<compile_context>
chip_gen: v7x
topology: tpu7x:2x2x1
jax: 0.10.0
libtpu: 0.0.40
codegen_flags: <defaults>
</compile_context>

<pallas_src>
import math

import jax
import jax.numpy as jnp
from jax import lax
from jax.experimental import pallas as pl
from jax.experimental.pallas import tpu as pltpu


def _round_up(x, m):
    return (x + m - 1) // m * m


def _make_kernel(C, TI, TJ, P_real):
    """Kernel factory; C / tile sizes / real pixel count are static."""

    def kernel(e_row_ref, lab_i_ref, e_col_ref, lab_j_ref, gts_ref,
               out_ref, acc_ref):
        # e_row_ref : (C, TI)  f32  errors for the i-block, all classes (rows)
        # lab_i_ref : (1, TI)  i32  labels for the i-block
        # e_col_ref : (TJ, C)  f32  errors for the j-block, all classes (cols)
        # lab_j_ref : (1, TJ)  i32  labels for the j-block
        # gts_ref   : (C,)     i32  per-class foreground totals (SMEM)
        # out_ref   : (C, TI)  f32  per-class loss products for this i-block
        # acc_ref   : (C, 8, TI) f32 scratch: row0 = rank, row1 = cum_fg (excl.)
        i_blk = pl.program_id(0)
        j_blk = pl.program_id(1)
        n_j = pl.num_programs(1)

        @pl.when(j_blk == 0)
        def _init():
            acc_ref[...] = jnp.zeros_like(acc_ref)

        e_rows = e_row_ref[...]            # (C, TI)
        lab_i = lab_i_ref[...]             # (1, TI)
        e_cols = e_col_ref[...]            # (TJ, C)
        lab_j = lab_j_ref[...]             # (1, TJ)

        # Global pixel indices: tie-break for the stable descending sort and
        # the padding mask.  Built once per grid step (shared by all classes).
        gi = i_blk * TI + lax.broadcasted_iota(jnp.int32, (1, TI), 1)   # (1, TI)
        gj = j_blk * TJ + lax.broadcasted_iota(jnp.int32, (TJ, 1), 0)   # (TJ, 1)
        tie = gj < gi                                                   # (TJ, TI)

        ones_row = jnp.ones((1, TJ), jnp.bfloat16)     # hoisted out of the loop
        zero_rows = jnp.zeros((6, TJ), jnp.bfloat16)

        for c in range(C):  # C is small & static -> trace-time unrolled
            err_i = e_rows[c:c + 1, :]                    # (1, TI)
            err_j = e_cols[:, c:c + 1]                    # (TJ, 1)
            fg_j = (lab_j == c).astype(jnp.bfloat16)      # (1, TJ)

            # before^T[b, a] = 1 iff j-element b precedes i-element a in the
            # stable descending sort of the errors.
            gt = err_j > err_i                            # (TJ, TI)
            eq = err_j == err_i
            before = (gt | (eq & tie)).astype(jnp.bfloat16)

            # One MXU matmul gives both reductions:
            #   row 0: rank contribution, row 1: cum_fg contribution.
            lhs = jnp.concatenate([ones_row, fg_j, zero_rows], axis=0)  # (8, TJ)
            part = jnp.dot(lhs, before, preferred_element_type=jnp.float32)
            acc_ref[c] = acc_ref[c] + part                # (8, TI), exact counts

        @pl.when(j_blk == n_j - 1)
        def _finalize():
            valid = (gi < P_real).astype(jnp.float32)     # (1, TI) padding mask
            rows = []
            for c in range(C):
                tot = acc_ref[c]                          # (8, TI)
                rank = tot[0:1, :]                        # sorted position of i
                cumfg_excl = tot[1:2, :]                  # fg among predecessors
                fg_i = (lab_i == c).astype(jnp.float32)   # (1, TI)
                err_i = e_rows[c:c + 1, :]                # (1, TI)
                gts_c = gts_ref[c].astype(jnp.float32)    # scalar

                cumfg = cumfg_excl + fg_i                 # inclusive cumsum(fg)
                inter = gts_c - cumfg
                union = gts_c + (rank + 1.0) - cumfg      # >= 1
                jac = 1.0 - inter / union
                inter_p = gts_c - cumfg_excl
                union_p = gts_c + rank - cumfg_excl
                jac_prev = jnp.where(rank >= 1.0,
                                     1.0 - inter_p / jnp.maximum(union_p, 1.0),
                                     0.0)
                grad = jac - jac_prev                     # lovasz_grad at rank_i
                rows.append(err_i * grad * valid)         # (1, TI)
            out_ref[...] = jnp.concatenate(rows, axis=0)  # (C, TI) lane-dense

    return kernel


def lovasz_softmax_loss(logits, labels):
    """Pallas TPU equivalent of LovaszSoftmaxLoss.forward(logits, labels)."""
    B, C, H, W = logits.shape
    P = B * H * W
    assert P < (1 << 24), "f32 rank/cum_fg counting is exact only up to 2^24"

    # --- O(P*C) prep in the wrapper (cheap): softmax, errors, fg totals. ----
    probas = jax.nn.softmax(logits.astype(jnp.float32), axis=1)          # (B,C,H,W)
    probas_pc = jnp.transpose(probas, (0, 2, 3, 1)).reshape(P, C)        # (P, C)
    labels_flat = labels.reshape(P).astype(jnp.int32)
    fg_bool = labels_flat[:, None] == jnp.arange(C, dtype=jnp.int32)[None, :]
    err_pc = jnp.abs(fg_bool.astype(jnp.float32) - probas_pc)            # (P, C)
    gts_i32 = jnp.sum(fg_bool, axis=0, dtype=jnp.int32)                  # (C,)

    # --- Tiling: i-blocks (parallel) x j-blocks (reduction). ----------------
    TI = min(256, _round_up(P, 128))
    TJ = min(512, _round_up(P, 128))
    P_pad = _round_up(P, TI * TJ // math.gcd(TI, TJ))
    pad = P_pad - P

    # Padding: error = -1 never precedes any real element (real errors >= 0);
    # label = C matches no class.  Padded i-rows are masked in the epilogue.
    err_pc_p = jnp.pad(err_pc, ((0, pad), (0, 0)), constant_values=-1.0)  # (P_pad, C)
    err_cp_p = err_pc_p.T                                # (C, P_pad) bitwise-identical values
    labels_row = jnp.pad(labels_flat, (0, pad),
                         constant_values=C).reshape(1, P_pad)

    n_i = P_pad // TI
    n_j = P_pad // TJ
    kernel = _make_kernel(C, TI, TJ, P)

    # VMEM budget derived from the tiled footprint (not hard-coded).
    vmem_est = (
        2 * 4 * (C * TI + TI + TJ * C + TJ)   # double-buffered input blocks
        + 2 * 4 * C * TI                      # output block (double-buffered)
        + 4 * C * 8 * TI                      # accumulator scratch
        + 16 * TI * TJ                        # bf16 'before' + masks + staging
    )
    vmem_limit = int(min(max(2 * vmem_est, 8 * 1024 * 1024), 32 * 1024 * 1024))

    out = pl.pallas_call(
        kernel,
        out_shape=jax.ShapeDtypeStruct((n_i, C, TI), jnp.float32),
        grid=(n_i, n_j),
        in_specs=[
            pl.BlockSpec((C, TI), lambda i, j: (0, i)),   # errors, i-block (rows)
            pl.BlockSpec((1, TI), lambda i, j: (0, i)),   # labels, i-block
            pl.BlockSpec((TJ, C), lambda i, j: (j, 0)),   # errors, j-block (cols)
            pl.BlockSpec((1, TJ), lambda i, j: (0, j)),   # labels, j-block
            pl.BlockSpec(memory_space=pltpu.MemorySpace.SMEM),  # per-class fg totals
        ],
        out_specs=pl.BlockSpec((None, C, TI), lambda i, j: (i, 0, 0)),
        scratch_shapes=[pltpu.VMEM((C, 8, TI), jnp.float32)],
        compiler_params=pltpu.CompilerParams(
            dimension_semantics=("parallel", "arbitrary"),
            vmem_limit_bytes=vmem_limit,
        ),
    )(err_cp_p, labels_row, err_pc_p, labels_row, gts_i32)

    # Tiny O(C) epilogue: mean over present classes.
    loss_pc = jnp.sum(out, axis=(0, 2))                    # (C,)
    present = (gts_i32 > 0).astype(jnp.float32)
    return jnp.sum(loss_pc * present) / jnp.maximum(jnp.sum(present), 1.0)


def _lovasz_softmax_ref(logits, labels):
    """Pure-JAX reference (mirrors the original PyTorch lovasz_softmax)."""
    B, C, H, W = logits.shape
    probas = jax.nn.softmax(logits.astype(jnp.float32), axis=1)
    probas = jnp.transpose(probas, (0, 2, 3, 1)).reshape(-1, C)
    lab = labels.reshape(-1)
    losses, present = [], []
    for c in range(C):
        fg = (lab == c).astype(jnp.float32)
        errors = jnp.abs(fg - probas[:, c])
        order = jnp.argsort(-errors)            # stable descending
        errors_sorted = errors[order]
        fg_sorted = fg[order]
        gts = jnp.sum(fg_sorted)
        inter = gts - jnp.cumsum(fg_sorted)
        union = gts + jnp.cumsum(1.0 - fg_sorted)
        jac = 1.0 - inter / union
        grad = jnp.concatenate([jac[:1], jac[1:] - jac[:-1]])
        losses.append(jnp.dot(errors_sorted, grad))
        present.append((gts > 0).astype(jnp.float32))
    losses = jnp.stack(losses)
    present = jnp.stack(present)
    return jnp.sum(losses * present) / jnp.maximum(jnp.sum(present), 1.0)


if __name__ == "__main__":
    key = jax.random.PRNGKey(0)
    k1, k2 = jax.random.split(key)
    B, C, H, W = 2, 4, 16, 16
    logits = jax.random.normal(k1, (B, C, H, W), dtype=jnp.float32)
    labels = jax.random.randint(k2, (B, H, W), 0, C, dtype=jnp.int32)

    loss = jax.jit(lovasz_softmax_loss)(logits, labels)
    loss = jax.block_until_ready(loss)

    ref = _lovasz_softmax_ref(logits, labels)
    assert jnp.allclose(loss, ref, rtol=1e-4, atol=1e-5), (loss, ref)
    print("KERNEL_OK")
</pallas_src>

<mosaic_0001>
module attributes {stable_mosaic.version = 11 : i64} {
  func.func @kernel(%arg0: i32, %arg1: i32, %arg2: memref<4x256xf32, #tpu.memory_space<vmem>>, %arg3: memref<1x256xi32, #tpu.memory_space<vmem>>, %arg4: memref<512x4xf32, #tpu.memory_space<vmem>>, %arg5: memref<1x512xi32, #tpu.memory_space<vmem>>, %arg6: memref<4xi32, #tpu.memory_space<smem>>, %arg7: memref<1x4x256xf32, #tpu.memory_space<vmem>>, %arg8: memref<4x8x256xf32, #tpu.memory_space<vmem>>) attributes {dimension_semantics = [#tpu.dimension_semantics<parallel>, #tpu.dimension_semantics<arbitrary>], iteration_bounds = array<i64: 2, 1>, scalar_prefetch = 0 : i64, scratch_operands = 1 : i64, tpu.core_type = #tpu.core_type<tc>, window_params = [{transform_indices = @transform_0, window_bounds = array<i64: 4, 256>}, {transform_indices = @transform_1, window_bounds = array<i64: 1, 256>}, {transform_indices = @transform_2, window_bounds = array<i64: 512, 4>}, {transform_indices = @transform_3, window_bounds = array<i64: 1, 512>}, {transform_indices = @transform_4, window_bounds = array<i64: 4>}, {transform_indices = @transform_5, window_bounds = array<i64: 1, 4, 256>}]} {
    %c0_i32 = arith.constant 0 : i32
    %0 = arith.cmpi eq, %arg1, %c0_i32 : i32
    %1 = arith.extui %0 : i1 to i32
    %c0_i32_0 = arith.constant 0 : i32
    %2 = arith.cmpi ne, %1, %c0_i32_0 : i32
    scf.if %2 {
      %cst_37 = arith.constant 0.000000e+00 : f32
      %127 = vector.broadcast %cst_37 : f32 to vector<4x8x256xf32>
      %c0_38 = arith.constant 0 : index
      %c0_39 = arith.constant 0 : index
      %c0_40 = arith.constant 0 : index
      %128 = vector.load %arg8[%c0_38, %c0_39, %c0_40] : memref<4x8x256xf32, #tpu.memory_space<vmem>>, vector<4x8x256xf32>
      tpu.vector_store %arg8[%c0_38, %c0_39, %c0_40], %127 {strides = array<i32>} : memref<4x8x256xf32, #tpu.memory_space<vmem>>, vector<4x8x256xf32>,
    } else {
    }
    %c0 = arith.constant 0 : index
    %c0_1 = arith.constant 0 : index
    %3 = vector.load %arg2[%c0, %c0_1] : memref<4x256xf32, #tpu.memory_space<vmem>>, vector<4x256xf32>
    %c0_2 = arith.constant 0 : index
    %c0_3 = arith.constant 0 : index
    %4 = vector.load %arg3[%c0_2, %c0_3] : memref<1x256xi32, #tpu.memory_space<vmem>>, vector<1x256xi32>
    %c0_4 = arith.constant 0 : index
    %c0_5 = arith.constant 0 : index
    %5 = vector.load %arg4[%c0_4, %c0_5] : memref<512x4xf32, #tpu.memory_space<vmem>>, vector<512x4xf32>
    %c0_6 = arith.constant 0 : index
    %c0_7 = arith.constant 0 : index
    %6 = vector.load %arg5[%c0_6, %c0_7] : memref<1x512xi32, #tpu.memory_space<vmem>>, vector<1x512xi32>
    %c256_i32 = arith.constant 256 : i32
    %7 = arith.muli %arg0, %c256_i32 : i32
    %8 = tpu.iota {dimensions = array<i32: 1>} : vector<1x256xi32>
    %9 = vector.broadcast %7 : i32 to vector<1x256xi32>
    %10 = arith.addi %9, %8 : vector<1x256xi32>
    %c512_i32 = arith.constant 512 : i32
    %11 = arith.muli %arg1, %c512_i32 : i32
    %12 = tpu.iota {dimensions = array<i32: 0>} : vector<512x1xi32>
    %13 = vector.broadcast %11 : i32 to vector<512x1xi32>
    %14 = arith.addi %13, %12 : vector<512x1xi32>
    %15 = vector.broadcast %14 : vector<512x1xi32> to vector<512x256xi32>
    %16 = vector.broadcast %10 : vector<1x256xi32> to vector<512x256xi32>
    %17 = arith.cmpi slt, %15, %16 : vector<512x256xi32>
    %cst = arith.constant 1.000000e+00 : bf16
    %18 = vector.broadcast %cst : bf16 to vector<1x512xbf16>
    %cst_8 = arith.constant 0.000000e+00 : bf16
    %19 = vector.broadcast %cst_8 : bf16 to vector<6x512xbf16>
    %20 = vector.extract_strided_slice %3 {offsets = [0, 0], sizes = [1, 256], strides = [1, 1]} : vector<4x256xf32> to vector<1x256xf32>
    %21 = vector.extract_strided_slice %5 {offsets = [0, 0], sizes = [512, 1], strides = [1, 1]} : vector<512x4xf32> to vector<512x1xf32>
    %c0_i32_9 = arith.constant 0 : i32
    %22 = vector.broadcast %c0_i32_9 : i32 to vector<1x512xi32>
    %23 = arith.cmpi eq, %6, %22 : vector<1x512xi32>
    %24 = arith.extui %23 : vector<1x512xi1> to vector<1x512xi32>
    %25 = arith.sitofp %24 : vector<1x512xi32> to vector<1x512xf32>
    %26 = arith.truncf %25 : vector<1x512xf32> to vector<1x512xbf16>
    %27 = vector.broadcast %21 : vector<512x1xf32> to vector<512x256xf32>
    %28 = vector.broadcast %20 : vector<1x256xf32> to vector<512x256xf32>
    %29 = arith.cmpf ogt, %27, %28 : vector<512x256xf32>
    %30 = vector.broadcast %21 : vector<512x1xf32> to vector<512x256xf32>
    %31 = vector.broadcast %20 : vector<1x256xf32> to vector<512x256xf32>
    %32 = arith.cmpf oeq, %30, %31 : vector<512x256xf32>
    %33 = arith.andi %32, %17 : vector<512x256xi1>
    %34 = arith.ori %29, %33 : vector<512x256xi1>
    %35 = arith.extui %34 : vector<512x256xi1> to vector<512x256xi32>
    %36 = arith.sitofp %35 : vector<512x256xi32> to vector<512x256xf32>
    %37 = arith.truncf %36 : vector<512x256xf32> to vector<512x256xbf16>
    %38 = tpu.concatenate %18, %26, %19 in 0 : vector<1x512xbf16>, vector<1x512xbf16>, vector<6x512xbf16> -> vector<8x512xbf16>
    %cst_10 = arith.constant dense<0.000000e+00> : vector<8x256xf32>
    %39 = tpu.matmul %38, %37, %cst_10 {dimension_numbers = #tpu.dot_dimension_numbers<[1], [0], [0], [1], [0, 0, 1, 1], [], []>} : vector<8x512xbf16>, vector<512x256xbf16>, vector<8x256xf32> -> vector<8x256xf32>
    %c0_11 = arith.constant 0 : index
    %c0_12 = arith.constant 0 : index
    %c0_13 = arith.constant 0 : index
    %40 = vector.load %arg8[%c0_11, %c0_12, %c0_13] : memref<4x8x256xf32, #tpu.memory_space<vmem>>, vector<1x8x256xf32>
    %41 = vector.shape_cast %40 : vector<1x8x256xf32> to vector<8x256xf32>
    %42 = arith.addf %41, %39 : vector<8x256xf32>
    %c0_14 = arith.constant 0 : index
    %c0_15 = arith.constant 0 : index
    %c0_16 = arith.constant 0 : index
    %43 = vector.load %arg8[%c0_14, %c0_15, %c0_16] : memref<4x8x256xf32, #tpu.memory_space<vmem>>, vector<1x8x256xf32>
    %44 = vector.shape_cast %43 : vector<1x8x256xf32> to vector<8x256xf32>
    %45 = vector.shape_cast %42 : vector<8x256xf32> to vector<1x8x256xf32>
    tpu.vector_store %arg8[%c0_14, %c0_15, %c0_16], %45 {strides = array<i32>} : memref<4x8x256xf32, #tpu.memory_space<vmem>>, vector<1x8x256xf32>,
    %46 = vector.extract_strided_slice %3 {offsets = [1, 0], sizes = [1, 256], strides = [1, 1]} : vector<4x256xf32> to vector<1x256xf32>
    %47 = vector.extract_strided_slice %5 {offsets = [0, 1], sizes = [512, 1], strides = [1, 1]} : vector<512x4xf32> to vector<512x1xf32>
    %c1_i32 = arith.constant 1 : i32
    %48 = vector.broadcast %c1_i32 : i32 to vector<1x512xi32>
    %49 = arith.cmpi eq, %6, %48 : vector<1x512xi32>
    %50 = arith.extui %49 : vector<1x512xi1> to vector<1x512xi32>
    %51 = arith.sitofp %50 : vector<1x512xi32> to vector<1x512xf32>
    %52 = arith.truncf %51 : vector<1x512xf32> to vector<1x512xbf16>
    %53 = vector.broadcast %47 : vector<512x1xf32> to vector<512x256xf32>
    %54 = vector.broadcast %46 : vector<1x256xf32> to vector<512x256xf32>
    %55 = arith.cmpf ogt, %53, %54 : vector<512x256xf32>
    %56 = vector.broadcast %47 : vector<512x1xf32> to vector<512x256xf32>
    %57 = vector.broadcast %46 : vector<1x256xf32> to vector<512x256xf32>
    %58 = arith.cmpf oeq, %56, %57 : vector<512x256xf32>
    %59 = arith.andi %58, %17 : vector<512x256xi1>
    %60 = arith.ori %55, %59 : vector<512x256xi1>
    %61 = arith.extui %60 : vector<512x256xi1> to vector<512x256xi32>
    %62 = arith.sitofp %61 : vector<512x256xi32> to vector<512x256xf32>
    %63 = arith.truncf %62 : vector<512x256xf32> to vector<512x256xbf16>
    %64 = tpu.concatenate %18, %52, %19 in 0 : vector<1x512xbf16>, vector<1x512xbf16>, vector<6x512xbf16> -> vector<8x512xbf16>
    %cst_17 = arith.constant dense<0.000000e+00> : vector<8x256xf32>
    %65 = tpu.matmul %64, %63, %cst_17 {dimension_numbers = #tpu.dot_dimension_numbers<[1], [0], [0], [1], [0, 0, 1, 1], [], []>} : vector<8x512xbf16>, vector<512x256xbf16>, vector<8x256xf32> -> vector<8x256xf32>
    %c1 = arith.constant 1 : index
    %c0_18 = arith.constant 0 : index
    %c0_19 = arith.constant 0 : index
    %66 = vector.load %arg8[%c1, %c0_18, %c0_19] : memref<4x8x256xf32, #tpu.memory_space<vmem>>, vector<1x8x256xf32>
    %67 = vector.shape_cast %66 : vector<1x8x256xf32> to vector<8x256xf32>
    %68 = arith.addf %67, %65 : vector<8x256xf32>
    %c1_20 = arith.constant 1 : index
    %c0_21 = arith.constant 0 : index
    %c0_22 = arith.constant 0 : index
    %69 = vector.load %arg8[%c1_20, %c0_21, %c0_22] : memref<4x8x256xf32, #tpu.memory_space<vmem>>, vector<1x8x256xf32>
    %70 = vector.shape_cast %69 : vector<1x8x256xf32> to vector<8x256xf32>
    %71 = vector.shape_cast %68 : vector<8x256xf32> to vector<1x8x256xf32>
    tpu.vector_store %arg8[%c1_20, %c0_21, %c0_22], %71 {strides = array<i32>} : memref<4x8x256xf32, #tpu.memory_space<vmem>>, vector<1x8x256xf32>,
    %72 = vector.extract_strided_slice %3 {offsets = [2, 0], sizes = [1, 256], strides = [1, 1]} : vector<4x256xf32> to vector<1x256xf32>
    %73 = vector.extract_strided_slice %5 {offsets = [0, 2], sizes = [512, 1], strides = [1, 1]} : vector<512x4xf32> to vector<512x1xf32>
    %c2_i32 = arith.constant 2 : i32
    %74 = vector.broadcast %c2_i32 : i32 to vector<1x512xi32>
    %75 = arith.cmpi eq, %6, %74 : vector<1x512xi32>
    %76 = arith.extui %75 : vector<1x512xi1> to vector<1x512xi32>
    %77 = arith.sitofp %76 : vector<1x512xi32> to vector<1x512xf32>
    %78 = arith.truncf %77 : vector<1x512xf32> to vector<1x512xbf16>
    %79 = vector.broadcast %73 : vector<512x1xf32> to vector<512x256xf32>
    %80 = vector.broadcast %72 : vector<1x256xf32> to vector<512x256xf32>
    %81 = arith.cmpf ogt, %79, %80 : vector<512x256xf32>
    %82 = vector.broadcast %73 : vector<512x1xf32> to vector<512x256xf32>
    %83 = vector.broadcast %72 : vector<1x256xf32> to vector<512x256xf32>
    %84 = arith.cmpf oeq, %82, %83 : vector<512x256xf32>
    %85 = arith.andi %84, %17 : vector<512x256xi1>
    %86 = arith.ori %81, %85 : vector<512x256xi1>
    %87 = arith.extui %86 : vector<512x256xi1> to vector<512x256xi32>
    %88 = arith.sitofp %87 : vector<512x256xi32> to vector<512x256xf32>
    %89 = arith.truncf %88 : vector<512x256xf32> to vector<512x256xbf16>
    %90 = tpu.concatenate %18, %78, %19 in 0 : vector<1x512xbf16>, vector<1x512xbf16>, vector<6x512xbf16> -> vector<8x512xbf16>
    %cst_23 = arith.constant dense<0.000000e+00> : vector<8x256xf32>
    %91 = tpu.matmul %90, %89, %cst_23 {dimension_numbers = #tpu.dot_dimension_numbers<[1], [0], [0], [1], [0, 0, 1, 1], [], []>} : vector<8x512xbf16>, vector<512x256xbf16>, vector<8x256xf32> -> vector<8x256xf32>
    %c2 = arith.constant 2 : index
    %c0_24 = arith.constant 0 : index
    %c0_25 = arith.constant 0 : index
    %92 = vector.load %arg8[%c2, %c0_24, %c0_25] : memref<4x8x256xf32, #tpu.memory_space<vmem>>, vector<1x8x256xf32>
    %93 = vector.shape_cast %92 : vector<1x8x256xf32> to vector<8x256xf32>
    %94 = arith.addf %93, %91 : vector<8x256xf32>
    %c2_26 = arith.constant 2 : index
    %c0_27 = arith.constant 0 : index
    %c0_28 = arith.constant 0 : index
    %95 = vector.load %arg8[%c2_26, %c0_27, %c0_28] : memref<4x8x256xf32, #tpu.memory_space<vmem>>, vector<1x8x256xf32>
    %96 = vector.shape_cast %95 : vector<1x8x256xf32> to vector<8x256xf32>
    %97 = vector.shape_cast %94 : vector<8x256xf32> to vector<1x8x256xf32>
    tpu.vector_store %arg8[%c2_26, %c0_27, %c0_28], %97 {strides = array<i32>} : memref<4x8x256xf32, #tpu.memory_space<vmem>>, vector<1x8x256xf32>,
    %98 = vector.extract_strided_slice %3 {offsets = [3, 0], sizes = [1, 256], strides = [1, 1]} : vector<4x256xf32> to vector<1x256xf32>
    %99 = vector.extract_strided_slice %5 {offsets = [0, 3], sizes = [512, 1], strides = [1, 1]} : vector<512x4xf32> to vector<512x1xf32>
    %c3_i32 = arith.constant 3 : i32
    %100 = vector.broadcast %c3_i32 : i32 to vector<1x512xi32>
    %101 = arith.cmpi eq, %6, %100 : vector<1x512xi32>
    %102 = arith.extui %101 : vector<1x512xi1> to vector<1x512xi32>
    %103 = arith.sitofp %102 : vector<1x512xi32> to vector<1x512xf32>
    %104 = arith.truncf %103 : vector<1x512xf32> to vector<1x512xbf16>
    %105 = vector.broadcast %99 : vector<512x1xf32> to vector<512x256xf32>
    %106 = vector.broadcast %98 : vector<1x256xf32> to vector<512x256xf32>
    %107 = arith.cmpf ogt, %105, %106 : vector<512x256xf32>
    %108 = vector.broadcast %99 : vector<512x1xf32> to vector<512x256xf32>
    %109 = vector.broadcast %98 : vector<1x256xf32> to vector<512x256xf32>
    %110 = arith.cmpf oeq, %108, %109 : vector<512x256xf32>
    %111 = arith.andi %110, %17 : vector<512x256xi1>
    %112 = arith.ori %107, %111 : vector<512x256xi1>
    %113 = arith.extui %112 : vector<512x256xi1> to vector<512x256xi32>
    %114 = arith.sitofp %113 : vector<512x256xi32> to vector<512x256xf32>
    %115 = arith.truncf %114 : vector<512x256xf32> to vector<512x256xbf16>
    %116 = tpu.concatenate %18, %104, %19 in 0 : vector<1x512xbf16>, vector<1x512xbf16>, vector<6x512xbf16> -> vector<8x512xbf16>
    %cst_29 = arith.constant dense<0.000000e+00> : vector<8x256xf32>
    %117 = tpu.matmul %116, %115, %cst_29 {dimension_numbers = #tpu.dot_dimension_numbers<[1], [0], [0], [1], [0, 0, 1, 1], [], []>} : vector<8x512xbf16>, vector<512x256xbf16>, vector<8x256xf32> -> vector<8x256xf32>
    %c3 = arith.constant 3 : index
    %c0_30 = arith.constant 0 : index
    %c0_31 = arith.constant 0 : index
    %118 = vector.load %arg8[%c3, %c0_30, %c0_31] : memref<4x8x256xf32, #tpu.memory_space<vmem>>, vector<1x8x256xf32>
    %119 = vector.shape_cast %118 : vector<1x8x256xf32> to vector<8x256xf32>
    %120 = arith.addf %119, %117 : vector<8x256xf32>
    %c3_32 = arith.constant 3 : index
    %c0_33 = arith.constant 0 : index
    %c0_34 = arith.constant 0 : index
    %121 = vector.load %arg8[%c3_32, %c0_33, %c0_34] : memref<4x8x256xf32, #tpu.memory_space<vmem>>, vector<1x8x256xf32>
    %122 = vector.shape_cast %121 : vector<1x8x256xf32> to vector<8x256xf32>
    %123 = vector.shape_cast %120 : vector<8x256xf32> to vector<1x8x256xf32>
    tpu.vector_store %arg8[%c3_32, %c0_33, %c0_34], %123 {strides = array<i32>} : memref<4x8x256xf32, #tpu.memory_space<vmem>>, vector<1x8x256xf32>,
    %c0_i32_35 = arith.constant 0 : i32
    %124 = arith.cmpi eq, %arg1, %c0_i32_35 : i32
    %125 = arith.extui %124 : i1 to i32
    %c0_i32_36 = arith.constant 0 : i32
    %126 = arith.cmpi ne, %125, %c0_i32_36 : i32
    scf.if %126 {
      %c512_i32_37 = arith.constant 512 : i32
      %127 = vector.broadcast %c512_i32_37 : i32 to vector<1x256xi32>
      %128 = arith.cmpi slt, %10, %127 : vector<1x256xi32>
      %129 = arith.extui %128 : vector<1x256xi1> to vector<1x256xi32>
      %130 = arith.sitofp %129 : vector<1x256xi32> to vector<1x256xf32>
      %c0_38 = arith.constant 0 : index
      %c0_39 = arith.constant 0 : index
      %c0_40 = arith.constant 0 : index
      %131 = vector.load %arg8[%c0_38, %c0_39, %c0_40] : memref<4x8x256xf32, #tpu.memory_space<vmem>>, vector<1x8x256xf32>
      %132 = vector.shape_cast %131 : vector<1x8x256xf32> to vector<8x256xf32>
      %133 = vector.extract_strided_slice %132 {offsets = [0, 0], sizes = [1, 256], strides = [1, 1]} : vector<8x256xf32> to vector<1x256xf32>
      %134 = vector.extract_strided_slice %132 {offsets = [1, 0], sizes = [1, 256], strides = [1, 1]} : vector<8x256xf32> to vector<1x256xf32>
      %c0_i32_41 = arith.constant 0 : i32
      %135 = vector.broadcast %c0_i32_41 : i32 to vector<1x256xi32>
      %136 = arith.cmpi eq, %4, %135 : vector<1x256xi32>
      %137 = arith.extui %136 : vector<1x256xi1> to vector<1x256xi32>
      %138 = arith.sitofp %137 : vector<1x256xi32> to vector<1x256xf32>
      %139 = vector.extract_strided_slice %3 {offsets = [0, 0], sizes = [1, 256], strides = [1, 1]} : vector<4x256xf32> to vector<1x256xf32>
      %c0_42 = arith.constant 0 : index
      %140 = memref.load %arg6[%c0_42] : memref<4xi32, #tpu.memory_space<smem>>
      %141 = arith.sitofp %140 : i32 to f32
      %142 = arith.addf %134, %138 : vector<1x256xf32>
      %143 = vector.broadcast %141 : f32 to vector<1x256xf32>
      %144 = arith.subf %143, %142 : vector<1x256xf32>
      %cst_43 = arith.constant 1.000000e+00 : f32
      %145 = vector.broadcast %cst_43 : f32 to vector<1x256xf32>
      %146 = arith.addf %133, %145 : vector<1x256xf32>
      %147 = vector.broadcast %141 : f32 to vector<1x256xf32>
      %148 = arith.addf %147, %146 : vector<1x256xf32>
      %149 = arith.subf %148, %142 : vector<1x256xf32>
      %150 = arith.divf %144, %149 : vector<1x256xf32>
      %cst_44 = arith.constant 1.000000e+00 : f32
      %151 = vector.broadcast %cst_44 : f32 to vector<1x256xf32>
      %152 = arith.subf %151, %150 : vector<1x256xf32>
      %153 = vector.broadcast %141 : f32 to vector<1x256xf32>
      %154 = arith.subf %153, %134 : vector<1x256xf32>
      %155 = vector.broadcast %141 : f32 to vector<1x256xf32>
      %156 = arith.addf %155, %133 : vector<1x256xf32>
      %157 = arith.subf %156, %134 : vector<1x256xf32>
      %cst_45 = arith.constant 1.000000e+00 : f32
      %158 = vector.broadcast %cst_45 : f32 to vector<1x256xf32>
      %159 = arith.cmpf oge, %133, %158 : vector<1x256xf32>
      %cst_46 = arith.constant 1.000000e+00 : f32
      %160 = vector.broadcast %cst_46 : f32 to vector<1x256xf32>
      %161 = arith.maximumf %157, %160 : vector<1x256xf32>
      %162 = arith.divf %154, %161 : vector<1x256xf32>
      %cst_47 = arith.constant 1.000000e+00 : f32
      %163 = vector.broadcast %cst_47 : f32 to vector<1x256xf32>
      %164 = arith.subf %163, %162 : vector<1x256xf32>
      %cst_48 = arith.constant 0.000000e+00 : f32
      %165 = vector.broadcast %cst_48 : f32 to vector<1x256xf32>
      %166 = arith.select %159, %164, %165 : vector<1x256xi1>, vector<1x256xf32>
      %167 = arith.subf %152, %166 : vector<1x256xf32>
      %168 = arith.mulf %139, %167 : vector<1x256xf32>
      %169 = arith.mulf %168, %130 : vector<1x256xf32>
      %c1_49 = arith.constant 1 : index
      %c0_50 = arith.constant 0 : index
      %c0_51 = arith.constant 0 : index
      %170 = vector.load %arg8[%c1_49, %c0_50, %c0_51] : memref<4x8x256xf32, #tpu.memory_space<vmem>>, vector<1x8x256xf32>
      %171 = vector.shape_cast %170 : vector<1x8x256xf32> to vector<8x256xf32>
      %172 = vector.extract_strided_slice %171 {offsets = [0, 0], sizes = [1, 256], strides = [1, 1]} : vector<8x256xf32> to vector<1x256xf32>
      %173 = vector.extract_strided_slice %171 {offsets = [1, 0], sizes = [1, 256], strides = [1, 1]} : vector<8x256xf32> to vector<1x256xf32>
      %c1_i32_52 = arith.constant 1 : i32
      %174 = vector.broadcast %c1_i32_52 : i32 to vector<1x256xi32>
      %175 = arith.cmpi eq, %4, %174 : vector<1x256xi32>
      %176 = arith.extui %175 : vector<1x256xi1> to vector<1x256xi32>
      %177 = arith.sitofp %176 : vector<1x256xi32> to vector<1x256xf32>
      %178 = vector.extract_strided_slice %3 {offsets = [1, 0], sizes = [1, 256], strides = [1, 1]} : vector<4x256xf32> to vector<1x256xf32>
      %c1_53 = arith.constant 1 : index
      %179 = memref.load %arg6[%c1_53] : memref<4xi32, #tpu.memory_space<smem>>
      %180 = arith.sitofp %179 : i32 to f32
      %181 = arith.addf %173, %177 : vector<1x256xf32>
      %182 = vector.broadcast %180 : f32 to vector<1x256xf32>
      %183 = arith.subf %182, %181 : vector<1x256xf32>
      %cst_54 = arith.constant 1.000000e+00 : f32
      %184 = vector.broadcast %cst_54 : f32 to vector<1x256xf32>
      %185 = arith.addf %172, %184 : vector<1x256xf32>
      %186 = vector.broadcast %180 : f32 to vector<1x256xf32>
      %187 = arith.addf %186, %185 : vector<1x256xf32>
      %188 = arith.subf %187, %181 : vector<1x256xf32>
      %189 = arith.divf %183, %188 : vector<1x256xf32>
      %cst_55 = arith.constant 1.000000e+00 : f32
      %190 = vector.broadcast %cst_55 : f32 to vector<1x256xf32>
      %191 = arith.subf %190, %189 : vector<1x256xf32>
      %192 = vector.broadcast %180 : f32 to vector<1x256xf32>
      %193 = arith.subf %192, %173 : vector<1x256xf32>
      %194 = vector.broadcast %180 : f32 to vector<1x256xf32>
      %195 = arith.addf %194, %172 : vector<1x256xf32>
      %196 = arith.subf %195, %173 : vector<1x256xf32>
      %cst_56 = arith.constant 1.000000e+00 : f32
      %197 = vector.broadcast %cst_56 : f32 to vector<1x256xf32>
      %198 = arith.cmpf oge, %172, %197 : vector<1x256xf32>
      %cst_57 = arith.constant 1.000000e+00 : f32
      %199 = vector.broadcast %cst_57 : f32 to vector<1x256xf32>
      %200 = arith.maximumf %196, %199 : vector<1x256xf32>
      %201 = arith.divf %193, %200 : vector<1x256xf32>
      %cst_58 = arith.constant 1.000000e+00 : f32
      %202 = vector.broadcast %cst_58 : f32 to vector<1x256xf32>
      %203 = arith.subf %202, %201 : vector<1x256xf32>
      %cst_59 = arith.constant 0.000000e+00 : f32
      %204 = vector.broadcast %cst_59 : f32 to vector<1x256xf32>
      %205 = arith.select %198, %203, %204 : vector<1x256xi1>, vector<1x256xf32>
      %206 = arith.subf %191, %205 : vector<1x256xf32>
      %207 = arith.mulf %178, %206 : vector<1x256xf32>
      %208 = arith.mulf %207, %130 : vector<1x256xf32>
      %c2_60 = arith.constant 2 : index
      %c0_61 = arith.constant 0 : index
      %c0_62 = arith.constant 0 : index
      %209 = vector.load %arg8[%c2_60, %c0_61, %c0_62] : memref<4x8x256xf32, #tpu.memory_space<vmem>>, vector<1x8x256xf32>
      %210 = vector.shape_cast %209 : vector<1x8x256xf32> to vector<8x256xf32>
      %211 = vector.extract_strided_slice %210 {offsets = [0, 0], sizes = [1, 256], strides = [1, 1]} : vector<8x256xf32> to vector<1x256xf32>
      %212 = vector.extract_strided_slice %210 {offsets = [1, 0], sizes = [1, 256], strides = [1, 1]} : vector<8x256xf32> to vector<1x256xf32>
      %c2_i32_63 = arith.constant 2 : i32
      %213 = vector.broadcast %c2_i32_63 : i32 to vector<1x256xi32>
      %214 = arith.cmpi eq, %4, %213 : vector<1x256xi32>
      %215 = arith.extui %214 : vector<1x256xi1> to vector<1x256xi32>
      %216 = arith.sitofp %215 : vector<1x256xi32> to vector<1x256xf32>
      %217 = vector.extract_strided_slice %3 {offsets = [2, 0], sizes = [1, 256], strides = [1, 1]} : vector<4x256xf32> to vector<1x256xf32>
      %c2_64 = arith.constant 2 : index
      %218 = memref.load %arg6[%c2_64] : memref<4xi32, #tpu.memory_space<smem>>
      %219 = arith.sitofp %218 : i32 to f32
      %220 = arith.addf %212, %216 : vector<1x256xf32>
      %221 = vector.broadcast %219 : f32 to vector<1x256xf32>
      %222 = arith.subf %221, %220 : vector<1x256xf32>
      %cst_65 = arith.constant 1.000000e+00 : f32
      %223 = vector.broadcast %cst_65 : f32 to vector<1x256xf32>
      %224 = arith.addf %211, %223 : vector<1x256xf32>
      %225 = vector.broadcast %219 : f32 to vector<1x256xf32>
      %226 = arith.addf %225, %224 : vector<1x256xf32>
      %227 = arith.subf %226, %220 : vector<1x256xf32>
      %228 = arith.divf %222, %227 : vector<1x256xf32>
      %cst_66 = arith.constant 1.000000e+00 : f32
      %229 = vector.broadcast %cst_66 : f32 to vector<1x256xf32>
      %230 = arith.subf %229, %228 : vector<1x256xf32>
      %231 = vector.broadcast %219 : f32 to vector<1x256xf32>
      %232 = arith.subf %231, %212 : vector<1x256xf32>
      %233 = vector.broadcast %219 : f32 to vector<1x256xf32>
      %234 = arith.addf %233, %211 : vector<1x256xf32>
      %235 = arith.subf %234, %212 : vector<1x256xf32>
      %cst_67 = arith.constant 1.000000e+00 : f32
      %236 = vector.broadcast %cst_67 : f32 to vector<1x256xf32>
      %237 = arith.cmpf oge, %211, %236 : vector<1x256xf32>
      %cst_68 = arith.constant 1.000000e+00 : f32
      %238 = vector.broadcast %cst_68 : f32 to vector<1x256xf32>
      %239 = arith.maximumf %235, %238 : vector<1x256xf32>
      %240 = arith.divf %232, %239 : vector<1x256xf32>
      %cst_69 = arith.constant 1.000000e+00 : f32
      %241 = vector.broadcast %cst_69 : f32 to vector<1x256xf32>
      %242 = arith.subf %241, %240 : vector<1x256xf32>
      %cst_70 = arith.constant 0.000000e+00 : f32
      %243 = vector.broadcast %cst_70 : f32 to vector<1x256xf32>
      %244 = arith.select %237, %242, %243 : vector<1x256xi1>, vector<1x256xf32>
      %245 = arith.subf %230, %244 : vector<1x256xf32>
      %246 = arith.mulf %217, %245 : vector<1x256xf32>
      %247 = arith.mulf %246, %130 : vector<1x256xf32>
      %c3_71 = arith.constant 3 : index
      %c0_72 = arith.constant 0 : index
      %c0_73 = arith.constant 0 : index
      %248 = vector.load %arg8[%c3_71, %c0_72, %c0_73] : memref<4x8x256xf32, #tpu.memory_space<vmem>>, vector<1x8x256xf32>
      %249 = vector.shape_cast %248 : vector<1x8x256xf32> to vector<8x256xf32>
      %250 = vector.extract_strided_slice %249 {offsets = [0, 0], sizes = [1, 256], strides = [1, 1]} : vector<8x256xf32> to vector<1x256xf32>
      %251 = vector.extract_strided_slice %249 {offsets = [1, 0], sizes = [1, 256], strides = [1, 1]} : vector<8x256xf32> to vector<1x256xf32>
      %c3_i32_74 = arith.constant 3 : i32
      %252 = vector.broadcast %c3_i32_74 : i32 to vector<1x256xi32>
      %253 = arith.cmpi eq, %4, %252 : vector<1x256xi32>
      %254 = arith.extui %253 : vector<1x256xi1> to vector<1x256xi32>
      %255 = arith.sitofp %254 : vector<1x256xi32> to vector<1x256xf32>
      %256 = vector.extract_strided_slice %3 {offsets = [3, 0], sizes = [1, 256], strides = [1, 1]} : vector<4x256xf32> to vector<1x256xf32>
      %c3_75 = arith.constant 3 : index
      %257 = memref.load %arg6[%c3_75] : memref<4xi32, #tpu.memory_space<smem>>
      %258 = arith.sitofp %257 : i32 to f32
      %259 = arith.addf %251, %255 : vector<1x256xf32>
      %260 = vector.broadcast %258 : f32 to vector<1x256xf32>
      %261 = arith.subf %260, %259 : vector<1x256xf32>
      %cst_76 = arith.constant 1.000000e+00 : f32
      %262 = vector.broadcast %cst_76 : f32 to vector<1x256xf32>
      %263 = arith.addf %250, %262 : vector<1x256xf32>
      %264 = vector.broadcast %258 : f32 to vector<1x256xf32>
      %265 = arith.addf %264, %263 : vector<1x256xf32>
      %266 = arith.subf %265, %259 : vector<1x256xf32>
      %267 = arith.divf %261, %266 : vector<1x256xf32>
      %cst_77 = arith.constant 1.000000e+00 : f32
      %268 = vector.broadcast %cst_77 : f32 to vector<1x256xf32>
      %269 = arith.subf %268, %267 : vector<1x256xf32>
      %270 = vector.broadcast %258 : f32 to vector<1x256xf32>
      %271 = arith.subf %270, %251 : vector<1x256xf32>
      %272 = vector.broadcast %258 : f32 to vector<1x256xf32>
      %273 = arith.addf %272, %250 : vector<1x256xf32>
      %274 = arith.subf %273, %251 : vector<1x256xf32>
      %cst_78 = arith.constant 1.000000e+00 : f32
      %275 = vector.broadcast %cst_78 : f32 to vector<1x256xf32>
      %276 = arith.cmpf oge, %250, %275 : vector<1x256xf32>
      %cst_79 = arith.constant 1.000000e+00 : f32
      %277 = vector.broadcast %cst_79 : f32 to vector<1x256xf32>
      %278 = arith.maximumf %274, %277 : vector<1x256xf32>
      %279 = arith.divf %271, %278 : vector<1x256xf32>
      %cst_80 = arith.constant 1.000000e+00 : f32
      %280 = vector.broadcast %cst_80 : f32 to vector<1x256xf32>
      %281 = arith.subf %280, %279 : vector<1x256xf32>
      %cst_81 = arith.constant 0.000000e+00 : f32
      %282 = vector.broadcast %cst_81 : f32 to vector<1x256xf32>
      %283 = arith.select %276, %281, %282 : vector<1x256xi1>, vector<1x256xf32>
      %284 = arith.subf %269, %283 : vector<1x256xf32>
      %285 = arith.mulf %256, %284 : vector<1x256xf32>
      %286 = arith.mulf %285, %130 : vector<1x256xf32>
      %287 = tpu.concatenate %169, %208, %247, %286 in 0 : vector<1x256xf32>, vector<1x256xf32>, vector<1x256xf32>, vector<1x256xf32> -> vector<4x256xf32>
      %c0_82 = arith.constant 0 : index
      %c0_83 = arith.constant 0 : index
      %c0_84 = arith.constant 0 : index
      %288 = vector.load %arg7[%c0_82, %c0_83, %c0_84] : memref<1x4x256xf32, #tpu.memory_space<vmem>>, vector<1x4x256xf32>
      %289 = vector.shape_cast %288 : vector<1x4x256xf32> to vector<4x256xf32>
      %290 = vector.shape_cast %287 : vector<4x256xf32> to vector<1x4x256xf32>
      tpu.vector_store %arg7[%c0_82, %c0_83, %c0_84], %290 {strides = array<i32>} : memref<1x4x256xf32, #tpu.memory_space<vmem>>, vector<1x4x256xf32>,
    } else {
    }
    return
  }
  func.func @transform_0(%arg0: i32, %arg1: i32) -> (i32, i32) {
    %c0_i32 = arith.constant 0 : i32
    %c0_i32_0 = arith.constant 0 : i32
    return %c0_i32, %arg0 : i32, i32
  }
  func.func @transform_1(%arg0: i32, %arg1: i32) -> (i32, i32) {
    %c0_i32 = arith.constant 0 : i32
    %c0_i32_0 = arith.constant 0 : i32
    return %c0_i32, %arg0 : i32, i32
  }
  func.func @transform_2(%arg0: i32, %arg1: i32) -> (i32, i32) {
    %c0_i32 = arith.constant 0 : i32
    %c0_i32_0 = arith.constant 0 : i32
    return %arg1, %c0_i32 : i32, i32
  }
  func.func @transform_3(%arg0: i32, %arg1: i32) -> (i32, i32) {
    %c0_i32 = arith.constant 0 : i32
    %c0_i32_0 = arith.constant 0 : i32
    return %c0_i32, %arg1 : i32, i32
  }
  func.func @transform_4(%arg0: i32, %arg1: i32) -> i32 {
    %c0_i32 = arith.constant 0 : i32
    %c0_i32_0 = arith.constant 0 : i32
    return %c0_i32 : i32
  }
  func.func @transform_5(%arg0: i32, %arg1: i32) -> (i32, i32, i32) {
    %c0_i32 = arith.constant 0 : i32
    %c0_i32_0 = arith.constant 0 : i32
    %c0_i32_1 = arith.constant 0 : i32
    return %arg0, %c0_i32, %c0_i32_0 : i32, i32, i32
  }
}

</mosaic_0001>

<bundles_post_ra>
// kernel: eq.8
= control target key start
LH: loop header
LB: loop body
LE: loop exit
PB: predicated region body
PF: predicated region fallthrough
CT: control target
= control target key end

     0   :  { %s67_s8 = smov 112   ;;  %s68_s11 = smov 80   ;;  %vm3_vm0 = vcmask 130048   ;;  %vm9_vm1 = vcmask 1048448   ;;  %vm15_vm2 = vcmask 917248   ;;  %vm21_vm3 = vcmask 786048   ;;  %s111_s0 = inlined_call_operand.vmem [shape: s32[2,16,16], index: 0, kind: input, shape index: {}]   ;;  %s112_s1 = inlined_call_operand.vmem [shape: s32[512], index: 1, kind: output, shape index: {}]  }
   0x1   :  { %v53_v0 = vld [vmem:[%s111_s0 + $0x7] ss:$8 sm:$0xf]   ;;  %v55_v1 = vld [vmem:[%s111_s0 + $0x5] ss:$8 sm:$0xf]  }
   0x2   :  { %7 = vrot.lane.b32.xlu0 %v53_v0, %s67_s8  ;;  %19 = vrot.lane.b32.xlu1 %v55_v1, %s68_s11  ;;  %v54_v2 = vld [vmem:[%s111_s0 + $0x6] ss:$8 sm:$0xf]   ;;  %v56_v3 = vld [vmem:[%s111_s0 + $0x4] ss:$8 sm:$0xf]  }
   0x3   :  { %s69_s16 = smov 96   ;;  %v2_v4 = vld [vmem:[%s111_s0] ss:$8 sm:$0xf]   ;;  %s70_s19 = smov 64   ;;  %vm27_vm4 = vcmask 654848  }
   0x4   :  { %v57_v5 = vld [vmem:[%s111_s0 + $0x3] ss:$8 sm:$0xf]   ;;  %4 = vst.msk [vmem:[#allocation0] sm:$0xf] %vm3_vm0, %v2_v4   ;;  %s71_s24 = smov 48  }
   0x5   :  { %v58_v6 = vld [vmem:[%s111_s0 + $0x2] ss:$8 sm:$0xf]   ;;  %s72_s25 = smov 32   ;;  %vm33_vm5 = vcmask 523648   ;;  %vm39_vm6 = vcmask 392448  }
   0x6   :  { %13 = vrot.lane.b32.xlu0 %v54_v2, %s69_s16  ;;  %25 = vrot.lane.b32.xlu1 %v56_v3, %s70_s19  ;;  %v59_v7 = vld [vmem:[%s111_s0 + $0x1] ss:$8 sm:$0xf]   ;;  %s73_s0 = smov 16   ;;  %vm45_vm7 = vcmask 261248  }
   0xa   :  { %31 = vrot.lane.b32.xlu0 %v57_v5, %s71_s24  ;;  %37 = vrot.lane.b32.xlu1 %v58_v6, %s72_s25 }
   0xe   :  { %43 = vrot.lane.b32.xlu0 %v59_v7, %s73_s0 }
  0x74   :  { %v8_v8 = vpop.permute.xlu0 %7   ;;  %v20_v9 = vpop.permute.xlu1 %19  }
  0x75   :  { %10 = vst.msk [vmem:[#allocation0] sm:$0xf] %vm9_vm1, %v8_v8  }
  0x78   :  { %v14_v10 = vpop.permute.xlu0 %13   ;;  %v26_v11 = vpop.permute.xlu1 %25  }
  0x79   :  { %16 = vst.msk [vmem:[#allocation0] sm:$0xf] %vm15_vm2, %v14_v10  }
  0x7a   :  { %22 = vst.msk [vmem:[#allocation0] sm:$0xf] %vm21_vm3, %v20_v9  }
  0x7b   :  { %28 = vst.msk [vmem:[#allocation0] sm:$0xf] %vm27_vm4, %v26_v11  }
  0x7c   :  { %v32_v12 = vpop.permute.xlu0 %31   ;;  %v38_v13 = vpop.permute.xlu1 %37  }
  0x7d   :  { %34 = vst.msk [vmem:[#allocation0] sm:$0xf] %vm33_vm5, %v32_v12  }
  0x7e   :  { %40 = vst.msk [vmem:[#allocation0] sm:$0xf] %vm39_vm6, %v38_v13  }
  0x80   :  { %v44_v14 = vpop.permute.xlu0 %43  }
  0x81   :  { %46 = vst.msk [vmem:[#allocation0] sm:$0xf] %vm45_vm7, %v44_v14  }
  0x88   :  { %v50_v15 = vld [vmem:[#allocation0] sm:$0xf] }
  0x89   :  { %52 = vst [vmem:[%s112_s1] sm:$0xf] %v50_v15 }

// kernel: lovasz_softmax_loss.1
= control target key start
LH: loop header
LB: loop body
LE: loop exit
PB: predicated region body
PF: predicated region fallthrough
CT: control target
= control target key end

     0   :  { %10 = vsyncpa [#allocation4], 0  ;;  %s7702_s18 = smov 0   ;;  %s7704_s19 = smov 0   ;;  %s13994_s0 = inlined_call_operand.vmem [shape: f32[4,512], index: 0, kind: input, shape index: {}]   ;;  %s13995_s1 = inlined_call_operand.vmem [shape: s32[1,512], index: 1, kind: input, shape index: {}, may-alias: {1,3}]   ;;  %s13996_s2 = inlined_call_operand.vmem [shape: f32[512,4], index: 2, kind: input, shape index: {}]   ;;  %s13997_s3 = inlined_call_operand.vmem [shape: s32[1,512], index: 3, kind: input, shape index: {}, may-alias: {1,3}]   ;;  %s13998_s4 = inlined_call_operand.vmem [shape: s32[4], index: 4, kind: input, shape index: {}]   ;;  %s13999_s5 = inlined_call_operand.vmem [shape: f32[2,4,256], index: 5, kind: output, shape index: {}]  }
   0x1   :  { %s7706_s20 = smov 0  }
   0x2 LB: > { %s6329_s21 = sadd.s32 4294967295, %s7663_s20   ;;  %s28_s22 = sadd.s32 1, %s7659_s19  ;;  %s7663_s20 = sphi %s7706_s20, %s16_s20   ;;  %s7659_s19 = sphi %s7704_s19, %s15174_s19   ;;  %s7655_s18 = sphi %s7702_s18, %s15173_s18  }
   0x3   : > { %p30_p0 = scmp.ge.s32.totalorder %s28_s22, 2  ;;  %p6331_p1 = scmp.ge.s32.totalorder %s7663_s20, 1 }
   0x4   : > { %p184_p2 = scmp.lt.s32.totalorder %s7663_s20, 3  ;;  %p7727_p4 = scmp.eq.s32.totalorder %s6329_s21, 0 }
   0x5   : > { %s15176_s22 = smov (%p30_p0, %s28_s22), 0  ;;  %s214_s27 = sshll.u32 %s13998_s4, 4  ;;  %s215_s27 = int_to_ptr.vmem [resolvable:$true] %s214_s27 }
   0x6   : > { %p7723_p3 = pnand %p6331_p1, %p184_p2  ;;  %s7622_s28 = scalar_lea.vmem %s215_s27, 16 }
   0x7   : > { %p7623_p7 = scmp.ne.s32.totalorder %s215_s27, %s7622_s28  ;;  %p7630_p11 = scmp.lt.s32.totalorder %s215_s27, %s215_s27 }
   0x8   : > { %p7421_p5 = pneg %p7723_p3  ;;  %p7631_p12 = scmp.lt.s32.totalorder %s7622_s28, %s7622_s28 }
   0xa   : > { %p7422_p6 = pnand %p7727_p4, %p7421_p5  ;;  %p7632_p13 = por %p7631_p12, %p7630_p11 }
   0xc   : > { %p7624_p8 = pneg %p7422_p6 }
   0xe   : > { %p7625_p9 = pnand %p7624_p8, %p7623_p7 }
  0x10   : > { %p7626_p10 = pneg %p7625_p9 }
  0x12   : > { %p7633_p0 = pnand %p7632_p13, %p7626_p10 }
  0x14   : > { %7636 = shalt.err (!%p7633_p0)
}
  0x15   : > { %s7665_s29 = smov [#allocation3]   ;;  %244 = sbr.rel (%p7723_p3) target bundleno = 1710 (0x6ae), region = 40 }
  0x16   : > { %7424 = dma.vmem_to_smem (!%p7422_p6), %s215_s27, 16, %s7665_s29, [#allocation4]  }
  0x1c   : > { %7650 = dma.done.wait (%p7727_p4), [#allocation4], 16  }
  0x1d   : > { %7652 = vsyncadd (%p7727_p4), [#allocation4], 4294967280 }
  0x1e   : > { %250 = sfence }
  0x1f   : > { %v7747_v0 = vld [vmem:[%s13996_s2 + $0x10] sm:$0xff]  ;;  %v7752_v1 = vld [vmem:[%s13996_s2] sm:$0xff]  ;;  %v7666_v2 = vmov 0   ;;  %v7759_v3 = vld [vmem:[%s13996_s2 + $0x18] sm:$0xff]  ;;  %s6338_s8 = sshll.u32 %s7655_s18, 1  ;;  %v395_v59 = vlaneseq  ;;  %s6343_s9 = sshll.u32 %s7655_s18, 8 }
  0x20   : > { %7459 = vset.pattern.permute.xlu1 %v7666_v2  ;;  %7458 = vset.pattern.permute.xlu0 %v7666_v2  ;;  %v7764_v4 = vld [vmem:[%s13996_s2 + $0x8] sm:$0xff]  ;;  %v7776_v6 = vld [vmem:[%s13996_s2 + $0x20] sm:$0xff]  ;;  %v7783_v7 = vld [vmem:[%s13996_s2 + $0x38] sm:$0xff]  ;;  %p287_p1 = scmp.lt.s32.totalorder %s6338_s8, 3  ;;  %s13076_s11 = sld [smem:[#allocation3]] }
  0x21   : > { %700 = vperm.xlu1 %7459, %v7747_v0   ;;  %690 = vperm.xlu0 %7458, %v7752_v1   ;;  %v7771_v5 = vld [vmem:[%s13996_s2 + $0x28] sm:$0xff]  ;;  %v7788_v8 = vld [vmem:[%s13996_s2 + $0x30] sm:$0xff]  ;;  %v7800_v10 = vld [vmem:[%s13996_s2 + $0x40] sm:$0xff]  ;;  %v8106_v62 = vshrl.u32 %v395_v59, 7  ;;  %v396_v63 = vand.u32 127, %v395_v59  ;;  %s13892_s15 = sld [smem:[#allocation3 + $0x3]] }
  0x22   : > { %v7795_v9 = vld [vmem:[%s13996_s2 + $0x48] sm:$0xff]  ;;  %v7807_v11 = vld [vmem:[%s13996_s2 + $0x58] sm:$0xff]  ;;  %v7812_v12 = vld [vmem:[%s13996_s2 + $0x50] sm:$0xff]  ;;  %s15178_s8 = smov (!%p287_p1, %s6338_s8), 3  ;;  %p308_p2 = scmp.lt.s32.totalorder %s7655_s18, 1 }
  0x23   : > { %v7819_v13 = vld [vmem:[%s13996_s2 + $0x68] sm:$0xff]  ;;  %v7824_v14 = vld [vmem:[%s13996_s2 + $0x60] sm:$0xff]  ;;  %v7831_v15 = vld [vmem:[%s13996_s2 + $0x78] sm:$0xff]  ;;  %s6339_s25 = sshll.u32 %s15178_s8, 2  ;;  %v397_v59 = vadd.s32 128, %v396_v63  ;;  %s295_s10 = scalar_lea.vmem %s13995_s1, %s15178_s8 }
  0x24   : > { %v7836_v16 = vld [vmem:[%s13996_s2 + $0x70] sm:$0xff]  ;;  %v7843_v17 = vld [vmem:[%s13996_s2 + $0x88] sm:$0xff]  ;;  %v7848_v18 = vld [vmem:[%s13996_s2 + $0x80] sm:$0xff]  ;;  %s8113_s28 = scalar_lea.vmem %s13994_s0, %s6339_s25  ;;  %s13117_s8 = sld [smem:[#allocation3 + $0x1]] }
  0x25   : > { %705 = vperm.xlu1 %7459, %v7759_v3   ;;  %695 = vperm.xlu0 %7458, %v7764_v4   ;;  %v7855_v19 = vld [vmem:[%s13996_s2 + $0x98] sm:$0xff]  ;;  %v7860_v20 = vld [vmem:[%s13996_s2 + $0x90] sm:$0xff]  ;;  %v7867_v21 = vld [vmem:[%s13996_s2 + $0xa8] sm:$0xff]  ;;  %s15180_s18 = smov (!%p308_p2, %s7655_s18), 1 }
  0x26   : > { %v7872_v22 = vld [vmem:[%s13996_s2 + $0xa0] sm:$0xff]  ;;  %v7879_v23 = vld [vmem:[%s13996_s2 + $0xb8] sm:$0xff]  ;;  %v7884_v24 = vld [vmem:[%s13996_s2 + $0xb0] sm:$0xff]  ;;  %s5764_s12 = scvt.s32.f32 %s13076_s11  ;;  %s7400_s17 = sshll.u32 %s15180_s18, 3 }
  0x27   : > { %v7891_v25 = vld [vmem:[%s13996_s2 + $0xc8] sm:$0xff]  ;;  %v7896_v26 = vld [vmem:[%s13996_s2 + $0xc0] sm:$0xff]  ;;  %v7903_v27 = vld [vmem:[%s13996_s2 + $0xd8] sm:$0xff]  ;;  %s6066_s16 = scvt.s32.f32 %s13892_s15  ;;  %s312_s24 = scalar_lea.vmem %s13999_s5, %s7400_s17 }
  0x28   : > { %v7908_v28 = vld [vmem:[%s13996_s2 + $0xd0] sm:$0xff]  ;;  %v7915_v29 = vld [vmem:[%s13996_s2 + $0xe8] sm:$0xff]  ;;  %v7920_v30 = vld [vmem:[%s13996_s2 + $0xe0] sm:$0xff] }
  0x29   : > { %715 = vperm.xlu1 %7459, %v7771_v5   ;;  %710 = vperm.xlu0 %7458, %v7776_v6   ;;  %v7927_v31 = vld [vmem:[%s13996_s2 + $0xf8] sm:$0xff]  ;;  %v7932_v32 = vld [vmem:[%s13996_s2 + $0xf0] sm:$0xff]  ;;  %v7939_v33 = vld [vmem:[%s13996_s2 + $0x108] sm:$0xff] }
  0x2a   : > { %v7944_v34 = vld [vmem:[%s13996_s2 + $0x100] sm:$0xff]  ;;  %v7951_v35 = vld [vmem:[%s13996_s2 + $0x118] sm:$0xff]  ;;  %v7956_v36 = vld [vmem:[%s13996_s2 + $0x110] sm:$0xff]  ;;  %s5867_s13 = scvt.s32.f32 %s13117_s8 }
  0x2b   : > { %v7963_v37 = vld [vmem:[%s13996_s2 + $0x128] sm:$0xff]  ;;  %v7968_v38 = vld [vmem:[%s13996_s2 + $0x120] sm:$0xff]  ;;  %v7975_v39 = vld [vmem:[%s13996_s2 + $0x138] sm:$0xff] }
  0x2c   : > { %v7980_v40 = vld [vmem:[%s13996_s2 + $0x130] sm:$0xff]  ;;  %v7987_v41 = vld [vmem:[%s13996_s2 + $0x148] sm:$0xff]  ;;  %v7992_v42 = vld [vmem:[%s13996_s2 + $0x140] sm:$0xff] }
  0x2d   : > { %725 = vperm.xlu1 %7459, %v7783_v7   ;;  %720 = vperm.xlu0 %7458, %v7788_v8   ;;  %v7999_v43 = vld [vmem:[%s13996_s2 + $0x158] sm:$0xff]  ;;  %v8004_v44 = vld [vmem:[%s13996_s2 + $0x150] sm:$0xff]  ;;  %v8011_v45 = vld [vmem:[%s13996_s2 + $0x168] sm:$0xff] }
  0x2e   : > { %v8016_v46 = vld [vmem:[%s13996_s2 + $0x160] sm:$0xff]  ;;  %v8023_v47 = vld [vmem:[%s13996_s2 + $0x178] sm:$0xff]  ;;  %v8028_v48 = vld [vmem:[%s13996_s2 + $0x170] sm:$0xff] }
  0x2f   : > { %v8035_v49 = vld [vmem:[%s13996_s2 + $0x188] sm:$0xff]  ;;  %v8040_v50 = vld [vmem:[%s13996_s2 + $0x180] sm:$0xff]  ;;  %v8047_v51 = vld [vmem:[%s13996_s2 + $0x198] sm:$0xff] }
  0x30   : > { %14325 = vst [vmem:[#allocation6_spill] sm:$0xff] %v8035_v49  ;;  %14326 = vst [vmem:[#allocation7_spill] sm:$0xff] %v8047_v51  ;;  %v8052_v52 = vld [vmem:[%s13996_s2 + $0x190] sm:$0xff]  ;;  %v8059_v53 = vld [vmem:[%s13996_s2 + $0x1a8] sm:$0xff] }
  0x31   : > { %735 = vperm.xlu1 %7459, %v7795_v9   ;;  %730 = vperm.xlu0 %7458, %v7800_v10   ;;  %14327 = vst [vmem:[#allocation8_spill] sm:$0xff] %v8052_v52  ;;  %14328 = vst [vmem:[#allocation9_spill] sm:$0xff] %v8059_v53  ;;  %v8064_v54 = vld [vmem:[%s13996_s2 + $0x1a0] sm:$0xff]  ;;  %v8072_v55 = vld [vmem:[%s13996_s2 + $0x1b8] sm:$0xff] }
  0x32   : > { %14329 = vst [vmem:[#allocation10_spill] sm:$0xff] %v8064_v54  ;;  %14330 = vst [vmem:[#allocation11_spill] sm:$0xff] %v8072_v55  ;;  %v8077_v56 = vld [vmem:[%s13996_s2 + $0x1b0] sm:$0xff]  ;;  %v8084_v57 = vld [vmem:[%s13996_s2 + $0x1c8] sm:$0xff] }
  0x33   : > { %14331 = vst [vmem:[#allocation12_spill] sm:$0xff] %v8077_v56  ;;  %14332 = vst [vmem:[#allocation13_spill] sm:$0xff] %v8084_v57  ;;  %v8089_v58 = vld [vmem:[%s13996_s2 + $0x1c0] sm:$0xff]  ;;  %v8098_v60 = vld [vmem:[%s13996_s2 + $0x1d8] sm:$0xff] }
  0x34   : > { %14333 = vst [vmem:[#allocation14_spill] sm:$0xff] %v8089_v58  ;;  %14334 = vst [vmem:[#allocation15_spill] sm:$0xff] %v8098_v60  ;;  %v8103_v61 = vld [vmem:[%s13996_s2 + $0x1d0] sm:$0xff]  ;;  %v8118_v2 = vld [vmem:[%s13996_s2 + $0x1e8] sm:$0xff] }
  0x35   : > { %745 = vperm.xlu1 %7459, %v7807_v11   ;;  %740 = vperm.xlu0 %7458, %v7812_v12   ;;  %14335 = vst [vmem:[#allocation16_spill] sm:$0xff] %v8103_v61  ;;  %14336 = vst [vmem:[#allocation17_spill] sm:$0xff] %v8118_v2 }
  0x39   : > { %755 = vperm.xlu1 %7459, %v7819_v13   ;;  %750 = vperm.xlu0 %7458, %v7824_v14  }
  0x3d   : > { %765 = vperm.xlu1 %7459, %v7831_v15   ;;  %760 = vperm.xlu0 %7458, %v7836_v16  }
  0x41   : > { %775 = vperm.xlu1 %7459, %v7843_v17   ;;  %770 = vperm.xlu0 %7458, %v7848_v18  }
  0x45   : > { %785 = vperm.xlu1 %7459, %v7855_v19   ;;  %780 = vperm.xlu0 %7458, %v7860_v20  }
  0x49   : > { %795 = vperm.xlu1 %7459, %v7867_v21   ;;  %790 = vperm.xlu0 %7458, %v7872_v22  }
  0x4d   : > { %805 = vperm.xlu1 %7459, %v7879_v23   ;;  %800 = vperm.xlu0 %7458, %v7884_v24  }
  0x51   : > { %815 = vperm.xlu1 %7459, %v7891_v25   ;;  %810 = vperm.xlu0 %7458, %v7896_v26  }
  0x55   : > { %825 = vperm.xlu1 %7459, %v7903_v27   ;;  %820 = vperm.xlu0 %7458, %v7908_v28  }
  0x59   : > { %835 = vperm.xlu1 %7459, %v7915_v29   ;;  %830 = vperm.xlu0 %7458, %v7920_v30  }
  0x5d   : > { %845 = vperm.xlu1 %7459, %v7927_v31   ;;  %840 = vperm.xlu0 %7458, %v7932_v32  }
  0x61   : > { %855 = vperm.xlu1 %7459, %v7939_v33   ;;  %850 = vperm.xlu0 %7458, %v7944_v34  }
  0x65   : > { %865 = vperm.xlu1 %7459, %v7951_v35   ;;  %860 = vperm.xlu0 %7458, %v7956_v36  }
  0x69   : > { %875 = vperm.xlu1 %7459, %v7963_v37   ;;  %870 = vperm.xlu0 %7458, %v7968_v38  }
  0x6d   : > { %885 = vperm.xlu1 %7459, %v7975_v39   ;;  %880 = vperm.xlu0 %7458, %v7980_v40  }
  0x71   : > { %895 = vperm.xlu1 %7459, %v7987_v41   ;;  %890 = vperm.xlu0 %7458, %v7992_v42  }
  0x75   : > { %905 = vperm.xlu1 %7459, %v7999_v43   ;;  %900 = vperm.xlu0 %7458, %v8004_v44  }
  0x79   : > { %915 = vperm.xlu1 %7459, %v8011_v45   ;;  %910 = vperm.xlu0 %7458, %v8016_v46  }
  0x7d   : > { %925 = vperm.xlu1 %7459, %v8023_v47   ;;  %920 = vperm.xlu0 %7458, %v8028_v48  }
  0x81   : > { %935 = vperm.xlu1 %7459, %v8035_v49   ;;  %930 = vperm.xlu0 %7458, %v8040_v50  }
  0x85   : > { %945 = vperm.xlu1 %7459, %v8047_v51   ;;  %940 = vperm.xlu0 %7458, %v8052_v52  }
  0x89   : > { %955 = vperm.xlu1 %7459, %v8059_v53   ;;  %950 = vperm.xlu0 %7458, %v8064_v54   ;;  %v14341_v53 = vsub.s32 4, %v8106_v62 }
  0x8d   : > { %965 = vperm.xlu1 %7459, %v8072_v55   ;;  %960 = vperm.xlu0 %7458, %v8077_v56   ;;  %v8136_v55 = vld [vmem:[%s13996_s2 + $0x1f8] sm:$0xff]  ;;  %v8141_v56 = vld [vmem:[%s13996_s2 + $0x1f0] sm:$0xff] }
  0x8e   : > { %14339 = vst [vmem:[#allocation20_spill] sm:$0xff] %v8136_v55  ;;  %14340 = vst [vmem:[#allocation21_spill] sm:$0xff] %v8141_v56 }
  0x91   : > { %975 = vperm.xlu1 %7459, %v8084_v57   ;;  %970 = vperm.xlu0 %7458, %v8089_v58   ;;  %v8123_v57 = vld [vmem:[%s13996_s2 + $0x1e0] sm:$0xff]  ;;  %v8129_v58 = vsub.s32 0, %v8106_v62 }
  0x92   : > { %14337 = vst [vmem:[#allocation18_spill] sm:$0xff] %v8123_v57 }
  0x93   : > { %14338 = vst [vmem:[#allocation19_spill] sm:$0xff] %v8129_v58 }
  0x95   : > { %985 = vperm.xlu1 %7459, %v8098_v60   ;;  %980 = vperm.xlu0 %7458, %v8103_v61   ;;  %v327_v61 = vld [vmem:[%s8113_s28] sm:$0xff]  ;;  %v398_v60 = vstv %s6343_s9 }
  0x96   : > { %v1016_v54 = vrot.slane %v327_v61, %v14341_v53  ;;  %v1012_v51 = vrot.slane %v327_v61, %v8129_v58  ;;  %v8158_v49 = vadd.s32 %v398_v60, %v396_v63  ;;  %v14368_v63 = vld [vmem:[#allocation11_spill] sm:$0xff] }
  0x98   : > { %v8156_v52 = vrot.slane %v1016_v54, %v8129_v58  ;;  %v8161_v61 = vrot.slane %v1012_v51, %v8129_v58  ;;  %vm14019_vm3 = vcmp.lt.s32.totalorder %v8106_v62, %v8158_v49  ;;  %v8655_v51 = vadd.s32 192, %v8106_v62 }
  0x99   : > { %995 = vperm.xlu1 %7459, %v8118_v2   ;;  %990 = vperm.xlu0 %7458, %v8123_v57   ;;  %v8148_v2 = vadd.s32 %v398_v60, %v397_v59  ;;  %v8151_v57 = vadd.s32 8, %v8106_v62 }
  0x9b   : > { %vm14246_vm0 = vcmp.lt.s32.totalorder %v8106_v62, %v8148_v2  ;;  %vm14080_vm7 = vcmp.lt.s32.totalorder %v8151_v57, %v8148_v2  ;;  %vm14015_vm14 = vcmp.lt.s32.totalorder %v8151_v57, %v8158_v49 }
  0x9d   : > { %1005 = vperm.xlu1 %7459, %v8136_v55   ;;  %1000 = vperm.xlu0 %7458, %v8141_v56   ;;  %v7667_v56 = vmov 1  }
  0xa0   : > { %v691_v53 = vpop.permute.xlu0 %690  ;;  %v8163_v55 = vpop.permute.xlu1 %700 }
  0xa1   : > { %7461 = vset.pattern.permute.xlu1 %v7667_v56  ;;  %7460 = vset.pattern.permute.xlu0 %v7667_v56  ;;  %vm1028_vm1 = vcmp.gt.f32.partialorder %v691_v53, %v8156_v52  ;;  %vm1156_vm2 = vcmp.eq.f32.partialorder %v691_v53, %v8156_v52  ;;  %vm1027_vm5 = vcmp.gt.f32.partialorder %v691_v53, %v8161_v61  ;;  %v8203_v56 = vadd.s32 24, %v8106_v62 }
  0xa2   : > { %2017 = vperm.xlu1 %7461, %v7764_v4   ;;  %2013 = vperm.xlu0 %7460, %v7752_v1   ;;  %vm1284_vm4 = vmand %vm1156_vm2, %vm14246_vm0  ;;  %vm1155_vm6 = vcmp.eq.f32.partialorder %v691_v53, %v8161_v61  ;;  %v8192_v4 = vadd.s32 16, %v8106_v62  ;;  %v14369_v53 = vld [vmem:[#allocation14_spill] sm:$0xff] }
  0xa3   : > { %vm8178_vm8 = vmor %vm1028_vm1, %vm1284_vm4 }
  0xa4   : > { %v696_v54 = vpop.permute.xlu0 %695  ;;  %vm1283_vm9 = vmand %vm1155_vm6, %vm14019_vm3  ;;  %v706_v60 = vpop.permute.xlu1 %705  ;;  %vm14017_vm6 = vcmp.lt.s32.totalorder %v8192_v4, %v8148_v2 }
  0xa5   : > { %vm1030_vm10 = vcmp.gt.f32.partialorder %v696_v54, %v8156_v52  ;;  %vm1158_vm11 = vcmp.eq.f32.partialorder %v696_v54, %v8156_v52  ;;  %vm8187_vm12 = vmor %vm1027_vm5, %vm1283_vm9  ;;  %vm1157_vm15 = vcmp.eq.f32.partialorder %v696_v54, %v8161_v61  ;;  %vm1029_vm2 = vcmp.gt.f32.partialorder %v696_v54, %v8161_v61  ;;  %v14371_v54 = vld [vmem:[#allocation13_spill] sm:$0xff] }
  0xa6   : > { %2021 = vperm.xlu1 %7461, %v7747_v0   ;;  %2025 = vperm.xlu0 %7460, %v7759_v3   ;;  %vm1286_vm13 = vmand %vm1158_vm11, %vm14080_vm7  ;;  %v14092_v0 = vmov 1.0|1.0   ;;  %vm1160_vm9 = vcmp.eq.f32.partialorder %v8163_v55, %v8156_v52  ;;  %vm1162_vm11 = vcmp.eq.f32.partialorder %v706_v60, %v8156_v52  ;;  %v8243_v3 = vadd.s32 32, %v8106_v62 }
  0xa7   : > { %vm1414_vm1 = vmor %vm1030_vm10, %vm1286_vm13 }
  0xa8   : > { %vm6473_vm4 = vmpackc.low %vm1414_vm1, %vm8178_vm8  ;;  %vm14016_vm8 = vcmp.lt.s32.totalorder %v8203_v56, %v8148_v2  ;;  %vm1034_vm1 = vcmp.gt.f32.partialorder %v706_v60, %v8156_v52 }
  0xa9   : > { %6474 = vmatprep.subr.msk.bf16.mxu0 %vm6473_vm4, %v14092_v0  ;;  %vm1285_vm5 = vmand %vm1157_vm15, %vm14015_vm14  ;;  %vm1032_vm15 = vcmp.gt.f32.partialorder %v8163_v55, %v8156_v52  ;;  %vm14022_vm14 = vcmp.lt.s32.totalorder %v8203_v56, %v8158_v49 }
  0xaa   : > { %2029 = vperm.xlu1 %7461, %v7776_v6   ;;  %2033 = vperm.xlu0 %7460, %v7771_v5   ;;  %vm1413_vm10 = vmor %vm1029_vm2, %vm1285_vm5  ;;  %v711_v5 = vpop.permute.xlu0 %710  ;;  %v8248_v6 = vadd.s32 40, %v8106_v62 }
  0xab   : > { %vm6475_vm13 = vmpackc.low %vm1413_vm10, %vm8187_vm12  ;;  %vm14018_vm12 = vcmp.lt.s32.totalorder %v8192_v4, %v8158_v49  ;;  %vm1159_vm10 = vcmp.eq.f32.partialorder %v8163_v55, %v8161_v61  ;;  %vm1036_vm3 = vcmp.gt.f32.partialorder %v711_v5, %v8156_v52 }
  0xac   : > { %6476 = vmatpush1.bf16.msk.msra.mxu0 %vm6475_vm13, %v14092_v0  ;;  %vm1288_vm4 = vmand %vm1160_vm9, %vm14017_vm6  ;;  %vm1161_vm9 = vcmp.eq.f32.partialorder %v706_v60, %v8161_v61  ;;  %vm14021_vm6 = vcmp.lt.s32.totalorder %v8248_v6, %v8148_v2 }
  0xad   : > { %vm1290_vm2 = vmand %vm1162_vm11, %vm14016_vm8 }
  0xae   : > { %vm1416_vm5 = vmor %vm1032_vm15, %vm1288_vm4  ;;  %2037 = vperm.xlu1 %7461, %v7788_v8   ;;  %2041 = vperm.xlu0 %7460, %v7783_v7   ;;  %vm1031_vm15 = vcmp.gt.f32.partialorder %v8163_v55, %v8161_v61  ;;  %v716_v7 = vpop.permute.xlu1 %715  ;;  %v8284_v8 = vadd.s32 48, %v8106_v62  ;;  %v14367_v55 = vld [vmem:[#allocation12_spill] sm:$0xff] }
  0xaf   : > { %vm1418_vm13 = vmor %vm1034_vm1, %vm1290_vm2  ;;  %vm1033_vm1 = vcmp.gt.f32.partialorder %v706_v60, %v8161_v61  ;;  %v8662_v60 = vadd.s32 200, %v8106_v62 }
  0xb0   : > { %vm6477_vm11 = vmpackc.low %vm1418_vm13, %vm1416_vm5  ;;  %vm14020_vm13 = vcmp.lt.s32.totalorder %v8243_v3, %v8148_v2 }
  0xb1   : > { %6478 = vmatprep.subr.msk.bf16.mxu0 %vm6477_vm11, %v14092_v0  ;;  %vm1287_vm4 = vmand %vm1159_vm10, %vm14018_vm12  ;;  %vm1164_vm11 = vcmp.eq.f32.partialorder %v711_v5, %v8156_v52  ;;  %vm1166_vm10 = vcmp.eq.f32.partialorder %v716_v7, %v8156_v52 }
  0xb2   : > { %vm1289_vm2 = vmand %vm1161_vm9, %vm14022_vm14  ;;  %2045 = vperm.xlu1 %7461, %v7800_v10   ;;  %2049 = vperm.xlu0 %7460, %v7795_v9   ;;  %vm1038_vm9 = vcmp.gt.f32.partialorder %v716_v7, %v8156_v52  ;;  %v721_v9 = vpop.permute.xlu0 %720  ;;  %v8288_v10 = vadd.s32 56, %v8106_v62 }
  0xb3   : > { %vm1415_vm5 = vmor %vm1031_vm15, %vm1287_vm4 }
  0xb4   : > { %vm1417_vm8 = vmor %vm1033_vm1, %vm1289_vm2 }
  0xb5   : > { %vm6479_vm12 = vmpackc.low %vm1417_vm8, %vm1415_vm5  ;;  %vm14023_vm8 = vcmp.lt.s32.totalorder %v8243_v3, %v8158_v49  ;;  %vm14024_vm5 = vcmp.lt.s32.totalorder %v8248_v6, %v8158_v49 }
  0xb6   : > { %6480 = vmatpush1.bf16.msk.msra.mxu0 %vm6479_vm12, %v14092_v0  ;;  %vm1292_vm15 = vmand %vm1164_vm11, %vm14020_vm13  ;;  %2053 = vperm.xlu1 %7461, %v7812_v12   ;;  %vm1163_vm12 = vcmp.eq.f32.partialorder %v711_v5, %v8161_v61  ;;  %vm1165_vm11 = vcmp.eq.f32.partialorder %v716_v7, %v8161_v61  ;;  %v8325_v12 = vadd.s32 64, %v8106_v62 }
  0xb7   : > { %vm1294_vm1 = vmand %vm1166_vm10, %vm14021_vm6  ;;  %2057 = vperm.xlu0 %7460, %v7807_v11   ;;  %vm1035_vm10 = vcmp.gt.f32.partialorder %v711_v5, %v8161_v61  ;;  %v726_v11 = vpop.permute.xlu1 %725  ;;  %v14373_v5 = vld [vmem:[#allocation16_spill] sm:$0xff] }
  0xb8   : > { %vm1420_vm4 = vmor %vm1036_vm3, %vm1292_vm15  ;;  %vm1037_vm3 = vcmp.gt.f32.partialorder %v716_v7, %v8161_v61  ;;  %vm1170_vm14 = vcmp.eq.f32.partialorder %v726_v11, %v8156_v52  ;;  %14346 = vst [vmem:[#allocation22_spill] sm:$0xff] %v8325_v12  ;;  %v14374_v7 = vld [vmem:[#allocation15_spill] sm:$0xff] }
  0xb9   : > { %vm1422_vm2 = vmor %vm1038_vm9, %vm1294_vm1 }
  0xba   : > { %vm6481_vm13 = vmpackc.low %vm1422_vm2, %vm1420_vm4  ;;  %2061 = vperm.xlu1 %7461, %v7824_v14   ;;  %vm14027_vm4 = vcmp.lt.s32.totalorder %v8284_v8, %v8148_v2  ;;  %vm1168_vm2 = vcmp.eq.f32.partialorder %v721_v9, %v8156_v52  ;;  %v8330_v14 = vadd.s32 72, %v8106_v62 }
  0xbb   : > { %6482 = vmatprep.subr.msk.bf16.mxu0 %vm6481_vm13, %v14092_v0  ;;  %vm1291_vm9 = vmand %vm1163_vm12, %vm14023_vm8  ;;  %2065 = vperm.xlu0 %7460, %v7819_v13   ;;  %vm14025_vm13 = vcmp.lt.s32.totalorder %v8288_v10, %v8148_v2  ;;  %vm1040_vm8 = vcmp.gt.f32.partialorder %v721_v9, %v8156_v52  ;;  %v731_v13 = vpop.permute.xlu0 %730 }
  0xbc   : > { %vm1293_vm15 = vmand %vm1165_vm11, %vm14024_vm5  ;;  %vm1042_vm11 = vcmp.gt.f32.partialorder %v726_v11, %v8156_v52  ;;  %vm1169_vm5 = vcmp.eq.f32.partialorder %v726_v11, %v8161_v61  ;;  %14347 = vst [vmem:[#allocation23_spill] sm:$0xff] %v8330_v14 }
  0xbd   : > { %vm1419_vm1 = vmor %vm1035_vm10, %vm1291_vm9 }
  0xbe   : > { %vm1421_vm6 = vmor %vm1037_vm3, %vm1293_vm15  ;;  %2069 = vperm.xlu1 %7461, %v7836_v16   ;;  %vm1167_vm15 = vcmp.eq.f32.partialorder %v721_v9, %v8161_v61  ;;  %v8366_v16 = vadd.s32 80, %v8106_v62 }
  0xbf   : > { %vm6483_vm12 = vmpackc.low %vm1421_vm6, %vm1419_vm1  ;;  %2073 = vperm.xlu0 %7460, %v7831_v15   ;;  %vm14026_vm6 = vcmp.lt.s32.totalorder %v8284_v8, %v8158_v49  ;;  %v736_v15 = vpop.permute.xlu1 %735 }
  0xc0   : > { %6484 = vmatpush1.bf16.msk.msra.mxu0 %vm6483_vm12, %v14092_v0  ;;  %vm1296_vm10 = vmand %vm1168_vm2, %vm14027_vm4  ;;  %vm14030_vm12 = vcmp.lt.s32.totalorder %v8288_v10, %v8158_v49  ;;  %vm1041_vm2 = vcmp.gt.f32.partialorder %v726_v11, %v8161_v61  ;;  %vm1044_vm4 = vcmp.gt.f32.partialorder %v731_v13, %v8156_v52  ;;  %14348 = vst [vmem:[#allocation24_spill] sm:$0xff] %v8366_v16 }
  0xc1   : > { %vm1298_vm3 = vmand %vm1170_vm14, %vm14025_vm13  ;;  %vm14029_vm13 = vcmp.lt.s32.totalorder %v8330_v14, %v8148_v2 }
  0xc2   : > { %vm1424_vm9 = vmor %vm1040_vm8, %vm1296_vm10  ;;  %2077 = vperm.xlu1 %7461, %v7848_v18   ;;  %vm1039_vm8 = vcmp.gt.f32.partialorder %v721_v9, %v8161_v61  ;;  %v8370_v18 = vadd.s32 88, %v8106_v62 }
  0xc3   : > { %vm1426_vm1 = vmor %vm1042_vm11, %vm1298_vm3  ;;  %2081 = vperm.xlu0 %7460, %v7843_v17   ;;  %v741_v17 = vpop.permute.xlu0 %740 }
  0xc4   : > { %vm6485_vm14 = vmpackc.low %vm1426_vm1, %vm1424_vm9  ;;  %vm14028_vm9 = vcmp.lt.s32.totalorder %v8325_v12, %v8148_v2  ;;  %vm1172_vm1 = vcmp.eq.f32.partialorder %v731_v13, %v8156_v52  ;;  %14349 = vst [vmem:[#allocation25_spill] sm:$0xff] %v8370_v18 }
  0xc5   : > { %6486 = vmatprep.subr.msk.bf16.mxu0 %vm6485_vm14, %v14092_v0  ;;  %vm1295_vm11 = vmand %vm1167_vm15, %vm14026_vm6  ;;  %vm1174_vm15 = vcmp.eq.f32.partialorder %v736_v15, %v8156_v52 }
  0xc6   : > { %vm1297_vm10 = vmand %vm1169_vm5, %vm14030_vm12  ;;  %2085 = vperm.xlu1 %7461, %v7860_v20   ;;  %vm1046_vm5 = vcmp.gt.f32.partialorder %v736_v15, %v8156_v52  ;;  %v8407_v20 = vadd.s32 96, %v8106_v62 }
  0xc7   : > { %vm1423_vm3 = vmor %vm1039_vm8, %vm1295_vm11  ;;  %2089 = vperm.xlu0 %7460, %v7855_v19   ;;  %v746_v19 = vpop.permute.xlu1 %745 }
  0xc8   : > { %vm1425_vm14 = vmor %vm1041_vm2, %vm1297_vm10  ;;  %vm14031_vm10 = vcmp.lt.s32.totalorder %v8325_v12, %v8158_v49  ;;  %vm1178_vm12 = vcmp.eq.f32.partialorder %v746_v19, %v8156_v52  ;;  %14350 = vst [vmem:[#allocation26_spill] sm:$0xff] %v8407_v20 }
  0xc9   : > { %vm6487_vm6 = vmpackc.low %vm1425_vm14, %vm1423_vm3  ;;  %vm14032_vm14 = vcmp.lt.s32.totalorder %v8330_v14, %v8158_v49 }
  0xca   : > { %6488 = vmatpush1.bf16.msk.msra.mxu0 %vm6487_vm6, %v14092_v0  ;;  %vm1300_vm8 = vmand %vm1172_vm1, %vm14028_vm9  ;;  %2093 = vperm.xlu1 %7461, %v7872_v22   ;;  %vm1171_vm6 = vcmp.eq.f32.partialorder %v731_v13, %v8161_v61  ;;  %vm1173_vm1 = vcmp.eq.f32.partialorder %v736_v15, %v8161_v61  ;;  %v8412_v22 = vadd.s32 104, %v8106_v62 }
  0xcb   : > { %vm1302_vm2 = vmand %vm1174_vm15, %vm14029_vm13  ;;  %2097 = vperm.xlu0 %7460, %v7867_v21   ;;  %vm1043_vm15 = vcmp.gt.f32.partialorder %v731_v13, %v8161_v61  ;;  %v751_v21 = vpop.permute.xlu0 %750  ;;  %v14375_v13 = vld [vmem:[#allocation18_spill] sm:$0xff] }
  0xcc   : > { %vm1428_vm11 = vmor %vm1044_vm4, %vm1300_vm8  ;;  %vm1045_vm4 = vcmp.gt.f32.partialorder %v736_v15, %v8161_v61  ;;  %14351 = vst [vmem:[#allocation27_spill] sm:$0xff] %v8412_v22  ;;  %v14376_v15 = vld [vmem:[#allocation17_spill] sm:$0xff] }
  0xcd   : > { %vm1430_vm3 = vmor %vm1046_vm5, %vm1302_vm2 }
  0xce   : > { %vm6489_vm9 = vmpackc.low %vm1430_vm3, %vm1428_vm11  ;;  %2101 = vperm.xlu1 %7461, %v7884_v24   ;;  %vm14035_vm11 = vcmp.lt.s32.totalorder %v8366_v16, %v8148_v2  ;;  %vm1176_vm3 = vcmp.eq.f32.partialorder %v741_v17, %v8156_v52  ;;  %v8448_v24 = vadd.s32 112, %v8106_v62 }
  0xcf   : > { %6490 = vmatprep.subr.msk.bf16.mxu0 %vm6489_vm9, %v14092_v0  ;;  %vm1299_vm5 = vmand %vm1171_vm6, %vm14031_vm10  ;;  %2105 = vperm.xlu0 %7460, %v7879_v23   ;;  %vm14033_vm9 = vcmp.lt.s32.totalorder %v8370_v18, %v8148_v2  ;;  %vm1048_vm10 = vcmp.gt.f32.partialorder %v741_v17, %v8156_v52  ;;  %v756_v23 = vpop.permute.xlu1 %755 }
  0xd0   : > { %vm1301_vm8 = vmand %vm1173_vm1, %vm14032_vm14  ;;  %vm1050_vm1 = vcmp.gt.f32.partialorder %v746_v19, %v8156_v52  ;;  %vm1177_vm14 = vcmp.eq.f32.partialorder %v746_v19, %v8161_v61  ;;  %14352 = vst [vmem:[#allocation28_spill] sm:$0xff] %v8448_v24 }
  0xd1   : > { %vm1427_vm2 = vmor %vm1043_vm15, %vm1299_vm5 }
  0xd2   : > { %vm1429_vm13 = vmor %vm1045_vm4, %vm1301_vm8  ;;  %2109 = vperm.xlu1 %7461, %v7896_v26   ;;  %vm1175_vm8 = vcmp.eq.f32.partialorder %v741_v17, %v8161_v61  ;;  %v8452_v26 = vadd.s32 120, %v8106_v62 }
  0xd3   : > { %vm6491_vm6 = vmpackc.low %vm1429_vm13, %vm1427_vm2  ;;  %2113 = vperm.xlu0 %7460, %v7891_v25   ;;  %vm14034_vm13 = vcmp.lt.s32.totalorder %v8366_v16, %v8158_v49  ;;  %v761_v25 = vpop.permute.xlu0 %760 }
  0xd4   : > { %6492 = vmatpush1.bf16.msk.msra.mxu0 %vm6491_vm6, %v14092_v0  ;;  %vm1304_vm15 = vmand %vm1176_vm3, %vm14035_vm11  ;;  %vm14038_vm6 = vcmp.lt.s32.totalorder %v8370_v18, %v8158_v49  ;;  %vm1049_vm3 = vcmp.gt.f32.partialorder %v746_v19, %v8161_v61  ;;  %vm1052_vm11 = vcmp.gt.f32.partialorder %v751_v21, %v8156_v52  ;;  %14353 = vst [vmem:[#allocation29_spill] sm:$0xff] %v8452_v26 }
  0xd5   : > { %vm1306_vm4 = vmand %vm1178_vm12, %vm14033_vm9  ;;  %vm14037_vm9 = vcmp.lt.s32.totalorder %v8412_v22, %v8148_v2 }
  0xd6   : > { %vm1432_vm5 = vmor %vm1048_vm10, %vm1304_vm15  ;;  %2117 = vperm.xlu1 %7461, %v7908_v28   ;;  %vm1047_vm10 = vcmp.gt.f32.partialorder %v741_v17, %v8161_v61  ;;  %v8489_v28 = vadd.s32 128, %v8106_v62  ;;  %v8703_v17 = vadd.s32 208, %v8106_v62 }
  0xd7   : > { %vm1434_vm2 = vmor %vm1050_vm1, %vm1306_vm4  ;;  %2121 = vperm.xlu0 %7460, %v7903_v27   ;;  %v766_v27 = vpop.permute.xlu1 %765 }
  0xd8   : > { %vm6493_vm12 = vmpackc.low %vm1434_vm2, %vm1432_vm5  ;;  %vm14036_vm5 = vcmp.lt.s32.totalorder %v8407_v20, %v8148_v2  ;;  %vm1180_vm2 = vcmp.eq.f32.partialorder %v751_v21, %v8156_v52  ;;  %14354 = vst [vmem:[#allocation30_spill] sm:$0xff] %v8489_v28 }
  0xd9   : > { %6494 = vmatprep.subr.msk.bf16.mxu0 %vm6493_vm12, %v14092_v0  ;;  %vm1303_vm1 = vmand %vm1175_vm8, %vm14034_vm13  ;;  %vm1182_vm8 = vcmp.eq.f32.partialorder %v756_v23, %v8156_v52 }
  0xda   : > { %vm1305_vm15 = vmand %vm1177_vm14, %vm14038_vm6  ;;  %2125 = vperm.xlu1 %7461, %v7920_v30   ;;  %vm1054_vm14 = vcmp.gt.f32.partialorder %v756_v23, %v8156_v52  ;;  %vm1186_vm6 = vcmp.eq.f32.partialorder %v766_v27, %v8156_v52  ;;  %v8494_v30 = vadd.s32 136, %v8106_v62 }
  0xdb   : > { %vm1431_vm4 = vmor %vm1047_vm10, %vm1303_vm1  ;;  %2129 = vperm.xlu0 %7460, %v7915_v29   ;;  %v771_v29 = vpop.permute.xlu0 %770 }
  0xdc   : > { %vm1433_vm12 = vmor %vm1049_vm3, %vm1305_vm15  ;;  %vm14039_vm15 = vcmp.lt.s32.totalorder %v8407_v20, %v8158_v49  ;;  %14355 = vst [vmem:[#allocation31_spill] sm:$0xff] %v8494_v30  ;;  %v7575_v20 = vld [vmem:[%s13996_s2 + $0x88] sm:$0xff] }
  0xdd   : > { %vm6495_vm13 = vmpackc.low %vm1433_vm12, %vm1431_vm4  ;;  %vm14040_vm12 = vcmp.lt.s32.totalorder %v8412_v22, %v8158_v49 }
  0xde   : > { %6496 = vmatpush1.bf16.msk.msra.mxu0 %vm6495_vm13, %v14092_v0  ;;  %vm1308_vm10 = vmand %vm1180_vm2, %vm14036_vm5  ;;  %2133 = vperm.xlu1 %7461, %v7932_v32   ;;  %vm1179_vm13 = vcmp.eq.f32.partialorder %v751_v21, %v8161_v61  ;;  %vm1181_vm2 = vcmp.eq.f32.partialorder %v756_v23, %v8161_v61  ;;  %v8530_v32 = vadd.s32 144, %v8106_v62 }
  0xdf   : > { %vm1310_vm3 = vmand %vm1182_vm8, %vm14037_vm9  ;;  %2137 = vperm.xlu0 %7460, %v7927_v31   ;;  %vm1051_vm8 = vcmp.gt.f32.partialorder %v751_v21, %v8161_v61  ;;  %v776_v31 = vpop.permute.xlu1 %775  ;;  %v8710_v21 = vadd.s32 216, %v8106_v62 }
  0xe0   : > { %vm1436_vm1 = vmor %vm1052_vm11, %vm1308_vm10  ;;  %vm1053_vm11 = vcmp.gt.f32.partialorder %v756_v23, %v8161_v61  ;;  %14356 = vst [vmem:[#allocation32_spill] sm:$0xff] %v8530_v32  ;;  %v14379_v23 = vld [vmem:[#allocation21_spill] sm:$0xff] }
  0xe1   : > { %vm1438_vm4 = vmor %vm1054_vm14, %vm1310_vm3  ;;  %14378 = vst [vmem:[#allocation12_spill] sm:$0xff] %v8710_v21 }
  0xe2   : > { %vm6497_vm5 = vmpackc.low %vm1438_vm4, %vm1436_vm1  ;;  %2141 = vperm.xlu1 %7461, %v7944_v34   ;;  %vm14043_vm1 = vcmp.lt.s32.totalorder %v8448_v24, %v8148_v2  ;;  %vm1184_vm4 = vcmp.eq.f32.partialorder %v761_v25, %v8156_v52  ;;  %v8534_v34 = vadd.s32 152, %v8106_v62 }
  0xe3   : > { %6498 = vmatprep.subr.msk.bf16.mxu0 %vm6497_vm5, %v14092_v0  ;;  %vm1307_vm14 = vmand %vm1179_vm13, %vm14039_vm15  ;;  %2145 = vperm.xlu0 %7460, %v7939_v33   ;;  %vm14041_vm5 = vcmp.lt.s32.totalorder %v8452_v26, %v8148_v2  ;;  %vm1056_vm15 = vcmp.gt.f32.partialorder %v761_v25, %v8156_v52  ;;  %v781_v33 = vpop.permute.xlu0 %780 }
  0xe4   : > { %vm1309_vm10 = vmand %vm1181_vm2, %vm14040_vm12  ;;  %vm1058_vm2 = vcmp.gt.f32.partialorder %v766_v27, %v8156_v52  ;;  %vm1185_vm12 = vcmp.eq.f32.partialorder %v766_v27, %v8161_v61  ;;  %14357 = vst [vmem:[#allocation33_spill] sm:$0xff] %v8534_v34 }
  0xe5   : > { %vm1435_vm3 = vmor %vm1051_vm8, %vm1307_vm14 }
  0xe6   : > { %vm1437_vm9 = vmor %vm1053_vm11, %vm1309_vm10  ;;  %2149 = vperm.xlu1 %7461, %v7956_v36   ;;  %vm1183_vm10 = vcmp.eq.f32.partialorder %v761_v25, %v8161_v61  ;;  %v8571_v36 = vadd.s32 160, %v8106_v62 }
  0xe7   : > { %vm6499_vm13 = vmpackc.low %vm1437_vm9, %vm1435_vm3  ;;  %2153 = vperm.xlu0 %7460, %v7951_v35   ;;  %vm14042_vm9 = vcmp.lt.s32.totalorder %v8448_v24, %v8158_v49  ;;  %v786_v35 = vpop.permute.xlu1 %785  ;;  %v9605_v24 = vadd.s32 424, %v8106_v62 }
  0xe8   : > { %6500 = vmatpush1.bf16.msk.msra.mxu0 %vm6499_vm13, %v14092_v0  ;;  %vm1312_vm8 = vmand %vm1184_vm4, %vm14043_vm1  ;;  %vm14046_vm13 = vcmp.lt.s32.totalorder %v8452_v26, %v8158_v49  ;;  %vm1057_vm4 = vcmp.gt.f32.partialorder %v766_v27, %v8161_v61  ;;  %vm1060_vm1 = vcmp.gt.f32.partialorder %v771_v29, %v8156_v52  ;;  %14358 = vst [vmem:[#allocation34_spill] sm:$0xff] %v8571_v36  ;;  %v9596_v26 = vadd.s32 416, %v8106_v62 }
  0xe9   : > { %vm1314_vm11 = vmand %vm1186_vm6, %vm14041_vm5  ;;  %vm14045_vm5 = vcmp.lt.s32.totalorder %v8494_v30, %v8148_v2  ;;  %14418 = vst [vmem:[#allocation55_spill] sm:$0xff] %v9605_v24 }
  0xea   : > { %vm1440_vm14 = vmor %vm1056_vm15, %vm1312_vm8  ;;  %2157 = vperm.xlu1 %7461, %v7968_v38   ;;  %vm1055_vm15 = vcmp.gt.f32.partialorder %v761_v25, %v8161_v61  ;;  %v8576_v38 = vadd.s32 168, %v8106_v62  ;;  %v14380_v25 = vld [vmem:[#allocation20_spill] sm:$0xff]  ;;  %14417 = vst [vmem:[#allocation54_spill] sm:$0xff] %v9596_v26 }
  0xeb   : > { %vm1442_vm3 = vmor %vm1058_vm2, %vm1314_vm11  ;;  %2161 = vperm.xlu0 %7460, %v7963_v37   ;;  %v791_v37 = vpop.permute.xlu0 %790 }
  0xec   : > { %vm6501_vm6 = vmpackc.low %vm1442_vm3, %vm1440_vm14  ;;  %vm14044_vm14 = vcmp.lt.s32.totalorder %v8489_v28, %v8148_v2  ;;  %vm1188_vm3 = vcmp.eq.f32.partialorder %v771_v29, %v8156_v52  ;;  %14359 = vst [vmem:[#allocation35_spill] sm:$0xff] %v8576_v38 }
  0xed   : > { %6502 = vmatprep.subr.msk.bf16.mxu0 %vm6501_vm6, %v14092_v0  ;;  %vm1311_vm2 = vmand %vm1183_vm10, %vm14042_vm9  ;;  %vm1190_vm10 = vcmp.eq.f32.partialorder %v776_v31, %v8156_v52 }
  0xee   : > { %vm1313_vm8 = vmand %vm1185_vm12, %vm14046_vm13  ;;  %2165 = vperm.xlu1 %7461, %v7980_v40   ;;  %vm1062_vm12 = vcmp.gt.f32.partialorder %v776_v31, %v8156_v52  ;;  %vm1194_vm13 = vcmp.eq.f32.partialorder %v786_v35, %v8156_v52  ;;  %v14360_v40 = vld [vmem:[#allocation6_spill] sm:$0xff] }
  0xef   : > { %vm1439_vm11 = vmor %vm1055_vm15, %vm1311_vm2  ;;  %2169 = vperm.xlu0 %7460, %v7975_v39   ;;  %v796_v39 = vpop.permute.xlu1 %795 }
  0xf0   : > { %vm1441_vm6 = vmor %vm1057_vm4, %vm1313_vm8  ;;  %vm14047_vm8 = vcmp.lt.s32.totalorder %v8489_v28, %v8158_v49  ;;  %v9395_v28 = vld [vmem:[%s13996_s2 + $0x120] sm:$0xff] }
  0xf1   : > { %vm6503_vm9 = vmpackc.low %vm1441_vm6, %vm1439_vm11  ;;  %vm14048_vm6 = vcmp.lt.s32.totalorder %v8494_v30, %v8158_v49  ;;  %v9340_v30 = vld [vmem:[%s13996_s2 + $0xe0] sm:$0xff] }
  0xf2   : > { %6504 = vmatpush1.bf16.msk.msra.mxu0 %vm6503_vm9, %v14092_v0  ;;  %vm1316_vm15 = vmand %vm1188_vm3, %vm14044_vm14  ;;  %2173 = vperm.xlu1 %7461, %v7992_v42   ;;  %vm1187_vm9 = vcmp.eq.f32.partialorder %v771_v29, %v8161_v61  ;;  %vm1189_vm3 = vcmp.eq.f32.partialorder %v776_v31, %v8161_v61  ;;  %v14362_v42 = vld [vmem:[#allocation7_spill] sm:$0xff] }
  0xf3   : > { %vm1318_vm4 = vmand %vm1190_vm10, %vm14045_vm5  ;;  %2177 = vperm.xlu0 %7460, %v7987_v41   ;;  %vm1059_vm10 = vcmp.gt.f32.partialorder %v771_v29, %v8161_v61  ;;  %v14361_v41 = vld [vmem:[#allocation8_spill] sm:$0xff]  ;;  %14370 = vst [vmem:[#allocation7_spill] sm:$0xff] %v8655_v51 }
  0xf4   : > { %vm1444_vm2 = vmor %vm1060_vm1, %vm1316_vm15  ;;  %vm1061_vm1 = vcmp.gt.f32.partialorder %v776_v31, %v8161_v61  ;;  %v8751_v31 = vadd.s32 224, %v8106_v62 }
  0xf5   : > { %vm1446_vm11 = vmor %vm1062_vm12, %vm1318_vm4 }
  0xf6   : > { %vm6505_vm14 = vmpackc.low %vm1446_vm11, %vm1444_vm2  ;;  %2181 = vperm.xlu1 %7461, %v8004_v44   ;;  %vm14051_vm2 = vcmp.lt.s32.totalorder %v8530_v32, %v8148_v2  ;;  %vm1192_vm11 = vcmp.eq.f32.partialorder %v781_v33, %v8156_v52  ;;  %v8612_v44 = vadd.s32 176, %v8106_v62  ;;  %14381 = vst [vmem:[#allocation11_spill] sm:$0xff] %v8751_v31 }
  0xf7   : > { %6506 = vmatprep.subr.msk.bf16.mxu0 %vm6505_vm14, %v14092_v0  ;;  %vm1315_vm12 = vmand %vm1187_vm9, %vm14047_vm8  ;;  %2185 = vperm.xlu0 %7460, %v7999_v43   ;;  %vm14049_vm14 = vcmp.lt.s32.totalorder %v8534_v34, %v8148_v2  ;;  %vm1064_vm8 = vcmp.gt.f32.partialorder %v781_v33, %v8156_v52  ;;  %v801_v43 = vpop.permute.xlu0 %800 }
  0xf8   : > { %vm1317_vm15 = vmand %vm1189_vm3, %vm14048_vm6  ;;  %vm1066_vm3 = vcmp.gt.f32.partialorder %v786_v35, %v8156_v52  ;;  %vm1193_vm6 = vcmp.eq.f32.partialorder %v786_v35, %v8161_v61  ;;  %14363 = vst [vmem:[#allocation6_spill] sm:$0xff] %v8612_v44 }
  0xf9   : > { %vm1443_vm4 = vmor %vm1059_vm10, %vm1315_vm12 }
  0xfa   : > { %vm1445_vm5 = vmor %vm1061_vm1, %vm1317_vm15  ;;  %2189 = vperm.xlu1 %7461, %v8016_v46   ;;  %vm1191_vm15 = vcmp.eq.f32.partialorder %v781_v33, %v8161_v61  ;;  %v14365_v46 = vld [vmem:[#allocation10_spill] sm:$0xff] }
  0xfb   : > { %vm6507_vm9 = vmpackc.low %vm1445_vm5, %vm1443_vm4  ;;  %2193 = vperm.xlu0 %7460, %v8011_v45   ;;  %vm14050_vm5 = vcmp.lt.s32.totalorder %v8530_v32, %v8158_v49  ;;  %v8616_v45 = vadd.s32 184, %v8106_v62  ;;  %14372 = vst [vmem:[#allocation10_spill] sm:$0xff] %v8662_v60  ;;  %v9321_v32 = vadd.s32 360, %v8106_v62 }
  0xfc   : > { %6508 = vmatpush1.bf16.msk.msra.mxu0 %vm6507_vm9, %v14092_v0  ;;  %vm1320_vm10 = vmand %vm1192_vm11, %vm14051_vm2  ;;  %vm14055_vm9 = vcmp.lt.s32.totalorder %v8534_v34, %v8158_v49  ;;  %vm1065_vm11 = vcmp.gt.f32.partialorder %v786_v35, %v8161_v61  ;;  %vm1068_vm2 = vcmp.gt.f32.partialorder %v791_v37, %v8156_v52  ;;  %v9315_v34 = vadd.s32 352, %v8106_v62 }
  0xfd   : > { %vm1322_vm1 = vmand %vm1194_vm13, %vm14049_vm14  ;;  %vm14053_vm14 = vcmp.lt.s32.totalorder %v8576_v38, %v8148_v2  ;;  %14364 = vst [vmem:[#allocation8_spill] sm:$0xff] %v8616_v45 }
  0xfe   : > { %vm1448_vm12 = vmor %vm1064_vm8, %vm1320_vm10  ;;  %2197 = vperm.xlu1 %7461, %v8028_v48   ;;  %vm1063_vm8 = vcmp.gt.f32.partialorder %v781_v33, %v8161_v61  ;;  %v14366_v48 = vld [vmem:[#allocation9_spill] sm:$0xff]  ;;  %v8756_v33 = vadd.s32 232, %v8106_v62  ;;  %14405 = vst [vmem:[#allocation45_spill] sm:$0xff] %v9315_v34 }
  0xff   : > { %vm1450_vm4 = vmor %vm1066_vm3, %vm1322_vm1  ;;  %2201 = vperm.xlu0 %7460, %v8023_v47   ;;  %v806_v47 = vpop.permute.xlu1 %805  ;;  %14377 = vst [vmem:[#allocation9_spill] sm:$0xff] %v8703_v17 }
 0x100   : > { %vm6509_vm13 = vmpackc.low %vm1450_vm4, %vm1448_vm12  ;;  %vm14052_vm12 = vcmp.lt.s32.totalorder %v8571_v36, %v8148_v2  ;;  %vm1196_vm4 = vcmp.eq.f32.partialorder %v791_v37, %v8156_v52  ;;  %14382 = vst [vmem:[#allocation14_spill] sm:$0xff] %v8756_v33 }
 0x101   : > { %6510 = vmatprep.subr.msk.bf16.mxu0 %vm6509_vm13, %v14092_v0  ;;  %vm1319_vm3 = vmand %vm1191_vm15, %vm14050_vm5  ;;  %vm1198_vm15 = vcmp.eq.f32.partialorder %v796_v39, %v8156_v52  ;;  %14406 = vst [vmem:[#allocation46_spill] sm:$0xff] %v9321_v32 }
 0x102   : > { %vm1321_vm10 = vmand %vm1193_vm6, %vm14055_vm9  ;;  %2205 = vperm.xlu1 %7461, %v8040_v50   ;;  %vm1070_vm6 = vcmp.gt.f32.partialorder %v796_v39, %v8156_v52  ;;  %v8631_v50 = vpop.permute.xlu0 %810  ;;  %vm1072_vm9 = vcmp.gt.f32.partialorder %v801_v43, %v8156_v52 }
 0x103   : > { %vm1447_vm1 = vmor %vm1063_vm8, %vm1319_vm3  ;;  %2209 = vperm.xlu0 %7460, %v14360_v40   ;;  %v816_v59 = vpop.permute.xlu1 %815  ;;  %v8800_v40 = vadd.s32 240, %v8106_v62 }
 0x104   : > { %vm1449_vm13 = vmor %vm1065_vm11, %vm1321_vm10  ;;  %vm14054_vm10 = vcmp.lt.s32.totalorder %v8571_v36, %v8158_v49  ;;  %v9307_v36 = vld [vmem:[%s13996_s2 + $0xc0] sm:$0xff] }
 0x105   : > { %vm6511_vm5 = vmpackc.low %vm1449_vm13, %vm1447_vm1  ;;  %vm14056_vm13 = vcmp.lt.s32.totalorder %v8576_v38, %v8158_v49  ;;  %14383 = vst [vmem:[#allocation13_spill] sm:$0xff] %v8800_v40 }
 0x106   : > { %6512 = vmatpush1.bf16.msk.msra.mxu0 %vm6511_vm5, %v14092_v0  ;;  %vm1324_vm8 = vmand %vm1196_vm4, %vm14052_vm12  ;;  %2213 = vperm.xlu1 %7461, %v14361_v41   ;;  %vm1195_vm5 = vcmp.eq.f32.partialorder %v791_v37, %v8161_v61  ;;  %vm1197_vm4 = vcmp.eq.f32.partialorder %v796_v39, %v8161_v61  ;;  %v8658_v1 = vpop.permute.xlu0 %820  ;;  %v8805_v41 = vadd.s32 248, %v8106_v62 }
 0x107   : > { %vm1326_vm11 = vmand %vm1198_vm15, %vm14053_vm14  ;;  %2217 = vperm.xlu0 %7460, %v14362_v42   ;;  %vm1067_vm15 = vcmp.gt.f32.partialorder %v791_v37, %v8161_v61  ;;  %vm14058_vm14 = vcmp.lt.s32.totalorder %v8616_v45, %v8148_v2  ;;  %v826_v9 = vpop.permute.xlu1 %825 }
 0x108   : > { %vm1452_vm3 = vmor %vm1068_vm2, %vm1324_vm8  ;;  %vm1069_vm2 = vcmp.gt.f32.partialorder %v796_v39, %v8161_v61  ;;  %14384 = vst [vmem:[#allocation16_spill] sm:$0xff] %v8805_v41 }
 0x109   : > { %vm1454_vm1 = vmor %vm1070_vm6, %vm1326_vm11 }
 0x10a   : > { %vm6513_vm12 = vmpackc.low %vm1454_vm1, %vm1452_vm3  ;;  %2221 = vperm.xlu1 %7461, %v14365_v46   ;;  %vm14063_vm3 = vcmp.lt.s32.totalorder %v8612_v44, %v8148_v2  ;;  %vm1200_vm1 = vcmp.eq.f32.partialorder %v801_v43, %v8156_v52  ;;  %v8688_v11 = vpop.permute.xlu0 %830 }
 0x10b   : > { %6514 = vmatprep.subr.msk.bf16.mxu0 %vm6513_vm12, %v14092_v0  ;;  %vm1323_vm6 = vmand %vm1195_vm5, %vm14054_vm10  ;;  %2225 = vperm.xlu0 %7460, %v14366_v48   ;;  %vm1202_vm5 = vcmp.eq.f32.partialorder %v806_v47, %v8156_v52  ;;  %v8705_v19 = vpop.permute.xlu1 %835 }
 0x10c   : > { %vm1325_vm8 = vmand %vm1197_vm4, %vm14056_vm13  ;;  %vm1074_vm4 = vcmp.gt.f32.partialorder %v806_v47, %v8156_v52  ;;  %vm1201_vm13 = vcmp.eq.f32.partialorder %v806_v47, %v8161_v61 }
 0x10d   : > { %vm1451_vm11 = vmor %vm1067_vm15, %vm1323_vm6 }
 0x10e   : > { %vm1453_vm12 = vmor %vm1069_vm2, %vm1325_vm8  ;;  %2229 = vperm.xlu1 %7461, %v14367_v55   ;;  %vm14057_vm8 = vcmp.lt.s32.totalorder %v8612_v44, %v8158_v49  ;;  %v8722_v27 = vpop.permute.xlu0 %840 }
 0x10f   : > { %vm6515_vm10 = vmpackc.low %vm1453_vm12, %vm1451_vm11  ;;  %2233 = vperm.xlu0 %7460, %v14368_v63   ;;  %vm1199_vm11 = vcmp.eq.f32.partialorder %v801_v43, %v8161_v61  ;;  %vm14060_vm12 = vcmp.lt.s32.totalorder %v8616_v45, %v8158_v49  ;;  %v8759_v35 = vpop.permute.xlu1 %845  ;;  %v8859_v63 = vadd.s32 256, %v8106_v62  ;;  %v9244_v45 = vld [vmem:[%s13996_s2 + $0x80] sm:$0xff] }
 0x110   : > { %6516 = vmatpush1.bf16.msk.msra.mxu0 %vm6515_vm10, %v14092_v0  ;;  %vm1328_vm15 = vmand %vm1200_vm1, %vm14063_vm3  ;;  %vm1080_vm3 = vcmp.gt.f32.partialorder %v8658_v1, %v8156_v52 }
 0x111   : > { %vm1330_vm2 = vmand %vm1202_vm5, %vm14058_vm14  ;;  %vm1073_vm5 = vcmp.gt.f32.partialorder %v806_v47, %v8161_v61  ;;  %v8840_v47 = vsub.s32 1, %v8106_v62  ;;  %14387 = vst [vmem:[#allocation17_spill] sm:$0xff] %v8859_v63 }
 0x112   : > { %vm1456_vm6 = vmor %vm1072_vm9, %vm1328_vm15  ;;  %2237 = vperm.xlu1 %7461, %v14369_v53   ;;  %vm1071_vm9 = vcmp.gt.f32.partialorder %v801_v43, %v8161_v61  ;;  %v8745_v29 = vpop.permute.xlu0 %850  ;;  %v393_v43 = vld [vmem:[%s13997_s3] sm:$0xf]  ;;  %v8866_v53 = vadd.s32 264, %v8106_v62 }
 0x113   : > { %vm1458_vm10 = vmor %vm1074_vm4, %vm1330_vm2  ;;  %2241 = vperm.xlu0 %7460, %v14371_v54   ;;  %v8789_v39 = vpop.permute.xlu1 %855  ;;  %14385 = vst [vmem:[#allocation15_spill] sm:$0xff] %v8840_v47 }
 0x114   : > { %vm6517_vm1 = vmpackc.low %vm1458_vm10, %vm1456_vm6  ;;  %vm14059_vm6 = vcmp.lt.s32.totalorder %v8655_v51, %v8148_v2  ;;  %vm1204_vm10 = vcmp.eq.f32.partialorder %v8631_v50, %v8156_v52  ;;  %14388 = vst [vmem:[#allocation21_spill] sm:$0xff] %v8866_v53 }
 0x115   : > { %6518 = vmatprep.subr.msk.bf16.mxu0 %vm6517_vm1, %v14092_v0  ;;  %vm1327_vm4 = vmand %vm1199_vm11, %vm14057_vm8  ;;  %vm14061_vm11 = vcmp.lt.s32.totalorder %v8662_v60, %v8148_v2  ;;  %vm1206_vm8 = vcmp.eq.f32.partialorder %v816_v59, %v8156_v52 }
 0x116   : > { %vm1329_vm15 = vmand %vm1201_vm13, %vm14060_vm12  ;;  %2245 = vperm.xlu1 %7461, %v14373_v5   ;;  %vm1076_vm13 = vcmp.gt.f32.partialorder %v8631_v50, %v8156_v52  ;;  %v8776_v37 = vpop.permute.xlu0 %860 }
 0x117   : > { %vm1455_vm2 = vmor %vm1071_vm9, %vm1327_vm4  ;;  %2249 = vperm.xlu0 %7460, %v14374_v7   ;;  %vm1078_vm9 = vcmp.gt.f32.partialorder %v816_v59, %v8156_v52  ;;  %v8825_v46 = vpop.permute.xlu1 %865 }
 0x118   : > { %vm1457_vm1 = vmor %vm1073_vm5, %vm1329_vm15 }
 0x119   : > { %vm6519_vm14 = vmpackc.low %vm1457_vm1, %vm1455_vm2  ;;  %vm1203_vm2 = vcmp.eq.f32.partialorder %v8631_v50, %v8161_v61 }
 0x11a   : > { %6520 = vmatpush1.bf16.msk.msra.mxu0 %vm6519_vm14, %v14092_v0  ;;  %vm1332_vm4 = vmand %vm1204_vm10, %vm14059_vm6  ;;  %2253 = vperm.xlu1 %7461, %v14375_v13   ;;  %vm14062_vm14 = vcmp.lt.s32.totalorder %v8655_v51, %v8158_v49  ;;  %vm14064_vm10 = vcmp.lt.s32.totalorder %v8662_v60, %v8158_v49  ;;  %vm1205_vm6 = vcmp.eq.f32.partialorder %v816_v59, %v8161_v61  ;;  %v8807_v42 = vpop.permute.xlu0 %870  ;;  %v9233_v60 = vld [vmem:[%s13996_s2 + $0x58] sm:$0xff]  ;;  %v9239_v51 = vadd.s32 344, %v8106_v62 }
 0x11b   : > { %vm1334_vm5 = vmand %vm1206_vm8, %vm14061_vm11  ;;  %2257 = vperm.xlu0 %7460, %v14376_v15   ;;  %vm1075_vm8 = vcmp.gt.f32.partialorder %v8631_v50, %v8161_v61  ;;  %vm14065_vm11 = vcmp.lt.s32.totalorder %v8710_v21, %v8148_v2  ;;  %v14084_v50 = vmov 0.0  }
 0x11c   : > { %vm1460_vm15 = vmor %vm1076_vm13, %vm1332_vm4  ;;  %vm1077_vm13 = vcmp.gt.f32.partialorder %v816_v59, %v8161_v61  ;;  %v8861_v59 = vpop.permute.xlu1 %875  ;;  %14403 = vst [vmem:[#allocation44_spill] sm:$0xff] %v9239_v51 }
 0x11d   : > { %vm1462_vm1 = vmor %vm1078_vm9, %vm1334_vm5 }
 0x11e   : > { %vm6521_vm12 = vmpackc.low %vm1462_vm1, %vm1460_vm15  ;;  %2261 = vperm.xlu1 %7461, %v14379_v23   ;;  %vm14066_vm15 = vcmp.lt.s32.totalorder %v8703_v17, %v8148_v2  ;;  %v8842_v48 = vpop.permute.xlu0 %880  ;;  %v8915_v23 = vadd.s32 272, %v8106_v62 }
 0x11f   : > { %6522 = vmatprep.subr.msk.bf16.mxu0 %vm6521_vm12, %v14092_v0  ;;  %vm1331_vm9 = vmand %vm1203_vm2, %vm14062_vm14  ;;  %2265 = vperm.xlu0 %7460, %v14380_v25   ;;  %vm1208_vm12 = vcmp.eq.f32.partialorder %v8658_v1, %v8156_v52  ;;  %vm1210_vm2 = vcmp.eq.f32.partialorder %v826_v9, %v8156_v52  ;;  %v14390_v25 = vmov 0 }
 0x120   : > { %vm1333_vm4 = vmand %vm1205_vm6, %vm14064_vm10  ;;  %vm1082_vm6 = vcmp.gt.f32.partialorder %v826_v9, %v8156_v52  ;;  %vm1209_vm10 = vcmp.eq.f32.partialorder %v826_v9, %v8161_v61  ;;  %14389 = vst [vmem:[#allocation20_spill] sm:$0xff] %v8915_v23 }
 0x121   : > { %vm1459_vm5 = vmor %vm1075_vm8, %vm1331_vm9 }
 0x122   : > { %vm1461_vm1 = vmor %vm1077_vm13, %vm1333_vm4  ;;  %vm14071_vm4 = vcmp.lt.s32.totalorder %v8703_v17, %v8158_v49  ;;  %v8881_v5 = vpop.permute.xlu0 %890 }
 0x123   : > { %vm6523_vm14 = vmpackc.low %vm1461_vm1, %vm1459_vm5  ;;  %vm1207_vm5 = vcmp.eq.f32.partialorder %v8658_v1, %v8161_v61  ;;  %vm14067_vm1 = vcmp.lt.s32.totalorder %v8710_v21, %v8158_v49  ;;  %v9226_v21 = vadd.s32 336, %v8106_v62 }
 0x124   : > { %6524 = vmatpush1.bf16.msk.msra.mxu0 %vm6523_vm14, %v14092_v0  ;;  %vm1336_vm8 = vmand %vm1208_vm12, %vm14066_vm15  ;;  %vm1214_vm15 = vcmp.eq.f32.partialorder %v8705_v19, %v8156_v52 }
 0x125   : > { %vm1338_vm13 = vmand %vm1210_vm2, %vm14065_vm11  ;;  %vm1081_vm2 = vcmp.gt.f32.partialorder %v826_v9, %v8161_v61  ;;  %vm14068_vm11 = vcmp.lt.s32.totalorder %v8756_v33, %v8148_v2  ;;  %14402 = vst [vmem:[#allocation43_spill] sm:$0xff] %v9226_v21 }
 0x126   : > { %vm1464_vm9 = vmor %vm1080_vm3, %vm1336_vm8  ;;  %vm1079_vm3 = vcmp.gt.f32.partialorder %v8658_v1, %v8161_v61 }
 0x127   : > { %vm1466_vm14 = vmor %vm1082_vm6, %vm1338_vm13 }
 0x128   : > { %vm6525_vm12 = vmpackc.low %vm1466_vm14, %vm1464_vm9  ;;  %vm14070_vm9 = vcmp.lt.s32.totalorder %v8751_v31, %v8148_v2  ;;  %vm1212_vm14 = vcmp.eq.f32.partialorder %v8688_v11, %v8156_v52 }
 0x129   : > { %6526 = vmatprep.subr.msk.bf16.mxu0 %vm6525_vm12, %v14092_v0  ;;  %vm1335_vm6 = vmand %vm1207_vm5, %vm14071_vm4 }
 0x12a   : > { %vm1337_vm8 = vmand %vm1209_vm10, %vm14067_vm1  ;;  %vm1084_vm10 = vcmp.gt.f32.partialorder %v8688_v11, %v8156_v52  ;;  %vm14076_vm1 = vcmp.lt.s32.totalorder %v8756_v33, %v8158_v49  ;;  %v9170_v33 = vld [vmem:[%s13996_s2 + $0x38] sm:$0xff] }
 0x12b   : > { %vm1463_vm13 = vmor %vm1079_vm3, %vm1335_vm6  ;;  %vm1086_vm3 = vcmp.gt.f32.partialorder %v8705_v19, %v8156_v52 }
 0x12c   : > { %vm1465_vm12 = vmor %vm1081_vm2, %vm1337_vm8 }
 0x12d   : > { %vm6527_vm5 = vmpackc.low %vm1465_vm12, %vm1463_vm13  ;;  %vm14069_vm13 = vcmp.lt.s32.totalorder %v8751_v31, %v8158_v49  ;;  %vm1211_vm12 = vcmp.eq.f32.partialorder %v8688_v11, %v8161_v61  ;;  %v9211_v31 = vld [vmem:[%s13996_s2 + $0x60] sm:$0xff] }
 0x12e   : > { %6528 = vmatpush1.bf16.msk.msra.mxu0 %vm6527_vm5, %v14092_v0  ;;  %vm1340_vm2 = vmand %vm1212_vm14, %vm14070_vm9  ;;  %vm1213_vm14 = vcmp.eq.f32.partialorder %v8705_v19, %v8161_v61  ;;  %vm660_vm9 = vcmp.eq.s32.totalorder %v393_v43, 0 }
 0x12f   : > { %vm1342_vm6 = vmand %vm1214_vm15, %vm14068_vm11  ;;  %v8848_v55 = vsel %vm660_vm9, 1.0, %v14084_v50  ;;  %v9028_v50 = vld [vmem:[%s13996_s2 + $0x8] sm:$0xff] }
 0x130   : > { %vm1468_vm8 = vmor %vm1084_vm10, %vm1340_vm2  ;;  %vm1083_vm10 = vcmp.gt.f32.partialorder %v8688_v11, %v8161_v61  ;;  %14386 = vst [vmem:[#allocation18_spill] sm:$0xff] %v8848_v55  ;;  %v671_v54 = vrot.slane %v8848_v55, %v8840_v47  ;;  %v667_v1 = vrot.slane %v8848_v55, %v8129_v58  ;;  %v8893_v11 = vpop.permute.xlu1 %885  ;;  %v9073_v55 = vld [vmem:[%s13996_s2 + $0x20] sm:$0xff] }
 0x131   : > { %vm1470_vm5 = vmor %vm1086_vm3, %vm1342_vm6  ;;  %vm1085_vm3 = vcmp.gt.f32.partialorder %v8705_v19, %v8161_v61  ;;  %v8904_v19 = vpop.permute.xlu0 %900 }
 0x132   : > { %vm6529_vm15 = vmpackc.low %vm1470_vm5, %vm1468_vm8  ;;  %vm14072_vm5 = vcmp.lt.s32.totalorder %v8800_v40, %v8148_v2  ;;  %v685_v7 = vpack.c.bf16 %v671_v54, %v671_v54  ;;  %v684_v9 = vpack.c.bf16 %v667_v1, %v667_v1  ;;  %v8979_v1 = vadd.s32 288, %v8106_v62 }
 0x133   : > { %6530 = vmatprep.subr.msk.bf16.mxu0 %vm6529_vm15, %v14092_v0  ;;  %vm1339_vm2 = vmand %vm1211_vm12, %vm14069_vm13  ;;  %vm1216_vm15 = vcmp.eq.f32.partialorder %v8722_v27, %v8156_v52  ;;  %vm14073_vm12 = vcmp.lt.s32.totalorder %v8805_v41, %v8148_v2  ;;  %vm1218_vm13 = vcmp.eq.f32.partialorder %v8759_v35, %v8156_v52 }
 0x134   : > { %vm1341_vm6 = vmand %vm1213_vm14, %vm14076_vm1  ;;  %vm1088_vm14 = vcmp.gt.f32.partialorder %v8722_v27, %v8156_v52  ;;  %v1863_v13 = vshll.u32 %v685_v7, 16  ;;  %v1860_v15 = vshll.u32 %v684_v9, 16  ;;  %vm14079_vm1 = vcmp.lt.s32.totalorder %v8859_v63, %v8158_v49  ;;  %14393 = vst [vmem:[#allocation37_spill] sm:$0xff] %v8979_v1 }
 0x135   : > { %vm1467_vm8 = vmor %vm1083_vm10, %vm1339_vm2  ;;  %vm1090_vm10 = vcmp.gt.f32.partialorder %v8759_v35, %v8156_v52  ;;  %vm14074_vm2 = vcmp.lt.s32.totalorder %v8800_v40, %v8158_v49  ;;  %v8986_v9 = vadd.s32 296, %v8106_v62  ;;  %v9154_v40 = vadd.s32 328, %v8106_v62 }
 0x136   : > { %vm1469_vm11 = vmor %vm1085_vm3, %vm1341_vm6  ;;  %vm1215_vm6 = vcmp.eq.f32.partialorder %v8722_v27, %v8161_v61 }
 0x137   : > { %vm6531_vm4 = vmpackc.low %vm1469_vm11, %vm1467_vm8  ;;  %14394 = vst [vmem:[#allocation38_spill] sm:$0xff] %v8986_v9 }
 0x138   : > { %6532 = vmatpush1.bf16.msk.msra.mxu0 %vm6531_vm4, %v14092_v0  ;;  %vm1344_vm3 = vmand %vm1216_vm15, %vm14072_vm5  ;;  %vm14075_vm15 = vcmp.lt.s32.totalorder %v8805_v41, %v8158_v49  ;;  %vm1217_vm5 = vcmp.eq.f32.partialorder %v8759_v35, %v8161_v61  ;;  %v9149_v41 = vadd.s32 320, %v8106_v62  ;;  %14401 = vst [vmem:[#allocation42_spill] sm:$0xff] %v9154_v40 }
 0x139   : > { %vm1346_vm11 = vmand %vm1218_vm13, %vm14073_vm12  ;;  %vm1087_vm13 = vcmp.gt.f32.partialorder %v8722_v27, %v8161_v61  ;;  %vm14078_vm12 = vcmp.lt.s32.totalorder %v8866_v53, %v8148_v2  ;;  %v8926_v27 = vadd.s32 280, %v8106_v62 }
 0x13a   : > { %vm1472_vm4 = vmor %vm1088_vm14, %vm1344_vm3  ;;  %vm1089_vm14 = vcmp.gt.f32.partialorder %v8759_v35, %v8161_v61  ;;  %v8928_v35 = vpop.permute.xlu1 %895  ;;  %14400 = vst [vmem:[#allocation41_spill] sm:$0xff] %v9149_v41 }
 0x13b   : > { %vm1474_vm8 = vmor %vm1090_vm10, %vm1346_vm11  ;;  %14392 = vst [vmem:[#allocation36_spill] sm:$0xff] %v8926_v27 }
 0x13c   : > { %vm6533_vm9 = vmpackc.low %vm1474_vm8, %vm1472_vm4  ;;  %vm14077_vm4 = vcmp.lt.s32.totalorder %v8859_v63, %v8148_v2  ;;  %vm1220_vm8 = vcmp.eq.f32.partialorder %v8745_v29, %v8156_v52  ;;  %v9141_v63 = vld [vmem:[%s13996_s2 + $0x40] sm:$0xff] }
 0x13d   : > { %6534 = vmatprep.subr.msk.bf16.mxu0 %vm6533_vm9, %v14092_v0  ;;  %vm1343_vm10 = vmand %vm1215_vm6, %vm14074_vm2  ;;  %vm1222_vm6 = vcmp.eq.f32.partialorder %v8789_v39, %v8156_v52 }
 0x13e   : > { %vm1345_vm3 = vmand %vm1217_vm5, %vm14075_vm15  ;;  %vm1092_vm5 = vcmp.gt.f32.partialorder %v8745_v29, %v8156_v52 }
 0x13f   : > { %vm1471_vm11 = vmor %vm1087_vm13, %vm1343_vm10  ;;  %vm1094_vm13 = vcmp.gt.f32.partialorder %v8789_v39, %v8156_v52 }
 0x140   : > { %vm1473_vm9 = vmor %vm1089_vm14, %vm1345_vm3 }
 0x141   : > { %vm6535_vm2 = vmpackc.low %vm1473_vm9, %vm1471_vm11  ;;  %vm14300_vm11 = vcmask 1040384   ;;  %vm1876_vm9 = vsmask.f32 256 }
 0x142   : > { %6536 = vmatpush1.bf16.msk.msra.mxu0 %vm6535_vm2, %v14092_v0  ;;  %vm1348_vm14 = vmand %vm1220_vm8, %vm14077_vm4  ;;  %vm1219_vm2 = vcmp.eq.f32.partialorder %v8745_v29, %v8161_v61  ;;  %vm1221_vm8 = vcmp.eq.f32.partialorder %v8789_v39, %v8161_v61 }
 0x143   : > { %vm1350_vm10 = vmand %vm1222_vm6, %vm14078_vm12  ;;  %vm14081_vm6 = vcmp.lt.s32.totalorder %v8866_v53, %v8158_v49  ;;  %v9131_v53 = vld [vmem:[%s13996_s2 + $0x28] sm:$0xff] }
 0x144   : > { %vm1476_vm3 = vmor %vm1092_vm5, %vm1348_vm14 }
 0x145   : > { %vm1478_vm15 = vmor %vm1094_vm13, %vm1350_vm10  ;;  %vm1091_vm13 = vcmp.gt.f32.partialorder %v8745_v29, %v8161_v61  ;;  %v8965_v29 = vpop.permute.xlu1 %905 }
 0x146   : > { %vm6539_vm4 = vmpackc.low %vm1478_vm15, %vm1476_vm3  ;;  %vm1093_vm15 = vcmp.gt.f32.partialorder %v8789_v39, %v8161_v61  ;;  %vm14171_vm3 = vcmp.lt.s32.totalorder %v8915_v23, %v8148_v2  ;;  %v8951_v39 = vpop.permute.xlu0 %910 }
 0x147   : > { %6540 = vmatprep.subr.msk.bf16.mxu0 %vm6539_vm4, %v14092_v0  ;;  %vm8919_vm5 = vmand %vm14300_vm11, %vm1876_vm9  ;;  %vm1224_vm9 = vcmp.eq.f32.partialorder %v8776_v37, %v8156_v52 }
 0x148   : > { %v14391_v25 = vsel %vm8919_vm5, 4294967295, %v14390_v25  ;;  %v1879_v43 = vsel %vm8919_vm5, 1065369472, %v1863_v13  ;;  %v1878_v54 = vsel %vm8919_vm5, 1065369472, %v1860_v15  ;;  %vm1347_vm4 = vmand %vm1219_vm2, %vm14079_vm1  ;;  %vm14082_vm2 = vcmp.lt.s32.totalorder %v8926_v27, %v8148_v2 }
 0x149   : > { %6537 = vmatprep.mubr.msk.bf16.mxu0 %vm14300_vm11, %v1879_v43  ;;  %vm1349_vm14 = vmand %vm1221_vm8, %vm14081_vm6  ;;  %vm1226_vm1 = vcmp.eq.f32.partialorder %v8825_v46, %v8156_v52  ;;  %vm1096_vm8 = vcmp.gt.f32.partialorder %v8776_v37, %v8156_v52  ;;  %v8997_v13 = vpop.permute.xlu1 %915  ;;  %v14090_v15 = vmov 3  }
 0x14a   : > { %6538 = vmatmul.mubr.msk.bf16.vlgmr.msra.gmra.mrb[0].mxu0 %vm14300_vm11, %v1878_v54  ;;  %vm1475_vm10 = vmor %vm1091_vm13, %vm1347_vm4  ;;  %vm1098_vm13 = vcmp.gt.f32.partialorder %v8825_v46, %v8156_v52  ;;  %v8981_v7 = vpop.permute.xlu0 %920  ;;  %7464 = vset.pattern.permute.xlu0 %v14090_v15  ;;  %v9022_v54 = vld [vmem:[%s13996_s2] sm:$0xff]  ;;  %v9062_v15 = vld [vmem:[%s13996_s2 + $0x10] sm:$0xff] }
 0x14b   : > { %vm1477_vm12 = vmor %vm1093_vm15, %vm1349_vm14  ;;  %4527 = vperm.xlu0 %7464, %v9028_v50  }
 0x14c   : > { %vm6541_vm7 = vmpackc.low %vm1477_vm12, %vm1475_vm10  ;;  %vm1223_vm12 = vcmp.eq.f32.partialorder %v8776_v37, %v8161_v61  ;;  %vm1225_vm10 = vcmp.eq.f32.partialorder %v8825_v46, %v8161_v61 }
 0x14d   : > { %6542 = vmatpush1.bf16.msk.msra.mxu0 %vm6541_vm7, %v14092_v0  ;;  %vm1352_vm4 = vmand %vm1224_vm9, %vm14171_vm3  ;;  %vm14083_vm7 = vcmp.lt.s32.totalorder %v8915_v23, %v8158_v49  ;;  %vm14086_vm9 = vcmp.lt.s32.totalorder %v8926_v27, %v8158_v49  ;;  %v14399_v27 = vmov 1.0|1.0  }
 0x14e   : > { %vm1354_vm15 = vmand %vm1226_vm1, %vm14082_vm2  ;;  %vm1095_vm2 = vcmp.gt.f32.partialorder %v8776_v37, %v8161_v61  ;;  %v9017_v43 = vpop.permute.xlu0 %930  ;;  %v9050_v37 = vpop.permute.xlu1 %925 }
 0x14f   : > { %vm1480_vm14 = vmor %vm1096_vm8, %vm1352_vm4  ;;  %vm1097_vm8 = vcmp.gt.f32.partialorder %v8825_v46, %v8161_v61  ;;  %v14088_v46 = vmov 2   ;;  %4539 = vperm.xlu0 %7464, %v9073_v55  }
 0x150   : > { %vm1482_vm6 = vmor %vm1098_vm13, %vm1354_vm15  ;;  %vm14087_vm15 = vcmp.lt.s32.totalorder %v8979_v1, %v8148_v2  ;;  %7462 = vset.pattern.permute.xlu1 %v14088_v46  ;;  %v9057_v46 = vadd.s32 304, %v8106_v62 }
 0x151   : > { %vm6543_vm1 = vmpackc.low %vm1482_vm6, %vm1480_vm14  ;;  %vm1228_vm14 = vcmp.eq.f32.partialorder %v8807_v42, %v8156_v52  ;;  %3268 = vperm.xlu1 %7462, %v9022_v54  }
 0x152   : > { %6544 = vmatprep.subr.msk.bf16.mxu0 %vm6543_vm1, %v14092_v0  ;;  %vm1351_vm13 = vmand %vm1223_vm12, %vm14083_vm7  ;;  %vm14122_vm12 = vcmp.lt.s32.totalorder %v8986_v9, %v8148_v2  ;;  %vm1230_vm7 = vcmp.eq.f32.partialorder %v8861_v59, %v8156_v52  ;;  %14397 = vst [vmem:[#allocation39_spill] sm:$0xff] %v9057_v46  ;;  %v9085_v23 = vpop.permute.xlu0 %940 }
 0x153   : > { %vm1353_vm4 = vmand %vm1225_vm10, %vm14086_vm9  ;;  %vm1100_vm10 = vcmp.gt.f32.partialorder %v8807_v42, %v8156_v52  ;;  %vm1229_vm9 = vcmp.eq.f32.partialorder %v8861_v59, %v8161_v61 }
 0x154   : > { %vm8999_vm6 = vmor %vm1095_vm2, %vm1351_vm13 }
 0x155   : > { %vm1481_vm1 = vmor %vm1097_vm8, %vm1353_vm4  ;;  %vm1102_vm8 = vcmp.gt.f32.partialorder %v8861_v59, %v8156_v52  ;;  %3276 = vperm.xlu1 %7462, %v9062_v15  }
 0x156   : > { %vm6545_vm2 = vmpackc.low %vm1481_vm1, %vm8999_vm6  ;;  %vm1227_vm6 = vcmp.eq.f32.partialorder %v8807_v42, %v8161_v61 }
 0x157   : > { %6546 = vmatpush1.bf16.msk.msra.mxu0 %vm6545_vm2, %v14092_v0  ;;  %vm1356_vm13 = vmand %vm1228_vm14, %vm14087_vm15  ;;  %vm14100_vm2 = vcmp.lt.s32.totalorder %v8979_v1, %v8158_v49  ;;  %vm14103_vm15 = vcmp.lt.s32.totalorder %v8986_v9, %v8158_v49  ;;  %v9068_v0 = vadd.s32 312, %v8106_v62  ;;  %v9112_v9 = vld [vmem:[%s13996_s2 + $0x30] sm:$0xff]  ;;  %v9126_v1 = vpop.permute.xlu0 %950 }
 0x158   : > { %vm1358_vm4 = vmand %vm1230_vm7, %vm14122_vm12  ;;  %4547 = vperm.xlu0 %7464, %v9112_v9   ;;  %vm1108_vm12 = vcmp.gt.f32.partialorder %v8881_v5, %v8156_v52 }
 0x159   : > { %vm1484_vm1 = vmor %vm1100_vm10, %vm1356_vm13  ;;  %vm1099_vm10 = vcmp.gt.f32.partialorder %v8807_v42, %v8161_v61  ;;  %14398 = vst [vmem:[#allocation40_spill] sm:$0xff] %v9068_v0  ;;  %v9100_v42 = vld [vmem:[%s13996_s2 + $0x18] sm:$0xff] }
 0x15a   : > { %vm1486_vm14 = vmor %vm1102_vm8, %vm1358_vm4  ;;  %vm1101_vm8 = vcmp.gt.f32.partialorder %v8861_v59, %v8161_v61  ;;  %3280 = vperm.xlu1 %7462, %v9100_v42   ;;  %v9107_v59 = vpop.permute.xlu1 %935 }
 0x15b   : > { %vm6547_vm7 = vmpackc.low %vm1486_vm14, %vm1484_vm1  ;;  %vm14121_vm14 = vcmp.lt.s32.totalorder %v9057_v46, %v8148_v2 }
 0x15c   : > { %6548 = vmatprep.subr.msk.bf16.mxu0 %vm6547_vm7, %v14399_v27  ;;  %vm1355_vm13 = vmand %vm1227_vm6, %vm14100_vm2  ;;  %vm1232_vm7 = vcmp.eq.f32.partialorder %v8842_v48, %v8156_v52  ;;  %vm14110_vm2 = vcmp.lt.s32.totalorder %v9068_v0, %v8148_v2  ;;  %4555 = vperm.xlu0 %7464, %v9141_v63  }
 0x15d   : > { %vm1357_vm4 = vmand %vm1229_vm9, %vm14103_vm15  ;;  %vm1234_vm9 = vcmp.eq.f32.partialorder %v8893_v11, %v8156_v52 }
 0x15e   : > { %vm1483_vm1 = vmor %vm1099_vm10, %vm1355_vm13  ;;  %vm1104_vm13 = vcmp.gt.f32.partialorder %v8842_v48, %v8156_v52  ;;  %3288 = vperm.xlu1 %7462, %v9131_v53   ;;  %v9156_v58 = vpop.permute.xlu1 %945 }
 0x15f   : > { %vm1485_vm6 = vmor %vm1101_vm8, %vm1357_vm4  ;;  %vm1106_vm8 = vcmp.gt.f32.partialorder %v8893_v11, %v8156_v52 }
 0x160   : > { %vm6549_vm10 = vmpackc.low %vm1485_vm6, %vm1483_vm1  ;;  %vm1231_vm1 = vcmp.eq.f32.partialorder %v8842_v48, %v8161_v61 }
 0x161   : > { %6550 = vmatpush1.bf16.msk.msra.mxu0 %vm6549_vm10, %v14399_v27  ;;  %vm1360_vm4 = vmand %vm1232_vm7, %vm14121_vm14  ;;  %vm14119_vm7 = vcmp.lt.s32.totalorder %v9057_v46, %v8158_v49 }
 0x162   : > { %vm1362_vm15 = vmand %vm1234_vm9, %vm14110_vm2  ;;  %vm1233_vm9 = vcmp.eq.f32.partialorder %v8893_v11, %v8161_v61  ;;  %vm14120_vm2 = vcmp.lt.s32.totalorder %v9068_v0, %v8158_v49  ;;  %3296 = vperm.xlu1 %7462, %v9170_v33   ;;  %v9197_v0 = vld [vmem:[%s13996_s2 + $0x48] sm:$0xff]  ;;  %v9206_v46 = vpop.permute.xlu1 %955 }
 0x163   : > { %vm1488_vm6 = vmor %vm1104_vm13, %vm1360_vm4  ;;  %vm1103_vm4 = vcmp.gt.f32.partialorder %v8842_v48, %v8161_v61  ;;  %v9186_v48 = vpop.permute.xlu0 %960 }
 0x164   : > { %vm1490_vm10 = vmor %vm1106_vm8, %vm1362_vm15  ;;  %vm1105_vm15 = vcmp.gt.f32.partialorder %v8893_v11, %v8161_v61  ;;  %v9179_v11 = vld [vmem:[%s13996_s2 + $0x50] sm:$0xff] }
 0x165   : > { %vm6551_vm13 = vmpackc.low %vm1490_vm10, %vm1488_vm6  ;;  %4563 = vperm.xlu0 %7464, %v9179_v11  }
 0x166   : > { %6552 = vmatprep.subr.msk.bf16.mxu0 %vm6551_vm13, %v14399_v27  ;;  %vm1359_vm8 = vmand %vm1231_vm1, %vm14119_vm7  ;;  %vm14129_vm1 = vcmp.lt.s32.totalorder %v9149_v41, %v8148_v2  ;;  %vm1236_vm13 = vcmp.eq.f32.partialorder %v8881_v5, %v8156_v52  ;;  %3304 = vperm.xlu1 %7462, %v9197_v0   ;;  %v9262_v44 = vpop.permute.xlu1 %965 }
 0x167   : > { %vm1361_vm6 = vmand %vm1233_vm9, %vm14120_vm2  ;;  %vm14163_vm9 = vcmp.lt.s32.totalorder %v9154_v40, %v8148_v2  ;;  %vm1238_vm2 = vcmp.eq.f32.partialorder %v8928_v35, %v8156_v52  ;;  %v9228_v17 = vpop.permute.xlu0 %970 }
 0x168   : > { %vm1487_vm10 = vmor %vm1103_vm4, %vm1359_vm8  ;;  %vm1110_vm4 = vcmp.gt.f32.partialorder %v8928_v35, %v8156_v52 }
 0x169   : > { %vm1489_vm7 = vmor %vm1105_vm15, %vm1361_vm6  ;;  %4571 = vperm.xlu0 %7464, %v9211_v31   ;;  %vm14145_vm6 = vcmp.lt.s32.totalorder %v9149_v41, %v8158_v49  ;;  %v14404_v41 = vmov 3  }
 0x16a   : > { %vm6553_vm14 = vmpackc.low %vm1489_vm7, %vm1487_vm10  ;;  %vm1235_vm7 = vcmp.eq.f32.partialorder %v8881_v5, %v8161_v61  ;;  %vm1237_vm10 = vcmp.eq.f32.partialorder %v8928_v35, %v8161_v61  ;;  %3312 = vperm.xlu1 %7462, %v9233_v60   ;;  %v9302_v38 = vpop.permute.xlu1 %975 }
 0x16b   : > { %6554 = vmatpush1.bf16.msk.msra.mxu0 %vm6553_vm14, %v14399_v27  ;;  %vm1364_vm15 = vmand %vm1236_vm13, %vm14129_vm1  ;;  %vm14142_vm1 = vcmp.lt.s32.totalorder %v9154_v40, %v8158_v49  ;;  %v9286_v40 = vpop.permute.xlu0 %980 }
 0x16c   : > { %vm1366_vm14 = vmand %vm1238_vm2, %vm14163_vm9  ;;  %vm1107_vm2 = vcmp.gt.f32.partialorder %v8881_v5, %v8161_v61  ;;  %v9271_v5 = vld [vmem:[%s13996_s2 + $0x68] sm:$0xff]  ;;  %vm14173_vm9 = vcmp.lt.s32.totalorder %v9321_v32, %v8158_v49 }
 0x16d   : > { %vm1492_vm8 = vmor %vm1108_vm12, %vm1364_vm15  ;;  %4587 = vperm.xlu0 %7464, %v9244_v45  }
 0x16e   : > { %vm1494_vm13 = vmor %vm1110_vm4, %vm1366_vm14  ;;  %vm1109_vm4 = vcmp.gt.f32.partialorder %v8928_v35, %v8161_v61  ;;  %3320 = vperm.xlu1 %7462, %v9271_v5   ;;  %v9281_v35 = vld [vmem:[%s13996_s2 + $0xa0] sm:$0xff] }
 0x16f   : > { %vm6555_vm12 = vmpackc.low %vm1494_vm13, %vm1492_vm8  ;;  %vm14161_vm13 = vcmp.lt.s32.totalorder %v9226_v21, %v8148_v2 }
 0x170   : > { %6556 = vmatprep.subr.msk.bf16.mxu0 %vm6555_vm12, %v14399_v27  ;;  %vm1363_vm15 = vmand %vm1235_vm7, %vm14145_vm6  ;;  %vm1240_vm12 = vcmp.eq.f32.partialorder %v8904_v19, %v8156_v52 }
 0x171   : > { %vm1365_vm14 = vmand %vm1237_vm10, %vm14142_vm1  ;;  %vm14152_vm10 = vcmp.lt.s32.totalorder %v9239_v51, %v8148_v2  ;;  %4603 = vperm.xlu0 %7464, %v9281_v35   ;;  %vm1112_vm1 = vcmp.gt.f32.partialorder %v8904_v19, %v8156_v52 }
 0x172   : > { %vm1491_vm8 = vmor %vm1107_vm2, %vm1363_vm15  ;;  %vm1242_vm2 = vcmp.eq.f32.partialorder %v8965_v29, %v8156_v52  ;;  %7463 = vset.pattern.permute.xlu1 %v14404_v41 }
 0x173   : > { %vm1493_vm7 = vmor %vm1109_vm4, %vm1365_vm14  ;;  %vm1114_vm4 = vcmp.gt.f32.partialorder %v8965_v29, %v8156_v52  ;;  %4523 = vperm.xlu1 %7463, %v9022_v54   ;;  %v9332_v54 = vpop.permute.xlu0 %990 }
 0x174   : > { %vm6557_vm15 = vmpackc.low %vm1493_vm7, %vm1491_vm8  ;;  %vm1239_vm8 = vcmp.eq.f32.partialorder %v8904_v19, %v8161_v61 }
 0x175   : > { %6558 = vmatpush1.bf16.msk.msra.mxu0 %vm6557_vm15, %v14399_v27  ;;  %vm1368_vm14 = vmand %vm1240_vm12, %vm14161_vm13  ;;  %vm14159_vm15 = vcmp.lt.s32.totalorder %v9226_v21, %v8158_v49  ;;  %4619 = vperm.xlu0 %7464, %v9307_v36   ;;  %vm1241_vm12 = vcmp.eq.f32.partialorder %v8965_v29, %v8161_v61 }
 0x176   : > { %vm1370_vm6 = vmand %vm1242_vm2, %vm14152_vm10  ;;  %vm14160_vm10 = vcmp.lt.s32.totalorder %v9239_v51, %v8158_v49  ;;  %v9383_v51 = vadd.s32 368, %v8106_v62 }
 0x177   : > { %vm1496_vm7 = vmor %vm1112_vm1, %vm1368_vm14  ;;  %vm1111_vm14 = vcmp.gt.f32.partialorder %v8904_v19, %v8161_v61  ;;  %4531 = vperm.xlu1 %7463, %v9062_v15   ;;  %v9352_v19 = vpop.permute.xlu1 %985  ;;  %v9371_v15 = vpop.permute.xlu0 %1000 }
 0x178   : > { %vm1498_vm2 = vmor %vm1114_vm4, %vm1370_vm6  ;;  %vm1113_vm6 = vcmp.gt.f32.partialorder %v8965_v29, %v8161_v61  ;;  %v9365_v29 = vld [vmem:[%s13996_s2 + $0x100] sm:$0xff]  ;;  %14407 = vst [vmem:[#allocation47_spill] sm:$0xff] %v9383_v51 }
 0x179   : > { %vm6559_vm1 = vmpackc.low %vm1498_vm2, %vm1496_vm7  ;;  %4635 = vperm.xlu0 %7464, %v9340_v30  }
 0x17a   : > { %6560 = vmatprep.subr.msk.bf16.mxu0 %vm6559_vm1, %v14399_v27  ;;  %vm1367_vm4 = vmand %vm1239_vm8, %vm14159_vm15  ;;  %vm14162_vm1 = vcmp.lt.s32.totalorder %v9315_v34, %v8148_v2  ;;  %vm1244_vm8 = vcmp.eq.f32.partialorder %v8951_v39, %v8156_v52 }
 0x17b   : > { %vm1369_vm7 = vmand %vm1241_vm12, %vm14160_vm10  ;;  %vm14166_vm12 = vcmp.lt.s32.totalorder %v9321_v32, %v8148_v2  ;;  %vm1246_vm10 = vcmp.eq.f32.partialorder %v8997_v13, %v8156_v52  ;;  %4535 = vperm.xlu1 %7463, %v9100_v42   ;;  %v9388_v42 = vadd.s32 376, %v8106_v62  ;;  %v9390_v21 = vpop.permute.xlu1 %995  ;;  %v9453_v32 = vadd.s32 384, %v8106_v62 }
 0x17c   : > { %vm1495_vm2 = vmor %vm1111_vm14, %vm1367_vm4  ;;  %vm1116_vm14 = vcmp.gt.f32.partialorder %v8951_v39, %v8156_v52  ;;  %vm1118_vm4 = vcmp.gt.f32.partialorder %v8997_v13, %v8156_v52 }
 0x17d   : > { %vm1497_vm15 = vmor %vm1113_vm6, %vm1369_vm7  ;;  %4651 = vperm.xlu0 %7464, %v9365_v29   ;;  %14408 = vst [vmem:[#allocation48_spill] sm:$0xff] %v9388_v42  ;;  %vm14181_vm3 = vcmp.lt.s32.totalorder %v9388_v42, %v8148_v2 }
 0x17e   : > { %vm6561_vm13 = vmpackc.low %vm1497_vm15, %vm1495_vm2  ;;  %vm14206_vm2 = vcmp.lt.s32.totalorder %v9315_v34, %v8158_v49  ;;  %14410 = vst [vmem:[#allocation50_spill] sm:$0xff] %v9453_v32 }
 0x17f   : > { %6562 = vmatpush1.bf16.msk.msra.mxu0 %vm6561_vm13, %v14399_v27  ;;  %vm1372_vm6 = vmand %vm1244_vm8, %vm14162_vm1  ;;  %vm1243_vm13 = vcmp.eq.f32.partialorder %v8951_v39, %v8161_v61  ;;  %vm1245_vm8 = vcmp.eq.f32.partialorder %v8997_v13, %v8161_v61  ;;  %4543 = vperm.xlu1 %7463, %v9131_v53   ;;  %v9424_v53 = vld [vmem:[%s13996_s2 + $0x140] sm:$0xff] }
 0x180   : > { %vm1374_vm15 = vmand %vm1246_vm10, %vm14166_vm12  ;;  %vm1115_vm12 = vcmp.gt.f32.partialorder %v8951_v39, %v8161_v61  ;;  %14409 = vst [vmem:[#allocation49_spill] sm:$0xff] %v9424_v53  ;;  %v9436_v39 = vpop.permute.xlu1 %1005 }
 0x181   : > { %vm1500_vm7 = vmor %vm1116_vm14, %vm1372_vm6  ;;  %4667 = vperm.xlu0 %7464, %v9395_v28  }
 0x182   : > { %vm1502_vm1 = vmor %vm1118_vm4, %vm1374_vm15  ;;  %vm14172_vm15 = vcmp.lt.s32.totalorder %v9383_v51, %v8148_v2 }
 0x183   : > { %vm6563_vm10 = vmpackc.low %vm1502_vm1, %vm1500_vm7  ;;  %vm1117_vm1 = vcmp.gt.f32.partialorder %v8997_v13, %v8161_v61  ;;  %vm1248_vm7 = vcmp.eq.f32.partialorder %v8981_v7, %v8156_v52  ;;  %v9415_v13 = vpop.permute.xlu0 %2013  ;;  %4551 = vperm.xlu1 %7463, %v9170_v33   ;;  %v7568_v33 = vld [vmem:[%s13996_s2 + $0x160] sm:$0xff] }
 0x184   : > { %6564 = vmatprep.subr.msk.bf16.mxu0 %vm6563_vm10, %v14399_v27  ;;  %vm1371_vm14 = vmand %vm1243_vm13, %vm14206_vm2  ;;  %vm1250_vm13 = vcmp.eq.f32.partialorder %v9050_v37, %v8156_v52 }
 0x185   : > { %vm1373_vm4 = vmand %vm1245_vm8, %vm14173_vm9  ;;  %4683 = vperm.xlu0 %7464, %v9424_v53   ;;  %vm1120_vm8 = vcmp.gt.f32.partialorder %v8981_v7, %v8156_v52  ;;  %vm14179_vm9 = vcmp.lt.s32.totalorder %v9388_v42, %v8158_v49  ;;  %v7569_v53 = vld [vmem:[%s13996_s2 + $0x180] sm:$0xff] }
 0x186   : > { %vm1499_vm6 = vmor %vm1115_vm12, %vm1371_vm14 }
 0x187   : > { %vm1501_vm10 = vmor %vm1117_vm1, %vm1373_vm4  ;;  %vm1122_vm1 = vcmp.gt.f32.partialorder %v9050_v37, %v8156_v52  ;;  %v9455_v34 = vpop.permute.xlu0 %2025  ;;  %4559 = vperm.xlu1 %7463, %v9197_v0   ;;  %v9475_v0 = vpop.permute.xlu1 %2017 }
 0x188   : > { %vm6565_vm12 = vmpackc.low %vm1501_vm10, %vm1499_vm6  ;;  %vm1247_vm6 = vcmp.eq.f32.partialorder %v8981_v7, %v8161_v61 }
 0x189   : > { %6566 = vmatpush1.bf16.msk.msra.mxu0 %vm6565_vm12, %v14399_v27  ;;  %vm1376_vm14 = vmand %vm1248_vm7, %vm14172_vm15  ;;  %vm14180_vm12 = vcmp.lt.s32.totalorder %v9383_v51, %v8158_v49  ;;  %4699 = vperm.xlu0 %7464, %v7568_v33   ;;  %vm1249_vm7 = vcmp.eq.f32.partialorder %v9050_v37, %v8161_v61  ;;  %v9461_v33 = vadd.s32 392, %v8106_v62  ;;  %v9541_v51 = vld [vmem:[%s13996_s2 + $0x70] sm:$0xff] }
 0x18a   : > { %vm1378_vm4 = vmand %vm1250_vm13, %vm14181_vm3  ;;  %vm1124_vm3 = vcmp.gt.f32.partialorder %v9017_v43, %v8156_v52 }
 0x18b   : > { %vm1504_vm10 = vmor %vm1120_vm8, %vm1376_vm14  ;;  %vm1119_vm8 = vcmp.gt.f32.partialorder %v8981_v7, %v8161_v61  ;;  %14411 = vst [vmem:[#allocation51_spill] sm:$0xff] %v9461_v33  ;;  %4567 = vperm.xlu1 %7463, %v9233_v60   ;;  %v9491_v7 = vpop.permute.xlu0 %2033  ;;  %v7570_v60 = vld [vmem:[%s13996_s2 + $0x1a0] sm:$0xff] }
 0x18c   : > { %vm1506_vm15 = vmor %vm1122_vm1, %vm1378_vm4  ;;  %vm1121_vm1 = vcmp.gt.f32.partialorder %v9050_v37, %v8161_v61  ;;  %v9510_v37 = vpop.permute.xlu1 %2021 }
 0x18d   : > { %vm6567_vm13 = vmpackc.low %vm1506_vm15, %vm1504_vm10  ;;  %4715 = vperm.xlu0 %7464, %v7569_v53   ;;  %vm14182_vm10 = vcmp.lt.s32.totalorder %v9453_v32, %v8148_v2  ;;  %v9517_v53 = vadd.s32 400, %v8106_v62 }
 0x18e   : > { %6568 = vmatprep.subr.msk.bf16.mxu0 %vm6567_vm13, %v14399_v27  ;;  %vm1375_vm14 = vmand %vm1247_vm6, %vm14180_vm12  ;;  %vm1252_vm13 = vcmp.eq.f32.partialorder %v9017_v43, %v8156_v52 }
 0x18f   : > { %vm1377_vm15 = vmand %vm1249_vm7, %vm14179_vm9  ;;  %vm14183_vm7 = vcmp.lt.s32.totalorder %v9461_v33, %v8148_v2  ;;  %vm1254_vm9 = vcmp.eq.f32.partialorder %v9107_v59, %v8156_v52  ;;  %4575 = vperm.xlu1 %7463, %v9271_v5   ;;  %14412 = vst [vmem:[#allocation52_spill] sm:$0xff] %v9517_v53  ;;  %v9522_v5 = vadd.s32 408, %v8106_v62  ;;  %v9536_v42 = vpop.permute.xlu0 %2041 }
 0x190   : > { %vm1503_vm4 = vmor %vm1119_vm8, %vm1375_vm14  ;;  %vm1126_vm8 = vcmp.gt.f32.partialorder %v9107_v59, %v8156_v52 }
 0x191   : > { %vm1505_vm6 = vmor %vm1121_vm1, %vm1377_vm15  ;;  %4731 = vperm.xlu0 %7464, %v7570_v60   ;;  %14413 = vst [vmem:[#allocation53_spill] sm:$0xff] %v9522_v5  ;;  %v7571_v60 = vld [vmem:[%s13996_s2 + $0x1c0] sm:$0xff] }
 0x192   : > { %vm6569_vm12 = vmpackc.low %vm1505_vm6, %vm1503_vm4  ;;  %vm14188_vm4 = vcmp.lt.s32.totalorder %v9453_v32, %v8158_v49  ;;  %v14416_v32 = vmov 2  }
 0x193   : > { %6570 = vmatpush1.bf16.msk.msra.mxu0 %vm6569_vm12, %v14399_v27  ;;  %vm1380_vm1 = vmand %vm1252_vm13, %vm14182_vm10  ;;  %vm1251_vm12 = vcmp.eq.f32.partialorder %v9017_v43, %v8161_v61  ;;  %vm1253_vm13 = vcmp.eq.f32.partialorder %v9107_v59, %v8161_v61  ;;  %vm14203_vm10 = vcmp.lt.s32.totalorder %v9461_v33, %v8158_v49  ;;  %4579 = vperm.xlu1 %7463, %v9541_v51  }
 0x194   : > { %vm1382_vm14 = vmand %vm1254_vm9, %vm14183_vm7  ;;  %vm1123_vm7 = vcmp.gt.f32.partialorder %v9017_v43, %v8161_v61  ;;  %v9558_v43 = vpop.permute.xlu1 %2029 }
 0x195   : > { %vm1508_vm15 = vmor %vm1124_vm3, %vm1380_vm1  ;;  %4747 = vperm.xlu0 %7464, %v7571_v60   ;;  %vm1125_vm3 = vcmp.gt.f32.partialorder %v9107_v59, %v8161_v61  ;;  %v7573_v59 = vld [vmem:[%s13996_s2 + $0x1e0] sm:$0xff]  ;;  %v9568_v60 = vld [vmem:[%s13996_s2 + $0x78] sm:$0xff] }
 0x196   : > { %vm1510_vm6 = vmor %vm1126_vm8, %vm1382_vm14 }
 0x197   : > { %vm6571_vm9 = vmpackc.low %vm1510_vm6, %vm1508_vm15  ;;  %vm1256_vm15 = vcmp.eq.f32.partialorder %v9085_v23, %v8156_v52  ;;  %4583 = vperm.xlu1 %7463, %v9568_v60  }
 0x198   : > { %6572 = vmatprep.subr.msk.bf16.mxu0 %vm6571_vm9, %v14399_v27  ;;  %vm1379_vm8 = vmand %vm1251_vm12, %vm14188_vm4  ;;  %vm14193_vm12 = vcmp.lt.s32.totalorder %v9517_v53, %v8148_v2  ;;  %vm14202_vm9 = vcmp.lt.s32.totalorder %v9522_v5, %v8148_v2  ;;  %vm1258_vm4 = vcmp.eq.f32.partialorder %v9156_v58, %v8156_v52  ;;  %v9607_v22 = vpop.permute.xlu1 %2037 }
 0x199   : > { %vm1381_vm1 = vmand %vm1253_vm13, %vm14203_vm10  ;;  %4763 = vperm.xlu0 %7464, %v7573_v59   ;;  %vm1128_vm13 = vcmp.gt.f32.partialorder %v9085_v23, %v8156_v52  ;;  %v9580_v59 = vpop.permute.xlu0 %2049 }
 0x19a   : > { %vm1507_vm14 = vmor %vm1123_vm7, %vm1379_vm8 }
 0x19b   : > { %vm1509_vm6 = vmor %vm1125_vm3, %vm1381_vm1  ;;  %vm1130_vm3 = vcmp.gt.f32.partialorder %v9156_v58, %v8156_v52  ;;  %7465 = vset.pattern.permute.xlu1 %v14416_v32 }
 0x19c   : > { %vm6573_vm7 = vmpackc.low %vm1509_vm6, %vm1507_vm14  ;;  %vm1255_vm14 = vcmp.eq.f32.partialorder %v9085_v23, %v8161_v61  ;;  %3336 = vperm.xlu1 %7465, %v7575_v20  }
 0x19d   : > { %6574 = vmatpush1.bf16.msk.msra.mxu0 %vm6573_vm7, %v14399_v27  ;;  %vm1384_vm8 = vmand %vm1256_vm15, %vm14193_vm12  ;;  %vm14204_vm7 = vcmp.lt.s32.totalorder %v9517_v53, %v8158_v49  ;;  %7510 = vset.pattern.permute.xlu0 %v14416_v32  ;;  %vm1257_vm15 = vcmp.eq.f32.partialorder %v9156_v58, %v8161_v61 }
 0x19e   : > { %vm1386_vm1 = vmand %vm1258_vm4, %vm14202_vm9  ;;  %vm14205_vm4 = vcmp.lt.s32.totalorder %v9522_v5, %v8158_v49  ;;  %3272 = vperm.xlu0 %7510, %v9028_v50   ;;  %vm1260_vm9 = vcmp.eq.f32.partialorder %v9126_v1, %v8156_v52  ;;  %v9631_v50 = vpop.permute.xlu0 %2057 }
 0x19f   : > { %vm9584_vm6 = vmor %vm1128_vm13, %vm1384_vm8  ;;  %vm1127_vm8 = vcmp.gt.f32.partialorder %v9085_v23, %v8161_v61  ;;  %v9670_v23 = vadd.s32 440, %v8106_v62 }
 0x1a0   : > { %vm1514_vm12 = vmor %vm1130_vm3, %vm1386_vm1  ;;  %vm1129_vm3 = vcmp.gt.f32.partialorder %v9156_v58, %v8161_v61  ;;  %7466 = vset.pattern.permute.xlu1 %v14404_v41  ;;  %v9647_v58 = vpop.permute.xlu1 %2045 }
 0x1a1   : > { %vm6575_vm13 = vmpackc.low %vm1514_vm12, %vm9584_vm6  ;;  %4591 = vperm.xlu1 %7466, %v7575_v20   ;;  %v9662_v20 = vadd.s32 432, %v8106_v62  ;;  %14420 = vst [vmem:[#allocation57_spill] sm:$0xff] %v9670_v23 }
 0x1a2   : > { %6576 = vmatprep.subr.msk.bf16.mxu0 %vm6575_vm13, %v14399_v27  ;;  %vm1383_vm12 = vmand %vm1255_vm14, %vm14204_vm7  ;;  %vm14209_vm13 = vcmp.lt.s32.totalorder %v9596_v26, %v8148_v2  ;;  %3284 = vperm.xlu0 %7510, %v9073_v55   ;;  %vm14207_vm14 = vcmp.lt.s32.totalorder %v9605_v24, %v8148_v2  ;;  %vm1262_vm7 = vcmp.eq.f32.partialorder %v9206_v46, %v8156_v52  ;;  %v9664_v55 = vpop.permute.xlu0 %2065 }
 0x1a3   : > { %vm1385_vm1 = vmand %vm1257_vm15, %vm14205_vm4  ;;  %vm1261_vm4 = vcmp.eq.f32.partialorder %v9206_v46, %v8161_v61  ;;  %14419 = vst [vmem:[#allocation56_spill] sm:$0xff] %v9662_v20 }
 0x1a4   : > { %vm1511_vm6 = vmor %vm1127_vm8, %vm1383_vm12  ;;  %vm1132_vm8 = vcmp.gt.f32.partialorder %v9126_v1, %v8156_v52  ;;  %vm1134_vm12 = vcmp.gt.f32.partialorder %v9206_v46, %v8156_v52  ;;  %v9691_v33 = vpop.permute.xlu1 %2053 }
 0x1a5   : > { %vm1513_vm10 = vmor %vm1129_vm3, %vm1385_vm1  ;;  %7467 = vset.pattern.permute.xlu1 %v14416_v32 }
 0x1a6   : > { %vm6577_vm15 = vmpackc.low %vm1513_vm10, %vm1511_vm6  ;;  %3292 = vperm.xlu0 %7510, %v9112_v9   ;;  %vm1259_vm10 = vcmp.eq.f32.partialorder %v9126_v1, %v8161_v61  ;;  %v7576_v9 = vld [vmem:[%s13996_s2 + $0x90] sm:$0xff] }
 0x1a7   : > { %6578 = vmatpush1.bf16.msk.msra.mxu0 %vm6577_vm15, %v14399_v27  ;;  %vm1388_vm3 = vmand %vm1260_vm9, %vm14209_vm13  ;;  %vm14208_vm15 = vcmp.lt.s32.totalorder %v9596_v26, %v8158_v49  ;;  %vm14210_vm9 = vcmp.lt.s32.totalorder %v9605_v24, %v8158_v49  ;;  %3340 = vperm.xlu1 %7467, %v7576_v9   ;;  %v14240_v24 = vsub.s32 5, %v8106_v62 }
 0x1a8   : > { %vm1390_vm1 = vmand %vm1262_vm7, %vm14207_vm14 }
 0x1a9   : > { %vm1516_vm6 = vmor %vm1132_vm8, %vm1388_vm3  ;;  %vm1131_vm8 = vcmp.gt.f32.partialorder %v9126_v1, %v8161_v61  ;;  %v9720_v1 = vpop.permute.xlu1 %2061 }
 0x1aa   : > { %vm1518_vm2 = vmor %vm1134_vm12, %vm1390_vm1  ;;  %vm1133_vm12 = vcmp.gt.f32.partialorder %v9206_v46, %v8161_v61  ;;  %3300 = vperm.xlu0 %7510, %v9141_v63   ;;  %v9704_v63 = vpop.permute.xlu0 %2073  ;;  %v9727_v46 = vadd.s32 448, %v8106_v62 }
 0x1ab   : > { %vm6579_vm7 = vmpackc.low %vm1518_vm2, %vm1516_vm6  ;;  %vm14222_vm6 = vcmp.lt.s32.totalorder %v9662_v20, %v8148_v2  ;;  %7468 = vset.pattern.permute.xlu1 %v14404_v41 }
 0x1ac   : > { %6580 = vmatprep.subr.msk.bf16.mxu0 %vm6579_vm7, %v14399_v27  ;;  %vm1387_vm2 = vmand %vm1259_vm10, %vm14208_vm15  ;;  %vm1264_vm7 = vcmp.eq.f32.partialorder %v9186_v48, %v8156_v52  ;;  %vm14211_vm10 = vcmp.lt.s32.totalorder %v9670_v23, %v8148_v2  ;;  %vm1266_vm15 = vcmp.eq.f32.partialorder %v9262_v44, %v8156_v52  ;;  %4595 = vperm.xlu1 %7468, %v7576_v9   ;;  %v9736_v9 = vadd.s32 456, %v8106_v62 }
 0x1ad   : > { %vm1389_vm3 = vmand %vm1261_vm4, %vm14210_vm9  ;;  %vm1136_vm4 = vcmp.gt.f32.partialorder %v9186_v48, %v8156_v52  ;;  %14421 = vst [vmem:[#allocation58_spill] sm:$0xff] %v9727_v46 }
 0x1ae   : > { %vm1515_vm1 = vmor %vm1131_vm8, %vm1387_vm2  ;;  %3308 = vperm.xlu0 %7510, %v9179_v11   ;;  %vm1138_vm8 = vcmp.gt.f32.partialorder %v9262_v44, %v8156_v52  ;;  %vm1263_vm2 = vcmp.eq.f32.partialorder %v9186_v48, %v8161_v61  ;;  %v7577_v11 = vld [vmem:[%s13996_s2 + $0x98] sm:$0xff]  ;;  %14422 = vst [vmem:[#allocation59_spill] sm:$0xff] %v9736_v9 }
 0x1af   : > { %vm1517_vm14 = vmor %vm1133_vm12, %vm1389_vm3 }
 0x1b0   : > { %vm6581_vm13 = vmpackc.low %vm1517_vm14, %vm1515_vm1  ;;  %vm14212_vm1 = vcmp.lt.s32.totalorder %v9662_v20, %v8158_v49  ;;  %4599 = vperm.xlu1 %7468, %v7577_v11  }
 0x1b1   : > { %6582 = vmatpush1.bf16.msk.msra.mxu0 %vm6581_vm13, %v14399_v27  ;;  %vm1392_vm12 = vmand %vm1264_vm7, %vm14222_vm6  ;;  %vm1265_vm13 = vcmp.eq.f32.partialorder %v9262_v44, %v8161_v61  ;;  %vm14219_vm7 = vcmp.lt.s32.totalorder %v9670_v23, %v8158_v49  ;;  %v9791_v23 = vadd.s32 464, %v8106_v62 }
 0x1b2   : > { %vm1394_vm14 = vmand %vm1266_vm15, %vm14211_vm10  ;;  %3316 = vperm.xlu0 %7510, %v9211_v31   ;;  %v9747_v31 = vpop.permute.xlu0 %2081 }
 0x1b3   : > { %vm1520_vm3 = vmor %vm1136_vm4, %vm1392_vm12  ;;  %vm1135_vm4 = vcmp.gt.f32.partialorder %v9186_v48, %v8161_v61  ;;  %v7578_v48 = vld [vmem:[%s13996_s2 + $0xa8] sm:$0xff]  ;;  %14423 = vst [vmem:[#allocation60_spill] sm:$0xff] %v9791_v23 }
 0x1b4   : > { %vm1522_vm9 = vmor %vm1138_vm8, %vm1394_vm14  ;;  %vm1137_vm8 = vcmp.gt.f32.partialorder %v9262_v44, %v8161_v61  ;;  %7469 = vset.pattern.permute.xlu1 %v14416_v32  ;;  %v9762_v44 = vpop.permute.xlu1 %2069 }
 0x1b5   : > { %vm6583_vm15 = vmpackc.low %vm1522_vm9, %vm1520_vm3  ;;  %vm14213_vm3 = vcmp.lt.s32.totalorder %v9727_v46, %v8148_v2  ;;  %3352 = vperm.xlu1 %7469, %v7578_v48  }
 0x1b6   : > { %6584 = vmatprep.subr.msk.bf16.mxu0 %vm6583_vm15, %v14399_v27  ;;  %vm1391_vm12 = vmand %vm1263_vm2, %vm14212_vm1  ;;  %vm1268_vm15 = vcmp.eq.f32.partialorder %v9228_v17, %v8156_v52  ;;  %3324 = vperm.xlu0 %7510, %v9541_v51   ;;  %vm14216_vm2 = vcmp.lt.s32.totalorder %v9736_v9, %v8148_v2  ;;  %vm1270_vm1 = vcmp.eq.f32.partialorder %v9302_v38, %v8156_v52  ;;  %v9778_v51 = vpop.permute.xlu0 %2089 }
 0x1b7   : > { %vm1393_vm9 = vmand %vm1265_vm13, %vm14219_vm7 }
 0x1b8   : > { %vm1519_vm14 = vmor %vm1135_vm4, %vm1391_vm12  ;;  %vm1140_vm4 = vcmp.gt.f32.partialorder %v9228_v17, %v8156_v52  ;;  %v9798_v20 = vpop.permute.xlu1 %2077 }
 0x1b9   : > { %vm1521_vm10 = vmor %vm1137_vm8, %vm1393_vm9  ;;  %vm1142_vm8 = vcmp.gt.f32.partialorder %v9302_v38, %v8156_v52  ;;  %7470 = vset.pattern.permute.xlu1 %v14404_v41 }
 0x1ba   : > { %vm6585_vm13 = vmpackc.low %vm1521_vm10, %vm1519_vm14  ;;  %3328 = vperm.xlu0 %7510, %v9568_v60   ;;  %vm1267_vm10 = vcmp.eq.f32.partialorder %v9228_v17, %v8161_v61  ;;  %4607 = vperm.xlu1 %7470, %v7578_v48   ;;  %v9796_v60 = vadd.s32 472, %v8106_v62 }
 0x1bb   : > { %6586 = vmatpush1.bf16.msk.msra.mxu0 %vm6585_vm13, %v14399_v27  ;;  %vm1396_vm12 = vmand %vm1268_vm15, %vm14213_vm3  ;;  %vm14220_vm13 = vcmp.lt.s32.totalorder %v9727_v46, %v8158_v49  ;;  %vm1269_vm15 = vcmp.eq.f32.partialorder %v9302_v38, %v8161_v61  ;;  %v7581_v46 = vld [vmem:[%s13996_s2 + $0xc8] sm:$0xff] }
 0x1bc   : > { %vm1398_vm9 = vmand %vm1270_vm1, %vm14216_vm2  ;;  %vm14221_vm1 = vcmp.lt.s32.totalorder %v9736_v9, %v8158_v49  ;;  %14424 = vst [vmem:[#allocation61_spill] sm:$0xff] %v9796_v60  ;;  %v9858_v9 = vadd.s32 488, %v8106_v62 }
 0x1bd   : > { %vm1524_vm14 = vmor %vm1140_vm4, %vm1396_vm12  ;;  %vm1139_vm4 = vcmp.gt.f32.partialorder %v9228_v17, %v8161_v61  ;;  %v9835_v17 = vpop.permute.xlu1 %2085 }
 0x1be   : > { %vm1526_vm3 = vmor %vm1142_vm8, %vm1398_vm9  ;;  %vm1141_vm8 = vcmp.gt.f32.partialorder %v9302_v38, %v8161_v61  ;;  %3332 = vperm.xlu0 %7510, %v9244_v45   ;;  %v9817_v38 = vpop.permute.xlu0 %2097  ;;  %7471 = vset.pattern.permute.xlu1 %v14416_v32  ;;  %v7579_v45 = vld [vmem:[%s13996_s2 + $0xb0] sm:$0xff]  ;;  %14426 = vst [vmem:[#allocation63_spill] sm:$0xff] %v9858_v9 }
 0x1bf   : > { %vm6587_vm2 = vmpackc.low %vm1526_vm3, %vm1524_vm14  ;;  %vm1272_vm14 = vcmp.eq.f32.partialorder %v9286_v40, %v8156_v52  ;;  %3356 = vperm.xlu1 %7471, %v7579_v45  }
 0x1c0   : > { %6588 = vmatprep.subr.msk.bf16.mxu0 %vm6587_vm2, %v14399_v27  ;;  %vm1395_vm3 = vmand %vm1267_vm10, %vm14220_vm13  ;;  %vm14238_vm2 = vcmp.lt.s32.totalorder %v9791_v23, %v8148_v2  ;;  %vm14225_vm10 = vcmp.lt.s32.totalorder %v9796_v60, %v8148_v2  ;;  %vm1274_vm13 = vcmp.eq.f32.partialorder %v9352_v19, %v8156_v52 }
 0x1c1   : > { %vm1397_vm12 = vmand %vm1269_vm15, %vm14221_vm1  ;;  %vm1273_vm1 = vcmp.eq.f32.partialorder %v9352_v19, %v8161_v61 }
 0x1c2   : > { %vm1523_vm9 = vmor %vm1139_vm4, %vm1395_vm3  ;;  %vm1144_vm4 = vcmp.gt.f32.partialorder %v9286_v40, %v8156_v52  ;;  %3344 = vperm.xlu0 %7510, %v7577_v11   ;;  %v9850_v11 = vadd.s32 480, %v8106_v62  ;;  %v9852_v48 = vpop.permute.xlu0 %2105 }
 0x1c3   : > { %vm1525_vm7 = vmor %vm1141_vm8, %vm1397_vm12  ;;  %vm1146_vm8 = vcmp.gt.f32.partialorder %v9352_v19, %v8156_v52  ;;  %7472 = vset.pattern.permute.xlu1 %v14404_v41 }
 0x1c4   : > { %vm6589_vm15 = vmpackc.low %vm1525_vm7, %vm1523_vm9  ;;  %vm1271_vm7 = vcmp.eq.f32.partialorder %v9286_v40, %v8161_v61  ;;  %14425 = vst [vmem:[#allocation62_spill] sm:$0xff] %v9850_v11  ;;  %4611 = vperm.xlu1 %7472, %v7579_v45  }
 0x1c5   : > { %6590 = vmatpush1.bf16.msk.msra.mxu0 %vm6589_vm15, %v14399_v27  ;;  %vm1400_vm3 = vmand %vm1272_vm14, %vm14238_vm2  ;;  %vm14227_vm15 = vcmp.lt.s32.totalorder %v9791_v23, %v8158_v49  ;;  %vm14226_vm14 = vcmp.lt.s32.totalorder %v9796_v60, %v8158_v49  ;;  %v9914_v23 = vadd.s32 496, %v8106_v62 }
 0x1c6   : > { %vm1402_vm12 = vmand %vm1274_vm13, %vm14225_vm10  ;;  %3348 = vperm.xlu0 %7510, %v9281_v35   ;;  %v9872_v35 = vpop.permute.xlu1 %2093  ;;  %v9907_v60 = vpop.permute.xlu0 %2113 }
 0x1c7   : > { %vm1528_vm9 = vmor %vm1144_vm4, %vm1400_vm3  ;;  %vm1143_vm4 = vcmp.gt.f32.partialorder %v9286_v40, %v8161_v61  ;;  %14429 = vst [vmem:[#allocation64_spill] sm:$0xff] %v9914_v23 }
 0x1c8   : > { %vm1530_vm6 = vmor %vm1146_vm8, %vm1402_vm12  ;;  %vm1145_vm8 = vcmp.gt.f32.partialorder %v9352_v19, %v8161_v61  ;;  %v7580_v19 = vld [vmem:[%s13996_s2 + $0xb8] sm:$0xff] }
 0x1c9   : > { %vm6591_vm13 = vmpackc.low %vm1530_vm6, %vm1528_vm9  ;;  %vm14237_vm9 = vcmp.lt.s32.totalorder %v9850_v11, %v8148_v2  ;;  %4615 = vperm.xlu1 %7472, %v7580_v19  }
 0x1ca   : > { %6592 = vmatprep.subr.msk.bf16.mxu0 %vm6591_vm13, %v14399_v27  ;;  %vm1399_vm3 = vmand %vm1271_vm7, %vm14227_vm15  ;;  %vm1276_vm13 = vcmp.eq.f32.partialorder %v9332_v54, %v8156_v52  ;;  %vm14236_vm7 = vcmp.lt.s32.totalorder %v9858_v9, %v8148_v2  ;;  %v9905_v45 = vpop.permute.xlu1 %2101  ;;  %3360 = vperm.xlu0 %7510, %v7580_v19   ;;  %v9924_v19 = vadd.s32 504, %v8106_v62 }
 0x1cb   : > { %vm1401_vm6 = vmand %vm1273_vm1, %vm14226_vm14  ;;  %vm1278_vm1 = vcmp.eq.f32.partialorder %v9390_v21, %v8156_v52 }
 0x1cc   : > { %vm1527_vm12 = vmor %vm1143_vm4, %vm1399_vm3  ;;  %vm1148_vm4 = vcmp.gt.f32.partialorder %v9332_v54, %v8156_v52  ;;  %vm1150_vm3 = vcmp.gt.f32.partialorder %v9390_v21, %v8156_v52  ;;  %14430 = vst [vmem:[#allocation65_spill] sm:$0xff] %v9924_v19  ;;  %vm14243_vm2 = vcmp.lt.s32.totalorder %v9924_v19, %v8148_v2 }
 0x1cd   : > { %vm1529_vm10 = vmor %vm1145_vm8, %vm1401_vm6  ;;  %7473 = vset.pattern.permute.xlu1 %v14416_v32 }
 0x1ce   : > { %vm6593_vm14 = vmpackc.low %vm1529_vm10, %vm1527_vm12  ;;  %vm1275_vm10 = vcmp.eq.f32.partialorder %v9332_v54, %v8161_v61  ;;  %vm1277_vm12 = vcmp.eq.f32.partialorder %v9390_v21, %v8161_v61  ;;  %3368 = vperm.xlu1 %7473, %v7581_v46  }
 0x1cf   : > { %6594 = vmatpush1.bf16.msk.msra.mxu0 %vm6593_vm14, %v14399_v27  ;;  %vm1404_vm15 = vmand %vm1276_vm13, %vm14237_vm9  ;;  %vm14245_vm14 = vcmp.lt.s32.totalorder %v9850_v11, %v8158_v49 }
 0x1d0   : > { %vm1406_vm8 = vmand %vm1278_vm1, %vm14236_vm7  ;;  %vm14239_vm1 = vcmp.lt.s32.totalorder %v9858_v9, %v8158_v49  ;;  %vm14244_vm7 = vcmp.lt.s32.totalorder %v9914_v23, %v8148_v2 }
 0x1d1   : > { %vm9899_vm6 = vmor %vm1148_vm4, %vm1404_vm15  ;;  %vm1147_vm4 = vcmp.gt.f32.partialorder %v9332_v54, %v8161_v61  ;;  %v7582_v54 = vld [vmem:[%s8113_s28] sm:$0xff] }
 0x1d2   : > { %vm1534_vm13 = vmor %vm1150_vm3, %vm1406_vm8  ;;  %vm1149_vm3 = vcmp.gt.f32.partialorder %v9390_v21, %v8161_v61  ;;  %7474 = vset.pattern.permute.xlu1 %v14404_v41  ;;  %v9948_v21 = vpop.permute.xlu1 %2109  ;;  %v2275_v40 = vrot.slane %v7582_v54, %v14240_v24  ;;  %v9972_v24 = vpop.permute.xlu0 %2121  ;;  %3364 = vperm.xlu0 %7510, %v9307_v36   ;;  %v2271_v9 = vrot.slane %v7582_v54, %v8840_v47 }
 0x1d3   : > { %vm6595_vm15 = vmpackc.low %vm1534_vm13, %vm9899_vm6  ;;  %4623 = vperm.xlu1 %7474, %v7581_v46  }
 0x1d4   : > { %6596 = vmatprep.subr.msk.bf16.mxu0 %vm6595_vm15, %v14399_v27  ;;  %vm1403_vm8 = vmand %vm1275_vm10, %vm14245_vm14  ;;  %vm1280_vm15 = vcmp.eq.f32.partialorder %v9371_v15, %v8156_v52  ;;  %vm1282_vm10 = vcmp.eq.f32.partialorder %v9436_v39, %v8156_v52  ;;  %v10008_v54 = vrot.slane %v2271_v9, %v8840_v47  ;;  %v10111_v9 = vld [vmem:[%s13996_s2 + $0xf8] sm:$0xff] }
 0x1d5   : > { %vm1405_vm6 = vmand %vm1277_vm12, %vm14239_vm1  ;;  %vm1279_vm1 = vcmp.eq.f32.partialorder %v9371_v15, %v8161_v61 }
 0x1d6   : > { %vm1531_vm13 = vmor %vm1147_vm4, %vm1403_vm8  ;;  %vm1152_vm4 = vcmp.gt.f32.partialorder %v9371_v15, %v8156_v52  ;;  %v9988_v36 = vpop.permute.xlu1 %2117 }
 0x1d7   : > { %vm1533_vm9 = vmor %vm1149_vm3, %vm1405_vm6  ;;  %vm1154_vm3 = vcmp.gt.f32.partialorder %v9436_v39, %v8156_v52  ;;  %v9976_v52 = vrot.slane %v2275_v40, %v8840_v47  ;;  %7475 = vset.pattern.permute.xlu1 %v14416_v32  ;;  %v7583_v40 = vld [vmem:[%s13996_s2 + $0xd0] sm:$0xff] }
 0x1d8   : > { %vm6597_vm12 = vmpackc.low %vm1533_vm9, %vm1531_vm13  ;;  %vm14248_vm13 = vcmp.lt.s32.totalorder %v9914_v23, %v8158_v49  ;;  %3372 = vperm.xlu1 %7475, %v7583_v40  }
 0x1d9   : > { %6598 = vmatpush1.bf16.msk.msra.mxu0 %vm6597_vm12, %v14399_v27  ;;  %vm1408_vm8 = vmand %vm1280_vm15, %vm14244_vm7  ;;  %vm1281_vm15 = vcmp.eq.f32.partialorder %v9436_v39, %v8161_v61  ;;  %vm14247_vm12 = vcmp.lt.s32.totalorder %v9924_v19, %v8158_v49  ;;  %vm2417_vm7 = vcmp.eq.f32.partialorder %v9475_v0, %v9976_v52 }
 0x1da   : > { %vm1410_vm6 = vmand %vm1282_vm10, %vm14243_vm2  ;;  %vm2415_vm2 = vcmp.eq.f32.partialorder %v9415_v13, %v9976_v52 }
 0x1db   : > { %vm9966_vm9 = vmor %vm1152_vm4, %vm1408_vm8  ;;  %vm1151_vm8 = vcmp.gt.f32.partialorder %v9371_v15, %v8161_v61  ;;  %v7584_v15 = vld [vmem:[%s13996_s2 + $0xd8] sm:$0xff] }
 0x1dc   : > { %vm1538_vm10 = vmor %vm1154_vm3, %vm1410_vm6  ;;  %vm1153_vm3 = vcmp.gt.f32.partialorder %v9436_v39, %v8161_v61  ;;  %7476 = vset.pattern.permute.xlu1 %v14404_v41  ;;  %v10026_v61 = vpop.permute.xlu0 %2129  ;;  %3376 = vperm.xlu0 %7510, %v7584_v15   ;;  %v10033_v39 = vpop.permute.xlu1 %2125 }
 0x1dd   : > { %vm6599_vm4 = vmpackc.low %vm1538_vm10, %vm9966_vm9  ;;  %4627 = vperm.xlu1 %7476, %v7583_v40  }
 0x1de   : > { %6600 = vmatprep.subr.msk.bf16.mxu0 %vm6599_vm4, %v14399_v27  ;;  %vm1407_vm6 = vmand %vm1279_vm1, %vm14248_vm13  ;;  %vm2287_vm1 = vcmp.gt.f32.partialorder %v9415_v13, %v9976_v52  ;;  %vm2291_vm13 = vcmp.gt.f32.partialorder %v9510_v37, %v9976_v52 }
 0x1df   : > { %vm1409_vm9 = vmand %vm1281_vm15, %vm14247_vm12  ;;  %vm2289_vm15 = vcmp.gt.f32.partialorder %v9475_v0, %v9976_v52  ;;  %vm2421_vm12 = vcmp.eq.f32.partialorder %v9455_v34, %v9976_v52 }
 0x1e0   : > { %vm1535_vm10 = vmor %vm1151_vm8, %vm1407_vm6 }
 0x1e1   : > { %vm1537_vm4 = vmor %vm1153_vm3, %vm1409_vm9  ;;  %vm14433_vm3 = vcmp.lt.s32.totalorder %v8151_v57, %v8148_v2 }
 0x1e2   : > { %vm6601_vm14 = vmpackc.low %vm1537_vm4, %vm1535_vm10  ;;  %vm2414_vm10 = vcmp.eq.f32.partialorder %v9415_v13, %v10008_v54  ;;  %vm2416_vm4 = vcmp.eq.f32.partialorder %v9475_v0, %v10008_v54 }
 0x1e3   : > { %6602 = vmatpush1.bf16.msk.msra.mxu0 %vm6601_vm14, %v14399_v27  ;;  %vm2543_vm8 = vmand %vm2415_vm2, %vm14246_vm0 }
 0x1e4   : > { %vm2545_vm6 = vmand %vm2417_vm7, %vm14433_vm3  ;;  %vm2286_vm7 = vcmp.gt.f32.partialorder %v9415_v13, %v10008_v54  ;;  %v10063_v13 = vpop.permute.xlu1 %2133  ;;  %4631 = vperm.xlu1 %7476, %v7584_v15  }
 0x1e5   : > { %vm2671_vm9 = vmor %vm2287_vm1, %vm2543_vm8  ;;  %vm2288_vm1 = vcmp.gt.f32.partialorder %v9475_v0, %v10008_v54  ;;  %vm14434_vm8 = vcmp.lt.s32.totalorder %v8106_v62, %v8158_v49  ;;  %v10067_v0 = vpop.permute.xlu0 %2137  ;;  %3380 = vperm.xlu0 %7510, %v9340_v30  }
 0x1e6   : > { %vm2673_vm14 = vmor %vm2289_vm15, %vm2545_vm6  ;;  %vm14435_vm15 = vcmp.lt.s32.totalorder %v8151_v57, %v8158_v49 }
 0x1e7   : > { %vm6734_vm2 = vmpackc.low %vm2673_vm14, %vm2671_vm9  ;;  %vm2419_vm9 = vcmp.eq.f32.partialorder %v9510_v37, %v9976_v52 }
 0x1e8   : > { %6735 = vmatprep.subr.msk.bf16.mxu1 %vm6734_vm2, %v14399_v27  ;;  %vm2542_vm3 = vmand %vm2414_vm10, %vm14434_vm8  ;;  %vm2293_vm10 = vcmp.gt.f32.partialorder %v9455_v34, %v9976_v52  ;;  %vm14437_vm8 = vcmp.lt.s32.totalorder %v8203_v56, %v8148_v2  ;;  %7477 = vset.pattern.permute.xlu1 %v14416_v32  ;;  %v10099_v30 = vpop.permute.xlu1 %2141 }
 0x1e9   : > { %vm2544_vm6 = vmand %vm2416_vm4, %vm14435_vm15  ;;  %vm14436_vm4 = vcmp.lt.s32.totalorder %v8192_v4, %v8148_v2 }
 0x1ea   : > { %vm2670_vm0 = vmor %vm2286_vm7, %vm2542_vm3 }
 0x1eb   : > { %vm2672_vm14 = vmor %vm2288_vm1, %vm2544_vm6  ;;  %vm2420_vm6 = vcmp.eq.f32.partialorder %v9455_v34, %v10008_v54 }
 0x1ec   : > { %vm6736_vm2 = vmpackc.low %vm2672_vm14, %vm2670_vm0  ;;  %vm2418_vm0 = vcmp.eq.f32.partialorder %v9510_v37, %v10008_v54  ;;  %vm2290_vm14 = vcmp.gt.f32.partialorder %v9510_v37, %v10008_v54  ;;  %v10106_v37 = vpop.permute.xlu0 %2145  ;;  %3392 = vperm.xlu0 %7510, %v10111_v9  }
 0x1ed   : > { %6737 = vmatpush1.bf16.msk.msra.mxu1 %vm6736_vm2, %v14399_v27  ;;  %vm2547_vm7 = vmand %vm2419_vm9, %vm14436_vm4 }
 0x1ee   : > { %vm2549_vm1 = vmand %vm2421_vm12, %vm14437_vm8  ;;  %vm14438_vm12 = vcmp.lt.s32.totalorder %v8192_v4, %v8158_v49  ;;  %vm2423_vm8 = vcmp.eq.f32.partialorder %v9558_v43, %v9976_v52 }
 0x1ef   : > { %vm2675_vm3 = vmor %vm2291_vm13, %vm2547_vm7  ;;  %vm2292_vm13 = vcmp.gt.f32.partialorder %v9455_v34, %v10008_v54  ;;  %v7585_v34 = vld [vmem:[%s13996_s2 + $0xe8] sm:$0xff] }
 0x1f0   : > { %vm2677_vm15 = vmor %vm2293_vm10, %vm2549_vm1  ;;  %vm14439_vm10 = vcmp.lt.s32.totalorder %v8203_v56, %v8158_v49  ;;  %3384 = vperm.xlu1 %7477, %v7585_v34  }
 0x1f1   : > { %vm6738_vm9 = vmpackc.low %vm2677_vm15, %vm2675_vm3  ;;  %vm2425_vm3 = vcmp.eq.f32.partialorder %v9491_v7, %v9976_v52 }
 0x1f2   : > { %6739 = vmatprep.subr.msk.bf16.mxu1 %vm6738_vm9, %v14399_v27  ;;  %vm2546_vm2 = vmand %vm2418_vm0, %vm14438_vm12  ;;  %vm2295_vm9 = vcmp.gt.f32.partialorder %v9558_v43, %v9976_v52  ;;  %vm2297_vm0 = vcmp.gt.f32.partialorder %v9491_v7, %v9976_v52  ;;  %vm14441_vm12 = vcmp.lt.s32.totalorder %v8248_v6, %v8148_v2 }
 0x1f3   : > { %vm2548_vm4 = vmand %vm2420_vm6, %vm14439_vm10  ;;  %vm14440_vm6 = vcmp.lt.s32.totalorder %v8243_v3, %v8148_v2  ;;  %vm2422_vm10 = vcmp.eq.f32.partialorder %v9558_v43, %v10008_v54 }
 0x1f4   : > { %vm2674_vm7 = vmor %vm2290_vm14, %vm2546_vm2  ;;  %7478 = vset.pattern.permute.xlu1 %v14404_v41 }
 0x1f5   : > { %vm2676_vm1 = vmor %vm2292_vm13, %vm2548_vm4 }
 0x1f6   : > { %vm6740_vm15 = vmpackc.low %vm2676_vm1, %vm2674_vm7  ;;  %vm2424_vm7 = vcmp.eq.f32.partialorder %v9491_v7, %v10008_v54  ;;  %vm2294_vm1 = vcmp.gt.f32.partialorder %v9558_v43, %v10008_v54  ;;  %v7587_v43 = vld [vmem:[%s13997_s3] sm:$0xf] }
 0x1f7   : > { %6741 = vmatpush1.bf16.msk.msra.mxu1 %vm6740_vm15, %v14399_v27  ;;  %vm2551_vm14 = vmand %vm2423_vm8, %vm14440_vm6  ;;  %vm14442_vm15 = vcmp.lt.s32.totalorder %v8243_v3, %v8158_v49 }
 0x1f8   : > { %vm2553_vm13 = vmand %vm2425_vm3, %vm14441_vm12  ;;  %vm2296_vm3 = vcmp.gt.f32.partialorder %v9491_v7, %v10008_v54  ;;  %vm2427_vm12 = vcmp.eq.f32.partialorder %v9607_v22, %v9976_v52  ;;  %v14444_v7 = vmov 0.0  }
 0x1f9   : > { %vm2679_vm2 = vmor %vm2295_vm9, %vm2551_vm14 }
 0x1fa   : > { %vm2681_vm4 = vmor %vm2297_vm0, %vm2553_vm13  ;;  %vm14443_vm0 = vcmp.lt.s32.totalorder %v8248_v6, %v8158_v49  ;;  %vm1984_vm13 = vcmp.eq.s32.totalorder %v7587_v43, 1  ;;  %v10151_v43 = vpop.permute.xlu1 %2149  ;;  %4639 = vperm.xlu1 %7478, %v7585_v34  }
 0x1fb   : > { %vm6742_vm8 = vmpackc.low %vm2681_vm4, %vm2679_vm2  ;;  %vm2429_vm4 = vcmp.eq.f32.partialorder %v9536_v42, %v9976_v52  ;;  %v10134_v46 = vsel %vm1984_vm13, 1.0, %v14444_v7  ;;  %vm2428_vm13 = vcmp.eq.f32.partialorder %v9536_v42, %v10008_v54 }
 0x1fc   : > { %6743 = vmatprep.subr.msk.bf16.mxu1 %vm6742_vm8, %v14399_v27  ;;  %vm2550_vm9 = vmand %vm2422_vm10, %vm14442_vm15  ;;  %v1995_v40 = vrot.slane %v10134_v46, %v8840_v47  ;;  %vm2301_vm8 = vcmp.gt.f32.partialorder %v9536_v42, %v9976_v52  ;;  %vm14446_vm15 = vcmp.lt.s32.totalorder %v8288_v10, %v8148_v2  ;;  %v10155_v47 = vpop.permute.xlu0 %2153  ;;  %3396 = vperm.xlu0 %7510, %v9365_v29   ;;  %v7588_v29 = vld [vmem:[%s13996_s2 + $0xf0] sm:$0xff] }
 0x1fd   : > { %vm2552_vm6 = vmand %vm2424_vm7, %vm14443_vm0  ;;  %vm2299_vm7 = vcmp.gt.f32.partialorder %v9607_v22, %v9976_v52 }
 0x1fe   : > { %vm2678_vm14 = vmor %vm2294_vm1, %vm2550_vm9  ;;  %vm14445_vm1 = vcmp.lt.s32.totalorder %v8284_v8, %v8148_v2  ;;  %v2009_v15 = vpack.c.bf16 %v1995_v40, %v1995_v40  ;;  %7479 = vset.pattern.permute.xlu1 %v14416_v32 }
 0x1ff   : > { %vm2680_vm2 = vmor %vm2296_vm3, %vm2552_vm6  ;;  %vm2426_vm6 = vcmp.eq.f32.partialorder %v9607_v22, %v10008_v54 }
 0x200   : > { %vm6744_vm10 = vmpackc.low %vm2680_vm2, %vm2678_vm14  ;;  %v3122_v7 = vshll.u32 %v2009_v15, 16  ;;  %vm2298_vm2 = vcmp.gt.f32.partialorder %v9607_v22, %v10008_v54  ;;  %v10190_v22 = vpop.permute.xlu1 %2157  ;;  %3388 = vperm.xlu1 %7479, %v7588_v29   ;;  %v10279_v15 = vld [vmem:[%s13996_s2 + $0x138] sm:$0xff] }
 0x201   : > { %6745 = vmatpush1.bf16.msk.msra.mxu1 %vm6744_vm10, %v14399_v27  ;;  %vm2555_vm3 = vmand %vm2427_vm12, %vm14445_vm1  ;;  %vm14447_vm10 = vcmp.lt.s32.totalorder %v8284_v8, %v8158_v49 }
 0x202   : > { %vm2557_vm9 = vmand %vm2429_vm4, %vm14446_vm15  ;;  %vm2300_vm4 = vcmp.gt.f32.partialorder %v9536_v42, %v10008_v54  ;;  %v3135_v34 = vsel %vm8919_vm5, 1065369472, %v3122_v7  ;;  %vm2431_vm15 = vcmp.eq.f32.partialorder %v9647_v58, %v9976_v52  ;;  %v10197_v42 = vpop.permute.xlu0 %2161  ;;  %v10202_v7 = vld [vmem:[%s13996_s2 + $0x118] sm:$0xff] }
 0x203   : > { %vm2683_vm0 = vmor %vm2299_vm7, %vm2555_vm3  ;;  %6798 = vmatprep.mubr.msk.bf16.mxu1 %vm14300_vm11, %v3135_v34  ;;  %3408 = vperm.xlu0 %7510, %v10202_v7   ;;  %v7591_v34 = vld [vmem:[%s13996_s2 + $0x108] sm:$0xff] }
 0x204   : > { %vm2685_vm14 = vmor %vm2301_vm8, %vm2557_vm9  ;;  %vm14448_vm8 = vcmp.lt.s32.totalorder %v8288_v10, %v8158_v49  ;;  %7480 = vset.pattern.permute.xlu1 %v14404_v41 }
 0x205   : > { %vm6746_vm12 = vmpackc.low %vm2685_vm14, %vm2683_vm0  ;;  %vm2433_vm0 = vcmp.eq.f32.partialorder %v9580_v59, %v9976_v52  ;;  %vm2303_vm14 = vcmp.gt.f32.partialorder %v9647_v58, %v9976_v52 }
 0x206   : > { %6747 = vmatprep.subr.msk.bf16.mxu1 %vm6746_vm12, %v14399_v27  ;;  %vm2554_vm7 = vmand %vm2426_vm6, %vm14447_vm10  ;;  %vm14449_vm12 = vcmp.lt.s32.totalorder %v8325_v12, %v8148_v2  ;;  %vm14450_vm10 = vcmp.lt.s32.totalorder %v8330_v14, %v8148_v2 }
 0x207   : > { %vm2556_vm1 = vmand %vm2428_vm13, %vm14448_vm8  ;;  %vm2305_vm13 = vcmp.gt.f32.partialorder %v9580_v59, %v9976_v52  ;;  %vm2430_vm8 = vcmp.eq.f32.partialorder %v9647_v58, %v10008_v54 }
 0x208   : > { %vm2682_vm3 = vmor %vm2298_vm2, %vm2554_vm7 }
 0x209   : > { %vm2684_vm9 = vmor %vm2300_vm4, %vm2556_vm1 }
 0x20a   : > { %vm6748_vm6 = vmpackc.low %vm2684_vm9, %vm2682_vm3  ;;  %vm2432_vm3 = vcmp.eq.f32.partialorder %v9580_v59, %v10008_v54  ;;  %vm2302_vm9 = vcmp.gt.f32.partialorder %v9647_v58, %v10008_v54  ;;  %v10238_v58 = vpop.permute.xlu0 %2169  ;;  %3412 = vperm.xlu0 %7510, %v9395_v28   ;;  %v14457_v28 = vld [vmem:[#allocation26_spill] sm:$0xff] }
 0x20b   : > { %6749 = vmatpush1.bf16.msk.msra.mxu1 %vm6748_vm6, %v14399_v27  ;;  %vm2559_vm2 = vmand %vm2431_vm15, %vm14449_vm12  ;;  %vm14451_vm6 = vcmp.lt.s32.totalorder %v8325_v12, %v8158_v49  ;;  %v7602_v12 = vld [vmem:[%s13996_s2 + $0x1c0] sm:$0xff] }
 0x20c   : > { %vm2561_vm4 = vmand %vm2433_vm0, %vm14450_vm10  ;;  %vm2304_vm0 = vcmp.gt.f32.partialorder %v9580_v59, %v10008_v54  ;;  %vm2435_vm10 = vcmp.eq.f32.partialorder %v9691_v33, %v9976_v52  ;;  %v10234_v59 = vpop.permute.xlu1 %2165  ;;  %4643 = vperm.xlu1 %7480, %v7588_v29  }
 0x20d   : > { %vm2687_vm7 = vmor %vm2303_vm14, %vm2559_vm2 }
 0x20e   : > { %vm2689_vm1 = vmor %vm2305_vm13, %vm2561_vm4  ;;  %vm14452_vm13 = vcmp.lt.s32.totalorder %v8330_v14, %v8158_v49  ;;  %v10274_v40 = vpop.permute.xlu0 %2177  ;;  %3424 = vperm.xlu0 %7510, %v10279_v15  }
 0x20f   : > { %vm6750_vm15 = vmpackc.low %vm2689_vm1, %vm2687_vm7  ;;  %vm2437_vm7 = vcmp.eq.f32.partialorder %v9631_v50, %v9976_v52 }
 0x210   : > { %6751 = vmatprep.subr.msk.bf16.mxu1 %vm6750_vm15, %v14399_v27  ;;  %vm2558_vm14 = vmand %vm2430_vm8, %vm14451_vm6  ;;  %vm2307_vm15 = vcmp.gt.f32.partialorder %v9691_v33, %v9976_v52  ;;  %vm2309_vm8 = vcmp.gt.f32.partialorder %v9631_v50, %v9976_v52  ;;  %vm14454_vm6 = vcmp.lt.s32.totalorder %v8370_v18, %v8148_v2 }
 0x211   : > { %vm2560_vm12 = vmand %vm2432_vm3, %vm14452_vm13  ;;  %vm14453_vm3 = vcmp.lt.s32.totalorder %v8366_v16, %v8148_v2  ;;  %vm2434_vm13 = vcmp.eq.f32.partialorder %v9691_v33, %v10008_v54 }
 0x212   : > { %vm2686_vm2 = vmor %vm2302_vm9, %vm2558_vm14  ;;  %v10318_v29 = vpop.permute.xlu0 %2185 }
 0x213   : > { %vm2688_vm4 = vmor %vm2304_vm0, %vm2560_vm12 }
 0x214   : > { %vm6752_vm1 = vmpackc.low %vm2688_vm4, %vm2686_vm2  ;;  %vm2436_vm2 = vcmp.eq.f32.partialorder %v9631_v50, %v10008_v54  ;;  %vm2306_vm4 = vcmp.gt.f32.partialorder %v9691_v33, %v10008_v54  ;;  %v10269_v33 = vpop.permute.xlu1 %2173  ;;  %4647 = vperm.xlu1 %7480, %v10111_v9  }
 0x215   : > { %6753 = vmatpush1.bf16.msk.msra.mxu1 %vm6752_vm1, %v14399_v27  ;;  %vm2563_vm9 = vmand %vm2435_vm10, %vm14453_vm3  ;;  %vm14455_vm1 = vcmp.lt.s32.totalorder %v8366_v16, %v8158_v49 }
 0x216   : > { %vm2565_vm0 = vmand %vm2437_vm7, %vm14454_vm6  ;;  %vm2308_vm7 = vcmp.gt.f32.partialorder %v9631_v50, %v10008_v54  ;;  %vm2439_vm6 = vcmp.eq.f32.partialorder %v9720_v1, %v9976_v52  ;;  %v14459_v50 = vld [vmem:[#allocation27_spill] sm:$0xff] }
 0x217   : > { %vm2691_vm14 = vmor %vm2307_vm15, %vm2563_vm9 }
 0x218   : > { %vm2693_vm12 = vmor %vm2309_vm8, %vm2565_vm0  ;;  %vm14456_vm8 = vcmp.lt.s32.totalorder %v8370_v18, %v8158_v49  ;;  %7481 = vset.pattern.permute.xlu1 %v14416_v32  ;;  %v10311_v9 = vpop.permute.xlu1 %2181  ;;  %v7599_v18 = vld [vmem:[%s13996_s2 + $0x1a0] sm:$0xff] }
 0x219   : > { %vm6754_vm10 = vmpackc.low %vm2693_vm12, %vm2691_vm14  ;;  %vm2441_vm14 = vcmp.eq.f32.partialorder %v9664_v55, %v9976_v52  ;;  %3400 = vperm.xlu1 %7481, %v7591_v34  }
 0x21a   : > { %6755 = vmatprep.subr.msk.bf16.mxu1 %vm6754_vm10, %v14399_v27  ;;  %vm2562_vm15 = vmand %vm2434_vm13, %vm14455_vm1  ;;  %vm2311_vm10 = vcmp.gt.f32.partialorder %v9720_v1, %v9976_v52  ;;  %vm2313_vm13 = vcmp.gt.f32.partialorder %v9664_v55, %v9976_v52  ;;  %vm14460_vm1 = vcmp.lt.s32.totalorder %v14459_v50, %v8148_v2 }
 0x21b   : > { %vm2564_vm3 = vmand %vm2436_vm2, %vm14456_vm8  ;;  %vm14458_vm2 = vcmp.lt.s32.totalorder %v14457_v28, %v8148_v2  ;;  %vm2438_vm8 = vcmp.eq.f32.partialorder %v9720_v1, %v10008_v54 }
 0x21c   : > { %vm2690_vm9 = vmor %vm2306_vm4, %vm2562_vm15 }
 0x21d   : > { %vm2692_vm0 = vmor %vm2308_vm7, %vm2564_vm3  ;;  %7482 = vset.pattern.permute.xlu1 %v14404_v41 }
 0x21e   : > { %vm6756_vm12 = vmpackc.low %vm2692_vm0, %vm2690_vm9  ;;  %vm2440_vm9 = vcmp.eq.f32.partialorder %v9664_v55, %v10008_v54  ;;  %vm2310_vm0 = vcmp.gt.f32.partialorder %v9720_v1, %v10008_v54  ;;  %v14465_v1 = vld [vmem:[#allocation29_spill] sm:$0xff] }
 0x21f   : > { %6757 = vmatpush1.bf16.msk.msra.mxu1 %vm6756_vm12, %v14399_v27  ;;  %vm2567_vm4 = vmand %vm2439_vm6, %vm14458_vm2  ;;  %vm14461_vm12 = vcmp.lt.s32.totalorder %v14457_v28, %v8158_v49  ;;  %v7594_v28 = vld [vmem:[%s13996_s2 + $0x160] sm:$0xff] }
 0x220   : > { %vm2569_vm7 = vmand %vm2441_vm14, %vm14460_vm1  ;;  %vm2312_vm14 = vcmp.gt.f32.partialorder %v9664_v55, %v10008_v54  ;;  %vm2443_vm1 = vcmp.eq.f32.partialorder %v9762_v44, %v9976_v52  ;;  %v14463_v55 = vld [vmem:[#allocation28_spill] sm:$0xff] }
 0x221   : > { %vm2695_vm15 = vmor %vm2311_vm10, %vm2567_vm4 }
 0x222   : > { %vm2697_vm3 = vmor %vm2313_vm13, %vm2569_vm7  ;;  %vm14462_vm13 = vcmp.lt.s32.totalorder %v14459_v50, %v8158_v49  ;;  %v14467_v50 = vld [vmem:[#allocation49_spill] sm:$0xff] }
 0x223   : > { %vm6758_vm6 = vmpackc.low %vm2697_vm3, %vm2695_vm15  ;;  %vm2445_vm15 = vcmp.eq.f32.partialorder %v9704_v63, %v9976_v52  ;;  %3428 = vperm.xlu0 %7510, %v14467_v50   ;;  %v10350_v50 = vpop.permute.xlu1 %2189  ;;  %4655 = vperm.xlu1 %7482, %v7591_v34  }
 0x224   : > { %6759 = vmatprep.subr.msk.bf16.mxu1 %vm6758_vm6, %v14399_v27  ;;  %vm2566_vm10 = vmand %vm2438_vm8, %vm14461_vm12  ;;  %vm2315_vm6 = vcmp.gt.f32.partialorder %v9762_v44, %v9976_v52  ;;  %vm2317_vm8 = vcmp.gt.f32.partialorder %v9704_v63, %v9976_v52  ;;  %vm14466_vm12 = vcmp.lt.s32.totalorder %v14465_v1, %v8148_v2 }
 0x225   : > { %vm2568_vm2 = vmand %vm2440_vm9, %vm14462_vm13  ;;  %vm14464_vm9 = vcmp.lt.s32.totalorder %v14463_v55, %v8148_v2  ;;  %vm2442_vm13 = vcmp.eq.f32.partialorder %v9762_v44, %v10008_v54 }
 0x226   : > { %vm2694_vm4 = vmor %vm2310_vm0, %vm2566_vm10 }
 0x227   : > { %vm2696_vm7 = vmor %vm2312_vm14, %vm2568_vm2  ;;  %7483 = vset.pattern.permute.xlu1 %v14416_v32  ;;  %v10391_v34 = vpop.permute.xlu1 %2197 }
 0x228   : > { %vm6760_vm3 = vmpackc.low %vm2696_vm7, %vm2694_vm4  ;;  %vm2444_vm4 = vcmp.eq.f32.partialorder %v9704_v63, %v10008_v54  ;;  %vm2314_vm7 = vcmp.gt.f32.partialorder %v9762_v44, %v10008_v54  ;;  %v14472_v44 = vld [vmem:[#allocation31_spill] sm:$0xff] }
 0x229   : > { %6761 = vmatpush1.bf16.msk.msra.mxu1 %vm6760_vm3, %v14399_v27  ;;  %vm2571_vm0 = vmand %vm2443_vm1, %vm14464_vm9  ;;  %vm14468_vm3 = vcmp.lt.s32.totalorder %v14463_v55, %v8158_v49  ;;  %v10359_v55 = vld [vmem:[%s13996_s2 + $0x158] sm:$0xff] }
 0x22a   : > { %vm2573_vm14 = vmand %vm2445_vm15, %vm14466_vm12  ;;  %vm2316_vm15 = vcmp.gt.f32.partialorder %v9704_v63, %v10008_v54  ;;  %vm2447_vm12 = vcmp.eq.f32.partialorder %v9798_v20, %v9976_v52  ;;  %v14470_v63 = vld [vmem:[#allocation30_spill] sm:$0xff] }
 0x22b   : > { %vm2699_vm10 = vmor %vm2315_vm6, %vm2571_vm0 }
 0x22c   : > { %vm2701_vm2 = vmor %vm2317_vm8, %vm2573_vm14  ;;  %vm14469_vm8 = vcmp.lt.s32.totalorder %v14465_v1, %v8158_v49  ;;  %v10354_v1 = vpop.permute.xlu0 %2193  ;;  %3440 = vperm.xlu0 %7510, %v10359_v55  }
 0x22d   : > { %vm6762_vm1 = vmpackc.low %vm2701_vm2, %vm2699_vm10  ;;  %vm2449_vm10 = vcmp.eq.f32.partialorder %v9747_v31, %v9976_v52 }
 0x22e   : > { %6763 = vmatprep.subr.msk.bf16.mxu1 %vm6762_vm1, %v14399_v27  ;;  %vm2570_vm6 = vmand %vm2442_vm13, %vm14468_vm3  ;;  %vm2319_vm1 = vcmp.gt.f32.partialorder %v9798_v20, %v9976_v52  ;;  %vm2321_vm13 = vcmp.gt.f32.partialorder %v9747_v31, %v9976_v52  ;;  %vm14473_vm3 = vcmp.lt.s32.totalorder %v14472_v44, %v8148_v2 }
 0x22f   : > { %vm2572_vm9 = vmand %vm2444_vm4, %vm14469_vm8  ;;  %vm14471_vm4 = vcmp.lt.s32.totalorder %v14470_v63, %v8148_v2  ;;  %vm2446_vm8 = vcmp.eq.f32.partialorder %v9798_v20, %v10008_v54 }
 0x230   : > { %vm2698_vm0 = vmor %vm2314_vm7, %vm2570_vm6 }
 0x231   : > { %vm2700_vm14 = vmor %vm2316_vm15, %vm2572_vm9 }
 0x232   : > { %vm6764_vm2 = vmpackc.low %vm2700_vm14, %vm2698_vm0  ;;  %vm2448_vm0 = vcmp.eq.f32.partialorder %v9747_v31, %v10008_v54  ;;  %vm2318_vm14 = vcmp.gt.f32.partialorder %v9798_v20, %v10008_v54  ;;  %v14476_v20 = vld [vmem:[#allocation32_spill] sm:$0xff] }
 0x233   : > { %6765 = vmatpush1.bf16.msk.msra.mxu1 %vm6764_vm2, %v14399_v27  ;;  %vm2575_vm7 = vmand %vm2447_vm12, %vm14471_vm4  ;;  %vm14474_vm2 = vcmp.lt.s32.totalorder %v14470_v63, %v8158_v49  ;;  %v10398_v63 = vpop.permute.xlu0 %2201  ;;  %3444 = vperm.xlu0 %7510, %v7594_v28   ;;  %v10432_v28 = vpop.permute.xlu1 %2205 }
 0x234   : > { %vm2577_vm15 = vmand %vm2449_vm10, %vm14473_vm3  ;;  %vm2320_vm10 = vcmp.gt.f32.partialorder %v9747_v31, %v10008_v54  ;;  %vm2451_vm3 = vcmp.eq.f32.partialorder %v9835_v17, %v9976_v52  ;;  %v14478_v31 = vld [vmem:[#allocation33_spill] sm:$0xff] }
 0x235   : > { %vm2703_vm6 = vmor %vm2319_vm1, %vm2575_vm7 }
 0x236   : > { %vm2705_vm9 = vmor %vm2321_vm13, %vm2577_vm15  ;;  %vm14475_vm13 = vcmp.lt.s32.totalorder %v14472_v44, %v8158_v49  ;;  %v7593_v44 = vld [vmem:[%s13996_s2 + $0x110] sm:$0xff] }
 0x237   : > { %vm6766_vm12 = vmpackc.low %vm2705_vm9, %vm2703_vm6  ;;  %vm2453_vm6 = vcmp.eq.f32.partialorder %v9778_v51, %v9976_v52  ;;  %3404 = vperm.xlu1 %7483, %v7593_v44  }
 0x238   : > { %6767 = vmatprep.subr.msk.bf16.mxu1 %vm6766_vm12, %v14399_v27  ;;  %vm2574_vm1 = vmand %vm2446_vm8, %vm14474_vm2  ;;  %vm2323_vm12 = vcmp.gt.f32.partialorder %v9835_v17, %v9976_v52  ;;  %vm2325_vm8 = vcmp.gt.f32.partialorder %v9778_v51, %v9976_v52  ;;  %vm14479_vm2 = vcmp.lt.s32.totalorder %v14478_v31, %v8148_v2 }
 0x239   : > { %vm2576_vm4 = vmand %vm2448_vm0, %vm14475_vm13  ;;  %vm14477_vm0 = vcmp.lt.s32.totalorder %v14476_v20, %v8148_v2  ;;  %vm2450_vm13 = vcmp.eq.f32.partialorder %v9835_v17, %v10008_v54 }
 0x23a   : > { %vm2702_vm7 = vmor %vm2318_vm14, %vm2574_vm1 }
 0x23b   : > { %vm2704_vm15 = vmor %vm2320_vm10, %vm2576_vm4  ;;  %7484 = vset.pattern.permute.xlu1 %v14404_v41 }
 0x23c   : > { %vm6768_vm9 = vmpackc.low %vm2704_vm15, %vm2702_vm7  ;;  %vm2452_vm7 = vcmp.eq.f32.partialorder %v9778_v51, %v10008_v54  ;;  %vm2322_vm15 = vcmp.gt.f32.partialorder %v9835_v17, %v10008_v54  ;;  %v14484_v17 = vld [vmem:[#allocation35_spill] sm:$0xff]  ;;  %4659 = vperm.xlu1 %7484, %v7593_v44   ;;  %v10472_v44 = vpop.permute.xlu1 %2213 }
 0x23d   : > { %6769 = vmatpush1.bf16.msk.msra.mxu1 %vm6768_vm9, %v14399_v27  ;;  %vm2579_vm14 = vmand %vm2451_vm3, %vm14477_vm0  ;;  %vm14480_vm9 = vcmp.lt.s32.totalorder %v14476_v20, %v8158_v49  ;;  %v10441_v20 = vld [vmem:[%s13996_s2 + $0x178] sm:$0xff] }
 0x23e   : > { %vm2581_vm10 = vmand %vm2453_vm6, %vm14479_vm2  ;;  %vm2324_vm6 = vcmp.gt.f32.partialorder %v9778_v51, %v10008_v54  ;;  %vm2455_vm2 = vcmp.eq.f32.partialorder %v9872_v35, %v9976_v52  ;;  %v14482_v51 = vld [vmem:[#allocation34_spill] sm:$0xff] }
 0x23f   : > { %vm2707_vm1 = vmor %vm2323_vm12, %vm2579_vm14 }
 0x240   : > { %vm2709_vm4 = vmor %vm2325_vm8, %vm2581_vm10  ;;  %vm14481_vm8 = vcmp.lt.s32.totalorder %v14478_v31, %v8158_v49  ;;  %v10436_v31 = vpop.permute.xlu0 %2209  ;;  %3456 = vperm.xlu0 %7510, %v10441_v20   ;;  %4663 = vperm.xlu1 %7484, %v10202_v7   ;;  %v10511_v7 = vpop.permute.xlu1 %2221 }
 0x241   : > { %vm6770_vm3 = vmpackc.low %vm2709_vm4, %vm2707_vm1  ;;  %vm2457_vm1 = vcmp.eq.f32.partialorder %v9817_v38, %v9976_v52 }
 0x242   : > { %6771 = vmatprep.subr.msk.bf16.mxu1 %vm6770_vm3, %v14399_v27  ;;  %vm2578_vm12 = vmand %vm2450_vm13, %vm14480_vm9  ;;  %vm2327_vm3 = vcmp.gt.f32.partialorder %v9872_v35, %v9976_v52  ;;  %vm2329_vm13 = vcmp.gt.f32.partialorder %v9817_v38, %v9976_v52  ;;  %vm14485_vm9 = vcmp.lt.s32.totalorder %v14484_v17, %v8148_v2 }
 0x243   : > { %vm2580_vm0 = vmand %vm2452_vm7, %vm14481_vm8  ;;  %vm14483_vm7 = vcmp.lt.s32.totalorder %v14482_v51, %v8148_v2  ;;  %vm2454_vm8 = vcmp.eq.f32.partialorder %v9872_v35, %v10008_v54 }
 0x244   : > { %vm2706_vm14 = vmor %vm2322_vm15, %vm2578_vm12  ;;  %7485 = vset.pattern.permute.xlu1 %v14416_v32 }
 0x245   : > { %vm2708_vm10 = vmor %vm2324_vm6, %vm2580_vm0 }
 0x246   : > { %vm6772_vm4 = vmpackc.low %vm2708_vm10, %vm2706_vm14  ;;  %vm2456_vm14 = vcmp.eq.f32.partialorder %v9817_v38, %v10008_v54  ;;  %vm2326_vm10 = vcmp.gt.f32.partialorder %v9872_v35, %v10008_v54  ;;  %v14490_v35 = vld [vmem:[#allocation8_spill] sm:$0xff] }
 0x247   : > { %6773 = vmatpush1.bf16.msk.msra.mxu1 %vm6772_vm4, %v14399_v27  ;;  %vm2583_vm15 = vmand %vm2455_vm2, %vm14483_vm7  ;;  %vm14486_vm4 = vcmp.lt.s32.totalorder %v14482_v51, %v8158_v49  ;;  %v7596_v51 = vld [vmem:[%s13996_s2 + $0x180] sm:$0xff] }
 0x248   : > { %vm2585_vm6 = vmand %vm2457_vm1, %vm14485_vm9  ;;  %vm2328_vm1 = vcmp.gt.f32.partialorder %v9817_v38, %v10008_v54  ;;  %vm2459_vm9 = vcmp.eq.f32.partialorder %v9905_v45, %v9976_v52  ;;  %v14488_v38 = vld [vmem:[#allocation6_spill] sm:$0xff] }
 0x249   : > { %vm2711_vm12 = vmor %vm2327_vm3, %vm2583_vm15 }
 0x24a   : > { %vm2713_vm0 = vmor %vm2329_vm13, %vm2585_vm6  ;;  %vm14487_vm13 = vcmp.lt.s32.totalorder %v14484_v17, %v8158_v49  ;;  %v10477_v17 = vpop.permute.xlu0 %2217  ;;  %3460 = vperm.xlu0 %7510, %v7596_v51   ;;  %v7597_v51 = vld [vmem:[%s13996_s2 + $0x128] sm:$0xff] }
 0x24b   : > { %vm6774_vm2 = vmpackc.low %vm2713_vm0, %vm2711_vm12  ;;  %vm2461_vm12 = vcmp.eq.f32.partialorder %v9852_v48, %v9976_v52  ;;  %3416 = vperm.xlu1 %7485, %v7597_v51  }
 0x24c   : > { %6775 = vmatprep.subr.msk.bf16.mxu1 %vm6774_vm2, %v14399_v27  ;;  %vm2582_vm3 = vmand %vm2454_vm8, %vm14486_vm4  ;;  %vm2331_vm2 = vcmp.gt.f32.partialorder %v9905_v45, %v9976_v52  ;;  %vm2333_vm8 = vcmp.gt.f32.partialorder %v9852_v48, %v9976_v52  ;;  %vm14491_vm4 = vcmp.lt.s32.totalorder %v14490_v35, %v8148_v2 }
 0x24d   : > { %vm2584_vm7 = vmand %vm2456_vm14, %vm14487_vm13  ;;  %vm14489_vm14 = vcmp.lt.s32.totalorder %v14488_v38, %v8148_v2  ;;  %vm2458_vm13 = vcmp.eq.f32.partialorder %v9905_v45, %v10008_v54 }
 0x24e   : > { %vm2710_vm15 = vmor %vm2326_vm10, %vm2582_vm3 }
 0x24f   : > { %vm2712_vm6 = vmor %vm2328_vm1, %vm2584_vm7  ;;  %7486 = vset.pattern.permute.xlu1 %v14404_v41 }
 0x250   : > { %vm6776_vm0 = vmpackc.low %vm2712_vm6, %vm2710_vm15  ;;  %vm2460_vm15 = vcmp.eq.f32.partialorder %v9852_v48, %v10008_v54  ;;  %vm2330_vm6 = vcmp.gt.f32.partialorder %v9905_v45, %v10008_v54  ;;  %v14496_v45 = vld [vmem:[#allocation10_spill] sm:$0xff] }
 0x251   : > { %6777 = vmatpush1.bf16.msk.msra.mxu1 %vm6776_vm0, %v14399_v27  ;;  %vm2587_vm10 = vmand %vm2459_vm9, %vm14489_vm14  ;;  %vm14492_vm0 = vcmp.lt.s32.totalorder %v14488_v38, %v8158_v49  ;;  %v10523_v38 = vld [vmem:[%s13996_s2 + $0x198] sm:$0xff] }
 0x252   : > { %vm2589_vm1 = vmand %vm2461_vm12, %vm14491_vm4  ;;  %vm2332_vm12 = vcmp.gt.f32.partialorder %v9852_v48, %v10008_v54  ;;  %vm2463_vm4 = vcmp.eq.f32.partialorder %v9948_v21, %v9976_v52  ;;  %v14494_v48 = vld [vmem:[#allocation7_spill] sm:$0xff] }
 0x253   : > { %vm2715_vm3 = vmor %vm2331_vm2, %vm2587_vm10 }
 0x254   : > { %vm2717_vm7 = vmor %vm2333_vm8, %vm2589_vm1  ;;  %vm14493_vm8 = vcmp.lt.s32.totalorder %v14490_v35, %v8158_v49  ;;  %v10518_v35 = vpop.permute.xlu0 %2225  ;;  %3472 = vperm.xlu0 %7510, %v10523_v38  }
 0x255   : > { %vm6778_vm9 = vmpackc.low %vm2717_vm7, %vm2715_vm3  ;;  %vm2465_vm3 = vcmp.eq.f32.partialorder %v9907_v60, %v9976_v52 }
 0x256   : > { %6779 = vmatprep.subr.msk.bf16.mxu1 %vm6778_vm9, %v14399_v27  ;;  %vm2586_vm2 = vmand %vm2458_vm13, %vm14492_vm0  ;;  %vm2335_vm9 = vcmp.gt.f32.partialorder %v9948_v21, %v9976_v52  ;;  %vm2337_vm13 = vcmp.gt.f32.partialorder %v9907_v60, %v9976_v52  ;;  %vm14497_vm0 = vcmp.lt.s32.totalorder %v14496_v45, %v8148_v2 }
 0x257   : > { %vm2588_vm14 = vmand %vm2460_vm15, %vm14493_vm8  ;;  %vm14495_vm15 = vcmp.lt.s32.totalorder %v14494_v48, %v8148_v2  ;;  %vm2462_vm8 = vcmp.eq.f32.partialorder %v9948_v21, %v10008_v54 }
 0x258   : > { %vm2714_vm10 = vmor %vm2330_vm6, %vm2586_vm2 }
 0x259   : > { %vm2716_vm1 = vmor %vm2332_vm12, %vm2588_vm14 }
 0x25a   : > { %vm6780_vm7 = vmpackc.low %vm2716_vm1, %vm2714_vm10  ;;  %vm2464_vm10 = vcmp.eq.f32.partialorder %v9907_v60, %v10008_v54  ;;  %vm2334_vm1 = vcmp.gt.f32.partialorder %v9948_v21, %v10008_v54  ;;  %v14502_v21 = vld [vmem:[#allocation12_spill] sm:$0xff] }
 0x25b   : > { %6781 = vmatpush1.bf16.msk.msra.mxu1 %vm6780_vm7, %v14399_v27  ;;  %vm2591_vm6 = vmand %vm2463_vm4, %vm14495_vm15  ;;  %vm14498_vm7 = vcmp.lt.s32.totalorder %v14494_v48, %v8158_v49  ;;  %v10559_v48 = vpop.permute.xlu0 %2233  ;;  %3476 = vperm.xlu0 %7510, %v7599_v18   ;;  %v14506_v18 = vld [vmem:[#allocation11_spill] sm:$0xff] }
 0x25c   : > { %vm2593_vm12 = vmand %vm2465_vm3, %vm14497_vm0  ;;  %vm2336_vm3 = vcmp.gt.f32.partialorder %v9907_v60, %v10008_v54  ;;  %vm2467_vm0 = vcmp.eq.f32.partialorder %v9988_v36, %v9976_v52  ;;  %v14500_v60 = vld [vmem:[#allocation9_spill] sm:$0xff] }
 0x25d   : > { %vm2719_vm2 = vmor %vm2335_vm9, %vm2591_vm6 }
 0x25e   : > { %vm2721_vm14 = vmor %vm2337_vm13, %vm2593_vm12  ;;  %vm14499_vm13 = vcmp.lt.s32.totalorder %v14496_v45, %v8158_v49  ;;  %v10555_v45 = vpop.permute.xlu1 %2229  ;;  %4671 = vperm.xlu1 %7486, %v7597_v51   ;;  %v7600_v51 = vld [vmem:[%s13996_s2 + $0x130] sm:$0xff] }
 0x25f   : > { %vm6782_vm4 = vmpackc.low %vm2721_vm14, %vm2719_vm2  ;;  %vm2469_vm2 = vcmp.eq.f32.partialorder %v9972_v24, %v9976_v52 }
 0x260   : > { %6783 = vmatprep.subr.msk.bf16.mxu1 %vm6782_vm4, %v14399_v27  ;;  %vm2590_vm9 = vmand %vm2462_vm8, %vm14498_vm7  ;;  %vm2339_vm4 = vcmp.gt.f32.partialorder %v9988_v36, %v9976_v52  ;;  %vm2341_vm8 = vcmp.gt.f32.partialorder %v9972_v24, %v9976_v52  ;;  %vm14503_vm7 = vcmp.lt.s32.totalorder %v14502_v21, %v8148_v2 }
 0x261   : > { %vm2592_vm15 = vmand %vm2464_vm10, %vm14499_vm13  ;;  %vm14501_vm10 = vcmp.lt.s32.totalorder %v14500_v60, %v8148_v2  ;;  %vm2466_vm13 = vcmp.eq.f32.partialorder %v9988_v36, %v10008_v54 }
 0x262   : > { %vm2718_vm6 = vmor %vm2334_vm1, %vm2590_vm9  ;;  %7487 = vset.pattern.permute.xlu1 %v14416_v32 }
 0x263   : > { %vm2720_vm12 = vmor %vm2336_vm3, %vm2592_vm15 }
 0x264   : > { %vm6784_vm14 = vmpackc.low %vm2720_vm12, %vm2718_vm6  ;;  %vm2468_vm6 = vcmp.eq.f32.partialorder %v9972_v24, %v10008_v54  ;;  %vm2338_vm12 = vcmp.gt.f32.partialorder %v9988_v36, %v10008_v54  ;;  %v10593_v36 = vpop.permute.xlu1 %2237  ;;  %3420 = vperm.xlu1 %7487, %v7600_v51  }
 0x265   : > { %6785 = vmatpush1.bf16.msk.msra.mxu1 %vm6784_vm14, %v14399_v27  ;;  %vm2595_vm1 = vmand %vm2467_vm0, %vm14501_vm10  ;;  %vm14504_vm14 = vcmp.lt.s32.totalorder %v14500_v60, %v8158_v49  ;;  %v10605_v60 = vld [vmem:[%s13996_s2 + $0x1b8] sm:$0xff] }
 0x266   : > { %vm2597_vm3 = vmand %vm2469_vm2, %vm14503_vm7  ;;  %vm2340_vm2 = vcmp.gt.f32.partialorder %v9972_v24, %v10008_v54  ;;  %vm2471_vm7 = vcmp.eq.f32.partialorder %v10033_v39, %v9976_v52  ;;  %v14508_v24 = vld [vmem:[#allocation14_spill] sm:$0xff] }
 0x267   : > { %vm2723_vm9 = vmor %vm2339_vm4, %vm2595_vm1 }
 0x268   : > { %vm2725_vm15 = vmor %vm2341_vm8, %vm2597_vm3  ;;  %vm14505_vm8 = vcmp.lt.s32.totalorder %v14502_v21, %v8158_v49  ;;  %v10600_v21 = vpop.permute.xlu0 %2241  ;;  %3488 = vperm.xlu0 %7510, %v10605_v60   ;;  %7488 = vset.pattern.permute.xlu1 %v14404_v41  ;;  %v10639_v16 = vpop.permute.xlu1 %2245 }
 0x269   : > { %vm6786_vm0 = vmpackc.low %vm2725_vm15, %vm2723_vm9  ;;  %vm2473_vm9 = vcmp.eq.f32.partialorder %v10026_v61, %v9976_v52  ;;  %4675 = vperm.xlu1 %7488, %v7600_v51  }
 0x26a   : > { %6787 = vmatprep.subr.msk.bf16.mxu1 %vm6786_vm0, %v14399_v27  ;;  %vm2594_vm4 = vmand %vm2466_vm13, %vm14504_vm14  ;;  %vm2343_vm0 = vcmp.gt.f32.partialorder %v10033_v39, %v9976_v52  ;;  %vm2345_vm13 = vcmp.gt.f32.partialorder %v10026_v61, %v9976_v52  ;;  %vm14509_vm14 = vcmp.lt.s32.totalorder %v14508_v24, %v8148_v2 }
 0x26b   : > { %vm2596_vm10 = vmand %vm2468_vm6, %vm14505_vm8  ;;  %vm14507_vm6 = vcmp.lt.s32.totalorder %v14506_v18, %v8148_v2  ;;  %vm2470_vm8 = vcmp.eq.f32.partialorder %v10033_v39, %v10008_v54 }
 0x26c   : > { %vm2722_vm1 = vmor %vm2338_vm12, %vm2594_vm4  ;;  %v10643_v14 = vpop.permute.xlu0 %2249  ;;  %3492 = vperm.xlu0 %7510, %v7602_v12   ;;  %v14519_v12 = vld [vmem:[#allocation17_spill] sm:$0xff] }
 0x26d   : > { %vm2724_vm3 = vmor %vm2340_vm2, %vm2596_vm10 }
 0x26e   : > { %vm6788_vm15 = vmpackc.low %vm2724_vm3, %vm2722_vm1  ;;  %vm2472_vm1 = vcmp.eq.f32.partialorder %v10026_v61, %v10008_v54  ;;  %vm2342_vm3 = vcmp.gt.f32.partialorder %v10033_v39, %v10008_v54  ;;  %v14512_v39 = vld [vmem:[#allocation19_spill] sm:$0xff] }
 0x26f   : > { %6789 = vmatpush1.bf16.msk.msra.mxu1 %vm6788_vm15, %v14399_v27  ;;  %vm2599_vm12 = vmand %vm2471_vm7, %vm14507_vm6  ;;  %vm14510_vm15 = vcmp.lt.s32.totalorder %v14506_v18, %v8158_v49  ;;  %v14513_v18 = vld [vmem:[#allocation13_spill] sm:$0xff] }
 0x270   : > { %vm2601_vm2 = vmand %vm2473_vm9, %vm14509_vm14  ;;  %vm2344_vm9 = vcmp.gt.f32.partialorder %v10026_v61, %v10008_v54  ;;  %vm2475_vm14 = vcmp.eq.f32.partialorder %v10063_v13, %v9976_v52  ;;  %v1991_v61 = vrot.slane %v10134_v46, %v14512_v39 }
 0x271   : > { %vm2727_vm4 = vmor %vm2343_vm0, %vm2599_vm12 }
 0x272   : > { %vm2729_vm10 = vmor %vm2345_vm13, %vm2601_vm2  ;;  %vm14511_vm13 = vcmp.lt.s32.totalorder %v14508_v24, %v8158_v49  ;;  %v14515_v24 = vld [vmem:[#allocation16_spill] sm:$0xff]  ;;  %v2008_v39 = vpack.c.bf16 %v1991_v61, %v1991_v61  ;;  %v10684_v61 = vpop.permute.xlu0 %2257 }
 0x273   : > { %vm6790_vm7 = vmpackc.low %vm2729_vm10, %vm2727_vm4  ;;  %vm2477_vm4 = vcmp.eq.f32.partialorder %v10067_v0, %v9976_v52 }
 0x274   : > { %6791 = vmatprep.subr.msk.bf16.mxu1 %vm6790_vm7, %v14399_v27  ;;  %vm2598_vm0 = vmand %vm2470_vm8, %vm14510_vm15  ;;  %vm2347_vm8 = vcmp.gt.f32.partialorder %v10063_v13, %v9976_v52  ;;  %vm14514_vm7 = vcmp.lt.s32.totalorder %v14513_v18, %v8148_v2  ;;  %v3119_v51 = vshll.u32 %v2008_v39, 16  ;;  %v10678_v39 = vpop.permute.xlu1 %2253  ;;  %4679 = vperm.xlu1 %7488, %v10279_v15  }
 0x275   : > { %vm2600_vm6 = vmand %vm2472_vm1, %vm14511_vm13  ;;  %vm2349_vm1 = vcmp.gt.f32.partialorder %v10067_v0, %v9976_v52  ;;  %vm2474_vm13 = vcmp.eq.f32.partialorder %v10063_v13, %v10008_v54 }
 0x276   : > { %vm2726_vm12 = vmor %vm2342_vm3, %vm2598_vm0 }
 0x277   : > { %vm2728_vm2 = vmor %vm2344_vm9, %vm2600_vm6  ;;  %vm14516_vm9 = vcmp.lt.s32.totalorder %v14515_v24, %v8148_v2 }
 0x278   : > { %vm6792_vm10 = vmpackc.low %vm2728_vm2, %vm2726_vm12  ;;  %vm2476_vm12 = vcmp.eq.f32.partialorder %v10067_v0, %v10008_v54  ;;  %vm2346_vm2 = vcmp.gt.f32.partialorder %v10063_v13, %v10008_v54  ;;  %v3134_v13 = vsel %vm8919_vm5, 1065369472, %v3119_v51  ;;  %v10689_v51 = vld [vmem:[%s13996_s2 + $0x1d8] sm:$0xff]  ;;  %7489 = vset.pattern.permute.xlu1 %v14416_v32  ;;  %v10721_v15 = vpop.permute.xlu1 %2261 }
 0x279   : > { %6793 = vmatpush1.bf16.msk.msra.mxu1 %vm6792_vm10, %v14399_v27  ;;  %vm2603_vm3 = vmand %vm2475_vm14, %vm14514_vm7  ;;  %vm14517_vm10 = vcmp.lt.s32.totalorder %v14513_v18, %v8158_v49  ;;  %3504 = vperm.xlu0 %7510, %v10689_v51  }
 0x27a   : > { %vm2605_vm15 = vmand %vm2477_vm4, %vm14516_vm9  ;;  %vm2348_vm4 = vcmp.gt.f32.partialorder %v10067_v0, %v10008_v54  ;;  %vm2479_vm9 = vcmp.eq.f32.partialorder %v10099_v30, %v9976_v52  ;;  %v14521_v0 = vld [vmem:[#allocation21_spill] sm:$0xff] }
 0x27b   : > { %vm2731_vm0 = vmor %vm2347_vm8, %vm2603_vm3 }
 0x27c   : > { %vm2733_vm6 = vmor %vm2349_vm1, %vm2605_vm15  ;;  %vm14518_vm1 = vcmp.lt.s32.totalorder %v14515_v24, %v8158_v49 }
 0x27d   : > { %vm6794_vm14 = vmpackc.low %vm2733_vm6, %vm2731_vm0  ;;  %vm2481_vm0 = vcmp.eq.f32.partialorder %v10106_v37, %v9976_v52 }
 0x27e   : > { %6795 = vmatprep.subr.msk.bf16.mxu1 %vm6794_vm14, %v14399_v27  ;;  %vm2602_vm8 = vmand %vm2474_vm13, %vm14517_vm10  ;;  %vm2351_vm14 = vcmp.gt.f32.partialorder %v10099_v30, %v9976_v52  ;;  %vm2353_vm13 = vcmp.gt.f32.partialorder %v10106_v37, %v9976_v52 }
 0x27f   : > { %vm2604_vm7 = vmand %vm2476_vm12, %vm14518_vm1  ;;  %vm14520_vm12 = vcmp.lt.s32.totalorder %v14519_v12, %v8148_v2 }
 0x280   : > { %vm2730_vm3 = vmor %vm2346_vm2, %vm2602_vm8  ;;  %vm2478_vm8 = vcmp.eq.f32.partialorder %v10099_v30, %v10008_v54 }
 0x281   : > { %vm2732_vm15 = vmor %vm2348_vm4, %vm2604_vm7  ;;  %vm14522_vm4 = vcmp.lt.s32.totalorder %v14521_v0, %v8148_v2  ;;  %vm2480_vm7 = vcmp.eq.f32.partialorder %v10106_v37, %v10008_v54 }
 0x282   : > { %vm6796_vm6 = vmpackc.low %vm2732_vm15, %vm2730_vm3  ;;  %vm2350_vm15 = vcmp.gt.f32.partialorder %v10099_v30, %v10008_v54  ;;  %v14525_v30 = vld [vmem:[#allocation20_spill] sm:$0xff] }
 0x283   : > { %6797 = vmatpush1.bf16.msk.msra.mxu1 %vm6796_vm6, %v14399_v27  ;;  %vm2607_vm2 = vmand %vm2479_vm9, %vm14520_vm12  ;;  %vm14523_vm6 = vcmp.lt.s32.totalorder %v14519_v12, %v8158_v49  ;;  %v10728_v12 = vpop.permute.xlu0 %2265 }
 0x284   : > { %vm2609_vm10 = vmand %vm2481_vm0, %vm14522_vm4  ;;  %vm2352_vm0 = vcmp.gt.f32.partialorder %v10106_v37, %v10008_v54  ;;  %vm2483_vm4 = vcmp.eq.f32.partialorder %v10151_v43, %v9976_v52  ;;  %v14527_v37 = vld [vmem:[#allocation36_spill] sm:$0xff] }
 0x285   : > { %vm2735_vm1 = vmor %vm2351_vm14, %vm2607_vm2 }
 0x286   : > { %vm2737_vm3 = vmor %vm2353_vm13, %vm2609_vm10  ;;  %6799 = vmatmul.mubr.msk.bf16.vlgmr.msra.gmra.mrb[0].mxu1 %vm14300_vm11, %v3134_v13  ;;  %vm14524_vm13 = vcmp.lt.s32.totalorder %v14521_v0, %v8158_v49  ;;  %v7604_v13 = vld [vmem:[%s13996_s2 + $0x148] sm:$0xff]  ;;  %v7605_v0 = vld [vmem:[%s13996_s2 + $0x1e0] sm:$0xff] }
 0x287   : > { %vm6800_vm9 = vmpackc.low %vm2737_vm3, %vm2735_vm1  ;;  %vm2485_vm1 = vcmp.eq.f32.partialorder %v10155_v47, %v9976_v52  ;;  %3432 = vperm.xlu1 %7489, %v7604_v13   ;;  %3508 = vperm.xlu0 %7510, %v7605_v0   ;;  %v10762_v0 = vpop.permute.xlu1 %3268 }
 0x288   : > { %6801 = vmatprep.subr.msk.bf16.mxu1 %vm6800_vm9, %v14399_v27  ;;  %vm2606_vm14 = vmand %vm2478_vm8, %vm14523_vm6  ;;  %vm2355_vm9 = vcmp.gt.f32.partialorder %v10151_v43, %v9976_v52  ;;  %vm2357_vm8 = vcmp.gt.f32.partialorder %v10155_v47, %v9976_v52  ;;  %vm14528_vm6 = vcmp.lt.s32.totalorder %v14527_v37, %v8148_v2 }
 0x289   : > { %vm2608_vm12 = vmand %vm2480_vm7, %vm14524_vm13  ;;  %vm14526_vm7 = vcmp.lt.s32.totalorder %v14525_v30, %v8148_v2 }
 0x28a   : > { %vm2734_vm2 = vmor %vm2350_vm15, %vm2606_vm14  ;;  %vm2482_vm14 = vcmp.eq.f32.partialorder %v10151_v43, %v10008_v54 }
 0x28b   : > { %vm2736_vm10 = vmor %vm2352_vm0, %vm2608_vm12  ;;  %vm2484_vm12 = vcmp.eq.f32.partialorder %v10155_v47, %v10008_v54  ;;  %7490 = vset.pattern.permute.xlu1 %v14404_v41 }
 0x28c   : > { %vm6802_vm3 = vmpackc.low %vm2736_vm10, %vm2734_vm2  ;;  %vm2354_vm10 = vcmp.gt.f32.partialorder %v10151_v43, %v10008_v54  ;;  %v14533_v43 = vld [vmem:[#allocation38_spill] sm:$0xff]  ;;  %4687 = vperm.xlu1 %7490, %v7604_v13   ;;  %v14537_v13 = vld [vmem:[#allocation39_spill] sm:$0xff] }
 0x28d   : > { %6803 = vmatpush1.bf16.msk.msra.mxu1 %vm6802_vm3, %v14399_v27  ;;  %vm2611_vm15 = vmand %vm2483_vm4, %vm14526_vm7  ;;  %vm14529_vm3 = vcmp.lt.s32.totalorder %v14525_v30, %v8158_v49  ;;  %v10820_v30 = vsub.s32 3, %v8106_v62 }
 0x28e   : > { %vm2613_vm0 = vmand %vm2485_vm1, %vm14528_vm6  ;;  %vm2356_vm1 = vcmp.gt.f32.partialorder %v10155_v47, %v10008_v54  ;;  %vm2487_vm6 = vcmp.eq.f32.partialorder %v10190_v22, %v9976_v52  ;;  %v14531_v47 = vld [vmem:[#allocation37_spill] sm:$0xff] }
 0x28f   : > { %vm2739_vm13 = vmor %vm2355_vm9, %vm2611_vm15  ;;  %14543 = vst [vmem:[#allocation49_spill] sm:$0xff] %v10820_v30 }
 0x290   : > { %vm2741_vm2 = vmor %vm2357_vm8, %vm2613_vm0  ;;  %vm14530_vm8 = vcmp.lt.s32.totalorder %v14527_v37, %v8158_v49  ;;  %7491 = vset.pattern.permute.xlu1 %v14416_v32 }
 0x291   : > { %vm6804_vm4 = vmpackc.low %vm2741_vm2, %vm2739_vm13  ;;  %vm2489_vm13 = vcmp.eq.f32.partialorder %v10197_v42, %v9976_v52 }
 0x292   : > { %6805 = vmatprep.subr.msk.bf16.mxu1 %vm6804_vm4, %v14399_v27  ;;  %vm2610_vm9 = vmand %vm2482_vm14, %vm14529_vm3  ;;  %vm2359_vm4 = vcmp.gt.f32.partialorder %v10190_v22, %v9976_v52  ;;  %vm2361_vm14 = vcmp.gt.f32.partialorder %v10197_v42, %v9976_v52  ;;  %vm14534_vm3 = vcmp.lt.s32.totalorder %v14533_v43, %v8148_v2 }
 0x293   : > { %vm2612_vm7 = vmand %vm2484_vm12, %vm14530_vm8  ;;  %vm14532_vm12 = vcmp.lt.s32.totalorder %v14531_v47, %v8148_v2 }
 0x294   : > { %vm2738_vm15 = vmor %vm2354_vm10, %vm2610_vm9  ;;  %vm2486_vm9 = vcmp.eq.f32.partialorder %v10190_v22, %v10008_v54 }
 0x295   : > { %vm2740_vm0 = vmor %vm2356_vm1, %vm2612_vm7  ;;  %vm2488_vm7 = vcmp.eq.f32.partialorder %v10197_v42, %v10008_v54 }
 0x296   : > { %vm6806_vm2 = vmpackc.low %vm2740_vm0, %vm2738_vm15 }
 0x297   : > { %6807 = vmatpush1.bf16.msk.msra.mxu1 %vm6806_vm2, %v14399_v27  ;;  %vm2615_vm10 = vmand %vm2487_vm6, %vm14532_vm12  ;;  %vm2358_vm2 = vcmp.gt.f32.partialorder %v10190_v22, %v10008_v54  ;;  %vm2360_vm6 = vcmp.gt.f32.partialorder %v10197_v42, %v10008_v54  ;;  %vm14536_vm12 = vcmp.lt.s32.totalorder %v14533_v43, %v8158_v49  ;;  %v10780_v22 = vpop.permute.xlu0 %4527  ;;  %v7606_v42 = vld [vmem:[%s13996_s2 + $0x1f8] sm:$0xff]  ;;  %v14539_v43 = vld [vmem:[#allocation40_spill] sm:$0xff] }
 0x298   : > { %vm2617_vm1 = vmand %vm2489_vm13, %vm14534_vm3  ;;  %vm14535_vm13 = vcmp.lt.s32.totalorder %v14531_v47, %v8158_v49  ;;  %vm2491_vm3 = vcmp.eq.f32.partialorder %v10234_v59, %v9976_v52  ;;  %3520 = vperm.xlu0 %7510, %v7606_v42   ;;  %v10801_v42 = vpop.permute.xlu1 %3276  ;;  %v7607_v47 = vld [vmem:[%s13996_s2 + $0x150] sm:$0xff] }
 0x299   : > { %vm2743_vm8 = vmor %vm2359_vm4, %vm2615_vm10  ;;  %3436 = vperm.xlu1 %7491, %v7607_v47  }
 0x29a   : > { %vm2745_vm15 = vmor %vm2361_vm14, %vm2617_vm1 }
 0x29b   : > { %vm6808_vm0 = vmpackc.low %vm2745_vm15, %vm2743_vm8  ;;  %vm2365_vm15 = vcmp.gt.f32.partialorder %v10238_v58, %v9976_v52 }
 0x29c   : > { %6809 = vmatprep.subr.msk.bf16.mxu1 %vm6808_vm0, %v14399_v27  ;;  %vm2614_vm4 = vmand %vm2486_vm9, %vm14535_vm13  ;;  %vm2493_vm9 = vcmp.eq.f32.partialorder %v10238_v58, %v9976_v52  ;;  %vm14538_vm0 = vcmp.lt.s32.totalorder %v14537_v13, %v8148_v2  ;;  %vm14540_vm13 = vcmp.lt.s32.totalorder %v14539_v43, %v8148_v2  ;;  %7514 = vset.pattern.permute.xlu0 %v14404_v41  ;;  %v10822_v37 = vpop.permute.xlu1 %3280 }
 0x29d   : > { %vm2616_vm10 = vmand %vm2488_vm7, %vm14536_vm12  ;;  %vm2363_vm7 = vcmp.gt.f32.partialorder %v10234_v59, %v9976_v52  ;;  %7492 = vset.pattern.permute.xlu1 %v14404_v41 }
 0x29e   : > { %vm2742_vm14 = vmor %vm2358_vm2, %vm2614_vm4  ;;  %vm2490_vm4 = vcmp.eq.f32.partialorder %v10234_v59, %v10008_v54  ;;  %4691 = vperm.xlu1 %7492, %v7607_v47   ;;  %v2003_v47 = vrot.slane %v10134_v46, %v10820_v30 }
 0x29f   : > { %vm2744_vm1 = vmor %vm2360_vm6, %vm2616_vm10  ;;  %vm2492_vm10 = vcmp.eq.f32.partialorder %v10238_v58, %v10008_v54 }
 0x2a0   : > { %vm6810_vm8 = vmpackc.low %vm2744_vm1, %vm2742_vm14  ;;  %vm2362_vm1 = vcmp.gt.f32.partialorder %v10234_v59, %v10008_v54  ;;  %v14544_v59 = vld [vmem:[#allocation41_spill] sm:$0xff] }
 0x2a1   : > { %6811 = vmatpush1.bf16.msk.msra.mxu1 %vm6810_vm8, %v14399_v27  ;;  %vm2619_vm2 = vmand %vm2491_vm3, %vm14538_vm0  ;;  %vm14541_vm8 = vcmp.lt.s32.totalorder %v14537_v13, %v8158_v49  ;;  %vm14542_vm0 = vcmp.lt.s32.totalorder %v14539_v43, %v8158_v49  ;;  %v14546_v13 = vld [vmem:[#allocation42_spill] sm:$0xff]  ;;  %v2011_v43 = vpack.c.bf16 %v2003_v47, %v2003_v47 }
 0x2a2   : > { %vm2621_vm6 = vmand %vm2493_vm9, %vm14540_vm13  ;;  %vm2364_vm9 = vcmp.gt.f32.partialorder %v10238_v58, %v10008_v54  ;;  %vm2495_vm13 = vcmp.eq.f32.partialorder %v10269_v33, %v9976_v52  ;;  %v10837_v58 = vpop.permute.xlu1 %3288  ;;  %4695 = vperm.xlu1 %7492, %v10359_v55  }
 0x2a3   : > { %vm2747_vm12 = vmor %vm2363_vm7, %vm2619_vm2  ;;  %v3128_v18 = vshll.u32 %v2011_v43, 16  ;;  %v14552_v43 = vld [vmem:[#allocation44_spill] sm:$0xff] }
 0x2a4   : > { %vm2749_vm14 = vmor %vm2365_vm15, %vm2621_vm6 }
 0x2a5   : > { %vm6812_vm3 = vmpackc.low %vm2749_vm14, %vm2747_vm12  ;;  %vm2369_vm14 = vcmp.gt.f32.partialorder %v10274_v40, %v9976_v52  ;;  %v3137_v55 = vsel %vm8919_vm5, 1065369472, %v3128_v18  ;;  %v14550_v18 = vld [vmem:[#allocation43_spill] sm:$0xff] }
 0x2a6   : > { %6813 = vmatprep.subr.msk.bf16.mxu1 %vm6812_vm3, %v14399_v27  ;;  %vm2618_vm7 = vmand %vm2490_vm4, %vm14541_vm8  ;;  %vm2497_vm4 = vcmp.eq.f32.partialorder %v10274_v40, %v9976_v52  ;;  %vm14545_vm3 = vcmp.lt.s32.totalorder %v14544_v59, %v8148_v2  ;;  %v10851_v24 = vpop.permute.xlu1 %3296  ;;  %7493 = vset.pattern.permute.xlu1 %v14416_v32 }
 0x2a7   : > { %vm2620_vm2 = vmand %vm2492_vm10, %vm14542_vm0  ;;  %vm2367_vm10 = vcmp.gt.f32.partialorder %v10269_v33, %v9976_v52  ;;  %6864 = vmatprep.mubr.msk.bf16.mxu1 %vm14300_vm11, %v3137_v55 }
 0x2a8   : > { %vm2746_vm15 = vmor %vm2362_vm1, %vm2618_vm7  ;;  %vm2494_vm7 = vcmp.eq.f32.partialorder %v10269_v33, %v10008_v54 }
 0x2a9   : > { %vm2748_vm6 = vmor %vm2364_vm9, %vm2620_vm2  ;;  %vm14547_vm9 = vcmp.lt.s32.totalorder %v14546_v13, %v8148_v2  ;;  %vm2496_vm2 = vcmp.eq.f32.partialorder %v10274_v40, %v10008_v54 }
 0x2aa   : > { %vm6814_vm12 = vmpackc.low %vm2748_vm6, %vm2746_vm15  ;;  %vm2366_vm6 = vcmp.gt.f32.partialorder %v10269_v33, %v10008_v54  ;;  %v7608_v33 = vld [vmem:[%s13996_s2 + $0x168] sm:$0xff] }
 0x2ab   : > { %6815 = vmatpush1.bf16.msk.msra.mxu1 %vm6814_vm12, %v14399_v27  ;;  %vm2623_vm1 = vmand %vm2495_vm13, %vm14545_vm3  ;;  %vm14548_vm12 = vcmp.lt.s32.totalorder %v14544_v59, %v8158_v49  ;;  %vm14549_vm3 = vcmp.lt.s32.totalorder %v14546_v13, %v8158_v49  ;;  %3448 = vperm.xlu1 %7493, %v7608_v33  }
 0x2ac   : > { %vm2625_vm8 = vmand %vm2497_vm4, %vm14547_vm9  ;;  %vm2368_vm4 = vcmp.gt.f32.partialorder %v10274_v40, %v10008_v54  ;;  %vm2499_vm9 = vcmp.eq.f32.partialorder %v10311_v9, %v9976_v52  ;;  %v10873_v40 = vpop.permute.xlu1 %3304 }
 0x2ad   : > { %vm2751_vm0 = vmor %vm2367_vm10, %vm2623_vm1 }
 0x2ae   : > { %vm2753_vm15 = vmor %vm2369_vm14, %vm2625_vm8 }
 0x2af   : > { %vm6816_vm13 = vmpackc.low %vm2753_vm15, %vm2751_vm0  ;;  %vm2373_vm15 = vcmp.gt.f32.partialorder %v10318_v29, %v9976_v52  ;;  %7494 = vset.pattern.permute.xlu1 %v14404_v41 }
 0x2b0   : > { %6817 = vmatprep.subr.msk.bf16.mxu1 %vm6816_vm13, %v14399_v27  ;;  %vm2622_vm10 = vmand %vm2494_vm7, %vm14548_vm12  ;;  %vm2501_vm7 = vcmp.eq.f32.partialorder %v10318_v29, %v9976_v52  ;;  %vm14551_vm13 = vcmp.lt.s32.totalorder %v14550_v18, %v8148_v2  ;;  %v10889_v47 = vpop.permute.xlu1 %3312  ;;  %4703 = vperm.xlu1 %7494, %v7608_v33  }
 0x2b1   : > { %vm2624_vm14 = vmand %vm2496_vm2, %vm14549_vm3  ;;  %vm2371_vm2 = vcmp.gt.f32.partialorder %v10311_v9, %v9976_v52 }
 0x2b2   : > { %vm2750_vm1 = vmor %vm2366_vm6, %vm2622_vm10  ;;  %vm2498_vm10 = vcmp.eq.f32.partialorder %v10311_v9, %v10008_v54 }
 0x2b3   : > { %vm2752_vm8 = vmor %vm2368_vm4, %vm2624_vm14  ;;  %vm14553_vm4 = vcmp.lt.s32.totalorder %v14552_v43, %v8148_v2  ;;  %vm2500_vm14 = vcmp.eq.f32.partialorder %v10318_v29, %v10008_v54 }
 0x2b4   : > { %vm6818_vm0 = vmpackc.low %vm2752_vm8, %vm2750_vm1  ;;  %v10904_v55 = vpop.permute.xlu1 %3320  ;;  %7495 = vset.pattern.permute.xlu1 %v14416_v32 }
 0x2b5   : > { %6819 = vmatpush1.bf16.msk.msra.mxu1 %vm6818_vm0, %v14399_v27  ;;  %vm2627_vm6 = vmand %vm2499_vm9, %vm14551_vm13  ;;  %vm2370_vm9 = vcmp.gt.f32.partialorder %v10311_v9, %v10008_v54  ;;  %vm14554_vm0 = vcmp.lt.s32.totalorder %v14550_v18, %v8158_v49  ;;  %vm14555_vm13 = vcmp.lt.s32.totalorder %v14552_v43, %v8158_v49  ;;  %v7609_v9 = vld [vmem:[%s13996_s2 + $0x170] sm:$0xff]  ;;  %v14558_v18 = vld [vmem:[#allocation46_spill] sm:$0xff] }
 0x2b6   : > { %vm2629_vm12 = vmand %vm2501_vm7, %vm14553_vm4  ;;  %vm2372_vm7 = vcmp.gt.f32.partialorder %v10318_v29, %v10008_v54  ;;  %vm2503_vm4 = vcmp.eq.f32.partialorder %v10350_v50, %v9976_v52  ;;  %3452 = vperm.xlu1 %7495, %v7609_v9   ;;  %v14556_v29 = vld [vmem:[#allocation45_spill] sm:$0xff] }
 0x2b7   : > { %vm2755_vm3 = vmor %vm2371_vm2, %vm2627_vm6 }
 0x2b8   : > { %vm2757_vm1 = vmor %vm2373_vm15, %vm2629_vm12  ;;  %v10922_v33 = vpop.permute.xlu1 %4523 }
 0x2b9   : > { %vm6820_vm8 = vmpackc.low %vm2757_vm1, %vm2755_vm3  ;;  %vm2377_vm1 = vcmp.gt.f32.partialorder %v10354_v1, %v9976_v52 }
 0x2ba   : > { %6821 = vmatprep.subr.msk.bf16.mxu1 %vm6820_vm8, %v14399_v27  ;;  %vm2626_vm2 = vmand %vm2498_vm10, %vm14554_vm0  ;;  %vm2505_vm10 = vcmp.eq.f32.partialorder %v10354_v1, %v9976_v52  ;;  %vm14557_vm8 = vcmp.lt.s32.totalorder %v14556_v29, %v8148_v2  ;;  %7496 = vset.pattern.permute.xlu1 %v14404_v41 }
 0x2bb   : > { %vm2628_vm6 = vmand %vm2500_vm14, %vm14555_vm13  ;;  %vm2375_vm14 = vcmp.gt.f32.partialorder %v10350_v50, %v9976_v52  ;;  %4707 = vperm.xlu1 %7496, %v7609_v9   ;;  %v7610_v9 = vld [vmem:[%s13996_s2 + $0x188] sm:$0xff] }
 0x2bc   : > { %vm2754_vm15 = vmor %vm2370_vm9, %vm2626_vm2  ;;  %vm2502_vm2 = vcmp.eq.f32.partialorder %v10350_v50, %v10008_v54  ;;  %v10934_v43 = vpop.permute.xlu1 %4531 }
 0x2bd   : > { %vm2756_vm12 = vmor %vm2372_vm7, %vm2628_vm6  ;;  %vm14559_vm7 = vcmp.lt.s32.totalorder %v14558_v18, %v8148_v2  ;;  %vm2504_vm6 = vcmp.eq.f32.partialorder %v10354_v1, %v10008_v54 }
 0x2be   : > { %vm6822_vm3 = vmpackc.low %vm2756_vm12, %vm2754_vm15 }
 0x2bf   : > { %6823 = vmatpush1.bf16.msk.msra.mxu1 %vm6822_vm3, %v14399_v27  ;;  %vm2631_vm9 = vmand %vm2503_vm4, %vm14557_vm8  ;;  %vm2374_vm4 = vcmp.gt.f32.partialorder %v10350_v50, %v10008_v54  ;;  %vm14560_vm3 = vcmp.lt.s32.totalorder %v14556_v29, %v8158_v49  ;;  %vm14561_vm8 = vcmp.lt.s32.totalorder %v14558_v18, %v8158_v49  ;;  %4711 = vperm.xlu1 %7496, %v10441_v20   ;;  %v14564_v20 = vld [vmem:[#allocation48_spill] sm:$0xff] }
 0x2c0   : > { %vm2633_vm0 = vmand %vm2505_vm10, %vm14559_vm7  ;;  %vm2376_vm10 = vcmp.gt.f32.partialorder %v10354_v1, %v10008_v54  ;;  %vm2507_vm7 = vcmp.eq.f32.partialorder %v10391_v34, %v9976_v52  ;;  %v14562_v1 = vld [vmem:[#allocation47_spill] sm:$0xff]  ;;  %v10958_v50 = vpop.permute.xlu1 %4535 }
 0x2c1   : > { %vm2759_vm13 = vmor %vm2375_vm14, %vm2631_vm9 }
 0x2c2   : > { %vm2761_vm15 = vmor %vm2377_vm1, %vm2633_vm0 }
 0x2c3   : > { %vm6824_vm12 = vmpackc.low %vm2761_vm15, %vm2759_vm13  ;;  %vm2509_vm13 = vcmp.eq.f32.partialorder %v10398_v63, %v9976_v52  ;;  %7497 = vset.pattern.permute.xlu1 %v14416_v32 }
 0x2c4   : > { %6825 = vmatprep.subr.msk.bf16.mxu1 %vm6824_vm12, %v14399_v27  ;;  %vm2630_vm14 = vmand %vm2502_vm2, %vm14560_vm3  ;;  %vm2379_vm12 = vcmp.gt.f32.partialorder %v10391_v34, %v9976_v52  ;;  %vm2381_vm2 = vcmp.gt.f32.partialorder %v10398_v63, %v9976_v52  ;;  %3464 = vperm.xlu1 %7497, %v7610_v9   ;;  %v10983_v18 = vpop.permute.xlu1 %4543 }
 0x2c5   : > { %vm2632_vm9 = vmand %vm2504_vm6, %vm14561_vm8  ;;  %vm14563_vm6 = vcmp.lt.s32.totalorder %v14562_v1, %v8148_v2 }
 0x2c6   : > { %vm2758_vm1 = vmor %vm2374_vm4, %vm2630_vm14  ;;  %vm2506_vm14 = vcmp.eq.f32.partialorder %v10391_v34, %v10008_v54 }
 0x2c7   : > { %vm2760_vm0 = vmor %vm2376_vm10, %vm2632_vm9  ;;  %vm14565_vm10 = vcmp.lt.s32.totalorder %v14564_v20, %v8148_v2  ;;  %vm2508_vm9 = vcmp.eq.f32.partialorder %v10398_v63, %v10008_v54 }
 0x2c8   : > { %vm6826_vm15 = vmpackc.low %vm2760_vm0, %vm2758_vm1  ;;  %vm2378_vm0 = vcmp.gt.f32.partialorder %v10391_v34, %v10008_v54  ;;  %7498 = vset.pattern.permute.xlu1 %v14404_v41  ;;  %v14570_v34 = vld [vmem:[#allocation51_spill] sm:$0xff] }
 0x2c9   : > { %6827 = vmatpush1.bf16.msk.msra.mxu1 %vm6826_vm15, %v14399_v27  ;;  %vm2635_vm4 = vmand %vm2507_vm7, %vm14563_vm6  ;;  %vm14566_vm15 = vcmp.lt.s32.totalorder %v14562_v1, %v8158_v49  ;;  %4719 = vperm.xlu1 %7498, %v7610_v9   ;;  %v7611_v9 = vld [vmem:[%s13996_s2 + $0x190] sm:$0xff]  ;;  %v11006_v1 = vpop.permute.xlu1 %4551 }
 0x2ca   : > { %vm2637_vm3 = vmand %vm2509_vm13, %vm14565_vm10  ;;  %vm2380_vm13 = vcmp.gt.f32.partialorder %v10398_v63, %v10008_v54  ;;  %vm2511_vm10 = vcmp.eq.f32.partialorder %v10432_v28, %v9976_v52  ;;  %v14568_v63 = vld [vmem:[#allocation50_spill] sm:$0xff] }
 0x2cb   : > { %vm2763_vm8 = vmor %vm2379_vm12, %vm2635_vm4  ;;  %vm14567_vm12 = vcmp.lt.s32.totalorder %v14564_v20, %v8158_v49 }
 0x2cc   : > { %vm2765_vm1 = vmor %vm2381_vm2, %vm2637_vm3 }
 0x2cd   : > { %vm6828_vm7 = vmpackc.low %vm2765_vm1, %vm2763_vm8  ;;  %vm2513_vm8 = vcmp.eq.f32.partialorder %v10436_v31, %v9976_v52  ;;  %7499 = vset.pattern.permute.xlu1 %v14416_v32 }
 0x2ce   : > { %6829 = vmatprep.subr.msk.bf16.mxu1 %vm6828_vm7, %v14399_v27  ;;  %vm2634_vm6 = vmand %vm2506_vm14, %vm14566_vm15  ;;  %vm2383_vm14 = vcmp.gt.f32.partialorder %v10432_v28, %v9976_v52  ;;  %vm14569_vm7 = vcmp.lt.s32.totalorder %v14568_v63, %v8148_v2  ;;  %3468 = vperm.xlu1 %7499, %v7611_v9  }
 0x2cf   : > { %vm2636_vm4 = vmand %vm2508_vm9, %vm14567_vm12  ;;  %vm2385_vm9 = vcmp.gt.f32.partialorder %v10436_v31, %v9976_v52 }
 0x2d0   : > { %vm2762_vm2 = vmor %vm2378_vm0, %vm2634_vm6  ;;  %vm2510_vm6 = vcmp.eq.f32.partialorder %v10432_v28, %v10008_v54 }
 0x2d1   : > { %vm2764_vm3 = vmor %vm2380_vm13, %vm2636_vm4  ;;  %vm14571_vm13 = vcmp.lt.s32.totalorder %v14570_v34, %v8148_v2  ;;  %vm2512_vm4 = vcmp.eq.f32.partialorder %v10436_v31, %v10008_v54 }
 0x2d2   : > { %vm6830_vm1 = vmpackc.low %vm2764_vm3, %vm2762_vm2  ;;  %vm2382_vm3 = vcmp.gt.f32.partialorder %v10432_v28, %v10008_v54  ;;  %7500 = vset.pattern.permute.xlu1 %v14404_v41 }
 0x2d3   : > { %6831 = vmatpush1.bf16.msk.msra.mxu1 %vm6830_vm1, %v14399_v27  ;;  %vm2639_vm0 = vmand %vm2511_vm10, %vm14569_vm7  ;;  %vm14572_vm1 = vcmp.lt.s32.totalorder %v14568_v63, %v8158_v49  ;;  %4723 = vperm.xlu1 %7500, %v7611_v9  }
 0x2d4   : > { %vm2641_vm15 = vmand %vm2513_vm8, %vm14571_vm13  ;;  %vm2384_vm8 = vcmp.gt.f32.partialorder %v10436_v31, %v10008_v54  ;;  %vm2515_vm13 = vcmp.eq.f32.partialorder %v10472_v44, %v9976_v52  ;;  %v11026_v31 = vpop.permute.xlu1 %4559 }
 0x2d5   : > { %vm2767_vm12 = vmor %vm2383_vm14, %vm2639_vm0  ;;  %vm14573_vm14 = vcmp.lt.s32.totalorder %v14570_v34, %v8158_v49 }
 0x2d6   : > { %vm2769_vm2 = vmor %vm2385_vm9, %vm2641_vm15 }
 0x2d7   : > { %vm6832_vm10 = vmpackc.low %vm2769_vm2, %vm2767_vm12  ;;  %vm2517_vm12 = vcmp.eq.f32.partialorder %v10477_v17, %v9976_v52  ;;  %4727 = vperm.xlu1 %7500, %v10523_v38   ;;  %v7612_v38 = vld [vmem:[%s13996_s2 + $0x1a8] sm:$0xff] }
 0x2d8   : > { %6833 = vmatprep.subr.msk.bf16.mxu1 %vm6832_vm10, %v14399_v27  ;;  %vm2638_vm7 = vmand %vm2510_vm6, %vm14572_vm1  ;;  %vm2387_vm6 = vcmp.gt.f32.partialorder %v10472_v44, %v9976_v52  ;;  %vm14574_vm10 = vcmp.lt.s32.totalorder %v9517_v53, %v8148_v2  ;;  %v11046_v28 = vpop.permute.xlu1 %4567 }
 0x2d9   : > { %vm2640_vm0 = vmand %vm2512_vm4, %vm14573_vm14  ;;  %vm2389_vm4 = vcmp.gt.f32.partialorder %v10477_v17, %v9976_v52 }
 0x2da   : > { %vm2766_vm9 = vmor %vm2382_vm3, %vm2638_vm7  ;;  %vm2514_vm7 = vcmp.eq.f32.partialorder %v10472_v44, %v10008_v54 }
 0x2db   : > { %vm2768_vm15 = vmor %vm2384_vm8, %vm2640_vm0  ;;  %vm14575_vm8 = vcmp.lt.s32.totalorder %v9522_v5, %v8148_v2  ;;  %vm2516_vm0 = vcmp.eq.f32.partialorder %v10477_v17, %v10008_v54  ;;  %7501 = vset.pattern.permute.xlu1 %v14416_v32 }
 0x2dc   : > { %vm6834_vm2 = vmpackc.low %vm2768_vm15, %vm2766_vm9  ;;  %3480 = vperm.xlu1 %7501, %v7612_v38  }
 0x2dd   : > { %6835 = vmatpush1.bf16.msk.msra.mxu1 %vm6834_vm2, %v14399_v27  ;;  %vm2643_vm3 = vmand %vm2515_vm13, %vm14574_vm10  ;;  %vm2386_vm2 = vcmp.gt.f32.partialorder %v10472_v44, %v10008_v54  ;;  %vm2388_vm13 = vcmp.gt.f32.partialorder %v10477_v17, %v10008_v54  ;;  %v11073_v17 = vpop.permute.xlu1 %4575  ;;  %v14579_v44 = vld [vmem:[#allocation55_spill] sm:$0xff] }
 0x2de   : > { %vm2645_vm1 = vmand %vm2517_vm12, %vm14575_vm8  ;;  %vm14576_vm12 = vcmp.lt.s32.totalorder %v9517_v53, %v8158_v49  ;;  %vm2519_vm8 = vcmp.eq.f32.partialorder %v10511_v7, %v9976_v52  ;;  %v7614_v53 = vld [vmem:[%s13996_s2 + $0x1c8] sm:$0xff] }
 0x2df   : > { %vm2771_vm14 = vmor %vm2387_vm6, %vm2643_vm3  ;;  %vm14577_vm6 = vcmp.lt.s32.totalorder %v9522_v5, %v8158_v49  ;;  %v14660_v5 = vld [vmem:[#allocation29_spill] sm:$0xff] }
 0x2e0   : > { %vm2773_vm9 = vmor %vm2389_vm4, %vm2645_vm1  ;;  %7502 = vset.pattern.permute.xlu1 %v14404_v41 }
 0x2e1   : > { %vm6836_vm15 = vmpackc.low %vm2773_vm9, %vm2771_vm14  ;;  %vm2521_vm14 = vcmp.eq.f32.partialorder %v10518_v35, %v9976_v52  ;;  %vm2391_vm9 = vcmp.gt.f32.partialorder %v10511_v7, %v9976_v52  ;;  %4735 = vperm.xlu1 %7502, %v7612_v38   ;;  %v11095_v9 = vpop.permute.xlu1 %4579  ;;  %v14585_v38 = vld [vmem:[#allocation57_spill] sm:$0xff] }
 0x2e2   : > { %6837 = vmatprep.subr.msk.bf16.mxu1 %vm6836_vm15, %v14399_v27  ;;  %vm2642_vm10 = vmand %vm2514_vm7, %vm14576_vm12  ;;  %vm14578_vm15 = vcmp.lt.s32.totalorder %v9596_v26, %v8148_v2 }
 0x2e3   : > { %vm2644_vm4 = vmand %vm2516_vm0, %vm14577_vm6  ;;  %vm2393_vm0 = vcmp.gt.f32.partialorder %v10518_v35, %v9976_v52 }
 0x2e4   : > { %vm2770_vm3 = vmor %vm2386_vm2, %vm2642_vm10  ;;  %vm2518_vm10 = vcmp.eq.f32.partialorder %v10511_v7, %v10008_v54 }
 0x2e5   : > { %vm2772_vm1 = vmor %vm2388_vm13, %vm2644_vm4  ;;  %vm14580_vm13 = vcmp.lt.s32.totalorder %v14579_v44, %v8148_v2  ;;  %vm2520_vm4 = vcmp.eq.f32.partialorder %v10518_v35, %v10008_v54  ;;  %7503 = vset.pattern.permute.xlu1 %v14416_v32 }
 0x2e6   : > { %vm6838_vm7 = vmpackc.low %vm2772_vm1, %vm2770_vm3 }
 0x2e7   : > { %6839 = vmatpush1.bf16.msk.msra.mxu1 %vm6838_vm7, %v14399_v27  ;;  %vm2647_vm2 = vmand %vm2519_vm8, %vm14578_vm15  ;;  %vm2390_vm8 = vcmp.gt.f32.partialorder %v10511_v7, %v10008_v54  ;;  %vm2392_vm7 = vcmp.gt.f32.partialorder %v10518_v35, %v10008_v54  ;;  %v7613_v7 = vld [vmem:[%s13996_s2 + $0x1b0] sm:$0xff] }
 0x2e8   : > { %vm2649_vm12 = vmand %vm2521_vm14, %vm14580_vm13  ;;  %vm14581_vm14 = vcmp.lt.s32.totalorder %v9596_v26, %v8158_v49  ;;  %3484 = vperm.xlu1 %7503, %v7613_v7   ;;  %vm2523_vm13 = vcmp.eq.f32.partialorder %v10555_v45, %v9976_v52  ;;  %v14583_v35 = vld [vmem:[#allocation56_spill] sm:$0xff] }
 0x2e9   : > { %vm2775_vm6 = vmor %vm2391_vm9, %vm2647_vm2  ;;  %vm14582_vm9 = vcmp.lt.s32.totalorder %v14579_v44, %v8158_v49  ;;  %v11120_v44 = vpop.permute.xlu1 %4583 }
 0x2ea   : > { %vm2777_vm3 = vmor %vm2393_vm0, %vm2649_vm12 }
 0x2eb   : > { %vm6840_vm1 = vmpackc.low %vm2777_vm3, %vm2775_vm6  ;;  %vm2395_vm3 = vcmp.gt.f32.partialorder %v10555_v45, %v9976_v52 }
 0x2ec   : > { %6841 = vmatprep.subr.msk.bf16.mxu1 %vm6840_vm1, %v14399_v27  ;;  %vm2646_vm15 = vmand %vm2518_vm10, %vm14581_vm14  ;;  %vm2525_vm10 = vcmp.eq.f32.partialorder %v10559_v48, %v9976_v52  ;;  %vm14584_vm1 = vcmp.lt.s32.totalorder %v14583_v35, %v8148_v2  ;;  %7504 = vset.pattern.permute.xlu1 %v14404_v41 }
 0x2ed   : > { %vm2648_vm2 = vmand %vm2520_vm4, %vm14582_vm9  ;;  %vm2397_vm4 = vcmp.gt.f32.partialorder %v10559_v48, %v9976_v52  ;;  %4739 = vperm.xlu1 %7504, %v7613_v7   ;;  %v11135_v7 = vpop.permute.xlu1 %3336 }
 0x2ee   : > { %vm2774_vm0 = vmor %vm2390_vm8, %vm2646_vm15  ;;  %vm2522_vm15 = vcmp.eq.f32.partialorder %v10555_v45, %v10008_v54 }
 0x2ef   : > { %vm2776_vm12 = vmor %vm2392_vm7, %vm2648_vm2  ;;  %vm14586_vm7 = vcmp.lt.s32.totalorder %v14585_v38, %v8148_v2  ;;  %vm2524_vm2 = vcmp.eq.f32.partialorder %v10559_v48, %v10008_v54 }
 0x2f0   : > { %vm6842_vm6 = vmpackc.low %vm2776_vm12, %vm2774_vm0 }
 0x2f1   : > { %6843 = vmatpush1.bf16.msk.msra.mxu1 %vm6842_vm6, %v14399_v27  ;;  %vm2651_vm8 = vmand %vm2523_vm13, %vm14584_vm1  ;;  %vm2394_vm13 = vcmp.gt.f32.partialorder %v10555_v45, %v10008_v54  ;;  %vm14587_vm6 = vcmp.lt.s32.totalorder %v14583_v35, %v8158_v49  ;;  %vm14588_vm1 = vcmp.lt.s32.totalorder %v14585_v38, %v8158_v49  ;;  %4743 = vperm.xlu1 %7504, %v10605_v60   ;;  %v14591_v45 = vld [vmem:[#allocation59_spill] sm:$0xff]  ;;  %v14594_v60 = vld [vmem:[#allocation18_spill] sm:$0xff]  ;;  %v11189_v26 = vpop.permute.xlu1 %4591 }
 0x2f2   : > { %vm2653_vm14 = vmand %vm2525_vm10, %vm14586_vm7  ;;  %vm2396_vm10 = vcmp.gt.f32.partialorder %v10559_v48, %v10008_v54  ;;  %vm2527_vm7 = vcmp.eq.f32.partialorder %v10593_v36, %v9976_v52  ;;  %v14589_v48 = vld [vmem:[#allocation58_spill] sm:$0xff]  ;;  %v679_v35 = vrot.slane %v14594_v60, %v10820_v30 }
 0x2f3   : > { %vm2779_vm9 = vmor %vm2395_vm3, %vm2651_vm8 }
 0x2f4   : > { %vm2781_vm0 = vmor %vm2397_vm4, %vm2653_vm14 }
 0x2f5   : > { %vm6844_vm12 = vmpackc.low %vm2781_vm0, %vm2779_vm9  ;;  %vm2529_vm9 = vcmp.eq.f32.partialorder %v10600_v21, %v9976_v52  ;;  %7505 = vset.pattern.permute.xlu1 %v14416_v32 }
 0x2f6   : > { %6845 = vmatprep.subr.msk.bf16.mxu1 %vm6844_vm12, %v14399_v27  ;;  %vm2650_vm3 = vmand %vm2522_vm15, %vm14587_vm6  ;;  %vm2399_vm15 = vcmp.gt.f32.partialorder %v10593_v36, %v9976_v52  ;;  %vm14590_vm12 = vcmp.lt.s32.totalorder %v14589_v48, %v8148_v2  ;;  %vm14592_vm6 = vcmp.lt.s32.totalorder %v14591_v45, %v8148_v2  ;;  %3496 = vperm.xlu1 %7505, %v7614_v53  }
 0x2f7   : > { %vm2652_vm4 = vmand %vm2524_vm2, %vm14588_vm1  ;;  %vm2401_vm2 = vcmp.gt.f32.partialorder %v10600_v21, %v9976_v52 }
 0x2f8   : > { %vm2778_vm8 = vmor %vm2394_vm13, %vm2650_vm3  ;;  %vm2526_vm3 = vcmp.eq.f32.partialorder %v10593_v36, %v10008_v54 }
 0x2f9   : > { %vm2780_vm14 = vmor %vm2396_vm10, %vm2652_vm4  ;;  %vm2528_vm4 = vcmp.eq.f32.partialorder %v10600_v21, %v10008_v54 }
 0x2fa   : > { %vm6846_vm0 = vmpackc.low %vm2780_vm14, %vm2778_vm8  ;;  %7506 = vset.pattern.permute.xlu1 %v14404_v41 }
 0x2fb   : > { %6847 = vmatpush1.bf16.msk.msra.mxu1 %vm6846_vm0, %v14399_v27  ;;  %vm2655_vm13 = vmand %vm2527_vm7, %vm14590_vm12  ;;  %vm2398_vm0 = vcmp.gt.f32.partialorder %v10593_v36, %v10008_v54  ;;  %vm2400_vm7 = vcmp.gt.f32.partialorder %v10600_v21, %v10008_v54  ;;  %v687_v36 = vpack.c.bf16 %v679_v35, %v679_v35  ;;  %v11176_v21 = vsub.s32 2, %v8106_v62  ;;  %v14598_v35 = vld [vmem:[#allocation61_spill] sm:$0xff] }
 0x2fc   : > { %vm2657_vm10 = vmand %vm2529_vm9, %vm14592_vm6  ;;  %vm14593_vm9 = vcmp.lt.s32.totalorder %v14589_v48, %v8158_v49  ;;  %vm2531_vm6 = vcmp.eq.f32.partialorder %v10639_v16, %v9976_v52 }
 0x2fd   : > { %vm2783_vm1 = vmor %vm2399_vm15, %vm2655_vm13  ;;  %vm14595_vm15 = vcmp.lt.s32.totalorder %v14591_v45, %v8158_v49  ;;  %v1869_v48 = vshll.u32 %v687_v36, 16  ;;  %v14596_v45 = vld [vmem:[#allocation60_spill] sm:$0xff]  ;;  %v675_v36 = vrot.slane %v14594_v60, %v11176_v21 }
 0x2fe   : > { %vm2785_vm8 = vmor %vm2401_vm2, %vm2657_vm10 }
 0x2ff   : > { %vm6848_vm14 = vmpackc.low %vm2785_vm8, %vm2783_vm1  ;;  %vm2533_vm1 = vcmp.eq.f32.partialorder %v10643_v14, %v9976_v52  ;;  %v1881_v38 = vsel %vm8919_vm5, 1065369472, %v1869_v48  ;;  %v686_v48 = vpack.c.bf16 %v675_v36, %v675_v36  ;;  %v11248_v36 = vpop.permute.xlu1 %3340  ;;  %4751 = vperm.xlu1 %7506, %v7614_v53  }
 0x300   : > { %6849 = vmatprep.subr.msk.bf16.mxu1 %vm6848_vm14, %v14399_v27  ;;  %vm2654_vm12 = vmand %vm2526_vm3, %vm14593_vm9  ;;  %vm2403_vm3 = vcmp.gt.f32.partialorder %v10639_v16, %v9976_v52  ;;  %vm14597_vm14 = vcmp.lt.s32.totalorder %v14596_v45, %v8148_v2  ;;  %6603 = vmatprep.mubr.msk.bf16.mxu0 %vm14300_vm11, %v1881_v38  ;;  %v11243_v38 = vpop.permute.xlu0 %4539 }
 0x301   : > { %vm2656_vm2 = vmand %vm2528_vm4, %vm14595_vm15  ;;  %vm2405_vm4 = vcmp.gt.f32.partialorder %v10643_v14, %v9976_v52  ;;  %v1866_v60 = vshll.u32 %v686_v48, 16 }
 0x302   : > { %vm2782_vm13 = vmor %vm2398_vm0, %vm2654_vm12  ;;  %vm2530_vm12 = vcmp.eq.f32.partialorder %v10639_v16, %v10008_v54 }
 0x303   : > { %vm2784_vm10 = vmor %vm2400_vm7, %vm2656_vm2  ;;  %vm14599_vm7 = vcmp.lt.s32.totalorder %v14598_v35, %v8148_v2  ;;  %vm2532_vm2 = vcmp.eq.f32.partialorder %v10643_v14, %v10008_v54  ;;  %7507 = vset.pattern.permute.xlu1 %v14416_v32 }
 0x304   : > { %vm6850_vm8 = vmpackc.low %vm2784_vm10, %vm2782_vm13  ;;  %vm2402_vm10 = vcmp.gt.f32.partialorder %v10639_v16, %v10008_v54  ;;  %v1880_v16 = vsel %vm8919_vm5, 1065369472, %v1866_v60  ;;  %v11268_v53 = vpop.permute.xlu0 %4547 }
 0x305   : > { %6851 = vmatpush1.bf16.msk.msra.mxu1 %vm6850_vm8, %v14399_v27  ;;  %vm2659_vm0 = vmand %vm2531_vm6, %vm14597_vm14  ;;  %vm14600_vm8 = vcmp.lt.s32.totalorder %v14596_v45, %v8158_v49  ;;  %6604 = vmatmul.mubr.msk.bf16.vlgmr.msra.gmra.mrb[0].mxu0 %vm14300_vm11, %v1880_v16 }
 0x306   : > { %vm2661_vm9 = vmand %vm2533_vm1, %vm14599_vm7  ;;  %vm2404_vm1 = vcmp.gt.f32.partialorder %v10643_v14, %v10008_v54  ;;  %vm2535_vm7 = vcmp.eq.f32.partialorder %v10678_v39, %v9976_v52  ;;  %v14603_v14 = vld [vmem:[#allocation63_spill] sm:$0xff] }
 0x307   : > { %vm2787_vm15 = vmor %vm2403_vm3, %vm2659_vm0 }
 0x308   : > { %vm2789_vm13 = vmor %vm2405_vm4, %vm2661_vm9  ;;  %vm14601_vm4 = vcmp.lt.s32.totalorder %v14598_v35, %v8158_v49  ;;  %v11286_v48 = vpop.permute.xlu0 %4555  ;;  %v14316_v35 = vsub.s32 6, %v8106_v62 }
 0x309   : > { %vm6852_vm6 = vmpackc.low %vm2789_vm13, %vm2787_vm15  ;;  %vm2537_vm15 = vcmp.eq.f32.partialorder %v10684_v61, %v9976_v52  ;;  %vm2407_vm13 = vcmp.gt.f32.partialorder %v10678_v39, %v9976_v52 }
 0x30a   : > { %6853 = vmatprep.subr.msk.bf16.mxu1 %vm6852_vm6, %v14399_v27  ;;  %vm2658_vm3 = vmand %vm2530_vm12, %vm14600_vm8  ;;  %vm14602_vm6 = vcmp.lt.s32.totalorder %v9850_v11, %v8148_v2 }
 0x30b   : > { %vm2660_vm14 = vmand %vm2532_vm2, %vm14601_vm4  ;;  %vm2409_vm2 = vcmp.gt.f32.partialorder %v10684_v61, %v9976_v52 }
 0x30c   : > { %vm2786_vm0 = vmor %vm2402_vm10, %vm2658_vm3  ;;  %vm2534_vm3 = vcmp.eq.f32.partialorder %v10678_v39, %v10008_v54 }
 0x30d   : > { %vm2788_vm9 = vmor %vm2404_vm1, %vm2660_vm14  ;;  %vm14604_vm1 = vcmp.lt.s32.totalorder %v14603_v14, %v8148_v2  ;;  %vm2536_vm14 = vcmp.eq.f32.partialorder %v10684_v61, %v10008_v54 }
 0x30e   : > { %vm6854_vm12 = vmpackc.low %vm2788_vm9, %vm2786_vm0 }
 0x30f   : > { %6855 = vmatpush1.bf16.msk.msra.mxu1 %vm6854_vm12, %v14399_v27  ;;  %vm2663_vm10 = vmand %vm2535_vm7, %vm14602_vm6  ;;  %vm2406_vm12 = vcmp.gt.f32.partialorder %v10678_v39, %v10008_v54  ;;  %vm2408_vm7 = vcmp.gt.f32.partialorder %v10684_v61, %v10008_v54  ;;  %v1999_v39 = vrot.slane %v10134_v46, %v11176_v21 }
 0x310   : > { %vm2665_vm8 = vmand %vm2537_vm15, %vm14604_vm1  ;;  %vm14605_vm15 = vcmp.lt.s32.totalorder %v9850_v11, %v8158_v49  ;;  %vm2539_vm1 = vcmp.eq.f32.partialorder %v10721_v15, %v9976_v52  ;;  %v14644_v11 = vld [vmem:[#allocation25_spill] sm:$0xff] }
 0x311   : > { %vm2791_vm4 = vmor %vm2407_vm13, %vm2663_vm10  ;;  %vm14606_vm13 = vcmp.lt.s32.totalorder %v14603_v14, %v8158_v49  ;;  %v2010_v46 = vpack.c.bf16 %v1999_v39, %v1999_v39  ;;  %v11302_v39 = vpop.permute.xlu0 %4563 }
 0x312   : > { %vm2793_vm0 = vmor %vm2409_vm2, %vm2665_vm8 }
 0x313   : > { %vm6856_vm9 = vmpackc.low %vm2793_vm0, %vm2791_vm4  ;;  %vm2541_vm4 = vcmp.eq.f32.partialorder %v10728_v12, %v9976_v52  ;;  %vm2411_vm0 = vcmp.gt.f32.partialorder %v10721_v15, %v9976_v52  ;;  %v3125_v61 = vshll.u32 %v2010_v46, 16 }
 0x314   : > { %6857 = vmatprep.subr.msk.bf16.mxu1 %vm6856_vm9, %v14399_v27  ;;  %vm2662_vm6 = vmand %vm2534_vm3, %vm14605_vm15  ;;  %vm14607_vm9 = vcmp.lt.s32.totalorder %v9914_v23, %v8148_v2 }
 0x315   : > { %vm2664_vm10 = vmand %vm2536_vm14, %vm14606_vm13  ;;  %vm2413_vm14 = vcmp.gt.f32.partialorder %v10728_v12, %v9976_v52  ;;  %v14301_v52 = vsub.s32 7, %v8106_v62 }
 0x316   : > { %vm2790_vm2 = vmor %vm2406_vm12, %vm2662_vm6  ;;  %vm2538_vm6 = vcmp.eq.f32.partialorder %v10721_v15, %v10008_v54 }
 0x317   : > { %vm2792_vm8 = vmor %vm2408_vm7, %vm2664_vm10  ;;  %vm14608_vm7 = vcmp.lt.s32.totalorder %v9924_v19, %v8148_v2  ;;  %vm2540_vm10 = vcmp.eq.f32.partialorder %v10728_v12, %v10008_v54 }
 0x318   : > { %vm6858_vm3 = vmpackc.low %vm2792_vm8, %vm2790_vm2 }
 0x319   : > { %6859 = vmatpush1.bf16.msk.msra.mxu1 %vm6858_vm3, %v14399_v27  ;;  %vm2667_vm12 = vmand %vm2539_vm1, %vm14607_vm9  ;;  %vm2410_vm1 = vcmp.gt.f32.partialorder %v10721_v15, %v10008_v54  ;;  %vm14609_vm3 = vcmp.lt.s32.totalorder %v9914_v23, %v8158_v49  ;;  %vm14610_vm9 = vcmp.lt.s32.totalorder %v9924_v19, %v8158_v49  ;;  %v11289_v15 = vld [vmem:[%s8113_s28] sm:$0xff]  ;;  %v14636_v19 = vld [vmem:[#allocation23_spill] sm:$0xff] }
 0x31a   : > { %vm2669_vm15 = vmand %vm2541_vm4, %vm14608_vm7  ;;  %vm2412_vm4 = vcmp.gt.f32.partialorder %v10728_v12, %v10008_v54  ;;  %v4785_v60 = vrot.slane %v11289_v15, %v14301_v52  ;;  %v3136_v54 = vsel %vm8919_vm5, 1065369472, %v3125_v61  ;;  %v4781_v16 = vrot.slane %v11289_v15, %v10820_v30  ;;  %v11314_v61 = vpop.permute.xlu0 %4571  ;;  %v14631_v52 = vld [vmem:[#allocation22_spill] sm:$0xff] }
 0x31b   : > { %vm2795_vm13 = vmor %vm2411_vm0, %vm2667_vm12 }
 0x31c   : > { %vm2797_vm2 = vmor %vm2413_vm14, %vm2669_vm15  ;;  %v11298_v12 = vrot.slane %v4785_v60, %v10820_v30  ;;  %v11308_v46 = vrot.slane %v4781_v16, %v10820_v30  ;;  %v11324_v60 = vpop.permute.xlu1 %4595 }
 0x31d   : > { %vm6860_vm8 = vmpackc.low %vm2797_vm2, %vm2795_vm13 }
 0x31e   : > { %6861 = vmatprep.subr.msk.bf16.mxu1 %vm6860_vm8, %v14399_v27  ;;  %vm2666_vm0 = vmand %vm2538_vm6, %vm14609_vm3  ;;  %vm4925_vm6 = vcmp.eq.f32.partialorder %v10922_v33, %v11298_v12  ;;  %vm4927_vm13 = vcmp.eq.f32.partialorder %v10780_v22, %v11298_v12  ;;  %vm4799_vm2 = vcmp.gt.f32.partialorder %v10780_v22, %v11298_v12  ;;  %vm14611_vm8 = vcmp.lt.s32.totalorder %v8106_v62, %v8148_v2  ;;  %v11342_v16 = vpop.permute.xlu0 %4587 }
 0x31f   : > { %vm2668_vm12 = vmand %vm2540_vm10, %vm14610_vm9  ;;  %vm4797_vm10 = vcmp.gt.f32.partialorder %v10922_v33, %v11298_v12 }
 0x320   : > { %vm2794_vm14 = vmor %vm2410_vm1, %vm2666_vm0  ;;  %vm4924_vm0 = vcmp.eq.f32.partialorder %v10922_v33, %v11308_v46 }
 0x321   : > { %vm2796_vm7 = vmor %vm2412_vm4, %vm2668_vm12  ;;  %vm14612_vm4 = vcmp.lt.s32.totalorder %v8151_v57, %v8148_v2  ;;  %vm4926_vm12 = vcmp.eq.f32.partialorder %v10780_v22, %v11308_v46 }
 0x322   : > { %vm6862_vm15 = vmpackc.low %vm2796_vm7, %vm2794_vm14 }
 0x323   : > { %6863 = vmatpush1.bf16.msk.msra.mxu1 %vm6862_vm15, %v14399_v27  ;;  %vm5053_vm1 = vmand %vm4925_vm6, %vm14611_vm8  ;;  %vm4796_vm15 = vcmp.gt.f32.partialorder %v10922_v33, %v11308_v46  ;;  %vm4798_vm6 = vcmp.gt.f32.partialorder %v10780_v22, %v11308_v46  ;;  %v11354_v22 = vpop.permute.xlu1 %4599  ;;  %v11356_v33 = vpop.permute.xlu0 %4603 }
 0x324   : > { %vm5055_vm3 = vmand %vm4927_vm13, %vm14612_vm4  ;;  %vm14613_vm13 = vcmp.lt.s32.totalorder %v8106_v62, %v8158_v49 }
 0x325   : > { %vm5181_vm9 = vmor %vm4797_vm10, %vm5053_vm1  ;;  %vm14614_vm10 = vcmp.lt.s32.totalorder %v8151_v57, %v8158_v49 }
 0x326   : > { %6865 = vmatmul.mubr.msk.bf16.vlgmr.msra.gmra.mrb[0].mxu1 %vm14300_vm11, %v3136_v54  ;;  %v7616_v54 = vld [vmem:[%s13996_s2 + $0x1d0] sm:$0xff]  ;;  %vm5183_vm14 = vmor %vm4799_vm2, %vm5055_vm3  ;;  %vm4810_vm11 = vcmp.gt.f32.partialorder %v11006_v1, %v11308_v46 }
 0x327   : > { %3500 = vperm.xlu1 %7507, %v7616_v54   ;;  %vm7256_vm7 = vmpackc.low %vm5183_vm14, %vm5181_vm9  ;;  %vm4929_vm9 = vcmp.eq.f32.partialorder %v10934_v43, %v11298_v12  ;;  %vm4931_vm14 = vcmp.eq.f32.partialorder %v10958_v50, %v11298_v12 }
 0x328   : > { %7257 = vmatprep.subr.msk.bf16.mxu1 %vm7256_vm7, %v14399_v27  ;;  %vm5052_vm8 = vmand %vm4924_vm0, %vm14613_vm13  ;;  %vm4801_vm0 = vcmp.gt.f32.partialorder %v10934_v43, %v11298_v12  ;;  %vm14615_vm7 = vcmp.lt.s32.totalorder %v8192_v4, %v8148_v2 }
 0x329   : > { %vm5054_vm2 = vmand %vm4926_vm12, %vm14614_vm10  ;;  %vm4803_vm12 = vcmp.gt.f32.partialorder %v10958_v50, %v11298_v12 }
 0x32a   : > { %vm5180_vm1 = vmor %vm4796_vm15, %vm5052_vm8  ;;  %vm4928_vm8 = vcmp.eq.f32.partialorder %v10934_v43, %v11308_v46 }
 0x32b   : > { %7508 = vset.pattern.permute.xlu1 %v14404_v41  ;;  %vm5182_vm4 = vmor %vm4798_vm6, %vm5054_vm2  ;;  %vm14616_vm6 = vcmp.lt.s32.totalorder %v8203_v56, %v8148_v2  ;;  %vm4930_vm2 = vcmp.eq.f32.partialorder %v10958_v50, %v11308_v46 }
 0x32c   : > { %vm7258_vm3 = vmpackc.low %vm5182_vm4, %vm5180_vm1  ;;  %4755 = vperm.xlu1 %7508, %v7616_v54   ;;  %v11378_v54 = vpop.permute.xlu0 %4619 }
 0x32d   : > { %7259 = vmatpush1.bf16.msk.msra.mxu1 %vm7258_vm3, %v14399_v27  ;;  %vm5057_vm15 = vmand %vm4929_vm9, %vm14615_vm7  ;;  %vm4800_vm3 = vcmp.gt.f32.partialorder %v10934_v43, %v11308_v46  ;;  %vm4802_vm9 = vcmp.gt.f32.partialorder %v10958_v50, %v11308_v46  ;;  %v11389_v43 = vpop.permute.xlu1 %3352 }
 0x32e   : > { %vm5059_vm13 = vmand %vm4931_vm14, %vm14616_vm6  ;;  %vm14617_vm14 = vcmp.lt.s32.totalorder %v8192_v4, %v8158_v49 }
 0x32f   : > { %vm5185_vm10 = vmor %vm4801_vm0, %vm5057_vm15  ;;  %vm14618_vm0 = vcmp.lt.s32.totalorder %v8203_v56, %v8158_v49 }
 0x330   : > { %vm5187_vm1 = vmor %vm4803_vm12, %vm5059_vm13  ;;  %vm4932_vm12 = vcmp.eq.f32.partialorder %v11243_v38, %v11308_v46  ;;  %vm4933_vm13 = vcmp.eq.f32.partialorder %v11243_v38, %v11298_v12  ;;  %4759 = vperm.xlu1 %7508, %v10689_v51   ;;  %v11407_v51 = vpop.permute.xlu0 %4635 }
 0x331   : > { %vm7260_vm4 = vmpackc.low %vm5187_vm1, %vm5185_vm10 }
 0x332   : > { %7261 = vmatprep.subr.msk.bf16.mxu1 %vm7260_vm4, %v14399_v27  ;;  %vm5056_vm7 = vmand %vm4928_vm8, %vm14617_vm14  ;;  %vm4935_vm4 = vcmp.eq.f32.partialorder %v10983_v18, %v11298_v12  ;;  %vm14619_vm8 = vcmp.lt.s32.totalorder %v8243_v3, %v8158_v49  ;;  %vm14622_vm14 = vcmp.lt.s32.totalorder %v8243_v3, %v8148_v2 }
 0x333   : > { %vm5058_vm15 = vmand %vm4930_vm2, %vm14618_vm0  ;;  %vm14623_vm0 = vcmp.lt.s32.totalorder %v8248_v6, %v8148_v2 }
 0x334   : > { %vm5184_vm6 = vmor %vm4800_vm3, %vm5056_vm7  ;;  %vm4805_vm3 = vcmp.gt.f32.partialorder %v11243_v38, %v11298_v12  ;;  %7509 = vset.pattern.permute.xlu1 %v14416_v32 }
 0x335   : > { %vm5186_vm10 = vmor %vm4802_vm9, %vm5058_vm15  ;;  %vm4807_vm9 = vcmp.gt.f32.partialorder %v10983_v18, %v11298_v12 }
 0x336   : > { %vm7262_vm1 = vmpackc.low %vm5186_vm10, %vm5184_vm6  ;;  %vm4804_vm10 = vcmp.gt.f32.partialorder %v11243_v38, %v11308_v46  ;;  %v11429_v38 = vpop.permute.xlu0 %4651 }
 0x337   : > { %vm11395_vm2 = vmand %vm4932_vm12, %vm14619_vm8  ;;  %7263 = vmatpush1.bf16.msk.msra.mxu1 %vm7262_vm1, %v14399_v27  ;;  %vm4934_vm12 = vcmp.eq.f32.partialorder %v10983_v18, %v11308_v46 }
 0x338   : > { %vm5061_vm7 = vmand %vm4933_vm13, %vm14622_vm14  ;;  %vm4806_vm13 = vcmp.gt.f32.partialorder %v10983_v18, %v11308_v46  ;;  %vm14624_vm14 = vcmp.lt.s32.totalorder %v8248_v6, %v8158_v49 }
 0x339   : > { %vm5063_vm15 = vmand %vm4935_vm4, %vm14623_vm0  ;;  %vm4936_vm0 = vcmp.eq.f32.partialorder %v11268_v53, %v11308_v46 }
 0x33a   : > { %vm5189_vm6 = vmor %vm4805_vm3, %vm5061_vm7  ;;  %vm4937_vm7 = vcmp.eq.f32.partialorder %v11268_v53, %v11298_v12  ;;  %v11455_v50 = vpop.permute.xlu0 %4667 }
 0x33b   : > { %vm5191_vm1 = vmor %vm4807_vm9, %vm5063_vm15 }
 0x33c   : > { %vm7264_vm8 = vmpackc.low %vm5191_vm1, %vm5189_vm6  ;;  %vm4939_vm6 = vcmp.eq.f32.partialorder %v11006_v1, %v11298_v12  ;;  %vm14625_vm1 = vcmp.lt.s32.totalorder %v8284_v8, %v8158_v49 }
 0x33d   : > { %7265 = vmatprep.subr.msk.bf16.mxu1 %vm7264_vm8, %v14399_v27  ;;  %vm5062_vm4 = vmand %vm4934_vm12, %vm14624_vm14  ;;  %vm14628_vm8 = vcmp.lt.s32.totalorder %v8284_v8, %v8148_v2  ;;  %vm14629_vm14 = vcmp.lt.s32.totalorder %v8288_v10, %v8148_v2 }
 0x33e   : > { %vm5188_vm3 = vmor %vm4804_vm10, %vm11395_vm2  ;;  %vm4809_vm2 = vcmp.gt.f32.partialorder %v11268_v53, %v11298_v12  ;;  %vm4811_vm10 = vcmp.gt.f32.partialorder %v11006_v1, %v11298_v12  ;;  %v11483_v23 = vpop.permute.xlu0 %4683 }
 0x33f   : > { %vm5190_vm9 = vmor %vm4806_vm13, %vm5062_vm4 }
 0x340   : > { %vm7266_vm15 = vmpackc.low %vm5190_vm9, %vm5188_vm3  ;;  %vm4808_vm9 = vcmp.gt.f32.partialorder %v11268_v53, %v11308_v46  ;;  %v7617_v53 = vld [vmem:[%s13996_s2 + $0x1e8] sm:$0xff] }
 0x341   : > { %vm11436_vm12 = vmand %vm4936_vm0, %vm14625_vm1  ;;  %7267 = vmatpush1.bf16.msk.msra.mxu1 %vm7266_vm15, %v14399_v27  ;;  %vm4938_vm0 = vcmp.eq.f32.partialorder %v11006_v1, %v11308_v46  ;;  %v11471_v1 = vpop.permute.xlu1 %4607  ;;  %3512 = vperm.xlu1 %7509, %v7617_v53  }
 0x342   : > { %vm5065_vm13 = vmand %vm4937_vm7, %vm14628_vm8  ;;  %vm14630_vm7 = vcmp.lt.s32.totalorder %v8288_v10, %v8158_v49  ;;  %vm4940_vm8 = vcmp.eq.f32.partialorder %v11286_v48, %v11308_v46  ;;  %v11503_v14 = vpop.permute.xlu0 %4699 }
 0x343   : > { %vm5067_vm4 = vmand %vm4939_vm6, %vm14629_vm14 }
 0x344   : > { %vm5193_vm3 = vmor %vm4809_vm2, %vm5065_vm13  ;;  %vm4941_vm13 = vcmp.eq.f32.partialorder %v11286_v48, %v11298_v12 }
 0x345   : > { %vm5195_vm15 = vmor %vm4811_vm10, %vm5067_vm4  ;;  %vm4943_vm4 = vcmp.eq.f32.partialorder %v11026_v31, %v11298_v12  ;;  %7511 = vset.pattern.permute.xlu1 %v14404_v41  ;;  %v11539_v45 = vpop.permute.xlu1 %3356 }
 0x346   : > { %vm7268_vm1 = vmpackc.low %vm5195_vm15, %vm5193_vm3  ;;  %v11532_v18 = vpop.permute.xlu0 %4715  ;;  %4767 = vperm.xlu1 %7511, %v7617_v53   ;;  %v14658_v53 = vld [vmem:[#allocation28_spill] sm:$0xff] }
 0x347   : > { %7269 = vmatprep.subr.msk.bf16.mxu1 %vm7268_vm1, %v14399_v27  ;;  %vm5066_vm6 = vmand %vm4938_vm0, %vm14630_vm7  ;;  %vm14632_vm0 = vcmp.lt.s32.totalorder %v14631_v52, %v8158_v49  ;;  %vm14637_vm1 = vcmp.lt.s32.totalorder %v14636_v19, %v8148_v2 }
 0x348   : > { %vm5192_vm2 = vmor %vm4808_vm9, %vm11436_vm12  ;;  %vm4815_vm12 = vcmp.gt.f32.partialorder %v11026_v31, %v11298_v12  ;;  %vm14635_vm9 = vcmp.lt.s32.totalorder %v14631_v52, %v8148_v2 }
 0x349   : > { %vm5194_vm10 = vmor %vm4810_vm11, %vm5066_vm6  ;;  %vm4813_vm11 = vcmp.gt.f32.partialorder %v11286_v48, %v11298_v12  ;;  %vm4942_vm6 = vcmp.eq.f32.partialorder %v11026_v31, %v11308_v46 }
 0x34a   : > { %vm7270_vm14 = vmpackc.low %vm5194_vm10, %vm5192_vm2  ;;  %vm4812_vm2 = vcmp.gt.f32.partialorder %v11286_v48, %v11308_v46  ;;  %7512 = vset.pattern.permute.xlu1 %v14416_v32  ;;  %v14653_v32 = vld [vmem:[#allocation27_spill] sm:$0xff] }
 0x34b   : > { %vm11479_vm3 = vmand %vm4940_vm8, %vm14632_vm0  ;;  %7271 = vmatpush1.bf16.msk.msra.mxu1 %vm7270_vm14, %v14399_v27  ;;  %vm4814_vm0 = vcmp.gt.f32.partialorder %v11026_v31, %v11308_v46  ;;  %v14639_v31 = vld [vmem:[#allocation24_spill] sm:$0xff] }
 0x34c   : > { %vm5069_vm15 = vmand %vm4941_vm13, %vm14635_vm9  ;;  %vm14638_vm13 = vcmp.lt.s32.totalorder %v14636_v19, %v8158_v49 }
 0x34d   : > { %vm5071_vm7 = vmand %vm4943_vm4, %vm14637_vm1 }
 0x34e   : > { %vm5197_vm8 = vmor %vm4813_vm11, %vm5069_vm15  ;;  %vm4944_vm11 = vcmp.eq.f32.partialorder %v11302_v39, %v11308_v46 }
 0x34f   : > { %vm5199_vm10 = vmor %vm4815_vm12, %vm5071_vm7  ;;  %vm4945_vm12 = vcmp.eq.f32.partialorder %v11302_v39, %v11298_v12  ;;  %vm4947_vm7 = vcmp.eq.f32.partialorder %v11046_v28, %v11298_v12 }
 0x350   : > { %vm7272_vm14 = vmpackc.low %vm5199_vm10, %vm5197_vm8  ;;  %vm14640_vm8 = vcmp.lt.s32.totalorder %v14639_v31, %v8158_v49 }
 0x351   : > { %7273 = vmatprep.subr.msk.bf16.mxu1 %vm7272_vm14, %v14399_v27  ;;  %vm5070_vm4 = vmand %vm4942_vm6, %vm14638_vm13  ;;  %vm4819_vm6 = vcmp.gt.f32.partialorder %v11046_v28, %v11298_v12 }
 0x352   : > { %vm5196_vm9 = vmor %vm4812_vm2, %vm11479_vm3  ;;  %vm4817_vm3 = vcmp.gt.f32.partialorder %v11302_v39, %v11298_v12  ;;  %vm14643_vm2 = vcmp.lt.s32.totalorder %v14639_v31, %v8148_v2 }
 0x353   : > { %vm5198_vm15 = vmor %vm4814_vm0, %vm5070_vm4  ;;  %vm14645_vm0 = vcmp.lt.s32.totalorder %v14644_v11, %v8148_v2  ;;  %vm4946_vm4 = vcmp.eq.f32.partialorder %v11046_v28, %v11308_v46 }
 0x354   : > { %vm7274_vm1 = vmpackc.low %vm5198_vm15, %vm5196_vm9  ;;  %vm4816_vm9 = vcmp.gt.f32.partialorder %v11302_v39, %v11308_v46  ;;  %v11556_v39 = vpop.permute.xlu0 %4731 }
 0x355   : > { %vm11520_vm10 = vmand %vm4944_vm11, %vm14640_vm8  ;;  %7275 = vmatpush1.bf16.msk.msra.mxu1 %vm7274_vm1, %v14399_v27  ;;  %14647 = vst [vmem:[#allocation41_spill] sm:$0xff] %v11556_v39  ;;  %v3526_v39 = vrot.slane %v11289_v15, %v11176_v21 }
 0x356   : > { %vm5073_vm14 = vmand %vm4945_vm12, %vm14643_vm2  ;;  %vm4818_vm12 = vcmp.gt.f32.partialorder %v11046_v28, %v11308_v46  ;;  %v14648_v28 = vld [vmem:[#allocation26_spill] sm:$0xff] }
 0x357   : > { %vm5075_vm13 = vmand %vm4947_vm7, %vm14645_vm0  ;;  %vm14646_vm7 = vcmp.lt.s32.totalorder %v14644_v11, %v8158_v49 }
 0x358   : > { %vm5201_vm11 = vmor %vm4817_vm3, %vm5073_vm14  ;;  %vm4948_vm3 = vcmp.eq.f32.partialorder %v11314_v61, %v11308_v46  ;;  %v11582_v48 = vpop.permute.xlu0 %4747 }
 0x359   : > { %vm5203_vm15 = vmor %vm4819_vm6, %vm5075_vm13  ;;  %vm4949_vm6 = vcmp.eq.f32.partialorder %v11314_v61, %v11298_v12  ;;  %vm4951_vm13 = vcmp.eq.f32.partialorder %v11073_v17, %v11298_v12  ;;  %14655 = vst [vmem:[#allocation42_spill] sm:$0xff] %v11582_v48  ;;  %v11610_v48 = vpop.permute.xlu1 %4611 }
 0x35a   : > { %vm7276_vm1 = vmpackc.low %vm5203_vm15, %vm5201_vm11  ;;  %vm14652_vm15 = vcmp.lt.s32.totalorder %v14648_v28, %v8148_v2 }
 0x35b   : > { %7277 = vmatprep.subr.msk.bf16.mxu1 %vm7276_vm1, %v14399_v27  ;;  %vm5074_vm8 = vmand %vm4946_vm4, %vm14646_vm7  ;;  %vm14649_vm4 = vcmp.lt.s32.totalorder %v14648_v28, %v8158_v49 }
 0x35c   : > { %vm5200_vm2 = vmor %vm4816_vm9, %vm11520_vm10  ;;  %vm4821_vm10 = vcmp.gt.f32.partialorder %v11314_v61, %v11298_v12  ;;  %vm4823_vm9 = vcmp.gt.f32.partialorder %v11073_v17, %v11298_v12 }
 0x35d   : > { %vm5202_vm14 = vmor %vm4818_vm12, %vm5074_vm8  ;;  %vm14654_vm12 = vcmp.lt.s32.totalorder %v14653_v32, %v8148_v2  ;;  %vm4950_vm8 = vcmp.eq.f32.partialorder %v11073_v17, %v11308_v46 }
 0x35e   : > { %vm7278_vm0 = vmpackc.low %vm5202_vm14, %vm5200_vm2  ;;  %vm4820_vm2 = vcmp.gt.f32.partialorder %v11314_v61, %v11308_v46  ;;  %v11596_v61 = vpop.permute.xlu0 %4763 }
 0x35f   : > { %vm11563_vm11 = vmand %vm4948_vm3, %vm14649_vm4  ;;  %7279 = vmatpush1.bf16.msk.msra.mxu1 %vm7278_vm0, %v14399_v27  ;;  %vm4822_vm4 = vcmp.gt.f32.partialorder %v11073_v17, %v11308_v46  ;;  %14657 = vst [vmem:[#allocation45_spill] sm:$0xff] %v11596_v61  ;;  %v3530_v17 = vrot.slane %v11289_v15, %v14316_v35  ;;  %v7618_v61 = vld [vmem:[%s13996_s2 + $0x1f0] sm:$0xff]  ;;  %v11631_v15 = vrot.slane %v3526_v39, %v11176_v21 }
 0x360   : > { %vm5077_vm1 = vmand %vm4949_vm6, %vm14652_vm15  ;;  %vm14656_vm6 = vcmp.lt.s32.totalorder %v14653_v32, %v8158_v49  ;;  %3516 = vperm.xlu1 %7512, %v7618_v61  }
 0x361   : > { %vm5079_vm7 = vmand %vm4951_vm13, %vm14654_vm12  ;;  %vm4955_vm12 = vcmp.eq.f32.partialorder %v11120_v44, %v11298_v12  ;;  %v11625_v35 = vrot.slane %v3530_v17, %v11176_v21 }
 0x362   : > { %vm5205_vm3 = vmor %vm4821_vm10, %vm5077_vm1  ;;  %v3273_v30 = vpop.permute.xlu0 %3272 }
 0x363   : > { %vm5207_vm14 = vmor %vm4823_vm9, %vm5079_vm7  ;;  %vm4953_vm9 = vcmp.eq.f32.partialorder %v11095_v9, %v11298_v12  ;;  %vm4825_vm7 = vcmp.gt.f32.partialorder %v11095_v9, %v11298_v12 }
 0x364   : > { %vm7280_vm0 = vmpackc.low %vm5207_vm14, %vm5205_vm3  ;;  %7513 = vset.pattern.permute.xlu1 %v14404_v41 }
 0x365   : > { %7281 = vmatprep.subr.msk.bf16.mxu1 %vm7280_vm0, %v14399_v27  ;;  %vm5078_vm13 = vmand %vm4950_vm8, %vm14656_vm6  ;;  %vm14659_vm8 = vcmp.lt.s32.totalorder %v14658_v53, %v8148_v2  ;;  %vm4952_vm0 = vcmp.eq.f32.partialorder %v11095_v9, %v11308_v46  ;;  %vm4954_vm6 = vcmp.eq.f32.partialorder %v11120_v44, %v11308_v46 }
 0x366   : > { %vm5204_vm15 = vmor %vm4820_vm2, %vm11563_vm11  ;;  %vm4827_vm11 = vcmp.gt.f32.partialorder %v11120_v44, %v11298_v12  ;;  %vm14661_vm2 = vcmp.lt.s32.totalorder %v14660_v5, %v8148_v2 }
 0x367   : > { %vm5206_vm10 = vmor %vm4822_vm4, %vm5078_vm13 }
 0x368   : > { %vm7282_vm1 = vmpackc.low %vm5206_vm10, %vm5204_vm15  ;;  %vm4824_vm10 = vcmp.gt.f32.partialorder %v11095_v9, %v11308_v46 }
 0x369   : > { %7283 = vmatpush1.bf16.msk.msra.mxu1 %vm7282_vm1, %v14399_v27  ;;  %vm5081_vm3 = vmand %vm4953_vm9, %vm14659_vm8  ;;  %vm4826_vm1 = vcmp.gt.f32.partialorder %v11120_v44, %v11308_v46  ;;  %vm14662_vm9 = vcmp.lt.s32.totalorder %v14658_v53, %v8158_v49  ;;  %vm3671_vm8 = vcmp.eq.f32.partialorder %v3273_v30, %v11631_v15  ;;  %v11656_v44 = vpop.permute.xlu1 %4615  ;;  %4771 = vperm.xlu1 %7513, %v7618_v61  }
 0x36a   : > { %vm5083_vm14 = vmand %vm4955_vm12, %vm14661_vm2 }
 0x36b   : > { %vm5209_vm4 = vmor %vm4825_vm7, %vm5081_vm3  ;;  %vm14663_vm7 = vcmp.lt.s32.totalorder %v14660_v5, %v8158_v49 }
 0x36c   : > { %vm5211_vm13 = vmor %vm4827_vm11, %vm5083_vm14  ;;  %vm3670_vm14 = vcmp.eq.f32.partialorder %v10762_v0, %v11625_v35 }
 0x36d   : > { %vm7284_vm15 = vmpackc.low %vm5211_vm13, %vm5209_vm4  ;;  %vm3672_vm4 = vcmp.eq.f32.partialorder %v3273_v30, %v11625_v35 }
 0x36e   : > { %7285 = vmatprep.subr.msk.bf16.mxu1 %vm7284_vm15, %v14399_v27  ;;  %vm5080_vm12 = vmand %vm4952_vm0, %vm14662_vm9  ;;  %vm14664_vm15 = vcmp.lt.s32.totalorder %v8151_v57, %v8158_v49  ;;  %vm3542_vm0 = vcmp.gt.f32.partialorder %v10762_v0, %v11625_v35  ;;  %vm14668_vm9 = vcmp.lt.s32.totalorder %v8151_v57, %v8148_v2  ;;  %v11688_v57 = vpop.permute.xlu1 %3368 }
 0x36f   : > { %vm5082_vm11 = vmand %vm4954_vm6, %vm14663_vm7  ;;  %vm3544_vm6 = vcmp.gt.f32.partialorder %v3273_v30, %v11625_v35  ;;  %vm3669_vm7 = vcmp.eq.f32.partialorder %v10762_v0, %v11631_v15 }
 0x370   : > { %vm5208_vm3 = vmor %vm4824_vm10, %vm5080_vm12  ;;  %vm14667_vm10 = vcmp.lt.s32.totalorder %v8106_v62, %v8148_v2 }
 0x371   : > { %vm5210_vm2 = vmor %vm4826_vm1, %vm5082_vm11 }
 0x372   : > { %vm7286_vm13 = vmpackc.low %vm5210_vm2, %vm5208_vm3  ;;  %vm3541_vm3 = vcmp.gt.f32.partialorder %v10762_v0, %v11631_v15  ;;  %vm3543_vm2 = vcmp.gt.f32.partialorder %v3273_v30, %v11631_v15  ;;  %v7619_v30 = vld [vmem:[%s13996_s2 + $0x1f8] sm:$0xff]  ;;  %v3285_v0 = vpop.permute.xlu0 %3284 }
 0x373   : > { %vm11649_vm5 = vmand %vm3671_vm8, %vm14664_vm15  ;;  %7287 = vmatpush1.bf16.msk.msra.mxu1 %vm7286_vm13, %v14399_v27  ;;  %4775 = vperm.xlu1 %7513, %v7619_v30  }
 0x374   : > { %vm3798_vm1 = vmand %vm3670_vm14, %vm14667_vm10  ;;  %vm14669_vm14 = vcmp.lt.s32.totalorder %v8106_v62, %v8158_v49 }
 0x375   : > { %vm3800_vm12 = vmand %vm3672_vm4, %vm14668_vm9  ;;  %vm3674_vm4 = vcmp.eq.f32.partialorder %v10801_v42, %v11625_v35  ;;  %vm3546_vm9 = vcmp.gt.f32.partialorder %v10801_v42, %v11625_v35 }
 0x376   : > { %vm3926_vm11 = vmor %vm3542_vm0, %vm3798_vm1 }
 0x377   : > { %vm3928_vm8 = vmor %vm3544_vm6, %vm3800_vm12  ;;  %vm3676_vm6 = vcmp.eq.f32.partialorder %v10822_v37, %v11625_v35  ;;  %vm3548_vm12 = vcmp.gt.f32.partialorder %v10822_v37, %v11625_v35 }
 0x378   : > { %vm6995_vm13 = vmpackc.low %vm3928_vm8, %vm3926_vm11 }
 0x379   : > { %6996 = vmatprep.subr.msk.bf16.mxu0 %vm6995_vm13, %v14399_v27  ;;  %vm3797_vm15 = vmand %vm3669_vm7, %vm14669_vm14  ;;  %vm14670_vm7 = vcmp.lt.s32.totalorder %v8192_v4, %v8148_v2  ;;  %vm3675_vm14 = vcmp.eq.f32.partialorder %v10822_v37, %v11631_v15 }
 0x37a   : > { %vm3925_vm10 = vmor %vm3541_vm3, %vm3797_vm15 }
 0x37b   : > { %vm3927_vm0 = vmor %vm3543_vm2, %vm11649_vm5  ;;  %vm14671_vm5 = vcmp.lt.s32.totalorder %v8203_v56, %v8148_v2  ;;  %vm3673_vm2 = vcmp.eq.f32.partialorder %v10801_v42, %v11631_v15 }
 0x37c   : > { %vm6997_vm1 = vmpackc.low %vm3927_vm0, %vm3925_vm10  ;;  %vm3545_vm10 = vcmp.gt.f32.partialorder %v10801_v42, %v11631_v15  ;;  %vm14672_vm0 = vcmp.lt.s32.totalorder %v8192_v4, %v8158_v49  ;;  %v14675_v4 = vld [vmem:[#allocation30_spill] sm:$0xff]  ;;  %v3293_v42 = vpop.permute.xlu0 %3292 }
 0x37d   : > { %6998 = vmatpush1.bf16.msk.msra.mxu0 %vm6997_vm1, %v14399_v27  ;;  %vm3802_vm11 = vmand %vm3674_vm4, %vm14670_vm7  ;;  %vm3547_vm4 = vcmp.gt.f32.partialorder %v10822_v37, %v11631_v15  ;;  %vm14673_vm1 = vcmp.lt.s32.totalorder %v8203_v56, %v8158_v49  ;;  %v14681_v37 = vld [vmem:[#allocation31_spill] sm:$0xff] }
 0x37e   : > { %vm3804_vm8 = vmand %vm3676_vm6, %vm14671_vm5 }
 0x37f   : > { %vm3930_vm3 = vmor %vm3546_vm9, %vm3802_vm11  ;;  %vm4956_vm11 = vcmp.eq.f32.partialorder %v11342_v16, %v11308_v46 }
 0x380   : > { %vm3932_vm13 = vmor %vm3548_vm12, %vm3804_vm8  ;;  %vm3678_vm12 = vcmp.eq.f32.partialorder %v3285_v0, %v11625_v35  ;;  %vm3680_vm8 = vcmp.eq.f32.partialorder %v10837_v58, %v11625_v35 }
 0x381   : > { %vm6999_vm15 = vmpackc.low %vm3932_vm13, %vm3930_vm3  ;;  %vm3550_vm13 = vcmp.gt.f32.partialorder %v3285_v0, %v11625_v35 }
 0x382   : > { %7000 = vmatprep.subr.msk.bf16.mxu0 %vm6999_vm15, %v14399_v27  ;;  %vm3801_vm6 = vmand %vm3673_vm2, %vm14672_vm0  ;;  %vm3552_vm2 = vcmp.gt.f32.partialorder %v10837_v58, %v11625_v35 }
 0x383   : > { %vm3803_vm9 = vmand %vm3675_vm14, %vm14673_vm1  ;;  %vm14674_vm14 = vcmp.lt.s32.totalorder %v8243_v3, %v8148_v2  ;;  %vm4957_vm1 = vcmp.eq.f32.partialorder %v11342_v16, %v11298_v12 }
 0x384   : > { %vm3929_vm7 = vmor %vm3545_vm10, %vm3801_vm6  ;;  %vm14676_vm10 = vcmp.lt.s32.totalorder %v14675_v4, %v8158_v49 }
 0x385   : > { %vm3931_vm5 = vmor %vm3547_vm4, %vm3803_vm9  ;;  %vm14679_vm4 = vcmp.lt.s32.totalorder %v8248_v6, %v8148_v2 }
 0x386   : > { %vm7001_vm3 = vmpackc.low %vm3931_vm5, %vm3929_vm7  ;;  %vm4959_vm5 = vcmp.eq.f32.partialorder %v11189_v26, %v11298_v12 }
 0x387   : > { %7002 = vmatpush1.bf16.msk.msra.mxu0 %vm7001_vm3, %v14399_v27  ;;  %vm3806_vm15 = vmand %vm3678_vm12, %vm14674_vm14  ;;  %vm4829_vm3 = vcmp.gt.f32.partialorder %v11342_v16, %v11298_v12 }
 0x388   : > { %vm11726_vm0 = vmand %vm4956_vm11, %vm14676_vm10  ;;  %vm4831_vm11 = vcmp.gt.f32.partialorder %v11189_v26, %v11298_v12 }
 0x389   : > { %vm3808_vm6 = vmand %vm3680_vm8, %vm14679_vm4  ;;  %vm14680_vm8 = vcmp.lt.s32.totalorder %v14675_v4, %v8148_v2  ;;  %vm4958_vm4 = vcmp.eq.f32.partialorder %v11189_v26, %v11308_v46 }
 0x38a   : > { %vm3934_vm9 = vmor %vm3550_vm13, %vm3806_vm15  ;;  %vm14682_vm13 = vcmp.lt.s32.totalorder %v14681_v37, %v8148_v2  ;;  %vm3677_vm15 = vcmp.eq.f32.partialorder %v3285_v0, %v11631_v15 }
 0x38b   : > { %vm3936_vm7 = vmor %vm3552_vm2, %vm3808_vm6 }
 0x38c   : > { %vm7003_vm12 = vmpackc.low %vm3936_vm7, %vm3934_vm9  ;;  %vm4828_vm9 = vcmp.gt.f32.partialorder %v11342_v16, %v11308_v46  ;;  %v14729_v16 = vmov 0 }
 0x38d   : > { %7004 = vmatprep.subr.msk.bf16.mxu0 %vm7003_vm12, %v14399_v27  ;;  %vm5085_vm14 = vmand %vm4957_vm1, %vm14680_vm8  ;;  %vm14683_vm12 = vcmp.lt.s32.totalorder %v8243_v3, %v8158_v49  ;;  %vm3679_vm8 = vcmp.eq.f32.partialorder %v10837_v58, %v11631_v15  ;;  %v14762_v3 = vld [vmem:[#allocation8_spill] sm:$0xff] }
 0x38e   : > { %vm5087_vm2 = vmand %vm4959_vm5, %vm14682_vm13  ;;  %vm4830_vm5 = vcmp.gt.f32.partialorder %v11189_v26, %v11308_v46  ;;  %v3301_v26 = vpop.permute.xlu0 %3300 }
 0x38f   : > { %vm5213_vm10 = vmor %vm4829_vm3, %vm5085_vm14  ;;  %vm14686_vm3 = vcmp.lt.s32.totalorder %v14681_v37, %v8158_v49  ;;  %vm3681_vm14 = vcmp.eq.f32.partialorder %v3293_v42, %v11631_v15 }
 0x390   : > { %vm5215_vm6 = vmor %vm4831_vm11, %vm5087_vm2  ;;  %vm3549_vm2 = vcmp.gt.f32.partialorder %v3285_v0, %v11631_v15 }
 0x391   : > { %vm7288_vm7 = vmpackc.low %vm5215_vm6, %vm5213_vm10  ;;  %vm3551_vm6 = vcmp.gt.f32.partialorder %v10837_v58, %v11631_v15 }
 0x392   : > { %vm11756_vm1 = vmand %vm3677_vm15, %vm14683_vm12  ;;  %7289 = vmatprep.subr.msk.bf16.mxu1 %vm7288_vm7, %v14399_v27  ;;  %vm14687_vm7 = vcmp.lt.s32.totalorder %v8284_v8, %v8158_v49 }
 0x393   : > { %vm5086_vm11 = vmand %vm4958_vm4, %vm14686_vm3  ;;  %vm14690_vm4 = vcmp.lt.s32.totalorder %v8248_v6, %v8158_v49  ;;  %v14777_v6 = vld [vmem:[#allocation10_spill] sm:$0xff] }
 0x394   : > { %vm5212_vm13 = vmor %vm4828_vm9, %vm11726_vm0  ;;  %vm3682_vm9 = vcmp.eq.f32.partialorder %v3293_v42, %v11625_v35 }
 0x395   : > { %vm5214_vm15 = vmor %vm4830_vm5, %vm5086_vm11  ;;  %vm3684_vm11 = vcmp.eq.f32.partialorder %v10851_v24, %v11625_v35 }
 0x396   : > { %vm7290_vm10 = vmpackc.low %vm5214_vm15, %vm5212_vm13  ;;  %vm3556_vm15 = vcmp.gt.f32.partialorder %v10851_v24, %v11625_v35 }
 0x397   : > { %vm11777_vm12 = vmand %vm3681_vm14, %vm14687_vm7  ;;  %7291 = vmatpush1.bf16.msk.msra.mxu1 %vm7290_vm10, %v14399_v27  ;;  %vm3554_vm14 = vcmp.gt.f32.partialorder %v3293_v42, %v11625_v35  ;;  %vm3683_vm7 = vcmp.eq.f32.partialorder %v10851_v24, %v11631_v15 }
 0x398   : > { %vm3807_vm0 = vmand %vm3679_vm8, %vm14690_vm4  ;;  %vm14691_vm8 = vcmp.lt.s32.totalorder %v8284_v8, %v8148_v2  ;;  %vm3685_vm4 = vcmp.eq.f32.partialorder %v3301_v26, %v11631_v15  ;;  %v3309_v8 = vpop.permute.xlu0 %3308 }
 0x399   : > { %vm3933_vm5 = vmor %vm3549_vm2, %vm11756_vm1  ;;  %vm14692_vm1 = vcmp.lt.s32.totalorder %v8288_v10, %v8148_v2 }
 0x39a   : > { %vm3935_vm3 = vmor %vm3551_vm6, %vm3807_vm0 }
 0x39b   : > { %vm7005_vm13 = vmpackc.low %vm3935_vm3, %vm3933_vm5  ;;  %vm3553_vm5 = vcmp.gt.f32.partialorder %v3293_v42, %v11631_v15 }
 0x39c   : > { %7006 = vmatpush1.bf16.msk.msra.mxu0 %vm7005_vm13, %v14399_v27  ;;  %vm3810_vm10 = vmand %vm3682_vm9, %vm14691_vm8  ;;  %vm3555_vm13 = vcmp.gt.f32.partialorder %v10851_v24, %v11631_v15  ;;  %vm14693_vm9 = vcmp.lt.s32.totalorder %v14631_v52, %v8158_v49  ;;  %v14707_v24 = vld [vmem:[#allocation33_spill] sm:$0xff]  ;;  %v3317_v58 = vpop.permute.xlu0 %3316 }
 0x39d   : > { %vm3812_vm2 = vmand %vm3684_vm11, %vm14692_vm1  ;;  %vm14696_vm11 = vcmp.lt.s32.totalorder %v8288_v10, %v8158_v49  ;;  %v14849_v10 = vld [vmem:[#allocation21_spill] sm:$0xff] }
 0x39e   : > { %vm3938_vm6 = vmor %vm3554_vm14, %vm3810_vm10 }
 0x39f   : > { %vm3940_vm0 = vmor %vm3556_vm15, %vm3812_vm2  ;;  %vm3686_vm15 = vcmp.eq.f32.partialorder %v3301_v26, %v11625_v35  ;;  %vm3688_vm2 = vcmp.eq.f32.partialorder %v10873_v40, %v11625_v35 }
 0x3a0   : > { %vm7007_vm3 = vmpackc.low %vm3940_vm0, %vm3938_vm6  ;;  %vm3558_vm0 = vcmp.gt.f32.partialorder %v3301_v26, %v11625_v35 }
 0x3a1   : > { %7008 = vmatprep.subr.msk.bf16.mxu0 %vm7007_vm3, %v14399_v27  ;;  %vm11810_vm8 = vmand %vm3685_vm4, %vm14693_vm9  ;;  %vm3560_vm4 = vcmp.gt.f32.partialorder %v10873_v40, %v11625_v35  ;;  %vm14698_vm9 = vcmp.lt.s32.totalorder %v14636_v19, %v8148_v2 }
 0x3a2   : > { %vm3811_vm14 = vmand %vm3683_vm7, %vm14696_vm11  ;;  %vm14697_vm7 = vcmp.lt.s32.totalorder %v14631_v52, %v8148_v2 }
 0x3a3   : > { %vm3937_vm10 = vmor %vm3553_vm5, %vm11777_vm12 }
 0x3a4   : > { %vm3939_vm1 = vmor %vm3555_vm13, %vm3811_vm14  ;;  %vm3687_vm13 = vcmp.eq.f32.partialorder %v10873_v40, %v11631_v15  ;;  %vm3557_vm14 = vcmp.gt.f32.partialorder %v3301_v26, %v11631_v15 }
 0x3a5   : > { %vm7009_vm6 = vmpackc.low %vm3939_vm1, %vm3937_vm10  ;;  %vm3559_vm1 = vcmp.gt.f32.partialorder %v10873_v40, %v11631_v15  ;;  %v3325_v40 = vpop.permute.xlu0 %3324 }
 0x3a6   : > { %7010 = vmatpush1.bf16.msk.msra.mxu0 %vm7009_vm6, %v14399_v27  ;;  %vm3814_vm3 = vmand %vm3686_vm15, %vm14697_vm7  ;;  %vm14699_vm15 = vcmp.lt.s32.totalorder %v14636_v19, %v8158_v49  ;;  %v14705_v19 = vld [vmem:[#allocation32_spill] sm:$0xff] }
 0x3a7   : > { %vm3816_vm12 = vmand %vm3688_vm2, %vm14698_vm9  ;;  %vm3690_vm2 = vcmp.eq.f32.partialorder %v3309_v8, %v11625_v35  ;;  %vm3562_vm9 = vcmp.gt.f32.partialorder %v3309_v8, %v11625_v35 }
 0x3a8   : > { %vm3942_vm5 = vmor %vm3558_vm0, %vm3814_vm3 }
 0x3a9   : > { %vm3944_vm11 = vmor %vm3560_vm4, %vm3816_vm12  ;;  %vm3692_vm4 = vcmp.eq.f32.partialorder %v10889_v47, %v11625_v35  ;;  %vm3564_vm12 = vcmp.gt.f32.partialorder %v10889_v47, %v11625_v35 }
 0x3aa   : > { %vm7011_vm10 = vmpackc.low %vm3944_vm11, %vm3942_vm5  ;;  %vm14700_vm5 = vcmp.lt.s32.totalorder %v14639_v31, %v8148_v2  ;;  %vm14701_vm11 = vcmp.lt.s32.totalorder %v14644_v11, %v8148_v2 }
 0x3ab   : > { %7012 = vmatprep.subr.msk.bf16.mxu0 %vm7011_vm10, %v14399_v27  ;;  %vm3815_vm6 = vmand %vm3687_vm13, %vm14699_vm15  ;;  %vm4961_vm15 = vcmp.eq.f32.partialorder %v11324_v60, %v11298_v12 }
 0x3ac   : > { %vm3941_vm0 = vmor %vm3557_vm14, %vm11810_vm8  ;;  %vm3689_vm14 = vcmp.eq.f32.partialorder %v3309_v8, %v11631_v15 }
 0x3ad   : > { %vm3943_vm7 = vmor %vm3559_vm1, %vm3815_vm6 }
 0x3ae   : > { %vm7013_vm3 = vmpackc.low %vm3943_vm7, %vm3941_vm0  ;;  %vm4963_vm0 = vcmp.eq.f32.partialorder %v11354_v22, %v11298_v12  ;;  %vm14702_vm7 = vcmp.lt.s32.totalorder %v14639_v31, %v8158_v49  ;;  %v14810_v31 = vmov 0 }
 0x3af   : > { %7014 = vmatpush1.bf16.msk.msra.mxu0 %vm7013_vm3, %v14399_v27  ;;  %vm3818_vm13 = vmand %vm3690_vm2, %vm14700_vm5  ;;  %vm4833_vm2 = vcmp.gt.f32.partialorder %v11324_v60, %v11298_v12  ;;  %vm14708_vm5 = vcmp.lt.s32.totalorder %v14707_v24, %v8148_v2 }
 0x3b0   : > { %vm3820_vm8 = vmand %vm3692_vm4, %vm14701_vm11  ;;  %vm4835_vm4 = vcmp.gt.f32.partialorder %v11354_v22, %v11298_v12  ;;  %vm3691_vm11 = vcmp.eq.f32.partialorder %v10889_v47, %v11631_v15 }
 0x3b1   : > { %vm3946_vm10 = vmor %vm3562_vm9, %vm3818_vm13  ;;  %vm14706_vm9 = vcmp.lt.s32.totalorder %v14705_v19, %v8148_v2 }
 0x3b2   : > { %vm3948_vm1 = vmor %vm3564_vm12, %vm3820_vm8 }
 0x3b3   : > { %vm7015_vm6 = vmpackc.low %vm3948_vm1, %vm3946_vm10 }
 0x3b4   : > { %vm11864_vm3 = vmand %vm3689_vm14, %vm14702_vm7  ;;  %7016 = vmatprep.subr.msk.bf16.mxu0 %vm7015_vm6, %v14399_v27  ;;  %vm3561_vm14 = vcmp.gt.f32.partialorder %v3309_v8, %v11631_v15  ;;  %vm3563_vm6 = vcmp.gt.f32.partialorder %v10889_v47, %v11631_v15  ;;  %v3329_v47 = vpop.permute.xlu0 %3328  ;;  %v4624_v8 = vpop.permute.xlu1 %4623 }
 0x3b5   : > { %vm5089_vm12 = vmand %vm4961_vm15, %vm14706_vm9  ;;  %vm14709_vm15 = vcmp.lt.s32.totalorder %v14644_v11, %v8158_v49  ;;  %vm3693_vm9 = vcmp.eq.f32.partialorder %v3317_v58, %v11631_v15  ;;  %v14712_v11 = vmov 0 }
 0x3b6   : > { %vm5091_vm13 = vmand %vm4963_vm0, %vm14708_vm5  ;;  %vm4960_vm0 = vcmp.eq.f32.partialorder %v11324_v60, %v11308_v46 }
 0x3b7   : > { %vm5217_vm8 = vmor %vm4833_vm2, %vm5089_vm12 }
 0x3b8   : > { %vm5219_vm10 = vmor %vm4835_vm4, %vm5091_vm13  ;;  %vm4962_vm4 = vcmp.eq.f32.partialorder %v11354_v22, %v11308_v46  ;;  %vm4832_vm13 = vcmp.gt.f32.partialorder %v11324_v60, %v11308_v46  ;;  %v14727_v60 = vld [vmem:[#allocation34_spill] sm:$0xff] }
 0x3b9   : > { %vm7292_vm1 = vmpackc.low %vm5219_vm10, %vm5217_vm8  ;;  %vm14710_vm8 = vcmp.lt.s32.totalorder %v14705_v19, %v8158_v49 }
 0x3ba   : > { %7293 = vmatprep.subr.msk.bf16.mxu1 %vm7292_vm1, %v14399_v27  ;;  %vm3819_vm7 = vmand %vm3691_vm11, %vm14709_vm15  ;;  %vm4834_vm11 = vcmp.gt.f32.partialorder %v11354_v22, %v11308_v46  ;;  %vm14714_vm1 = vcmp.lt.s32.totalorder %v14707_v24, %v8158_v49  ;;  %vm3694_vm15 = vcmp.eq.f32.partialorder %v3317_v58, %v11625_v35  ;;  %v14733_v22 = vld [vmem:[#allocation35_spill] sm:$0xff] }
 0x3bb   : > { %vm3945_vm2 = vmor %vm3561_vm14, %vm11864_vm3  ;;  %vm14711_vm3 = vcmp.lt.s32.totalorder %v14648_v28, %v8158_v49 }
 0x3bc   : > { %vm3947_vm12 = vmor %vm3563_vm6, %vm3819_vm7 }
 0x3bd   : > { %vm7017_vm5 = vmpackc.low %vm3947_vm12, %vm3945_vm2  ;;  %vm3696_vm12 = vcmp.eq.f32.partialorder %v10904_v55, %v11625_v35 }
 0x3be   : > { %7018 = vmatpush1.bf16.msk.msra.mxu0 %vm7017_vm5, %v14399_v27  ;;  %vm5088_vm10 = vmand %vm4960_vm0, %vm14710_vm8  ;;  %vm3566_vm5 = vcmp.gt.f32.partialorder %v3317_v58, %v11625_v35  ;;  %vm14715_vm8 = vcmp.lt.s32.totalorder %v14648_v28, %v8148_v2  ;;  %v14743_v28 = vld [vmem:[#allocation15_spill] sm:$0xff] }
 0x3bf   : > { %vm11906_vm14 = vmand %vm3693_vm9, %vm14711_vm3  ;;  %vm3568_vm9 = vcmp.gt.f32.partialorder %v10904_v55, %v11625_v35 }
 0x3c0   : > { %v14713_v11 = vsel %vm11906_vm14, 4294967295, %v14712_v11  ;;  %vm5090_vm6 = vmand %vm4962_vm4, %vm14714_vm1  ;;  %vm3695_vm1 = vcmp.eq.f32.partialorder %v10904_v55, %v11631_v15 }
 0x3c1   : > { %vm5216_vm7 = vmor %vm4832_vm13, %vm5088_vm10  ;;  %vm14716_vm13 = vcmp.lt.s32.totalorder %v14653_v32, %v8148_v2 }
 0x3c2   : > { %vm5218_vm2 = vmor %vm4834_vm11, %vm5090_vm6  ;;  %vm3697_vm11 = vcmp.eq.f32.partialorder %v3325_v40, %v11631_v15 }
 0x3c3   : > { %vm7294_vm0 = vmpackc.low %vm5218_vm2, %vm5216_vm7  ;;  %vm3565_vm7 = vcmp.gt.f32.partialorder %v3317_v58, %v11631_v15  ;;  %v14788_v58 = vld [vmem:[#allocation9_spill] sm:$0xff] }
 0x3c4   : > { %7295 = vmatpush1.bf16.msk.msra.mxu1 %vm7294_vm0, %v14399_v27  ;;  %vm3822_vm4 = vmand %vm3694_vm15, %vm14715_vm8  ;;  %vm14717_vm0 = vcmp.lt.s32.totalorder %v14658_v53, %v8158_v49  ;;  %vm3567_vm15 = vcmp.gt.f32.partialorder %v10904_v55, %v11631_v15  ;;  %vm14721_vm8 = vnez %v14713_v11  ;;  %v14723_v55 = vmov 0 }
 0x3c5   : > { %vm3824_vm10 = vmand %vm3696_vm12, %vm14716_vm13  ;;  %vm14720_vm12 = vcmp.lt.s32.totalorder %v14653_v32, %v8158_v49  ;;  %vm3698_vm13 = vcmp.eq.f32.partialorder %v3325_v40, %v11625_v35 }
 0x3c6   : > { %vm3950_vm3 = vmor %vm3566_vm5, %vm3822_vm4 }
 0x3c7   : > { %vm3952_vm6 = vmor %vm3568_vm9, %vm3824_vm10  ;;  %vm3699_vm9 = vcmp.eq.f32.partialorder %v3329_v47, %v11631_v15 }
 0x3c8   : > { %vm7019_vm2 = vmpackc.low %vm3952_vm6, %vm3950_vm3  ;;  %vm14722_vm6 = vcmp.lt.s32.totalorder %v14660_v5, %v8158_v49 }
 0x3c9   : > { %vm11933_vm14 = vmand %vm3697_vm11, %vm14717_vm0  ;;  %7020 = vmatprep.subr.msk.bf16.mxu0 %vm7019_vm2, %v14399_v27  ;;  %vm3700_vm11 = vcmp.eq.f32.partialorder %v3329_v47, %v11625_v35  ;;  %vm3572_vm0 = vcmp.gt.f32.partialorder %v3329_v47, %v11625_v35 }
 0x3ca   : > { %vm3823_vm5 = vmand %vm3695_vm1, %vm14720_vm12  ;;  %vm3570_vm1 = vcmp.gt.f32.partialorder %v3325_v40, %v11625_v35  ;;  %vm4964_vm12 = vcmp.eq.f32.partialorder %v11356_v33, %v11308_v46 }
 0x3cb   : > { %vm3949_vm4 = vmor %vm3565_vm7, %vm14721_vm8  ;;  %vm14725_vm7 = vcmp.lt.s32.totalorder %v14658_v53, %v8148_v2  ;;  %vm3569_vm8 = vcmp.gt.f32.partialorder %v3325_v40, %v11631_v15  ;;  %v14793_v40 = vld [vmem:[#allocation12_spill] sm:$0xff] }
 0x3cc   : > { %vm3951_vm10 = vmor %vm3567_vm15, %vm3823_vm5  ;;  %vm14726_vm5 = vcmp.lt.s32.totalorder %v14660_v5, %v8148_v2  ;;  %v3333_v5 = vpop.permute.xlu0 %3332 }
 0x3cd   : > { %vm7021_vm3 = vmpackc.low %vm3951_vm10, %vm3949_vm4  ;;  %vm3571_vm10 = vcmp.gt.f32.partialorder %v3329_v47, %v11631_v15  ;;  %v14795_v47 = vmov 0 }
 0x3ce   : > { %vm11951_vm2 = vmand %vm3699_vm9, %vm14722_vm6  ;;  %7022 = vmatpush1.bf16.msk.msra.mxu0 %vm7021_vm3, %v14399_v27  ;;  %vm14728_vm6 = vcmp.lt.s32.totalorder %v14727_v60, %v8158_v49 }
 0x3cf   : > { %v14724_v55 = vsel %vm11951_vm2, 4294967295, %v14723_v55  ;;  %vm3826_vm15 = vmand %vm3698_vm13, %vm14725_vm7  ;;  %vm4965_vm7 = vcmp.eq.f32.partialorder %v11356_v33, %v11298_v12 }
 0x3d0   : > { %vm3828_vm9 = vmand %vm3700_vm11, %vm14726_vm5  ;;  %vm4837_vm5 = vcmp.gt.f32.partialorder %v11356_v33, %v11298_v12  ;;  %v3345_v61 = vpop.permute.xlu0 %3344 }
 0x3d1   : > { %vm3954_vm4 = vmor %vm3570_vm1, %vm3826_vm15  ;;  %vm14731_vm1 = vnez %v14724_v55  ;;  %v14956_v55 = vmov 0 }
 0x3d2   : > { %vm3956_vm3 = vmor %vm3572_vm0, %vm3828_vm9  ;;  %vm4967_vm0 = vcmp.eq.f32.partialorder %v11471_v1, %v11298_v12  ;;  %vm4839_vm9 = vcmp.gt.f32.partialorder %v11471_v1, %v11298_v12 }
 0x3d3   : > { %vm11971_vm2 = vmand %vm4964_vm12, %vm14728_vm6 }
 0x3d4   : > { %v14730_v16 = vsel %vm11971_vm2, 4294967295, %v14729_v16  ;;  %vm7023_vm13 = vmpackc.low %vm3956_vm3, %vm3954_vm4  ;;  %vm14732_vm4 = vcmp.lt.s32.totalorder %v14727_v60, %v8148_v2  ;;  %vm3701_vm3 = vcmp.eq.f32.partialorder %v3333_v5, %v11631_v15 }
 0x3d5   : > { %7024 = vmatprep.subr.msk.bf16.mxu0 %vm7023_vm13, %v14399_v27  ;;  %vm3953_vm11 = vmor %vm3569_vm8, %vm11933_vm14  ;;  %vm14734_vm8 = vcmp.lt.s32.totalorder %v14733_v22, %v8148_v2  ;;  %vm4966_vm13 = vcmp.eq.f32.partialorder %v11471_v1, %v11308_v46 }
 0x3d6   : > { %vm3955_vm15 = vmor %vm3571_vm10, %vm14731_vm1  ;;  %vm4836_vm1 = vcmp.gt.f32.partialorder %v11356_v33, %v11308_v46  ;;  %v7620_v33 = vld [vmem:[%s13997_s3] sm:$0xf] }
 0x3d7   : > { %vm7025_vm12 = vmpackc.low %vm3955_vm15, %vm3953_vm11 }
 0x3d8   : > { %7026 = vmatpush1.bf16.msk.msra.mxu0 %vm7025_vm12, %v14399_v27  ;;  %vm5093_vm14 = vmand %vm4965_vm7, %vm14732_vm4  ;;  %vm14735_vm12 = vcmp.lt.s32.totalorder %v14675_v4, %v8158_v49  ;;  %vm4838_vm7 = vcmp.gt.f32.partialorder %v11471_v1, %v11308_v46  ;;  %vm14739_vm4 = vnez %v14730_v16  ;;  %v14741_v1 = vmov 0.0  }
 0x3d9   : > { %vm5095_vm10 = vmand %vm4967_vm0, %vm14734_vm8  ;;  %vm14738_vm0 = vcmp.lt.s32.totalorder %v14733_v22, %v8158_v49  ;;  %v14804_v16 = vmov 0 }
 0x3da   : > { %vm5221_vm6 = vmor %vm4837_vm5, %vm5093_vm14 }
 0x3db   : > { %vm5223_vm11 = vmor %vm4839_vm9, %vm5095_vm10  ;;  %vm3702_vm9 = vcmp.eq.f32.partialorder %v3333_v5, %v11625_v35  ;;  %vm3704_vm10 = vcmp.eq.f32.partialorder %v11135_v7, %v11625_v35 }
 0x3dc   : > { %vm7296_vm15 = vmpackc.low %vm5223_vm11, %vm5221_vm6  ;;  %vm3574_vm6 = vcmp.gt.f32.partialorder %v3333_v5, %v11625_v35  ;;  %vm3239_vm11 = vcmp.eq.s32.totalorder %v7620_v33, 2 }
 0x3dd   : > { %vm12003_vm2 = vmand %vm3701_vm3, %vm14735_vm12  ;;  %7297 = vmatprep.subr.msk.bf16.mxu1 %vm7296_vm15, %v14399_v27  ;;  %v12029_v39 = vsel %vm3239_vm11, 1.0, %v14741_v1  ;;  %vm14742_vm12 = vcmp.lt.s32.totalorder %v14681_v37, %v8148_v2 }
 0x3de   : > { %vm5094_vm5 = vmand %vm4966_vm13, %vm14738_vm0  ;;  %vm3576_vm13 = vcmp.gt.f32.partialorder %v11135_v7, %v11625_v35  ;;  %vm3703_vm0 = vcmp.eq.f32.partialorder %v11135_v7, %v11631_v15  ;;  %v3250_v32 = vrot.slane %v12029_v39, %v14743_v28 }
 0x3df   : > { %vm5220_vm14 = vmor %vm4836_vm1, %vm14739_vm4  ;;  %vm14740_vm1 = vcmp.lt.s32.totalorder %v14675_v4, %v8148_v2  ;;  %vm3573_vm4 = vcmp.gt.f32.partialorder %v3333_v5, %v11631_v15 }
 0x3e0   : > { %vm5222_vm8 = vmor %vm4838_vm7, %vm5094_vm5  ;;  %v3264_v17 = vpack.c.bf16 %v3250_v32, %v3250_v32 }
 0x3e1   : > { %vm7298_vm3 = vmpackc.low %vm5222_vm8, %vm5220_vm14 }
 0x3e2   : > { %7299 = vmatpush1.bf16.msk.msra.mxu1 %vm7298_vm3, %v14399_v27  ;;  %vm3830_vm15 = vmand %vm3702_vm9, %vm14740_vm1  ;;  %vm3575_vm9 = vcmp.gt.f32.partialorder %v11135_v7, %v11631_v15  ;;  %v4377_v53 = vshll.u32 %v3264_v17, 16  ;;  %vm4494_vm1 = vcmp.eq.s32.totalorder %v7620_v33, 3  ;;  %v14813_v33 = vld [vmem:[#allocation11_spill] sm:$0xff] }
 0x3e3   : > { %vm3832_vm7 = vmand %vm3704_vm10, %vm14742_vm12  ;;  %vm14744_vm10 = vcmp.lt.s32.totalorder %v14681_v37, %v8158_v49  ;;  %v12051_v7 = vsel %vm4494_vm1, 1.0, %v14741_v1  ;;  %vm3708_vm12 = vcmp.eq.f32.partialorder %v3345_v61, %v11625_v35  ;;  %v3349_v37 = vpop.permute.xlu0 %3348 }
 0x3e4   : > { %vm3958_vm5 = vmor %vm3574_vm6, %vm3830_vm15  ;;  %vm3707_vm6 = vcmp.eq.f32.partialorder %v3345_v61, %v11631_v15  ;;  %v4505_v30 = vrot.slane %v12051_v7, %v14743_v28 }
 0x3e5   : > { %vm3960_vm14 = vmor %vm3576_vm13, %vm3832_vm7  ;;  %vm3706_vm13 = vcmp.eq.f32.partialorder %v11248_v36, %v11625_v35 }
 0x3e6   : > { %vm7027_vm8 = vmpackc.low %vm3960_vm14, %vm3958_vm5  ;;  %vm14745_vm5 = vnez %v14391_v25  ;;  %vm14749_vm14 = vcmask 1040384   ;;  %v4519_v4 = vpack.c.bf16 %v4505_v30, %v4505_v30  ;;  %v14826_v30 = vld [vmem:[#allocation13_spill] sm:$0xff] }
 0x3e7   : > { %7028 = vmatprep.subr.msk.bf16.mxu0 %vm7027_vm8, %v14399_v27  ;;  %vm3831_vm3 = vmand %vm3703_vm0, %vm14744_vm10  ;;  %v4390_v41 = vsel %vm14745_vm5, 1065369472, %v4377_v53  ;;  %vm3580_vm8 = vcmp.gt.f32.partialorder %v3345_v61, %v11625_v35  ;;  %v3361_v9 = vpop.permute.xlu0 %3360  ;;  %v14822_v53 = vmov 0 }
 0x3e8   : > { %vm3957_vm11 = vmor %vm3573_vm4, %vm12003_vm2  ;;  %vm14746_vm2 = vcmp.lt.s32.totalorder %v14707_v24, %v8158_v49  ;;  %vm3578_vm4 = vcmp.gt.f32.partialorder %v11248_v36, %v11625_v35  ;;  %7059 = vmatprep.mubr.msk.bf16.mxu0 %vm14749_vm14, %v4390_v41  ;;  %v5632_v56 = vshll.u32 %v4519_v4, 16 }
 0x3e9   : > { %vm3959_vm15 = vmor %vm3575_vm9, %vm3831_vm3  ;;  %vm14750_vm9 = vcmp.lt.s32.totalorder %v14705_v19, %v8148_v2  ;;  %vm14751_vm3 = vcmp.lt.s32.totalorder %v14707_v24, %v8148_v2 }
 0x3ea   : > { %vm7029_vm7 = vmpackc.low %vm3959_vm15, %vm3957_vm11  ;;  %vm3705_vm11 = vcmp.eq.f32.partialorder %v11248_v36, %v11631_v15  ;;  %v5645_v42 = vsel %vm14745_vm5, 1065369472, %v5632_v56 }
 0x3eb   : > { %vm12061_vm0 = vmand %vm3707_vm6, %vm14746_vm2  ;;  %7030 = vmatpush1.bf16.msk.msra.mxu0 %vm7029_vm7, %v14399_v27  ;;  %vm3577_vm7 = vcmp.gt.f32.partialorder %v11248_v36, %v11631_v15  ;;  %vm3579_vm2 = vcmp.gt.f32.partialorder %v3345_v61, %v11631_v15 }
 0x3ec   : > { %vm3834_vm10 = vmand %vm3706_vm13, %vm14750_vm9  ;;  %vm14752_vm13 = vcmp.lt.s32.totalorder %v14705_v19, %v8158_v49  ;;  %vm14753_vm9 = vcmask 1040384   ;;  %v14784_v19 = vmov 0 }
 0x3ed   : > { %vm3836_vm6 = vmand %vm3708_vm12, %vm14751_vm3  ;;  %7320 = vmatprep.mubr.msk.bf16.mxu1 %vm14753_vm9, %v5645_v42  ;;  %vm3711_vm9 = vcmp.eq.f32.partialorder %v11389_v43, %v11631_v15  ;;  %v13211_v42 = vstv %s5867_s13 }
 0x3ee   : > { %vm3962_vm1 = vmor %vm3578_vm4, %vm3834_vm10  ;;  %vm3709_vm4 = vcmp.eq.f32.partialorder %v3349_v37, %v11631_v15  ;;  %vm3710_vm10 = vcmp.eq.f32.partialorder %v3349_v37, %v11625_v35 }
 0x3ef   : > { %vm3964_vm15 = vmor %vm3580_vm8, %vm3836_vm6 }
 0x3f0   : > { %vm7031_vm14 = vmpackc.low %vm3964_vm15, %vm3962_vm1  ;;  %vm3712_vm1 = vcmp.eq.f32.partialorder %v11389_v43, %v11625_v35  ;;  %vm14754_vm15 = vcmp.lt.s32.totalorder %v14727_v60, %v8158_v49 }
 0x3f1   : > { %7032 = vmatprep.subr.msk.bf16.mxu0 %vm7031_vm14, %v14399_v27  ;;  %vm3833_vm12 = vmand %vm3705_vm11, %vm14752_vm13  ;;  %vm3582_vm11 = vcmp.gt.f32.partialorder %v3349_v37, %v11625_v35  ;;  %vm14758_vm13 = vcmp.lt.s32.totalorder %v14733_v22, %v8148_v2 }
 0x3f2   : > { %vm3961_vm8 = vmor %vm3577_vm7, %vm3833_vm12  ;;  %vm3584_vm7 = vcmp.gt.f32.partialorder %v11389_v43, %v11625_v35 }
 0x3f3   : > { %vm3963_vm3 = vmor %vm3579_vm2, %vm12061_vm0  ;;  %vm14757_vm0 = vcmp.lt.s32.totalorder %v14727_v60, %v8148_v2 }
 0x3f4   : > { %vm7033_vm6 = vmpackc.low %vm3963_vm3, %vm3961_vm8  ;;  %vm3581_vm8 = vcmp.gt.f32.partialorder %v3349_v37, %v11631_v15  ;;  %v14832_v37 = vld [vmem:[#allocation16_spill] sm:$0xff] }
 0x3f5   : > { %vm12097_vm14 = vmand %vm3709_vm4, %vm14754_vm15  ;;  %7034 = vmatpush1.bf16.msk.msra.mxu0 %vm7033_vm6, %v14399_v27  ;;  %vm3583_vm15 = vcmp.gt.f32.partialorder %v11389_v43, %v11631_v15  ;;  %v14760_v43 = vld [vmem:[#allocation6_spill] sm:$0xff] }
 0x3f6   : > { %vm3838_vm2 = vmand %vm3710_vm10, %vm14757_vm0  ;;  %vm14759_vm10 = vcmp.lt.s32.totalorder %v14733_v22, %v8158_v49  ;;  %v14808_v22 = vld [vmem:[#allocation14_spill] sm:$0xff] }
 0x3f7   : > { %vm3840_vm12 = vmand %vm3712_vm1, %vm14758_vm13 }
 0x3f8   : > { %vm3966_vm4 = vmor %vm3582_vm11, %vm3838_vm2  ;;  %vm3714_vm11 = vcmp.eq.f32.partialorder %v11539_v45, %v11625_v35  ;;  %vm3716_vm2 = vcmp.eq.f32.partialorder %v3361_v9, %v11625_v35 }
 0x3f9   : > { %vm3968_vm3 = vmor %vm3584_vm7, %vm3840_vm12  ;;  %vm3715_vm7 = vcmp.eq.f32.partialorder %v3361_v9, %v11631_v15 }
 0x3fa   : > { %vm7035_vm6 = vmpackc.low %vm3968_vm3, %vm3966_vm4  ;;  %vm3586_vm4 = vcmp.gt.f32.partialorder %v11539_v45, %v11625_v35  ;;  %vm3588_vm3 = vcmp.gt.f32.partialorder %v3361_v9, %v11625_v35 }
 0x3fb   : > { %7036 = vmatprep.subr.msk.bf16.mxu0 %vm7035_vm6, %v14399_v27  ;;  %vm3839_vm0 = vmand %vm3711_vm9, %vm14759_vm10  ;;  %vm14761_vm9 = vcmp.lt.s32.totalorder %v14760_v43, %v8148_v2 }
 0x3fc   : > { %vm3965_vm1 = vmor %vm3581_vm8, %vm12097_vm14  ;;  %vm14763_vm8 = vcmp.lt.s32.totalorder %v14762_v3, %v8158_v49 }
 0x3fd   : > { %vm3967_vm13 = vmor %vm3583_vm15, %vm3839_vm0  ;;  %vm14766_vm15 = vcmp.lt.s32.totalorder %v14762_v3, %v8148_v2 }
 0x3fe   : > { %vm7037_vm12 = vmpackc.low %vm3967_vm13, %vm3965_vm1  ;;  %vm4969_vm1 = vcmp.eq.f32.partialorder %v11610_v48, %v11298_v12 }
 0x3ff   : > { %7038 = vmatpush1.bf16.msk.msra.mxu0 %vm7037_vm12, %v14399_v27  ;;  %vm3842_vm14 = vmand %vm3714_vm11, %vm14761_vm9  ;;  %vm4971_vm12 = vcmp.eq.f32.partialorder %v11656_v44, %v11298_v12  ;;  %vm4841_vm9 = vcmp.gt.f32.partialorder %v11610_v48, %v11298_v12 }
 0x400   : > { %vm12136_vm6 = vmand %vm3715_vm7, %vm14763_vm8  ;;  %vm4843_vm7 = vcmp.gt.f32.partialorder %v11656_v44, %v11298_v12  ;;  %vm3713_vm8 = vcmp.eq.f32.partialorder %v11539_v45, %v11631_v15 }
 0x401   : > { %vm3844_vm10 = vmand %vm3716_vm2, %vm14766_vm15  ;;  %vm14767_vm2 = vcmp.lt.s32.totalorder %v14760_v43, %v8148_v2 }
 0x402   : > { %vm3970_vm0 = vmor %vm3586_vm4, %vm3842_vm14 }
 0x403   : > { %vm3972_vm13 = vmor %vm3588_vm3, %vm3844_vm10 }
 0x404   : > { %vm7039_vm11 = vmpackc.low %vm3972_vm13, %vm3970_vm0  ;;  %vm3585_vm0 = vcmp.gt.f32.partialorder %v11539_v45, %v11631_v15  ;;  %vm3587_vm13 = vcmp.gt.f32.partialorder %v3361_v9, %v11631_v15  ;;  %v3365_v45 = vpop.permute.xlu0 %3364 }
 0x405   : > { %7040 = vmatprep.subr.msk.bf16.mxu0 %vm7039_vm11, %v14399_v27  ;;  %vm5097_vm4 = vmand %vm4969_vm1, %vm14767_vm2  ;;  %vm14769_vm1 = vcmp.lt.s32.totalorder %v14760_v43, %v8158_v49 }
 0x406   : > { %vm14768_vm14 = vmmov %vm14766_vm15 }
 0x407   : > { %vm5099_vm3 = vmand %vm4971_vm12, %vm14768_vm14  ;;  %vm4968_vm12 = vcmp.eq.f32.partialorder %v11610_v48, %v11308_v46 }
 0x408   : > { %vm5225_vm15 = vmor %vm4841_vm9, %vm5097_vm4  ;;  %vm4970_vm9 = vcmp.eq.f32.partialorder %v11656_v44, %v11308_v46  ;;  %v3377_v24 = vpop.permute.xlu0 %3376 }
 0x409   : > { %vm5227_vm10 = vmor %vm4843_vm7, %vm5099_vm3  ;;  %vm4840_vm3 = vcmp.gt.f32.partialorder %v11610_v48, %v11308_v46  ;;  %v14772_v48 = vld [vmem:[#allocation7_spill] sm:$0xff] }
 0x40a   : > { %vm7300_vm11 = vmpackc.low %vm5227_vm10, %vm5225_vm15 }
 0x40b   : > { %7301 = vmatprep.subr.msk.bf16.mxu1 %vm7300_vm11, %v14399_v27  ;;  %vm3841_vm2 = vmand %vm3713_vm8, %vm14769_vm1  ;;  %vm4842_vm8 = vcmp.gt.f32.partialorder %v11656_v44, %v11308_v46 }
 0x40c   : > { %vm3969_vm14 = vmor %vm3585_vm0, %vm3841_vm2  ;;  %vm14771_vm0 = vcmp.lt.s32.totalorder %v14762_v3, %v8158_v49  ;;  %v3381_v5 = vpop.permute.xlu0 %3380 }
 0x40d   : > { %vm3971_vm7 = vmor %vm3587_vm13, %vm12136_vm6  ;;  %vm3717_vm6 = vcmp.eq.f32.partialorder %v3365_v45, %v11631_v15 }
 0x40e   : > { %vm7041_vm4 = vmpackc.low %vm3971_vm7, %vm3969_vm14  ;;  %vm3720_vm7 = vcmp.eq.f32.partialorder %v11688_v57, %v11625_v35 }
 0x40f   : > { %7042 = vmatpush1.bf16.msk.msra.mxu0 %vm7041_vm4, %v14399_v27  ;;  %vm14770_vm15 = vmmov %vm14769_vm1  ;;  %vm3718_vm1 = vcmp.eq.f32.partialorder %v3365_v45, %v11625_v35  ;;  %vm14773_vm4 = vcmp.lt.s32.totalorder %v14772_v48, %v8158_v49 }
 0x410   : > { %vm5096_vm10 = vmand %vm4968_vm12, %vm14770_vm15  ;;  %vm3590_vm12 = vcmp.gt.f32.partialorder %v3365_v45, %v11625_v35  ;;  %vm14778_vm15 = vcmp.lt.s32.totalorder %v14777_v6, %v8148_v2  ;;  %v3393_v41 = vpop.permute.xlu0 %3392 }
 0x411   : > { %vm5098_vm11 = vmand %vm4970_vm9, %vm14771_vm0  ;;  %vm3592_vm9 = vcmp.gt.f32.partialorder %v11688_v57, %v11625_v35  ;;  %vm3719_vm0 = vcmp.eq.f32.partialorder %v11688_v57, %v11631_v15 }
 0x412   : > { %vm5224_vm13 = vmor %vm4840_vm3, %vm5096_vm10  ;;  %vm14776_vm3 = vcmp.lt.s32.totalorder %v14772_v48, %v8148_v2 }
 0x413   : > { %vm5226_vm2 = vmor %vm4842_vm8, %vm5098_vm11 }
 0x414   : > { %vm7302_vm14 = vmpackc.low %vm5226_vm2, %vm5224_vm13 }
 0x415   : > { %vm12191_vm5 = vmand %vm3717_vm6, %vm14773_vm4  ;;  %7303 = vmatpush1.bf16.msk.msra.mxu1 %vm7302_vm14, %v14399_v27  ;;  %vm3589_vm6 = vcmp.gt.f32.partialorder %v3365_v45, %v11631_v15  ;;  %vm3591_vm14 = vcmp.gt.f32.partialorder %v11688_v57, %v11631_v15  ;;  %v3373_v57 = vpop.permute.xlu1 %3372 }
 0x416   : > { %vm3846_vm8 = vmand %vm3718_vm1, %vm14776_vm3  ;;  %vm14779_vm1 = vcmp.lt.s32.totalorder %v14777_v6, %v8158_v49 }
 0x417   : > { %vm3848_vm10 = vmand %vm3720_vm7, %vm14778_vm15  ;;  %vm4972_vm7 = vcmp.eq.f32.partialorder %v11378_v54, %v11308_v46 }
 0x418   : > { %vm3974_vm11 = vmor %vm3590_vm12, %vm3846_vm8  ;;  %vm4974_vm12 = vcmp.eq.f32.partialorder %v4624_v8, %v11308_v46 }
 0x419   : > { %vm3976_vm13 = vmor %vm3592_vm9, %vm3848_vm10  ;;  %vm4973_vm9 = vcmp.eq.f32.partialorder %v11378_v54, %v11298_v12  ;;  %vm14780_vm10 = vcmp.lt.s32.totalorder %v14772_v48, %v8158_v49 }
 0x41a   : > { %vm7043_vm2 = vmpackc.low %vm3976_vm13, %vm3974_vm11  ;;  %vm4845_vm13 = vcmp.gt.f32.partialorder %v11378_v54, %v11298_v12 }
 0x41b   : > { %7044 = vmatprep.subr.msk.bf16.mxu0 %vm7043_vm2, %v14399_v27  ;;  %vm3847_vm4 = vmand %vm3719_vm0, %vm14779_vm1  ;;  %vm4975_vm0 = vcmp.eq.f32.partialorder %v4624_v8, %v11298_v12  ;;  %vm3721_vm2 = vcmp.eq.f32.partialorder %v3373_v57, %v11631_v15 }
 0x41c   : > { %vm3973_vm3 = vmor %vm3589_vm6, %vm12191_vm5 }
 0x41d   : > { %vm3975_vm8 = vmor %vm3591_vm14, %vm3847_vm4  ;;  %vm4847_vm14 = vcmp.gt.f32.partialorder %v4624_v8, %v11298_v12 }
 0x41e   : > { %vm7045_vm15 = vmpackc.low %vm3975_vm8, %vm3973_vm3 }
 0x41f   : > { %vm12224_vm11 = vmand %vm4972_vm7, %vm14780_vm10  ;;  %7046 = vmatpush1.bf16.msk.msra.mxu0 %vm7045_vm15, %v14399_v27  ;;  %vm14787_vm7 = vcmp.lt.s32.totalorder %v14777_v6, %v8148_v2  ;;  %vm4846_vm15 = vcmp.gt.f32.partialorder %v4624_v8, %v11308_v46  ;;  %vm14789_vm10 = vcmp.lt.s32.totalorder %v14788_v58, %v8158_v49  ;;  %v3397_v8 = vpop.permute.xlu0 %3396 }
 0x420   : > { %vm14783_vm5 = vmmov %vm14779_vm1  ;;  %vm14786_vm1 = vcmp.lt.s32.totalorder %v14772_v48, %v8148_v2  ;;  %v14843_v48 = vmov 0 }
 0x421   : > { %vm12233_vm6 = vmand %vm4974_vm12, %vm14783_vm5  ;;  %vm4844_vm12 = vcmp.gt.f32.partialorder %v11378_v54, %v11308_v46  ;;  %v4628_v54 = vpop.permute.xlu1 %4627 }
 0x422   : > { %v14785_v19 = vsel %vm12233_vm6, 4294967295, %v14784_v19  ;;  %vm5101_vm4 = vmand %vm4973_vm9, %vm14786_vm1  ;;  %vm3723_vm1 = vcmp.eq.f32.partialorder %v3377_v24, %v11631_v15 }
 0x423   : > { %vm5103_vm3 = vmand %vm4975_vm0, %vm14787_vm7 }
 0x424   : > { %vm5229_vm8 = vmor %vm4845_vm13, %vm5101_vm4  ;;  %vm3722_vm13 = vcmp.eq.f32.partialorder %v3373_v57, %v11625_v35  ;;  %vm14792_vm4 = vnez %v14785_v19  ;;  %v14851_v19 = vmov 0 }
 0x425   : > { %vm12253_vm5 = vmand %vm3721_vm2, %vm14789_vm10  ;;  %vm3724_vm2 = vcmp.eq.f32.partialorder %v3377_v24, %v11625_v35  ;;  %v4632_v52 = vpop.permute.xlu1 %4631 }
 0x426   : > { %vm5231_vm6 = vmor %vm4847_vm14, %vm5103_vm3  ;;  %vm14794_vm14 = vcmp.lt.s32.totalorder %v14793_v40, %v8158_v49  ;;  %vm3596_vm3 = vcmp.gt.f32.partialorder %v3377_v24, %v11625_v35 }
 0x427   : > { %vm7304_vm9 = vmpackc.low %vm5231_vm6, %vm5229_vm8 }
 0x428   : > { %7305 = vmatprep.subr.msk.bf16.mxu1 %vm7304_vm9, %v14399_v27  ;;  %vm5228_vm0 = vmor %vm4844_vm12, %vm12224_vm11  ;;  %vm3594_vm11 = vcmp.gt.f32.partialorder %v3373_v57, %v11625_v35  ;;  %vm14797_vm12 = vcmp.lt.s32.totalorder %v14788_v58, %v8148_v2 }
 0x429   : > { %vm5230_vm7 = vmor %vm4846_vm15, %vm14792_vm4  ;;  %vm14798_vm15 = vcmp.lt.s32.totalorder %v14793_v40, %v8148_v2  ;;  %vm3595_vm4 = vcmp.gt.f32.partialorder %v3377_v24, %v11631_v15  ;;  %v3385_v60 = vpop.permute.xlu1 %3384 }
 0x42a   : > { %vm7306_vm10 = vmpackc.low %vm5230_vm7, %vm5228_vm0  ;;  %vm3593_vm0 = vcmp.gt.f32.partialorder %v3373_v57, %v11631_v15 }
 0x42b   : > { %vm12268_vm6 = vmand %vm3723_vm1, %vm14794_vm14  ;;  %7307 = vmatpush1.bf16.msk.msra.mxu1 %vm7306_vm10, %v14399_v27 }
 0x42c   : > { %v14796_v47 = vsel %vm12268_vm6, 4294967295, %v14795_v47  ;;  %vm3850_vm8 = vmand %vm3722_vm13, %vm14797_vm12  ;;  %vm4976_vm6 = vcmp.eq.f32.partialorder %v4628_v54, %v11308_v46 }
 0x42d   : > { %vm3852_vm9 = vmand %vm3724_vm2, %vm14798_vm15  ;;  %vm14799_vm13 = vnez %v14796_v47  ;;  %vm4978_vm15 = vcmp.eq.f32.partialorder %v4632_v52, %v11308_v46  ;;  %v4640_v32 = vpop.permute.xlu1 %4639 }
 0x42e   : > { %vm3978_vm1 = vmor %vm3594_vm11, %vm3850_vm8  ;;  %vm4977_vm11 = vcmp.eq.f32.partialorder %v4628_v54, %v11298_v12 }
 0x42f   : > { %vm3980_vm7 = vmor %vm3596_vm3, %vm3852_vm9  ;;  %vm14800_vm3 = vcmp.lt.s32.totalorder %v14788_v58, %v8158_v49  ;;  %vm14803_vm9 = vcmp.lt.s32.totalorder %v14793_v40, %v8158_v49 }
 0x430   : > { %vm7047_vm10 = vmpackc.low %vm3980_vm7, %vm3978_vm1  ;;  %vm4849_vm1 = vcmp.gt.f32.partialorder %v4628_v54, %v11298_v12 }
 0x431   : > { %7048 = vmatprep.subr.msk.bf16.mxu0 %vm7047_vm10, %v14399_v27  ;;  %vm3977_vm14 = vmor %vm3593_vm0, %vm12253_vm5  ;;  %vm4979_vm5 = vcmp.eq.f32.partialorder %v4632_v52, %v11298_v12  ;;  %vm3727_vm10 = vcmp.eq.f32.partialorder %v3385_v60, %v11631_v15  ;;  %v3389_v61 = vpop.permute.xlu1 %3388 }
 0x432   : > { %vm3979_vm12 = vmor %vm3595_vm4, %vm14799_vm13  ;;  %vm4851_vm4 = vcmp.gt.f32.partialorder %v4632_v52, %v11298_v12 }
 0x433   : > { %vm7049_vm2 = vmpackc.low %vm3979_vm12, %vm3977_vm14  ;;  %vm14807_vm14 = vcmp.lt.s32.totalorder %v14793_v40, %v8148_v2  ;;  %vm4848_vm12 = vcmp.gt.f32.partialorder %v4628_v54, %v11308_v46  ;;  %v14945_v40 = vmov 0 }
 0x434   : > { %7050 = vmatpush1.bf16.msk.msra.mxu0 %vm7049_vm2, %v14399_v27  ;;  %vm12295_vm8 = vmand %vm4976_vm6, %vm14800_vm3  ;;  %vm14806_vm6 = vcmp.lt.s32.totalorder %v14788_v58, %v8148_v2  ;;  %v14854_v58 = vld [vmem:[#allocation17_spill] sm:$0xff] }
 0x435   : > { %vm12303_vm0 = vmand %vm4978_vm15, %vm14803_vm9  ;;  %vm4850_vm15 = vcmp.gt.f32.partialorder %v4632_v52, %v11308_v46  ;;  %vm14809_vm9 = vcmp.lt.s32.totalorder %v14808_v22, %v8158_v49  ;;  %v4644_v56 = vpop.permute.xlu1 %4643  ;;  %v3409_v52 = vpop.permute.xlu0 %3408 }
 0x436   : > { %v14805_v16 = vsel %vm12303_vm0, 4294967295, %v14804_v16  ;;  %vm5105_vm7 = vmand %vm4977_vm11, %vm14806_vm6  ;;  %vm3725_vm6 = vcmp.eq.f32.partialorder %v3381_v5, %v11631_v15 }
 0x437   : > { %vm5107_vm13 = vmand %vm4979_vm5, %vm14807_vm14  ;;  %vm3728_vm14 = vcmp.eq.f32.partialorder %v3385_v60, %v11625_v35 }
 0x438   : > { %vm5233_vm2 = vmor %vm4849_vm1, %vm5105_vm7  ;;  %vm3726_vm1 = vcmp.eq.f32.partialorder %v3381_v5, %v11625_v35  ;;  %vm14812_vm7 = vnez %v14805_v16 }
 0x439   : > { %vm5235_vm3 = vmor %vm4851_vm4, %vm5107_vm13  ;;  %v4648_v9 = vpop.permute.xlu1 %4647 }
 0x43a   : > { %vm12321_vm0 = vmand %vm3727_vm10, %vm14809_vm9  ;;  %vm14814_vm10 = vcmp.lt.s32.totalorder %v14813_v33, %v8158_v49 }
 0x43b   : > { %v14811_v31 = vsel %vm12321_vm0, 4294967295, %v14810_v31  ;;  %vm7308_vm11 = vmpackc.low %vm5235_vm3, %vm5233_vm2  ;;  %vm3598_vm2 = vcmp.gt.f32.partialorder %v3381_v5, %v11625_v35  ;;  %vm3600_vm3 = vcmp.gt.f32.partialorder %v3385_v60, %v11625_v35 }
 0x43c   : > { %7309 = vmatprep.subr.msk.bf16.mxu1 %vm7308_vm11, %v14399_v27  ;;  %vm5232_vm5 = vmor %vm4848_vm12, %vm12295_vm8  ;;  %vm14815_vm8 = vcmp.lt.s32.totalorder %v14813_v33, %v8148_v2 }
 0x43d   : > { %vm5234_vm4 = vmor %vm4850_vm15, %vm14812_vm7  ;;  %vm14816_vm15 = vcmp.lt.s32.totalorder %v14808_v22, %v8148_v2  ;;  %v3401_v6 = vpop.permute.xlu1 %3400 }
 0x43e   : > { %vm7310_vm13 = vmpackc.low %vm5234_vm4, %vm5232_vm5  ;;  %vm3597_vm5 = vcmp.gt.f32.partialorder %v3381_v5, %v11631_v15 }
 0x43f   : > { %vm3853_vm9 = vmand %vm3725_vm6, %vm14814_vm10  ;;  %7311 = vmatpush1.bf16.msk.msra.mxu1 %vm7310_vm13, %v14399_v27  ;;  %vm3599_vm6 = vcmp.gt.f32.partialorder %v3385_v60, %v11631_v15  ;;  %vm4980_vm10 = vcmp.eq.f32.partialorder %v11407_v51, %v11308_v46  ;;  %v14872_v60 = vld [vmem:[#allocation20_spill] sm:$0xff] }
 0x440   : > { %vm3854_vm12 = vmand %vm3726_vm1, %vm14815_vm8  ;;  %vm4982_vm1 = vcmp.eq.f32.partialorder %v4640_v32, %v11308_v46  ;;  %vm14817_vm8 = vnez %v14811_v31 }
 0x441   : > { %vm3856_vm11 = vmand %vm3728_vm14, %vm14816_vm15  ;;  %vm4981_vm15 = vcmp.eq.f32.partialorder %v11407_v51, %v11298_v12  ;;  %v4656_v11 = vpop.permute.xlu1 %4655 }
 0x442   : > { %vm3982_vm7 = vmor %vm3598_vm2, %vm3854_vm12 }
 0x443   : > { %vm3984_vm4 = vmor %vm3600_vm3, %vm3856_vm11  ;;  %vm14818_vm3 = vcmp.lt.s32.totalorder %v14813_v33, %v8158_v49  ;;  %vm4983_vm11 = vcmp.eq.f32.partialorder %v4640_v32, %v11298_v12 }
 0x444   : > { %vm7051_vm13 = vmpackc.low %vm3984_vm4, %vm3982_vm7  ;;  %vm3729_vm7 = vcmp.eq.f32.partialorder %v3389_v61, %v11631_v15  ;;  %vm14824_vm4 = vcmp.lt.s32.totalorder %v14813_v33, %v8148_v2 }
 0x445   : > { %7052 = vmatprep.subr.msk.bf16.mxu0 %vm7051_vm13, %v14399_v27  ;;  %vm3981_vm0 = vmor %vm3597_vm5, %vm3853_vm9  ;;  %vm14821_vm9 = vcmp.lt.s32.totalorder %v14808_v22, %v8158_v49  ;;  %v3405_v47 = vpop.permute.xlu1 %3404 }
 0x446   : > { %vm3983_vm14 = vmor %vm3599_vm6, %vm14817_vm8  ;;  %vm4855_vm6 = vcmp.gt.f32.partialorder %v4640_v32, %v11298_v12 }
 0x447   : > { %vm7053_vm2 = vmpackc.low %vm3983_vm14, %vm3981_vm0  ;;  %vm4853_vm0 = vcmp.gt.f32.partialorder %v11407_v51, %v11298_v12 }
 0x448   : > { %vm12358_vm12 = vmand %vm4980_vm10, %vm14818_vm3  ;;  %7054 = vmatpush1.bf16.msk.msra.mxu0 %vm7053_vm2, %v14399_v27  ;;  %vm14825_vm10 = vcmp.lt.s32.totalorder %v14808_v22, %v8148_v2  ;;  %vm4854_vm2 = vcmp.gt.f32.partialorder %v4640_v32, %v11308_v46  ;;  %vm14827_vm3 = vcmp.lt.s32.totalorder %v14826_v30, %v8158_v49  ;;  %v3413_v32 = vpop.permute.xlu0 %3412 }
 0x449   : > { %vm12367_vm5 = vmand %vm4982_vm1, %vm14821_vm9  ;;  %vm4852_vm1 = vcmp.gt.f32.partialorder %v11407_v51, %v11308_v46  ;;  %v14830_v51 = vld [vmem:[#allocation19_spill] sm:$0xff]  ;;  %v4660_v16 = vpop.permute.xlu1 %4659 }
 0x44a   : > { %v14823_v53 = vsel %vm12367_vm5, 4294967295, %v14822_v53  ;;  %vm5109_vm13 = vmand %vm4981_vm15, %vm14824_vm4  ;;  %vm3731_vm4 = vcmp.eq.f32.partialorder %v3393_v41, %v11631_v15  ;;  %v3246_v4 = vrot.slane %v12029_v39, %v14830_v51  ;;  %v4501_v3 = vrot.slane %v12051_v7, %v14830_v51 }
 0x44b   : > { %vm5111_vm8 = vmand %vm4983_vm11, %vm14825_vm10  ;;  %vm3732_vm10 = vcmp.eq.f32.partialorder %v3393_v41, %v11625_v35 }
 0x44c   : > { %vm5237_vm14 = vmor %vm4853_vm0, %vm5109_vm13  ;;  %vm3730_vm0 = vcmp.eq.f32.partialorder %v3389_v61, %v11625_v35  ;;  %vm14831_vm13 = vnez %v14823_v53  ;;  %v3263_v36 = vpack.c.bf16 %v3246_v4, %v3246_v4  ;;  %v4518_v44 = vpack.c.bf16 %v4501_v3, %v4501_v3  ;;  %v14888_v53 = vld [vmem:[#allocation38_spill] sm:$0xff] }
 0x44d   : > { %vm12387_vm9 = vmand %vm3729_vm7, %vm14827_vm3  ;;  %v4664_v5 = vpop.permute.xlu1 %4663 }
 0x44e   : > { %vm5239_vm5 = vmor %vm4855_vm6, %vm5111_vm8  ;;  %vm3604_vm8 = vcmp.gt.f32.partialorder %v3393_v41, %v11625_v35  ;;  %v4374_v43 = vshll.u32 %v3263_v36, 16  ;;  %v5629_v57 = vshll.u32 %v4518_v44, 16  ;;  %v14906_v36 = vld [vmem:[#allocation39_spill] sm:$0xff] }
 0x44f   : > { %vm7312_vm15 = vmpackc.low %vm5239_vm5, %vm5237_vm14  ;;  %vm14833_vm5 = vcmp.lt.s32.totalorder %v14832_v37, %v8158_v49 }
 0x450   : > { %7313 = vmatprep.subr.msk.bf16.mxu1 %vm7312_vm15, %v14399_v27  ;;  %vm5236_vm11 = vmor %vm4852_vm1, %vm12358_vm12  ;;  %vm3602_vm12 = vcmp.gt.f32.partialorder %v3389_v61, %v11625_v35  ;;  %vm14836_vm1 = vcmp.lt.s32.totalorder %v14826_v30, %v8148_v2 }
 0x451   : > { %vm5238_vm7 = vmor %vm4854_vm2, %vm14831_vm13  ;;  %vm14837_vm2 = vcmp.lt.s32.totalorder %v14832_v37, %v8148_v2  ;;  %vm3603_vm13 = vcmp.gt.f32.partialorder %v3393_v41, %v11631_v15  ;;  %v3417_v33 = vpop.permute.xlu1 %3416 }
 0x452   : > { %vm7314_vm3 = vmpackc.low %vm5238_vm7, %vm5236_vm11 }
 0x453   : > { %vm12404_vm6 = vmand %vm3731_vm4, %vm14833_vm5  ;;  %7315 = vmatpush1.bf16.msk.msra.mxu1 %vm7314_vm3, %v14399_v27  ;;  %vm3601_vm4 = vcmp.gt.f32.partialorder %v3389_v61, %v11631_v15  ;;  %v14884_v61 = vld [vmem:[#allocation37_spill] sm:$0xff] }
 0x454   : > { %vm3858_vm14 = vmand %vm3730_vm0, %vm14836_vm1  ;;  %vm4984_vm0 = vcmp.eq.f32.partialorder %v4644_v56, %v11308_v46 }
 0x455   : > { %vm3860_vm15 = vmand %vm3732_vm10, %vm14837_vm2  ;;  %vm4986_vm2 = vcmp.eq.f32.partialorder %v4648_v9, %v11308_v46 }
 0x456   : > { %vm3986_vm11 = vmor %vm3602_vm12, %vm3858_vm14  ;;  %vm4985_vm12 = vcmp.eq.f32.partialorder %v4644_v56, %v11298_v12 }
 0x457   : > { %vm3988_vm7 = vmor %vm3604_vm8, %vm3860_vm15  ;;  %vm14838_vm8 = vnez %v14391_v25  ;;  %vm14842_vm15 = vcmp.lt.s32.totalorder %v14832_v37, %v8158_v49 }
 0x458   : > { %vm7055_vm3 = vmpackc.low %vm3988_vm7, %vm3986_vm11  ;;  %v4389_v26 = vsel %vm14838_vm8, 1065369472, %v4374_v43  ;;  %vm4857_vm11 = vcmp.gt.f32.partialorder %v4644_v56, %v11298_v12  ;;  %vm14845_vm7 = vcmp.lt.s32.totalorder %v14826_v30, %v8148_v2 }
 0x459   : > { %7056 = vmatprep.subr.msk.bf16.mxu0 %vm7055_vm3, %v14399_v27  ;;  %vm3985_vm5 = vmor %vm3601_vm4, %vm12387_vm9  ;;  %vm14839_vm9 = vcmp.lt.s32.totalorder %v14826_v30, %v8158_v49  ;;  %v4672_v30 = vpop.permute.xlu1 %4671 }
 0x45a   : > { %vm3987_vm1 = vmor %vm3603_vm13, %vm12404_vm6  ;;  %vm4987_vm6 = vcmp.eq.f32.partialorder %v4648_v9, %v11298_v12  ;;  %vm4859_vm13 = vcmp.gt.f32.partialorder %v4648_v9, %v11298_v12 }
 0x45b   : > { %vm7057_vm10 = vmpackc.low %vm3987_vm1, %vm3985_vm5  ;;  %vm14846_vm5 = vcmask 1040384  }
 0x45c   : > { %7058 = vmatpush1.bf16.msk.msra.mxu0 %vm7057_vm10, %v14399_v27  ;;  %vm12435_vm14 = vmand %vm4984_vm0, %vm14839_vm9  ;;  %vm14847_vm0 = vcmp.lt.s32.totalorder %v14832_v37, %v8148_v2  ;;  %vm4856_vm10 = vcmp.gt.f32.partialorder %v4644_v56, %v11308_v46  ;;  %vm4858_vm9 = vcmp.gt.f32.partialorder %v4648_v9, %v11308_v46  ;;  %v3425_v37 = vpop.permute.xlu0 %3424 }
 0x45d   : > { %vm12443_vm4 = vmand %vm4986_vm2, %vm14842_vm15  ;;  %v3421_v56 = vpop.permute.xlu1 %3420 }
 0x45e   : > { %v14844_v48 = vsel %vm12443_vm4, 4294967295, %v14843_v48  ;;  %vm5113_vm3 = vmand %vm4985_vm12, %vm14845_vm7  ;;  %vm3735_vm4 = vcmp.eq.f32.partialorder %v3401_v6, %v11631_v15  ;;  %vm3733_vm7 = vcmp.eq.f32.partialorder %v3397_v8, %v11631_v15 }
 0x45f   : > { %7060 = vmatmul.mubr.msk.bf16.vlgmr.msra.gmra.mrb[4].mxu0 %vm14846_vm5, %v4389_v26  ;;  %vm5115_vm1 = vmand %vm4987_vm6, %vm14847_vm0  ;;  %vm14848_vm6 = vnez %v14844_v48  ;;  %vm3736_vm0 = vcmp.eq.f32.partialorder %v3401_v6, %v11625_v35 }
 0x460   : > { %vm5241_vm2 = vmor %vm4857_vm11, %vm5113_vm3  ;;  %vm3734_vm11 = vcmp.eq.f32.partialorder %v3397_v8, %v11625_v35  ;;  %v3429_v48 = vpop.permute.xlu0 %3428 }
 0x461   : > { %vm5243_vm15 = vmor %vm4859_vm13, %vm5115_vm1  ;;  %vm14850_vm13 = vcmp.lt.s32.totalorder %v14849_v10, %v8158_v49  ;;  %v4676_v9 = vpop.permute.xlu1 %4675 }
 0x462   : > { %vm7316_vm8 = vmpackc.low %vm5243_vm15, %vm5241_vm2  ;;  %vm3606_vm2 = vcmp.gt.f32.partialorder %v3397_v8, %v11625_v35  ;;  %vm14856_vm15 = vcmp.lt.s32.totalorder %v14854_v58, %v8148_v2 }
 0x463   : > { %7317 = vmatprep.subr.msk.bf16.mxu1 %vm7316_vm8, %v14399_v27  ;;  %vm5240_vm12 = vmor %vm4856_vm10, %vm12435_vm14  ;;  %vm14853_vm8 = vnez %v14391_v25  ;;  %vm14855_vm14 = vcmp.lt.s32.totalorder %v14854_v58, %v8158_v49 }
 0x464   : > { %vm5242_vm5 = vmor %vm4858_vm9, %vm14848_vm6  ;;  %v5644_v24 = vsel %vm14853_vm8, 1065369472, %v5629_v57  ;;  %vm3608_vm9 = vcmp.gt.f32.partialorder %v3401_v6, %v11625_v35  ;;  %vm3607_vm8 = vcmp.gt.f32.partialorder %v3401_v6, %v11631_v15 }
 0x465   : > { %vm7318_vm3 = vmpackc.low %vm5242_vm5, %vm5240_vm12  ;;  %vm14857_vm12 = vcmp.lt.s32.totalorder %v14849_v10, %v8148_v2  ;;  %vm14858_vm5 = vcmask 1040384   ;;  %v4680_v43 = vpop.permute.xlu1 %4679 }
 0x466   : > { %vm12470_vm1 = vmand %vm3735_vm4, %vm14850_vm13  ;;  %7319 = vmatpush1.bf16.msk.msra.mxu1 %vm7318_vm3, %v14399_v27  ;;  %vm3605_vm3 = vcmp.gt.f32.partialorder %v3397_v8, %v11631_v15 }
 0x467   : > { %v14852_v19 = vsel %vm12470_vm1, 4294967295, %v14851_v19  ;;  %vm3861_vm10 = vmand %vm3733_vm7, %vm14855_vm14  ;;  %vm4988_vm1 = vcmp.eq.f32.partialorder %v11429_v38, %v11308_v46 }
 0x468   : > { %vm3862_vm4 = vmand %vm3734_vm11, %vm14856_vm15  ;;  %vm4990_vm15 = vcmp.eq.f32.partialorder %v4656_v11, %v11308_v46 }
 0x469   : > { %vm3864_vm6 = vmand %vm3736_vm0, %vm14857_vm12  ;;  %7321 = vmatmul.mubr.msk.bf16.vlgmr.msra.gmra.mrb[4].mxu1 %vm14858_vm5, %v5644_v24  ;;  %vm14859_vm0 = vnez %v14852_v19  ;;  %vm4989_vm5 = vcmp.eq.f32.partialorder %v11429_v38, %v11298_v12  ;;  %v3433_v45 = vpop.permute.xlu1 %3432  ;;  %v14934_v19 = vmov 0  ;;  %v14936_v24 = vld [vmem:[#allocation43_spill] sm:$0xff] }
 0x46a   : > { %vm3990_vm13 = vmor %vm3606_vm2, %vm3862_vm4  ;;  %vm14860_vm4 = vcmp.lt.s32.totalorder %v14854_v58, %v8158_v49 }
 0x46b   : > { %vm3992_vm7 = vmor %vm3608_vm9, %vm3864_vm6  ;;  %vm4991_vm6 = vcmp.eq.f32.partialorder %v4656_v11, %v11298_v12 }
 0x46c   : > { %vm7061_vm14 = vmpackc.low %vm3992_vm7, %vm3990_vm13  ;;  %vm4863_vm13 = vcmp.gt.f32.partialorder %v4656_v11, %v11298_v12 }
 0x46d   : > { %7062 = vmatprep.subr.msk.bf16.mxu0 %vm7061_vm14, %v14399_v27  ;;  %vm3989_vm11 = vmor %vm3605_vm3, %vm3861_vm10  ;;  %vm14863_vm10 = vcmp.lt.s32.totalorder %v14849_v10, %v8158_v49  ;;  %vm14867_vm14 = vcmp.lt.s32.totalorder %v14849_v10, %v8148_v2  ;;  %v4688_v8 = vpop.permute.xlu1 %4687 }
 0x46e   : > { %vm3991_vm12 = vmor %vm3607_vm8, %vm14859_vm0  ;;  %vm4861_vm8 = vcmp.gt.f32.partialorder %v11429_v38, %v11298_v12  ;;  %vm4860_vm0 = vcmp.gt.f32.partialorder %v11429_v38, %v11308_v46  ;;  %v14868_v38 = vld [vmem:[#allocation36_spill] sm:$0xff] }
 0x46f   : > { %vm7063_vm2 = vmpackc.low %vm3991_vm12, %vm3989_vm11  ;;  %vm4862_vm12 = vcmp.gt.f32.partialorder %v4656_v11, %v11308_v46  ;;  %v14942_v11 = vmov 0 }
 0x470   : > { %vm12502_vm9 = vmand %vm4988_vm1, %vm14860_vm4  ;;  %7064 = vmatpush1.bf16.msk.msra.mxu0 %vm7063_vm2, %v14399_v27  ;;  %vm14866_vm1 = vcmp.lt.s32.totalorder %v14854_v58, %v8148_v2 }
 0x471   : > { %vm12511_vm3 = vmand %vm4990_vm15, %vm14863_vm10  ;;  %vm3739_vm10 = vcmp.eq.f32.partialorder %v3409_v52, %v11631_v15  ;;  %v3437_v10 = vpop.permute.xlu1 %3436 }
 0x472   : > { %vm5117_vm7 = vmand %vm4989_vm5, %vm14866_vm1  ;;  %vm3737_vm1 = vcmp.eq.f32.partialorder %v3405_v47, %v11631_v15 }
 0x473   : > { %vm5119_vm11 = vmand %vm4991_vm6, %vm14867_vm14  ;;  %vm3740_vm14 = vcmp.eq.f32.partialorder %v3409_v52, %v11625_v35 }
 0x474   : > { %vm5245_vm15 = vmor %vm4861_vm8, %vm5117_vm7  ;;  %vm3738_vm8 = vcmp.eq.f32.partialorder %v3405_v47, %v11625_v35 }
 0x475   : > { %vm5247_vm2 = vmor %vm4863_vm13, %vm5119_vm11  ;;  %vm14869_vm13 = vcmp.lt.s32.totalorder %v14868_v38, %v8158_v49 }
 0x476   : > { %vm7322_vm4 = vmpackc.low %vm5247_vm2, %vm5245_vm15  ;;  %vm3612_vm15 = vcmp.gt.f32.partialorder %v3409_v52, %v11625_v35 }
 0x477   : > { %7323 = vmatprep.subr.msk.bf16.mxu1 %vm7322_vm4, %v14399_v27  ;;  %vm5244_vm5 = vmor %vm4860_vm0, %vm12502_vm9  ;;  %vm14873_vm9 = vcmp.lt.s32.totalorder %v14872_v60, %v8158_v49  ;;  %vm14875_vm4 = vcmp.lt.s32.totalorder %v14868_v38, %v8148_v2 }
 0x478   : > { %vm5246_vm6 = vmor %vm4862_vm12, %vm12511_vm3  ;;  %vm3610_vm3 = vcmp.gt.f32.partialorder %v3405_v47, %v11625_v35  ;;  %vm14874_vm12 = vcmp.lt.s32.totalorder %v14872_v60, %v8148_v2 }
 0x479   : > { %vm7324_vm7 = vmpackc.low %vm5246_vm6, %vm5244_vm5  ;;  %vm3609_vm5 = vcmp.gt.f32.partialorder %v3405_v47, %v11631_v15 }
 0x47a   : > { %vm12539_vm11 = vmand %vm3739_vm10, %vm14869_vm13  ;;  %7325 = vmatpush1.bf16.msk.msra.mxu1 %vm7324_vm7, %v14399_v27  ;;  %vm3611_vm7 = vcmp.gt.f32.partialorder %v3409_v52, %v11631_v15  ;;  %v14950_v52 = vmov 0 }
 0x47b   : > { %vm3865_vm0 = vmand %vm3737_vm1, %vm14873_vm9 }
 0x47c   : > { %vm3866_vm2 = vmand %vm3738_vm8, %vm14874_vm12  ;;  %vm4992_vm12 = vcmp.eq.f32.partialorder %v4660_v16, %v11308_v46 }
 0x47d   : > { %vm3868_vm10 = vmand %vm3740_vm14, %vm14875_vm4  ;;  %vm4994_vm14 = vcmp.eq.f32.partialorder %v4664_v5, %v11308_v46 }
 0x47e   : > { %vm3994_vm6 = vmor %vm3610_vm3, %vm3866_vm2  ;;  %vm4993_vm3 = vcmp.eq.f32.partialorder %v4660_v16, %v11298_v12 }
 0x47f   : > { %vm3996_vm13 = vmor %vm3612_vm15, %vm3868_vm10  ;;  %vm14876_vm15 = vcmp.lt.s32.totalorder %v14872_v60, %v8158_v49 }
 0x480   : > { %vm7065_vm1 = vmpackc.low %vm3996_vm13, %vm3994_vm6  ;;  %vm4867_vm6 = vcmp.gt.f32.partialorder %v4664_v5, %v11298_v12 }
 0x481   : > { %7066 = vmatprep.subr.msk.bf16.mxu0 %vm7065_vm1, %v14399_v27  ;;  %vm3993_vm9 = vmor %vm3609_vm5, %vm3865_vm0  ;;  %vm4995_vm0 = vcmp.eq.f32.partialorder %v4664_v5, %v11298_v12  ;;  %vm4865_vm5 = vcmp.gt.f32.partialorder %v4660_v16, %v11298_v12  ;;  %vm14883_vm1 = vcmp.lt.s32.totalorder %v14868_v38, %v8148_v2 }
 0x482   : > { %vm3995_vm8 = vmor %vm3611_vm7, %vm12539_vm11  ;;  %vm14879_vm11 = vcmp.lt.s32.totalorder %v14868_v38, %v8158_v49  ;;  %vm14882_vm7 = vcmp.lt.s32.totalorder %v14872_v60, %v8148_v2  ;;  %v14954_v38 = vld [vmem:[#allocation46_spill] sm:$0xff] }
 0x483   : > { %vm7067_vm4 = vmpackc.low %vm3995_vm8, %vm3993_vm9 }
 0x484   : > { %7068 = vmatpush1.bf16.msk.msra.mxu0 %vm7067_vm4, %v14399_v27  ;;  %vm12567_vm2 = vmand %vm4992_vm12, %vm14876_vm15  ;;  %vm4864_vm12 = vcmp.gt.f32.partialorder %v4660_v16, %v11308_v46 }
 0x485   : > { %vm12575_vm10 = vmand %vm4994_vm14, %vm14879_vm11  ;;  %vm4866_vm14 = vcmp.gt.f32.partialorder %v4664_v5, %v11308_v46  ;;  %vm3741_vm11 = vcmp.eq.f32.partialorder %v3413_v32, %v11631_v15  ;;  %v14966_v5 = vmov 0 }
 0x486   : > { %vm5121_vm13 = vmand %vm4993_vm3, %vm14882_vm7  ;;  %vm3743_vm7 = vcmp.eq.f32.partialorder %v3417_v33, %v11631_v15 }
 0x487   : > { %vm5123_vm9 = vmand %vm4995_vm0, %vm14883_vm1 }
 0x488   : > { %vm5249_vm8 = vmor %vm4865_vm5, %vm5121_vm13  ;;  %vm3742_vm5 = vcmp.eq.f32.partialorder %v3413_v32, %v11625_v35  ;;  %vm14885_vm13 = vcmp.lt.s32.totalorder %v14884_v61, %v8158_v49 }
 0x489   : > { %vm5251_vm4 = vmor %vm4867_vm6, %vm5123_vm9  ;;  %vm3744_vm9 = vcmp.eq.f32.partialorder %v3417_v33, %v11625_v35 }
 0x48a   : > { %vm7326_vm15 = vmpackc.low %vm5251_vm4, %vm5249_vm8  ;;  %vm14892_vm4 = vcmp.lt.s32.totalorder %v14884_v61, %v8148_v2 }
 0x48b   : > { %7327 = vmatprep.subr.msk.bf16.mxu1 %vm7326_vm15, %v14399_v27  ;;  %vm5248_vm3 = vmor %vm4864_vm12, %vm12567_vm2  ;;  %vm14889_vm2 = vcmp.lt.s32.totalorder %v14888_v53, %v8158_v49  ;;  %vm3616_vm12 = vcmp.gt.f32.partialorder %v3417_v33, %v11625_v35  ;;  %vm14893_vm15 = vcmp.lt.s32.totalorder %v14888_v53, %v8148_v2 }
 0x48c   : > { %vm5250_vm0 = vmor %vm4866_vm14, %vm12575_vm10  ;;  %vm3614_vm10 = vcmp.gt.f32.partialorder %v3413_v32, %v11625_v35 }
 0x48d   : > { %vm7328_vm6 = vmpackc.low %vm5250_vm0, %vm5248_vm3  ;;  %vm3613_vm3 = vcmp.gt.f32.partialorder %v3413_v32, %v11631_v15 }
 0x48e   : > { %vm12600_vm1 = vmand %vm3741_vm11, %vm14885_vm13  ;;  %7329 = vmatpush1.bf16.msk.msra.mxu1 %vm7328_vm6, %v14399_v27 }
 0x48f   : > { %vm12609_vm8 = vmand %vm3743_vm7, %vm14889_vm2  ;;  %vm3615_vm7 = vcmp.gt.f32.partialorder %v3417_v33, %v11631_v15  ;;  %vm4996_vm2 = vcmp.eq.f32.partialorder %v11455_v50, %v11308_v46  ;;  %v14971_v33 = vmov 0 }
 0x490   : > { %vm3870_vm14 = vmand %vm3742_vm5, %vm14892_vm4  ;;  %vm4998_vm4 = vcmp.eq.f32.partialorder %v4672_v30, %v11308_v46 }
 0x491   : > { %vm3872_vm11 = vmand %vm3744_vm9, %vm14893_vm15 }
 0x492   : > { %vm3998_vm0 = vmor %vm3614_vm10, %vm3870_vm14  ;;  %vm4997_vm10 = vcmp.eq.f32.partialorder %v11455_v50, %v11298_v12 }
 0x493   : > { %vm4000_vm6 = vmor %vm3616_vm12, %vm3872_vm11  ;;  %vm14894_vm12 = vcmp.lt.s32.totalorder %v14884_v61, %v8158_v49  ;;  %vm4999_vm11 = vcmp.eq.f32.partialorder %v4672_v30, %v11298_v12 }
 0x494   : > { %vm7069_vm13 = vmpackc.low %vm4000_vm6, %vm3998_vm0  ;;  %vm4871_vm0 = vcmp.gt.f32.partialorder %v4672_v30, %v11298_v12 }
 0x495   : > { %7070 = vmatprep.subr.msk.bf16.mxu0 %vm7069_vm13, %v14399_v27  ;;  %vm3997_vm5 = vmor %vm3613_vm3, %vm12600_vm1  ;;  %vm14897_vm1 = vcmp.lt.s32.totalorder %v14888_v53, %v8158_v49  ;;  %vm14901_vm13 = vcmp.lt.s32.totalorder %v14888_v53, %v8148_v2  ;;  %v14983_v53 = vmov 0 }
 0x496   : > { %vm3999_vm9 = vmor %vm3615_vm7, %vm12609_vm8  ;;  %vm4869_vm8 = vcmp.gt.f32.partialorder %v11455_v50, %v11298_v12  ;;  %vm14900_vm7 = vcmp.lt.s32.totalorder %v14884_v61, %v8148_v2  ;;  %v14980_v61 = vmov 0 }
 0x497   : > { %vm7071_vm14 = vmpackc.low %vm3999_vm9, %vm3997_vm5  ;;  %vm4868_vm5 = vcmp.gt.f32.partialorder %v11455_v50, %v11308_v46  ;;  %vm4870_vm9 = vcmp.gt.f32.partialorder %v4672_v30, %v11308_v46  ;;  %v14902_v50 = vld [vmem:[#allocation40_spill] sm:$0xff]  ;;  %v14988_v30 = vmov 0 }
 0x498   : > { %vm12636_vm15 = vmand %vm4996_vm2, %vm14894_vm12  ;;  %7072 = vmatpush1.bf16.msk.msra.mxu0 %vm7071_vm14, %v14399_v27 }
 0x499   : > { %vm12645_vm3 = vmand %vm4998_vm4, %vm14897_vm1  ;;  %vm3747_vm1 = vcmp.eq.f32.partialorder %v3425_v37, %v11631_v15 }
 0x49a   : > { %vm5125_vm6 = vmand %vm4997_vm10, %vm14900_vm7  ;;  %vm3745_vm7 = vcmp.eq.f32.partialorder %v3421_v56, %v11631_v15 }
 0x49b   : > { %vm5127_vm2 = vmand %vm4999_vm11, %vm14901_vm13  ;;  %vm3748_vm13 = vcmp.eq.f32.partialorder %v3425_v37, %v11625_v35 }
 0x49c   : > { %vm5253_vm4 = vmor %vm4869_vm8, %vm5125_vm6  ;;  %vm3746_vm8 = vcmp.eq.f32.partialorder %v3421_v56, %v11625_v35 }
 0x49d   : > { %vm5255_vm14 = vmor %vm4871_vm0, %vm5127_vm2  ;;  %vm14903_vm0 = vcmp.lt.s32.totalorder %v14902_v50, %v8158_v49 }
 0x49e   : > { %vm7330_vm12 = vmpackc.low %vm5255_vm14, %vm5253_vm4  ;;  %vm3620_vm4 = vcmp.gt.f32.partialorder %v3425_v37, %v11625_v35 }
 0x49f   : > { %7331 = vmatprep.subr.msk.bf16.mxu1 %vm7330_vm12, %v14399_v27  ;;  %vm5252_vm10 = vmor %vm4868_vm5, %vm12636_vm15  ;;  %vm14907_vm15 = vcmp.lt.s32.totalorder %v14906_v36, %v8158_v49  ;;  %vm14909_vm12 = vcmp.lt.s32.totalorder %v14902_v50, %v8148_v2 }
 0x4a0   : > { %vm5254_vm11 = vmor %vm4870_vm9, %vm12645_vm3  ;;  %vm3618_vm3 = vcmp.gt.f32.partialorder %v3421_v56, %v11625_v35  ;;  %vm14908_vm9 = vcmp.lt.s32.totalorder %v14906_v36, %v8148_v2 }
 0x4a1   : > { %vm7332_vm6 = vmpackc.low %vm5254_vm11, %vm5252_vm10  ;;  %vm3617_vm10 = vcmp.gt.f32.partialorder %v3421_v56, %v11631_v15 }
 0x4a2   : > { %vm12673_vm2 = vmand %vm3747_vm1, %vm14903_vm0  ;;  %7333 = vmatpush1.bf16.msk.msra.mxu1 %vm7332_vm6, %v14399_v27  ;;  %vm3619_vm6 = vcmp.gt.f32.partialorder %v3425_v37, %v11631_v15  ;;  %v15002_v37 = vld [vmem:[#allocation49_spill] sm:$0xff] }
 0x4a3   : > { %vm3873_vm5 = vmand %vm3745_vm7, %vm14907_vm15 }
 0x4a4   : > { %vm3874_vm14 = vmand %vm3746_vm8, %vm14908_vm9  ;;  %vm5000_vm9 = vcmp.eq.f32.partialorder %v4676_v9, %v11308_v46 }
 0x4a5   : > { %vm3876_vm1 = vmand %vm3748_vm13, %vm14909_vm12  ;;  %vm5002_vm13 = vcmp.eq.f32.partialorder %v4680_v43, %v11308_v46 }
 0x4a6   : > { %vm4002_vm11 = vmor %vm3618_vm3, %vm3874_vm14  ;;  %vm5001_vm3 = vcmp.eq.f32.partialorder %v4676_v9, %v11298_v12 }
 0x4a7   : > { %vm4004_vm0 = vmor %vm3620_vm4, %vm3876_vm1  ;;  %vm14910_vm4 = vcmp.lt.s32.totalorder %v14906_v36, %v8158_v49 }
 0x4a8   : > { %vm7073_vm7 = vmpackc.low %vm4004_vm0, %vm4002_vm11  ;;  %vm4875_vm11 = vcmp.gt.f32.partialorder %v4680_v43, %v11298_v12 }
 0x4a9   : > { %7074 = vmatprep.subr.msk.bf16.mxu0 %vm7073_vm7, %v14399_v27  ;;  %vm4001_vm15 = vmor %vm3617_vm10, %vm3873_vm5  ;;  %vm5003_vm5 = vcmp.eq.f32.partialorder %v4680_v43, %v11298_v12  ;;  %vm4873_vm10 = vcmp.gt.f32.partialorder %v4676_v9, %v11298_v12  ;;  %vm14917_vm7 = vcmp.lt.s32.totalorder %v14902_v50, %v8148_v2 }
 0x4aa   : > { %vm4003_vm8 = vmor %vm3619_vm6, %vm12673_vm2  ;;  %vm14913_vm2 = vcmp.lt.s32.totalorder %v14902_v50, %v8158_v49  ;;  %vm14916_vm6 = vcmp.lt.s32.totalorder %v14906_v36, %v8148_v2  ;;  %v3258_v50 = vrot.slane %v12029_v39, %v15002_v37 }
 0x4ab   : > { %vm7075_vm12 = vmpackc.low %vm4003_vm8, %vm4001_vm15 }
 0x4ac   : > { %7076 = vmatpush1.bf16.msk.msra.mxu0 %vm7075_vm12, %v14399_v27  ;;  %vm12701_vm14 = vmand %vm5000_vm9, %vm14910_vm4  ;;  %vm4872_vm9 = vcmp.gt.f32.partialorder %v4676_v9, %v11308_v46  ;;  %v3266_v9 = vpack.c.bf16 %v3258_v50, %v3258_v50 }
 0x4ad   : > { %vm12709_vm1 = vmand %vm5002_vm13, %vm14913_vm2  ;;  %vm4874_vm13 = vcmp.gt.f32.partialorder %v4680_v43, %v11308_v46  ;;  %vm3749_vm2 = vcmp.eq.f32.partialorder %v3429_v48, %v11631_v15 }
 0x4ae   : > { %vm5129_vm0 = vmand %vm5001_vm3, %vm14916_vm6  ;;  %vm3751_vm6 = vcmp.eq.f32.partialorder %v3433_v45, %v11631_v15  ;;  %v4383_v26 = vshll.u32 %v3266_v9, 16 }
 0x4af   : > { %vm5131_vm15 = vmand %vm5003_vm5, %vm14917_vm7 }
 0x4b0   : > { %vm5257_vm8 = vmor %vm4873_vm10, %vm5129_vm0  ;;  %vm3750_vm10 = vcmp.eq.f32.partialorder %v3429_v48, %v11625_v35  ;;  %vm14918_vm0 = vcmp.lt.s32.totalorder %v14544_v59, %v8158_v49 }
 0x4b1   : > { %vm5259_vm12 = vmor %vm4875_vm11, %vm5131_vm15  ;;  %vm3752_vm15 = vcmp.eq.f32.partialorder %v3433_v45, %v11625_v35 }
 0x4b2   : > { %vm7334_vm4 = vmpackc.low %vm5259_vm12, %vm5257_vm8  ;;  %vm14924_vm12 = vcmp.lt.s32.totalorder %v14544_v59, %v8148_v2 }
 0x4b3   : > { %7335 = vmatprep.subr.msk.bf16.mxu1 %vm7334_vm4, %v14399_v27  ;;  %vm5256_vm3 = vmor %vm4872_vm9, %vm12701_vm14  ;;  %vm14921_vm14 = vcmp.lt.s32.totalorder %v14546_v13, %v8158_v49  ;;  %vm3624_vm9 = vcmp.gt.f32.partialorder %v3433_v45, %v11625_v35  ;;  %vm14925_vm4 = vcmp.lt.s32.totalorder %v14546_v13, %v8148_v2 }
 0x4b4   : > { %vm5258_vm5 = vmor %vm4874_vm13, %vm12709_vm1  ;;  %vm3622_vm1 = vcmp.gt.f32.partialorder %v3429_v48, %v11625_v35 }
 0x4b5   : > { %vm7336_vm11 = vmpackc.low %vm5258_vm5, %vm5256_vm3  ;;  %vm3621_vm3 = vcmp.gt.f32.partialorder %v3429_v48, %v11631_v15  ;;  %v15010_v48 = vld [vmem:[#allocation53_spill] sm:$0xff] }
 0x4b6   : > { %vm12734_vm7 = vmand %vm3749_vm2, %vm14918_vm0  ;;  %7337 = vmatpush1.bf16.msk.msra.mxu1 %vm7336_vm11, %v14399_v27 }
 0x4b7   : > { %vm12743_vm8 = vmand %vm3751_vm6, %vm14921_vm14  ;;  %vm3623_vm6 = vcmp.gt.f32.partialorder %v3433_v45, %v11631_v15  ;;  %vm5004_vm14 = vcmp.eq.f32.partialorder %v11483_v23, %v11308_v46 }
 0x4b8   : > { %vm3878_vm13 = vmand %vm3750_vm10, %vm14924_vm12  ;;  %vm5006_vm12 = vcmp.eq.f32.partialorder %v4688_v8, %v11308_v46 }
 0x4b9   : > { %vm3880_vm2 = vmand %vm3752_vm15, %vm14925_vm4 }
 0x4ba   : > { %vm4006_vm5 = vmor %vm3622_vm1, %vm3878_vm13  ;;  %vm5005_vm1 = vcmp.eq.f32.partialorder %v11483_v23, %v11298_v12 }
 0x4bb   : > { %vm4008_vm11 = vmor %vm3624_vm9, %vm3880_vm2  ;;  %vm14926_vm9 = vcmp.lt.s32.totalorder %v14544_v59, %v8158_v49  ;;  %vm5007_vm2 = vcmp.eq.f32.partialorder %v4688_v8, %v11298_v12 }
 0x4bc   : > { %vm7077_vm0 = vmpackc.low %vm4008_vm11, %vm4006_vm5  ;;  %vm4879_vm5 = vcmp.gt.f32.partialorder %v4688_v8, %v11298_v12 }
 0x4bd   : > { %7078 = vmatprep.subr.msk.bf16.mxu0 %vm7077_vm0, %v14399_v27  ;;  %vm4005_vm10 = vmor %vm3621_vm3, %vm12734_vm7  ;;  %vm14929_vm7 = vcmp.lt.s32.totalorder %v14546_v13, %v8158_v49  ;;  %vm14931_vm0 = vcmp.lt.s32.totalorder %v14546_v13, %v8148_v2  ;;  %v14932_v13 = vld [vmem:[#allocation44_spill] sm:$0xff] }
 0x4be   : > { %vm4007_vm15 = vmor %vm3623_vm6, %vm12743_vm8  ;;  %vm4877_vm8 = vcmp.gt.f32.partialorder %v11483_v23, %v11298_v12  ;;  %vm14930_vm6 = vcmp.lt.s32.totalorder %v14544_v59, %v8148_v2  ;;  %v3441_v59 = vpop.permute.xlu0 %3440 }
 0x4bf   : > { %vm7079_vm13 = vmpackc.low %vm4007_vm15, %vm4005_vm10  ;;  %vm4876_vm10 = vcmp.gt.f32.partialorder %v11483_v23, %v11308_v46  ;;  %v4692_v23 = vpop.permute.xlu1 %4691 }
 0x4c0   : > { %vm12770_vm4 = vmand %vm5004_vm14, %vm14926_vm9  ;;  %7080 = vmatpush1.bf16.msk.msra.mxu0 %vm7079_vm13, %v14399_v27  ;;  %vm4878_vm13 = vcmp.gt.f32.partialorder %v4688_v8, %v11308_v46  ;;  %v13097_v8 = vpop.f32.mrb[0].mxu1 }
 0x4c1   : > { %vm5134_vm3 = vmand %vm5006_vm12, %vm14929_vm7 }
 0x4c2   : > { %vm5133_vm11 = vmand %vm5005_vm1, %vm14930_vm6  ;;  %vm3755_vm6 = vcmp.eq.f32.partialorder %v3441_v59, %v11631_v15  ;;  %v3445_v54 = vpop.permute.xlu0 %3444 }
 0x4c3   : > { %vm5135_vm14 = vmand %vm5007_vm2, %vm14931_vm0  ;;  %vm3753_vm2 = vcmp.eq.f32.partialorder %v3437_v10, %v11631_v15  ;;  %v4696_v58 = vpop.permute.xlu1 %4695 }
 0x4c4   : > { %vm5261_vm15 = vmor %vm4877_vm8, %vm5133_vm11  ;;  %vm3754_vm8 = vcmp.eq.f32.partialorder %v3437_v10, %v11625_v35  ;;  %vm14933_vm11 = vcmp.lt.s32.totalorder %v14932_v13, %v8158_v49 }
 0x4c5   : > { %vm5263_vm12 = vmor %vm4879_vm5, %vm5135_vm14  ;;  %vm3756_vm5 = vcmp.eq.f32.partialorder %v3441_v59, %v11625_v35 }
 0x4c6   : > { %vm7338_vm9 = vmpackc.low %vm5263_vm12, %vm5261_vm15  ;;  %vm3628_vm15 = vcmp.gt.f32.partialorder %v3441_v59, %v11625_v35  ;;  %v3457_v22 = vpop.permute.xlu0 %3456 }
 0x4c7   : > { %7339 = vmatprep.subr.msk.bf16.mxu1 %vm7338_vm9, %v14399_v27  ;;  %vm5260_vm7 = vmor %vm4876_vm10, %vm12770_vm4  ;;  %vm14937_vm4 = vcmp.lt.s32.totalorder %v14936_v24, %v8158_v49  ;;  %vm3626_vm10 = vcmp.gt.f32.partialorder %v3437_v10, %v11625_v35  ;;  %vm14939_vm9 = vcmp.lt.s32.totalorder %v14932_v13, %v8148_v2  ;;  %v3449_v47 = vpop.permute.xlu1 %3448 }
 0x4c8   : > { %vm5262_vm1 = vmor %vm4878_vm13, %vm5134_vm3  ;;  %vm14938_vm13 = vcmp.lt.s32.totalorder %v14936_v24, %v8148_v2 }
 0x4c9   : > { %vm7340_vm0 = vmpackc.low %vm5262_vm1, %vm5260_vm7  ;;  %vm3625_vm1 = vcmp.gt.f32.partialorder %v3437_v10, %v11631_v15 }
 0x4ca   : > { %7341 = vmatpush1.bf16.msk.msra.mxu1 %vm7340_vm0, %v14399_v27  ;;  %vm12802_vm14 = vmand %vm3755_vm6, %vm14933_vm11  ;;  %vm3627_vm0 = vcmp.gt.f32.partialorder %v3441_v59, %v11631_v15  ;;  %v3461_v17 = vpop.permute.xlu0 %3460 }
 0x4cb   : > { %v14935_v19 = vsel %vm12802_vm14, 4294967295, %v14934_v19  ;;  %vm3881_vm3 = vmand %vm3753_vm2, %vm14937_vm4  ;;  %vm5008_vm4 = vcmp.eq.f32.partialorder %v4692_v23, %v11308_v46  ;;  %v4704_v60 = vpop.permute.xlu1 %4703 }
 0x4cc   : > { %vm3882_vm12 = vmand %vm3754_vm8, %vm14938_vm13  ;;  %vm14940_vm8 = vnez %v14935_v19 }
 0x4cd   : > { %vm3884_vm7 = vmand %vm3756_vm5, %vm14939_vm9  ;;  %vm5010_vm5 = vcmp.eq.f32.partialorder %v4696_v58, %v11308_v46  ;;  %vm5009_vm9 = vcmp.eq.f32.partialorder %v4692_v23, %v11298_v12 }
 0x4ce   : > { %vm4010_vm6 = vmor %vm3626_vm10, %vm3882_vm12  ;;  %vm14941_vm12 = vcmp.lt.s32.totalorder %v14936_v24, %v8158_v49  ;;  %v13051_v36 = vpop.permute.xlu0 %3472 }
 0x4cf   : > { %vm4012_vm11 = vmor %vm3628_vm15, %vm3884_vm7  ;;  %vm5011_vm15 = vcmp.eq.f32.partialorder %v4696_v58, %v11298_v12  ;;  %v3453_v31 = vpop.permute.xlu1 %3452 }
 0x4d0   : > { %vm7081_vm2 = vmpackc.low %vm4012_vm11, %vm4010_vm6  ;;  %vm3757_vm6 = vcmp.eq.f32.partialorder %v3445_v54, %v11631_v15  ;;  %vm14947_vm11 = vcmp.lt.s32.totalorder %v14936_v24, %v8148_v2 }
 0x4d1   : > { %7082 = vmatprep.subr.msk.bf16.mxu0 %vm7081_vm2, %v14399_v27  ;;  %vm4009_vm14 = vmor %vm3625_vm1, %vm3881_vm3  ;;  %vm14944_vm3 = vcmp.lt.s32.totalorder %v14932_v13, %v8158_v49 }
 0x4d2   : > { %vm4011_vm13 = vmor %vm3627_vm0, %vm14940_vm8  ;;  %vm4883_vm0 = vcmp.gt.f32.partialorder %v4696_v58, %v11298_v12 }
 0x4d3   : > { %vm7083_vm10 = vmpackc.low %vm4011_vm13, %vm4009_vm14  ;;  %vm4881_vm14 = vcmp.gt.f32.partialorder %v4692_v23, %v11298_v12  ;;  %vm4880_vm13 = vcmp.gt.f32.partialorder %v4692_v23, %v11308_v46 }
 0x4d4   : > { %vm12828_vm7 = vmand %vm5008_vm4, %vm14941_vm12  ;;  %7084 = vmatpush1.bf16.msk.msra.mxu0 %vm7083_vm10, %v14399_v27  ;;  %vm14948_vm4 = vcmp.lt.s32.totalorder %v14932_v13, %v8148_v2  ;;  %vm14949_vm10 = vcmp.lt.s32.totalorder %v14556_v29, %v8158_v49  ;;  %v13129_v13 = vpop.f32.mrb[1].mxu1 }
 0x4d5   : > { %v14943_v11 = vsel %vm12828_vm7, 4294967295, %v14942_v11  ;;  %vm12837_vm1 = vmand %vm5010_vm5, %vm14944_vm3  ;;  %vm4882_vm3 = vcmp.gt.f32.partialorder %v4696_v58, %v11308_v46  ;;  %v3229_v58 = vpop.f32.mrb[2].mxu1 }
 0x4d6   : > { %v14946_v40 = vsel %vm12837_vm1, 4294967295, %v14945_v40  ;;  %vm5137_vm2 = vmand %vm5009_vm9, %vm14947_vm11  ;;  %vm3759_vm9 = vcmp.eq.f32.partialorder %v3449_v47, %v11631_v15 }
 0x4d7   : > { %vm5139_vm8 = vmand %vm5011_vm15, %vm14948_vm4  ;;  %vm14952_vm15 = vnez %v14943_v11  ;;  %v15018_v11 = vld [vmem:[#allocation52_spill] sm:$0xff] }
 0x4d8   : > { %vm5265_vm5 = vmor %vm4881_vm14, %vm5137_vm2  ;;  %vm3758_vm14 = vcmp.eq.f32.partialorder %v3445_v54, %v11625_v35  ;;  %vm14953_vm2 = vnez %v14946_v40 }
 0x4d9   : > { %vm12854_vm12 = vmand %vm3757_vm6, %vm14949_vm10  ;;  %vm3760_vm6 = vcmp.eq.f32.partialorder %v3449_v47, %v11625_v35 }
 0x4da   : > { %v14951_v52 = vsel %vm12854_vm12, 4294967295, %v14950_v52  ;;  %vm5267_vm1 = vmor %vm4883_vm0, %vm5139_vm8  ;;  %vm14955_vm12 = vcmp.lt.s32.totalorder %v14954_v38, %v8158_v49  ;;  %vm3632_vm8 = vcmp.gt.f32.partialorder %v3449_v47, %v11625_v35 }
 0x4db   : > { %vm7342_vm7 = vmpackc.low %vm5267_vm1, %vm5265_vm5  ;;  %vm5012_vm1 = vcmp.eq.f32.partialorder %v11503_v14, %v11308_v46 }
 0x4dc   : > { %7343 = vmatprep.subr.msk.bf16.mxu1 %vm7342_vm7, %v14399_v27  ;;  %vm5264_vm11 = vmor %vm4880_vm13, %vm14952_vm15  ;;  %vm3630_vm7 = vcmp.gt.f32.partialorder %v3445_v54, %v11625_v35  ;;  %vm14958_vm13 = vcmp.lt.s32.totalorder %v14556_v29, %v8148_v2 }
 0x4dd   : > { %vm5266_vm4 = vmor %vm4882_vm3, %vm14953_vm2  ;;  %vm14959_vm3 = vcmp.lt.s32.totalorder %v14954_v38, %v8148_v2 }
 0x4de   : > { %vm7344_vm10 = vmpackc.low %vm5266_vm4, %vm5264_vm11  ;;  %vm14960_vm11 = vcmp.lt.s32.totalorder %v14556_v29, %v8158_v49  ;;  %vm3631_vm4 = vcmp.gt.f32.partialorder %v3449_v47, %v11631_v15 }
 0x4df   : > { %vm12870_vm0 = vmand %vm3759_vm9, %vm14955_vm12  ;;  %7345 = vmatpush1.bf16.msk.msra.mxu1 %vm7344_vm10, %v14399_v27  ;;  %vm3629_vm9 = vcmp.gt.f32.partialorder %v3445_v54, %v11631_v15 }
 0x4e0   : > { %v14957_v55 = vsel %vm12870_vm0, 4294967295, %v14956_v55  ;;  %vm3886_vm5 = vmand %vm3758_vm14, %vm14958_vm13  ;;  %vm5014_vm14 = vcmp.eq.f32.partialorder %v4704_v60, %v11308_v46 }
 0x4e1   : > { %vm3888_vm12 = vmand %vm3760_vm6, %vm14959_vm3  ;;  %vm14963_vm6 = vnez %v14951_v52  ;;  %vm5015_vm3 = vcmp.eq.f32.partialorder %v4704_v60, %v11298_v12 }
 0x4e2   : > { %vm4014_vm15 = vmor %vm3630_vm7, %vm3886_vm5  ;;  %vm5013_vm7 = vcmp.eq.f32.partialorder %v11503_v14, %v11298_v12  ;;  %vm14964_vm5 = vnez %v14957_v55 }
 0x4e3   : > { %vm12889_vm2 = vmand %vm5012_vm1, %vm14960_vm11 }
 0x4e4   : > { %vm4016_vm10 = vmor %vm3632_vm8, %vm3888_vm12  ;;  %vm14965_vm8 = vcmp.lt.s32.totalorder %v14954_v38, %v8158_v49 }
 0x4e5   : > { %vm7085_vm0 = vmpackc.low %vm4016_vm10, %vm4014_vm15  ;;  %vm14968_vm15 = vcmp.lt.s32.totalorder %v14556_v29, %v8148_v2  ;;  %vm3763_vm10 = vcmp.eq.f32.partialorder %v3457_v22, %v11631_v15  ;;  %v4708_v29 = vpop.permute.xlu1 %4707 }
 0x4e6   : > { %7086 = vmatprep.subr.msk.bf16.mxu0 %vm7085_vm0, %v14399_v27  ;;  %vm4013_vm13 = vmor %vm3629_vm9, %vm14963_vm6  ;;  %vm4885_vm0 = vcmp.gt.f32.partialorder %v11503_v14, %v11298_v12  ;;  %vm4887_vm9 = vcmp.gt.f32.partialorder %v4704_v60, %v11298_v12 }
 0x4e7   : > { %vm4015_vm1 = vmor %vm3631_vm4, %vm14964_vm5 }
 0x4e8   : > { %vm7087_vm11 = vmpackc.low %vm4015_vm1, %vm4013_vm13  ;;  %vm4884_vm13 = vcmp.gt.f32.partialorder %v11503_v14, %v11308_v46  ;;  %vm4886_vm1 = vcmp.gt.f32.partialorder %v4704_v60, %v11308_v46  ;;  %v14974_v14 = vld [vmem:[#allocation47_spill] sm:$0xff]  ;;  %v3230_v60 = vpop.f32.mrb[3].mxu1 }
 0x4e9   : > { %vm12906_vm12 = vmand %vm5014_vm14, %vm14965_vm8  ;;  %7088 = vmatpush1.bf16.msk.msra.mxu0 %vm7087_vm11, %v14399_v27  ;;  %vm14969_vm14 = vcmp.lt.s32.totalorder %v14954_v38, %v8148_v2  ;;  %vm14970_vm8 = vcmp.lt.s32.totalorder %v14564_v20, %v8158_v49  ;;  %v4712_v32 = vpop.permute.xlu1 %4711 }
 0x4ea   : > { %v14967_v5 = vsel %vm12906_vm12, 4294967295, %v14966_v5  ;;  %vm5141_vm4 = vmand %vm5013_vm7, %vm14968_vm15  ;;  %vm3761_vm15 = vcmp.eq.f32.partialorder %v3453_v31, %v11631_v15 }
 0x4eb   : > { %vm5143_vm6 = vmand %vm5015_vm3, %vm14969_vm14  ;;  %vm3764_vm14 = vcmp.eq.f32.partialorder %v3457_v22, %v11625_v35 }
 0x4ec   : > { %vm5269_vm5 = vmor %vm4885_vm0, %vm5141_vm4  ;;  %vm3762_vm0 = vcmp.eq.f32.partialorder %v3453_v31, %v11625_v35  ;;  %vm14973_vm4 = vnez %v14967_v5 }
 0x4ed   : > { %vm5271_vm11 = vmor %vm4887_vm9, %vm5143_vm6  ;;  %vm14975_vm6 = vcmp.lt.s32.totalorder %v14974_v14, %v8158_v49  ;;  %v3465_v41 = vpop.permute.xlu1 %3464 }
 0x4ee   : > { %vm12927_vm12 = vmand %vm3763_vm10, %vm14970_vm8  ;;  %vm3636_vm8 = vcmp.gt.f32.partialorder %v3457_v22, %v11625_v35 }
 0x4ef   : > { %v14972_v33 = vsel %vm12927_vm12, 4294967295, %v14971_v33  ;;  %vm7346_vm7 = vmpackc.low %vm5271_vm11, %vm5269_vm5  ;;  %vm3634_vm11 = vcmp.gt.f32.partialorder %v3453_v31, %v11625_v35 }
 0x4f0   : > { %7347 = vmatprep.subr.msk.bf16.mxu1 %vm7346_vm7, %v14399_v27  ;;  %vm5268_vm3 = vmor %vm4884_vm13, %vm12889_vm2  ;;  %vm14976_vm2 = vcmp.lt.s32.totalorder %v14974_v14, %v8148_v2 }
 0x4f1   : > { %vm5270_vm9 = vmor %vm4886_vm1, %vm14973_vm4  ;;  %vm14977_vm1 = vcmp.lt.s32.totalorder %v14564_v20, %v8148_v2  ;;  %v4720_v0 = vpop.permute.xlu1 %4719 }
 0x4f2   : > { %vm7348_vm10 = vmpackc.low %vm5270_vm9, %vm5268_vm3  ;;  %vm3633_vm3 = vcmp.gt.f32.partialorder %v3453_v31, %v11631_v15  ;;  %vm3635_vm9 = vcmp.gt.f32.partialorder %v3457_v22, %v11631_v15  ;;  %v13178_v31 = vstv %s5764_s12 }
 0x4f3   : > { %vm3889_vm5 = vmand %vm3761_vm15, %vm14975_vm6  ;;  %7349 = vmatpush1.bf16.msk.msra.mxu1 %vm7348_vm10, %v14399_v27  ;;  %vm5016_vm6 = vcmp.eq.f32.partialorder %v4708_v29, %v11308_v46 }
 0x4f4   : > { %vm3890_vm13 = vmand %vm3762_vm0, %vm14976_vm2  ;;  %vm14978_vm0 = vnez %v14972_v33 }
 0x4f5   : > { %vm3892_vm7 = vmand %vm3764_vm14, %vm14977_vm1  ;;  %vm5018_vm1 = vcmp.eq.f32.partialorder %v4712_v32, %v11308_v46  ;;  %vm5017_vm14 = vcmp.eq.f32.partialorder %v4708_v29, %v11298_v12  ;;  %v13032_v56 = vpop.permute.xlu1 %3468 }
 0x4f6   : > { %vm4018_vm4 = vmor %vm3634_vm11, %vm3890_vm13  ;;  %vm14979_vm13 = vcmp.lt.s32.totalorder %v14974_v14, %v8158_v49 }
 0x4f7   : > { %vm4020_vm15 = vmor %vm3636_vm8, %vm3892_vm7  ;;  %vm5019_vm8 = vcmp.eq.f32.partialorder %v4712_v32, %v11298_v12 }
 0x4f8   : > { %vm7089_vm10 = vmpackc.low %vm4020_vm15, %vm4018_vm4  ;;  %vm3765_vm4 = vcmp.eq.f32.partialorder %v3461_v17, %v11631_v15  ;;  %vm14985_vm15 = vcmp.lt.s32.totalorder %v14974_v14, %v8148_v2  ;;  %v5884_v14 = vadd.f32 1.0, %v13097_v8 }
 0x4f9   : > { %7090 = vmatprep.subr.msk.bf16.mxu0 %vm7089_vm10, %v14399_v27  ;;  %vm4017_vm12 = vmor %vm3633_vm3, %vm3889_vm5  ;;  %vm14982_vm5 = vcmp.lt.s32.totalorder %v14564_v20, %v8158_v49  ;;  %v13068_v3 = vpop.permute.xlu1 %4723 }
 0x4fa   : > { %vm4019_vm2 = vmor %vm3635_vm9, %vm14978_vm0  ;;  %vm4891_vm9 = vcmp.gt.f32.partialorder %v4712_v32, %v11298_v12 }
 0x4fb   : > { %vm7091_vm11 = vmpackc.low %vm4019_vm2, %vm4017_vm12  ;;  %vm4889_vm12 = vcmp.gt.f32.partialorder %v4708_v29, %v11298_v12  ;;  %vm4888_vm2 = vcmp.gt.f32.partialorder %v4708_v29, %v11308_v46 }
 0x4fc   : > { %vm12962_vm7 = vmand %vm5016_vm6, %vm14979_vm13  ;;  %7092 = vmatpush1.bf16.msk.msra.mxu0 %vm7091_vm11, %v14399_v27  ;;  %vm14986_vm6 = vcmp.lt.s32.totalorder %v14564_v20, %v8148_v2  ;;  %vm14987_vm11 = vcmp.lt.s32.totalorder %v14568_v63, %v8158_v49  ;;  %v14993_v20 = vmov 0 }
 0x4fd   : > { %v14981_v61 = vsel %vm12962_vm7, 4294967295, %v14980_v61  ;;  %vm12971_vm3 = vmand %vm5018_vm1, %vm14982_vm5  ;;  %vm4890_vm5 = vcmp.gt.f32.partialorder %v4712_v32, %v11308_v46  ;;  %v13150_v40 = vpop.permute.xlu1 %4727  ;;  %v4513_v32 = vrot.slane %v12051_v7, %v15002_v37 }
 0x4fe   : > { %v14984_v53 = vsel %vm12971_vm3, 4294967295, %v14983_v53  ;;  %vm5145_vm10 = vmand %vm5017_vm14, %vm14985_vm15  ;;  %vm3767_vm14 = vcmp.eq.f32.partialorder %v3465_v41, %v11631_v15 }
 0x4ff   : > { %vm5147_vm0 = vmand %vm5019_vm8, %vm14986_vm6  ;;  %vm14990_vm8 = vnez %v14981_v61 }
 0x500   : > { %vm5273_vm1 = vmor %vm4889_vm12, %vm5145_vm10  ;;  %vm3766_vm12 = vcmp.eq.f32.partialorder %v3461_v17, %v11625_v35  ;;  %vm14991_vm10 = vnez %v14984_v53 }
 0x501   : > { %vm12988_vm13 = vmand %vm3765_vm4, %vm14987_vm11  ;;  %vm3768_vm4 = vcmp.eq.f32.partialorder %v3465_v41, %v11625_v35 }
 0x502   : > { %v14989_v30 = vsel %vm12988_vm13, 4294967295, %v14988_v30  ;;  %vm5275_vm3 = vmor %vm4891_vm9, %vm5147_vm0  ;;  %vm14992_vm13 = vcmp.lt.s32.totalorder %v14570_v34, %v8158_v49  ;;  %vm3640_vm0 = vcmp.gt.f32.partialorder %v3465_v41, %v11625_v35 }
 0x503   : > { %vm7350_vm7 = vmpackc.low %vm5275_vm3, %vm5273_vm1  ;;  %vm5020_vm3 = vcmp.eq.f32.partialorder %v11532_v18, %v11308_v46 }
 0x504   : > { %7351 = vmatprep.subr.msk.bf16.mxu1 %vm7350_vm7, %v14399_v27  ;;  %vm5272_vm15 = vmor %vm4888_vm2, %vm14990_vm8  ;;  %vm3638_vm7 = vcmp.gt.f32.partialorder %v3461_v17, %v11625_v35  ;;  %vm14995_vm2 = vcmp.lt.s32.totalorder %v14568_v63, %v8148_v2 }
 0x505   : > { %vm5274_vm6 = vmor %vm4890_vm5, %vm14991_vm10 }
 0x506   : > { %vm7352_vm11 = vmpackc.low %vm5274_vm6, %vm5272_vm15  ;;  %vm14997_vm15 = vcmp.lt.s32.totalorder %v14568_v63, %v8158_v49  ;;  %vm3639_vm6 = vcmp.gt.f32.partialorder %v3465_v41, %v11631_v15 }
 0x507   : > { %vm13004_vm9 = vmand %vm3767_vm14, %vm14992_vm13  ;;  %7353 = vmatpush1.bf16.msk.msra.mxu1 %vm7352_vm11, %v14399_v27  ;;  %vm14996_vm13 = vcmp.lt.s32.totalorder %v14570_v34, %v8148_v2  ;;  %vm3637_vm14 = vcmp.gt.f32.partialorder %v3461_v17, %v11631_v15 }
 0x508   : > { %v14994_v20 = vsel %vm13004_vm9, 4294967295, %v14993_v20  ;;  %vm3894_vm1 = vmand %vm3766_vm12, %vm14995_vm2  ;;  %vm5022_vm12 = vcmp.eq.f32.partialorder %v4720_v0, %v11308_v46 }
 0x509   : > { %vm3896_vm5 = vmand %vm3768_vm4, %vm14996_vm13  ;;  %vm15000_vm4 = vnez %v14989_v30  ;;  %vm5023_vm13 = vcmp.eq.f32.partialorder %v4720_v0, %v11298_v12 }
 0x50a   : > { %vm4022_vm8 = vmor %vm3638_vm7, %vm3894_vm1  ;;  %vm5021_vm7 = vcmp.eq.f32.partialorder %v11532_v18, %v11298_v12 }
 0x50b   : > { %vm13023_vm10 = vmand %vm5020_vm3, %vm14997_vm15  ;;  %vm15001_vm3 = vnez %v14994_v20  ;;  %vm15006_vm15 = vcmp.lt.s32.totalorder %v14568_v63, %v8148_v2  ;;  %v13074_v63 = vpop.f32.mrb[0].mxu0  ;;  %v5885_v20 = vadd.f32 1.0, %v13129_v13 }
 0x50c   : > { %vm4024_vm11 = vmor %vm3640_vm0, %vm3896_vm5  ;;  %v13081_v45 = vpop.f32.mrb[1].mxu0  ;;  %v5781_v24 = vadd.f32 1.0, %v13074_v63  ;;  %v5811_v16 = vrot.slane %v13074_v63, 1  ;;  %v5807_v17 = vadd.f32 %v13178_v31, %v13074_v63 }
 0x50d   : > { %vm7093_vm9 = vmpackc.low %vm4024_vm11, %vm4022_vm8  ;;  %vm4895_vm8 = vcmp.gt.f32.partialorder %v4720_v0, %v11298_v12  ;;  %vm3771_vm11 = vcmp.eq.f32.partialorder %v13051_v36, %v11631_v15  ;;  %v1975_v57 = vpop.f32.mrb[2].mxu0  ;;  %v5782_v38 = vadd.f32 1.0, %v13081_v45  ;;  %v5812_v5 = vrot.slane %v13081_v45, 1 }
 0x50e   : > { %7094 = vmatprep.subr.msk.bf16.mxu0 %vm7093_vm9, %v14399_v27  ;;  %vm4021_vm2 = vmor %vm3637_vm14, %vm15000_vm4  ;;  %vm15003_vm9 = vcmp.lt.s32.totalorder %v14570_v34, %v8158_v49  ;;  %vm4893_vm14 = vcmp.gt.f32.partialorder %v11532_v18, %v11298_v12  ;;  %v1976_v19 = vpop.f32.mrb[3].mxu0  ;;  %v5783_v61 = vadd.f32 %v5781_v24, %v13178_v31  ;;  %v5808_v41 = vadd.f32 %v13178_v31, %v13081_v45 }
 0x50f   : > { %vm4023_vm1 = vmor %vm3639_vm6, %vm15001_vm3  ;;  %v5784_v53 = vadd.f32 %v5782_v38, %v13178_v31  ;;  %v5815_v4 = vsub.f32 %v5807_v17, %v5811_v16  ;;  %v5914_v57 = vrot.slane %v13097_v8, 1  ;;  %v5910_v19 = vadd.f32 %v13211_v42, %v13097_v8  ;;  %v13252_v38 = vpop.permute.xlu0 %3476 }
 0x510   : > { %vm7095_vm0 = vmpackc.low %vm4023_vm1, %vm4021_vm2  ;;  %vm4892_vm2 = vcmp.gt.f32.partialorder %v11532_v18, %v11308_v46  ;;  %v5887_v54 = vadd.f32 %v5885_v20, %v13211_v42  ;;  %v4521_v20 = vpack.c.bf16 %v4513_v32, %v4513_v32  ;;  %v5909_v32 = vsub.f32 %v13211_v42, %v13129_v13 }
 0x511   : > { %vm13044_vm5 = vmand %vm5022_vm12, %vm15003_vm9  ;;  %7096 = vmatpush1.bf16.msk.msra.mxu0 %vm7095_vm0, %v14399_v27  ;;  %vm15007_vm12 = vcmp.lt.s32.totalorder %v14570_v34, %v8148_v2  ;;  %v13079_v34 = vld [vmem:[%s295_s10] sm:$0x3]  ;;  %vm15011_vm0 = vcmp.lt.s32.totalorder %v15010_v48, %v8158_v49  ;;  %v5819_v10 = vmax.f32 %v5815_v4, 1.0  ;;  %v5918_v16 = vsub.f32 %v5910_v19, %v5914_v57 }
 0x512   : > { %vm5149_vm6 = vmand %vm5021_vm7, %vm15006_vm15  ;;  %vm4894_vm7 = vcmp.gt.f32.partialorder %v4720_v0, %v11308_v46  ;;  %vm15014_vm15 = vnez %v14391_v25  ;;  %v5806_v57 = vsub.f32 %v13178_v31, %v13081_v45 }
 0x513   : > { %vm5151_vm4 = vmand %vm5023_vm13, %vm15007_vm12  ;;  %vm3643_vm13 = vcmp.gt.f32.partialorder %v13051_v36, %v11631_v15  ;;  %v4392_v6 = vsel %vm15014_vm15, 1065369472, %v4383_v26  ;;  %vm3769_vm12 = vcmp.eq.f32.partialorder %v13032_v56, %v11631_v15  ;;  %v5816_v26 = vsub.f32 %v5808_v41, %v5812_v5 }
 0x514   : > { %vm13064_vm3 = vmor %vm4893_vm14, %vm5149_vm6  ;;  %vm3772_vm6 = vcmp.eq.f32.partialorder %v13051_v36, %v11625_v35  ;;  %v5823_v24 = vrot.slane %v5819_v10, 7  ;;  %v5915_v5 = vrot.slane %v13129_v13, 1 }
 0x515   : > { %vm5279_vm1 = vmor %vm4895_vm8, %vm5151_vm4  ;;  %vm5760_vm8 = vcmp.eq.s32.totalorder %v13079_v34, 0 }
 0x516   : > { %vm13088_vm9 = vmand %vm3771_vm11, %vm15011_vm0  ;;  %vm3641_vm11 = vcmp.gt.f32.partialorder %v13032_v56, %v11631_v15  ;;  %v7390_v59 = vsel %vm5760_vm8, 1.0, %v14741_v1  ;;  %vm3644_vm8 = vcmp.gt.f32.partialorder %v13051_v36, %v11625_v35 }
 0x517   : > { %vm7354_vm14 = vmpackc.low %vm5279_vm1, %vm13064_vm3  ;;  %vm15017_vm3 = vcmask 1040384   ;;  %vm3770_vm1 = vcmp.eq.f32.partialorder %v13032_v56, %v11625_v35  ;;  %v5769_v18 = vrot.slane %v7390_v59, %v14830_v51  ;;  %v5773_v23 = vrot.slane %v7390_v59, %v14743_v28 }
 0x518   : > { %7355 = vmatprep.subr.msk.bf16.mxu1 %vm7354_vm14, %v14399_v27  ;;  %vm13111_vm4 = vmor %vm4892_vm2, %vm13023_vm10  ;;  %7125 = vmatprep.mubr.msk.bf16.mxu0 %vm15017_vm3, %v4392_v6  ;;  %vm3642_vm10 = vcmp.gt.f32.partialorder %v13032_v56, %v11625_v35  ;;  %vm5024_vm14 = vcmp.eq.f32.partialorder %v13068_v3, %v11308_v46  ;;  %v5886_v6 = vadd.f32 %v5884_v14, %v13211_v42 }
 0x519   : > { %vm5278_vm0 = vmor %vm4894_vm7, %vm13044_vm5  ;;  %vm5863_vm5 = vcmp.eq.s32.totalorder %v13079_v34, 1  ;;  %vm15019_vm7 = vcmp.lt.s32.totalorder %v15018_v11, %v8158_v49  ;;  %v13154_v47 = vadd.f32 %v5769_v18, %v13074_v63  ;;  %v13157_v52 = vadd.f32 %v5773_v23, %v13081_v45 }
 0x51a   : > { %vm7356_vm2 = vmpackc.low %vm5278_vm0, %vm13111_vm4  ;;  %v7392_v55 = vsel %vm5863_vm5, 1.0, %v14741_v1  ;;  %vm15022_vm4 = vcmp.lt.s32.totalorder %v15018_v11, %v8148_v2  ;;  %v5820_v23 = vmax.f32 %v5816_v26, 1.0  ;;  %v15100_v26 = vmov 0 }
 0x51b   : > { %vm13145_vm3 = vmand %vm3769_vm12, %vm15019_vm7  ;;  %7357 = vmatpush1.bf16.msk.msra.mxu1 %vm7356_vm2, %v14399_v27  ;;  %vm5025_vm12 = vcmp.eq.f32.partialorder %v13068_v3, %v11298_v12  ;;  %v5872_v22 = vrot.slane %v7392_v55, %v14830_v51  ;;  %vm15023_vm2 = vcmp.lt.s32.totalorder %v15010_v48, %v8148_v2  ;;  %v5787_v33 = vrot.slane %v13154_v47, 1 }
 0x51c   : > { %vm3898_vm0 = vmand %vm3770_vm1, %vm15022_vm4  ;;  %v5788_v29 = vrot.slane %v13157_v52, 1  ;;  %vm5026_vm7 = vcmp.eq.f32.partialorder %v13150_v40, %v11308_v46  ;;  %v5876_v30 = vrot.slane %v7392_v55, %v14743_v28  ;;  %v5824_v60 = vrot.slane %v5820_v23, 7 }
 0x51d   : > { %vm3900_vm5 = vmand %vm3772_vm6, %vm15023_vm2  ;;  %vm5027_vm6 = vcmp.eq.f32.partialorder %v13150_v40, %v11298_v12  ;;  %v5791_v0 = vsub.f32 %v5783_v61, %v5787_v33  ;;  %v13209_v50 = vadd.f32 %v5872_v22, %v13097_v8  ;;  %vm4897_vm2 = vcmp.gt.f32.partialorder %v13068_v3, %v11298_v12  ;;  %v15036_v61 = vld [vmem:[#allocation54_spill] sm:$0xff] }
 0x51e   : > { %vm13186_vm1 = vmor %vm3642_vm10, %vm3898_vm0  ;;  %v5792_v43 = vsub.f32 %v5784_v53, %v5788_v29  ;;  %v13238_v44 = vadd.f32 %v5876_v30, %v13129_v13  ;;  %v5922_v33 = vmax.f32 %v5918_v16, 1.0  ;;  %v5911_v29 = vadd.f32 %v13211_v42, %v13129_v13 }
 0x51f   : > { %vm4028_vm4 = vmor %vm3644_vm8, %vm3900_vm5  ;;  %v5795_v56 = vrot.slane %v5791_v0, 7  ;;  %v5890_v59 = vrot.slane %v13209_v50, 1 }
 0x520   : > { %vm7097_vm10 = vmpackc.low %vm4028_vm4, %vm13186_vm1  ;;  %v5796_v18 = vrot.slane %v5792_v43, 7  ;;  %vm4899_vm1 = vcmp.gt.f32.partialorder %v13150_v40, %v11298_v12  ;;  %vm15034_vm4 = vcmp.lt.s32.totalorder %v15018_v11, %v8148_v2  ;;  %v5891_v22 = vrot.slane %v13238_v44, 1  ;;  %v15040_v43 = vld [vmem:[#allocation55_spill] sm:$0xff] }
 0x521   : > { %7098 = vmatprep.subr.msk.bf16.mxu0 %vm7097_vm10, %v14399_v27  ;;  %vm13219_vm8 = vmor %vm3641_vm11, %vm13145_vm3  ;;  %7515 = vrcp.f32 %v5795_v56  ;;  %v5894_v58 = vsub.f32 %v5886_v6, %v5890_v59  ;;  %vm15031_vm3 = vcmp.lt.s32.totalorder %v15010_v48, %v8158_v49  ;;  %vm15035_vm10 = vcmp.lt.s32.totalorder %v15010_v48, %v8148_v2  ;;  %v15044_v59 = vld [vmem:[#allocation41_spill] sm:$0xff] }
 0x522   : > { %vm4027_vm0 = vmor %vm3643_vm13, %vm13088_vm9  ;;  %vm15028_vm13 = vcmp.lt.s32.totalorder %v15018_v11, %v8158_v49  ;;  %7517 = vrcp.f32 %v5796_v18  ;;  %v13286_v11 = vpop.permute.xlu1 %3480  ;;  %v5895_v48 = vsub.f32 %v5887_v54, %v5891_v22  ;;  %v5926_v53 = vrot.slane %v5922_v33, 7 }
 0x523   : > { %vm7099_vm11 = vmpackc.low %vm4027_vm0, %vm13219_vm8  ;;  %7519 = vrcp.f32 %v5823_v24  ;;  %vm4896_vm0 = vcmp.gt.f32.partialorder %v13068_v3, %v11308_v46  ;;  %v5898_v14 = vrot.slane %v5894_v58, 7  ;;  %v5919_v41 = vsub.f32 %v5911_v29, %v5915_v5 }
 0x524   : > { %vm13246_vm9 = vmand %vm5024_vm14, %vm15028_vm13  ;;  %7100 = vmatpush1.bf16.msk.msra.mxu0 %vm7099_vm11, %v14399_v27  ;;  %vm3773_vm14 = vcmp.eq.f32.partialorder %v13252_v38, %v11631_v15  ;;  %7521 = vrcp.f32 %v5824_v60  ;;  %vm4898_vm13 = vcmp.gt.f32.partialorder %v13150_v40, %v11308_v46  ;;  %v5899_v30 = vrot.slane %v5895_v48, 7 }
 0x525   : > { %vm13260_vm5 = vmand %vm5026_vm7, %vm15031_vm3  ;;  %7523 = vrcp.f32 %v5926_v53  ;;  %v5923_v0 = vmax.f32 %v5919_v41, 1.0  ;;  %v5638_v40 = vshll.u32 %v4521_v20, 16  ;;  %v5805_v3 = vsub.f32 %v13178_v31, %v13074_v63 }
 0x526   : > { %vm5153_vm7 = vmand %vm5025_vm12, %vm15034_vm4  ;;  %vm3775_vm4 = vcmp.eq.f32.partialorder %v13286_v11, %v11631_v15  ;;  %7525 = vrcp.f32 %v5898_v14  ;;  %v5779_v6 = vsub.f32 %v13178_v31, %v13154_v47  ;;  %v5780_v47 = vsub.f32 %v13178_v31, %v13157_v52  ;;  %v13364_v19 = vpop.permute.xlu1 %4735 }
 0x527   : > { %vm5155_vm8 = vmand %vm5027_vm6, %vm15035_vm10  ;;  %vm15037_vm6 = vcmp.lt.s32.totalorder %v15036_v61, %v8158_v49  ;;  %vm3776_vm10 = vcmp.eq.f32.partialorder %v13286_v11, %v11625_v35  ;;  %v5927_v4 = vrot.slane %v5923_v0, 7  ;;  %7527 = vrcp.f32 %v5899_v30  ;;  %v13428_v30 = vpop.permute.xlu0 %3488 }
 0x528   : > { %vm5281_vm12 = vmor %vm4897_vm2, %vm5153_vm7  ;;  %v5647_v56 = vsel %vm15014_vm15, 1065369472, %v5638_v40  ;;  %v5908_v58 = vsub.f32 %v13211_v42, %v13097_v8  ;;  %v5883_v53 = vsub.f32 %v13211_v42, %v13238_v44 }
 0x529   : > { %vm13299_vm11 = vmand %vm3773_vm14, %vm15037_vm6  ;;  %vm3648_vm6 = vcmp.gt.f32.partialorder %v13286_v11, %v11625_v35  ;;  %7529 = vrcp.f32 %v5927_v4 }
 0x52a   : > { %vm5283_vm2 = vmor %vm4899_vm1, %vm5155_vm8  ;;  %vm3774_vm1 = vcmp.eq.f32.partialorder %v13252_v38, %v11625_v35  ;;  %v13430_v20 = vpop.permute.xlu1 %3484 }
 0x52b   : > { %vm7358_vm3 = vmpackc.low %vm5283_vm2, %vm5281_vm12  ;;  %vm3646_vm12 = vcmp.gt.f32.partialorder %v13252_v38, %v11625_v35  ;;  %v7516_v9 = vpop.eup %7515 }
 0x52c   : > { %7359 = vmatprep.subr.msk.bf16.mxu1 %vm7358_vm3, %v14399_v27  ;;  %vm5280_vm14 = vmor %vm4896_vm0, %vm13246_vm9  ;;  %vm15041_vm9 = vcmp.lt.s32.totalorder %v15040_v43, %v8158_v49  ;;  %v7518_v10 = vpop.eup %7517  ;;  %vm5028_vm0 = vcmp.eq.f32.partialorder %v15044_v59, %v11308_v46  ;;  %vm15046_vm3 = vcmask 1040384   ;;  %v5800_v36 = vmul.f32 %v7516_v9, %v5779_v6 }
 0x52d   : > { %vm5282_vm7 = vmor %vm4898_vm13, %vm13260_vm5  ;;  %vm15045_vm13 = vcmp.lt.s32.totalorder %v15036_v61, %v8148_v2  ;;  %7386 = vmatprep.mubr.msk.bf16.mxu1 %vm15046_vm3, %v5647_v56  ;;  %v7520_v18 = vpop.eup %7519  ;;  %v5802_v55 = vmul.f32 %v7518_v10, %v5780_v47  ;;  %vm5030_vm3 = vcmp.eq.f32.partialorder %v13364_v19, %v11308_v46  ;;  %v15104_v56 = vld [vmem:[#allocation61_spill] sm:$0xff] }
 0x52e   : > { %vm7360_vm8 = vmpackc.low %vm5282_vm7, %vm5280_vm14  ;;  %v7522_v23 = vpop.eup %7521  ;;  %vm3645_vm7 = vcmp.gt.f32.partialorder %v13252_v38, %v11631_v15  ;;  %v5828_v52 = vmul.f32 %v7520_v18, %v5805_v3  ;;  %v5882_v38 = vsub.f32 %v13211_v42, %v13209_v50  ;;  %v5803_v29 = vsub.f32 1.0, %v5800_v36  ;;  %v15064_v36 = vld [vmem:[#allocation56_spill] sm:$0xff] }
 0x52f   : > { %vm13332_vm5 = vmand %vm3775_vm4, %vm15041_vm9  ;;  %7361 = vmatpush1.bf16.msk.msra.mxu1 %vm7360_vm8, %v14399_v27  ;;  %vm15047_vm4 = vcmp.lt.s32.totalorder %v15040_v43, %v8148_v2  ;;  %vm15048_vm8 = vcmp.lt.s32.totalorder %v15036_v61, %v8158_v49  ;;  %v5830_v24 = vmul.f32 %v7522_v23, %v5806_v57  ;;  %v7524_v5 = vpop.eup %7523  ;;  %v5804_v17 = vsub.f32 1.0, %v5802_v55 }
 0x530   : > { %vm3902_vm2 = vmand %vm3774_vm1, %vm15045_vm13  ;;  %v5831_v54 = vsub.f32 1.0, %v5828_v52  ;;  %v7526_v33 = vpop.eup %7525  ;;  %v5931_v48 = vmul.f32 %v7524_v5, %v5908_v58 }
 0x531   : > { %vm3904_vm14 = vmand %vm3776_vm10, %vm15047_vm4  ;;  %vm3647_vm10 = vcmp.gt.f32.partialorder %v13286_v11, %v11631_v15  ;;  %vm5817_vm4 = vcmp.ge.f32.partialorder %v13074_v63, 1.0  ;;  %v5832_v16 = vsub.f32 1.0, %v5830_v24  ;;  %v7528_v41 = vpop.eup %7527  ;;  %v5903_v40 = vmul.f32 %v7526_v33, %v5882_v38 }
 0x532   : > { %vm4030_vm1 = vmor %vm3646_vm12, %vm3902_vm2  ;;  %vm4900_vm12 = vcmp.gt.f32.partialorder %v15044_v59, %v11308_v46  ;;  %v5835_v22 = vrot.slane %v5831_v54, 1  ;;  %v5934_v42 = vsub.f32 1.0, %v5931_v48  ;;  %v13525_v54 = vld [vmem:[%s8113_s28] sm:$0xff]  ;;  %s7395_s28 = sld [smem:[#allocation3 + $0x2]] }
 0x533   : > { %vm13372_vm9 = vmand %vm5028_vm0, %vm15048_vm8  ;;  %vm5029_vm0 = vcmp.eq.f32.partialorder %v15044_v59, %v11298_v12  ;;  %vm5818_vm8 = vcmp.ge.f32.partialorder %v13081_v45, 1.0  ;;  %v5836_v14 = vrot.slane %v5832_v16, 1  ;;  %v7530_v44 = vpop.eup %7529  ;;  %v5906_v47 = vsub.f32 1.0, %v5903_v40  ;;  %v15082_v40 = vld [vmem:[#allocation58_spill] sm:$0xff] }
 0x534   : > { %vm4032_vm13 = vmor %vm3648_vm6, %vm3904_vm14  ;;  %vm5031_vm14 = vcmp.eq.f32.partialorder %v13364_v19, %v11298_v12  ;;  %v5839_v50 = vsel %vm5817_vm4, %v5835_v22, 0.0  ;;  %vm15057_vm4 = vcmp.lt.s32.totalorder %v15040_v43, %v8148_v2  ;;  %v5938_v3 = vrot.slane %v5934_v42, 1 }
 0x535   : > { %vm7101_vm2 = vmpackc.low %vm4032_vm13, %vm4030_vm1  ;;  %vm4903_vm13 = vcmp.gt.f32.partialorder %v13364_v19, %v11298_v12  ;;  %v5843_v63 = vrot.slane %v5839_v50, 7  ;;  %v5840_v0 = vsel %vm5818_vm8, %v5836_v14, 0.0  ;;  %v5933_v4 = vmul.f32 %v7530_v44, %v5909_v32  ;;  %v15152_v32 = vld [vmem:[#allocation64_spill] sm:$0xff] }
 0x536   : > { %7102 = vmatprep.subr.msk.bf16.mxu0 %vm7101_vm2, %v14399_v27  ;;  %vm13392_vm6 = vmor %vm3645_vm7, %vm13299_vm11  ;;  %vm15053_vm7 = vcmp.lt.s32.totalorder %v15040_v43, %v8158_v49  ;;  %vm15056_vm2 = vcmp.lt.s32.totalorder %v15036_v61, %v8148_v2  ;;  %v5844_v61 = vrot.slane %v5840_v0, 7  ;;  %v15058_v43 = vld [vmem:[#allocation57_spill] sm:$0xff]  ;;  %v15073_v50 = vsub.s32 4, %v8106_v62 }
 0x537   : > { %vm4031_vm1 = vmor %vm3647_vm10, %vm13332_vm5  ;;  %vm4901_vm10 = vcmp.gt.f32.partialorder %v15044_v59, %v11298_v12  ;;  %v5847_v45 = vsub.f32 %v5803_v29, %v5843_v63  ;;  %v5935_v57 = vsub.f32 1.0, %v5933_v4  ;;  %v13491_v59 = vpop.permute.xlu1 %4739  ;;  %v15078_v63 = vsub.s32 5, %v8106_v62 }
 0x538   : > { %vm7103_vm11 = vmpackc.low %vm4031_vm1, %vm13392_vm6  ;;  %vm3779_vm6 = vcmp.eq.f32.partialorder %v13428_v30, %v11631_v15  ;;  %v5848_v9 = vsub.f32 %v5804_v17, %v5844_v61  ;;  %v15089_v4 = vmov 0  ;;  %s5966_s14 = scvt.s32.f32 %s7395_s28 }
 0x539   : > { %vm13417_vm5 = vmand %vm5030_vm3, %vm15053_vm7  ;;  %7104 = vmatpush1.bf16.msk.msra.mxu0 %vm7103_vm11, %v14399_v27  ;;  %vm4902_vm11 = vcmp.gt.f32.partialorder %v13364_v19, %v11308_v46  ;;  %v5939_v52 = vrot.slane %v5935_v57, 1 }
 0x53a   : > { %vm5157_vm3 = vmand %vm5029_vm0, %vm15056_vm2  ;;  %vm5920_vm0 = vcmp.ge.f32.partialorder %v13097_v8, 1.0  ;;  %vm5753_vm2 = vcmp.lt.s32.totalorder %v8148_v2, 512  ;;  %v5905_v8 = vmul.f32 %v7528_v41, %v5883_v53  ;;  %v5851_v10 = vcombine.low %v5847_v45, %v5848_v9  ;;  %v3493_v41 = vpop.permute.xlu0 %3492  ;;  %v15091_v9 = vld [vmem:[#allocation42_spill] sm:$0xff] }
 0x53b   : > { %vm5159_vm1 = vmand %vm5031_vm14, %vm15057_vm4  ;;  %vm5752_vm14 = vcmp.lt.s32.totalorder %v8158_v49, 512  ;;  %vm15059_vm4 = vcmp.lt.s32.totalorder %v15058_v43, %v8158_v49  ;;  %v5942_v6 = vsel %vm5920_vm0, %v5938_v3, 0.0  ;;  %vm3778_vm0 = vcmp.eq.f32.partialorder %v13430_v20, %v11625_v35  ;;  %v4744_v38 = vpop.permute.xlu1 %4743  ;;  %v15087_v3 = vld [vmem:[#allocation59_spill] sm:$0xff] }
 0x53c   : > { %vm5285_vm8 = vmor %vm4901_vm10, %vm5157_vm3  ;;  %vm3777_vm3 = vcmp.eq.f32.partialorder %v13430_v20, %v11631_v15  ;;  %v5946_v18 = vrot.slane %v5942_v6, 7  ;;  %v7388_v23 = vsel %vm5752_vm14, 1.0, %v14741_v1  ;;  %v7391_v19 = vrot.slane %v5851_v10, 9 }
 0x53d   : > { %vm5287_vm7 = vmor %vm4903_vm13, %vm5159_vm1  ;;  %v5907_v31 = vsub.f32 1.0, %v5905_v8  ;;  %vm3652_vm14 = vcmp.gt.f32.partialorder %v13428_v30, %v11625_v35  ;;  %v15084_v45 = vmov 0  ;;  %v15106_v10 = vmov 0 }
 0x53e   : > { %vm13467_vm10 = vmand %vm3779_vm6, %vm15059_vm4  ;;  %vm5921_vm6 = vcmp.ge.f32.partialorder %v13129_v13, 1.0  ;;  %v7389_v13 = vsel %vm5753_vm2, 1.0, %v14741_v1  ;;  %vm15068_vm2 = vcmp.lt.s32.totalorder %v15064_v36, %v8148_v2  ;;  %v5855_v55 = vmul.f32 %v13525_v54, %v7391_v19  ;;  %v3505_v6 = vpop.permute.xlu0 %3504 }
 0x53f   : > { %vm7362_vm13 = vmpackc.low %vm5287_vm7, %vm5285_vm8  ;;  %vm3650_vm7 = vcmp.gt.f32.partialorder %v13430_v20, %v11625_v35  ;;  %v5943_v58 = vsel %vm5921_vm6, %v5939_v52, 0.0  ;;  %v13528_v60 = vcombine.low %v7388_v23, %v7389_v13  ;;  %v5950_v16 = vsub.f32 %v5906_v47, %v5946_v18  ;;  %v3497_v42 = vpop.permute.xlu1 %3496  ;;  %v15109_v18 = vld [vmem:[#allocation60_spill] sm:$0xff] }
 0x540   : > { %7363 = vmatprep.subr.msk.bf16.mxu1 %vm7362_vm13, %v14399_v27  ;;  %vm13479_vm1 = vmor %vm4900_vm12, %vm13372_vm9  ;;  %vm3780_vm9 = vcmp.eq.f32.partialorder %v13428_v30, %v11625_v35  ;;  %v5947_v5 = vrot.slane %v5943_v58, 7  ;;  %v15115_v23 = vmov 0  ;;  %v15118_v52 = vmov 0  ;;  %v15128_v58 = vld [vmem:[#allocation63_spill] sm:$0xff] }
 0x541   : > { %vm5286_vm8 = vmor %vm4902_vm11, %vm13417_vm5  ;;  %vm15065_vm5 = vcmp.lt.s32.totalorder %v15064_v36, %v8158_v49  ;;  %v5860_v33 = vmul.f32 %v13528_v60, %v5855_v55  ;;  %v5957_v14 = vrot.slane %v13528_v60, 7  ;;  %v15130_v55 = vmov 0 }
 0x542   : > { %vm7364_vm12 = vmpackc.low %vm5286_vm8, %vm13479_vm1  ;;  %vm3649_vm1 = vcmp.gt.f32.partialorder %v13430_v20, %v11631_v15  ;;  %v5951_v22 = vsub.f32 %v5907_v31, %v5947_v5  ;;  %v3509_v13 = vpop.permute.xlu0 %3508  ;;  %v15122_v31 = vld [vmem:[#allocation62_spill] sm:$0xff]  ;;  %v15132_v5 = vld [vmem:[#allocation45_spill] sm:$0xff] }
 0x543   : > { %vm13509_vm11 = vmand %vm3777_vm3, %vm15065_vm5  ;;  %7365 = vmatpush1.bf16.msk.msra.mxu1 %vm7364_vm12, %v14399_v27  ;;  %vm15069_vm3 = vcmp.lt.s32.totalorder %v15058_v43, %v8148_v2  ;;  %vm5032_vm5 = vcmp.eq.f32.partialorder %v13491_v59, %v11308_v46  ;;  %v6164_v11 = vrot.slane %v5860_v33, %v14830_v51  ;;  %v6168_v17 = vrot.slane %v5860_v33, %v15073_v50  ;;  %v4752_v8 = vpop.permute.xlu1 %4751 }
 0x544   : > { %vm3906_vm4 = vmand %vm3778_vm0, %vm15068_vm2  ;;  %vm3651_vm0 = vcmp.gt.f32.partialorder %v13428_v30, %v11631_v15  ;;  %v5954_v29 = vcombine.low %v5950_v16, %v5951_v22  ;;  %vm5033_vm2 = vcmp.eq.f32.partialorder %v13491_v59, %v11298_v12  ;;  %v15075_v30 = vmov 0 }
 0x545   : > { %vm3908_vm13 = vmand %vm3780_vm9, %vm15069_vm3  ;;  %vm15070_vm3 = vcmp.lt.s32.totalorder %v15064_v36, %v8158_v49  ;;  %v15136_v22 = vmov 0 }
 0x546   : > { %vm4034_vm6 = vmor %vm3650_vm7, %vm3906_vm4  ;;  %v5956_v48 = vmul.f32 %v13525_v54, %v5954_v29  ;;  %v3521_v24 = vpop.permute.xlu0 %3520 }
 0x547   : > { %vm4036_vm8 = vmor %vm3652_vm14, %vm3908_vm13  ;;  %vm5034_vm14 = vcmp.eq.f32.partialorder %v4744_v38, %v11308_v46  ;;  %v3501_v57 = vpop.permute.xlu1 %3500 }
 0x548   : > { %vm7105_vm12 = vmpackc.low %vm4036_vm8, %vm4034_vm6  ;;  %v5959_v53 = vmul.f32 %v5957_v14, %v5956_v48  ;;  %vm4905_vm6 = vcmp.gt.f32.partialorder %v13491_v59, %v11298_v12  ;;  %vm4907_vm8 = vcmp.gt.f32.partialorder %v4744_v38, %v11298_v12  ;;  %v15148_v48 = vmov 0 }
 0x549   : > { %7106 = vmatprep.subr.msk.bf16.mxu0 %vm7105_vm12, %v14399_v27  ;;  %vm4033_vm9 = vmor %vm3649_vm1, %vm13509_vm11  ;;  %vm5035_vm11 = vcmp.eq.f32.partialorder %v4744_v38, %v11298_v12  ;;  %vm15077_vm12 = vcmp.lt.s32.totalorder %v15064_v36, %v8148_v2  ;;  %v15124_v36 = vmov 0 }
 0x54a   : > { %vm4035_vm7 = vmor %vm3651_vm0, %vm13467_vm10  ;;  %vm15074_vm10 = vcmp.lt.s32.totalorder %v15058_v43, %v8158_v49  ;;  %vm3781_vm0 = vcmp.eq.f32.partialorder %v3493_v41, %v11631_v15  ;;  %v6175_v20 = vrot.slane %v5959_v53, %v14743_v28  ;;  %v6179_v0 = vrot.slane %v5959_v53, %v15078_v63 }
 0x54b   : > { %vm7107_vm4 = vmpackc.low %vm4035_vm7, %vm4033_vm9  ;;  %vm15079_vm9 = vcmp.lt.s32.totalorder %v15058_v43, %v8148_v2  ;;  %v4756_v47 = vpop.permute.xlu1 %4755  ;;  %v13894_v63 = vstv %s5966_s14 }
 0x54c   : > { %vm13556_vm13 = vmand %vm5032_vm5, %vm15070_vm3  ;;  %7108 = vmatpush1.bf16.msk.msra.mxu0 %vm7107_vm4, %v14399_v27  ;;  %vm15080_vm3 = vcmask 1040384  }
 0x54d   : > { %vm13568_vm1 = vmand %vm5034_vm14, %vm15074_vm10  ;;  %vm4904_vm14 = vcmp.gt.f32.partialorder %v13491_v59, %v11308_v46  ;;  %v13588_v44 = vsel %vm15080_vm3, %v6164_v11, %v6175_v20  ;;  %v4509_v20 = vrot.slane %v12051_v7, %v11176_v21 }
 0x54e   : > { %v15076_v30 = vsel %vm13568_vm1, 4294967295, %v15075_v30  ;;  %vm5161_vm5 = vmand %vm5033_vm2, %vm15077_vm12  ;;  %vm15083_vm2 = vcmp.lt.s32.totalorder %v15082_v40, %v8158_v49  ;;  %vm3783_vm1 = vcmp.eq.f32.partialorder %v3497_v42, %v11631_v15 }
 0x54f   : > { %vm5163_vm7 = vmand %vm5035_vm11, %vm15079_vm9  ;;  %vm4906_vm11 = vcmp.gt.f32.partialorder %v4744_v38, %v11308_v46  ;;  %v4760_v59 = vpop.permute.xlu1 %4759  ;;  %v15138_v38 = vld [vmem:[#allocation65_spill] sm:$0xff]  ;;  %v4520_v7 = vpack.c.bf16 %v4509_v20, %v4509_v20 }
 0x550   : > { %vm5289_vm4 = vmor %vm4905_vm6, %vm5161_vm5  ;;  %vm3782_vm5 = vcmp.eq.f32.partialorder %v3493_v41, %v11625_v35 }
 0x551   : > { %vm15081_vm10 = vmmov %vm15080_vm3  ;;  %vm15086_vm3 = vnez %v15076_v30 }
 0x552   : > { %v13591_v61 = vsel %vm15081_vm10, %v6168_v17, %v6179_v0  ;;  %vm13596_vm12 = vmand %vm3781_vm0, %vm15083_vm2  ;;  %vm3784_vm0 = vcmp.eq.f32.partialorder %v3497_v42, %v11625_v35  ;;  %v3254_v17 = vrot.slane %v12029_v39, %v11176_v21 }
 0x553   : > { %v15085_v45 = vsel %vm13596_vm12, 4294967295, %v15084_v45  ;;  %vm5291_vm9 = vmor %vm4907_vm8, %vm5163_vm7  ;;  %vm15088_vm12 = vcmp.lt.s32.totalorder %v15087_v3, %v8158_v49  ;;  %vm3656_vm7 = vcmp.gt.f32.partialorder %v3497_v42, %v11625_v35  ;;  %v3513_v19 = vpop.permute.xlu1 %3512 }
 0x554   : > { %vm7366_vm15 = vmpackc.low %vm5291_vm9, %vm5289_vm4  ;;  %v3265_v39 = vpack.c.bf16 %v3254_v17, %v3254_v17 }
 0x555   : > { %7367 = vmatprep.subr.msk.bf16.mxu1 %vm7366_vm15, %v14399_v27  ;;  %vm5288_vm6 = vmor %vm4904_vm14, %vm13556_vm13  ;;  %vm3654_vm15 = vcmp.gt.f32.partialorder %v3493_v41, %v11625_v35  ;;  %vm5036_vm13 = vcmp.eq.f32.partialorder %v15091_v9, %v11308_v46  ;;  %vm15092_vm14 = vcmp.lt.s32.totalorder %v15082_v40, %v8148_v2 }
 0x556   : > { %vm5290_vm10 = vmor %vm4906_vm11, %vm15086_vm3  ;;  %vm15093_vm11 = vcmp.lt.s32.totalorder %v15087_v3, %v8148_v2 }
 0x557   : > { %vm7368_vm2 = vmpackc.low %vm5290_vm10, %vm5288_vm6  ;;  %vm15094_vm6 = vcmp.lt.s32.totalorder %v15082_v40, %v8158_v49  ;;  %vm3655_vm10 = vcmp.gt.f32.partialorder %v3497_v42, %v11631_v15  ;;  %v4768_v16 = vpop.permute.xlu1 %4767 }
 0x558   : > { %vm13612_vm8 = vmand %vm3783_vm1, %vm15088_vm12  ;;  %7369 = vmatpush1.bf16.msk.msra.mxu1 %vm7368_vm2, %v14399_v27  ;;  %vm3653_vm12 = vcmp.gt.f32.partialorder %v3493_v41, %v11631_v15 }
 0x559   : > { %v15090_v4 = vsel %vm13612_vm8, 4294967295, %v15089_v4  ;;  %vm3910_vm4 = vmand %vm3782_vm5, %vm15092_vm14  ;;  %vm5038_vm5 = vcmp.eq.f32.partialorder %v4752_v8, %v11308_v46 }
 0x55a   : > { %vm3912_vm1 = vmand %vm3784_vm0, %vm15093_vm11  ;;  %vm15097_vm0 = vnez %v15085_v45  ;;  %vm5039_vm11 = vcmp.eq.f32.partialorder %v4752_v8, %v11298_v12 }
 0x55b   : > { %vm4038_vm9 = vmor %vm3654_vm15, %vm3910_vm4  ;;  %vm5037_vm15 = vcmp.eq.f32.partialorder %v15091_v9, %v11298_v12  ;;  %vm15098_vm4 = vnez %v15090_v4  ;;  %v3517_v29 = vpop.permute.xlu1 %3516 }
 0x55c   : > { %vm13631_vm3 = vmand %vm5036_vm13, %vm15094_vm6 }
 0x55d   : > { %vm4040_vm2 = vmor %vm3656_vm7, %vm3912_vm1  ;;  %vm15099_vm7 = vcmp.lt.s32.totalorder %v15087_v3, %v8158_v49 }
 0x55e   : > { %vm7109_vm8 = vmpackc.low %vm4040_vm2, %vm4038_vm9  ;;  %vm15102_vm9 = vcmp.lt.s32.totalorder %v15082_v40, %v8148_v2  ;;  %vm3787_vm2 = vcmp.eq.f32.partialorder %v3505_v6, %v11631_v15 }
 0x55f   : > { %7110 = vmatprep.subr.msk.bf16.mxu0 %vm7109_vm8, %v14399_v27  ;;  %vm4037_vm14 = vmor %vm3653_vm12, %vm15097_vm0  ;;  %vm4909_vm8 = vcmp.gt.f32.partialorder %v15091_v9, %v11298_v12  ;;  %vm4911_vm12 = vcmp.gt.f32.partialorder %v4752_v8, %v11298_v12  ;;  %v4772_v50 = vpop.permute.xlu1 %4771 }
 0x560   : > { %vm4039_vm13 = vmor %vm3655_vm10, %vm15098_vm4 }
 0x561   : > { %vm7111_vm6 = vmpackc.low %vm4039_vm13, %vm4037_vm14  ;;  %vm4908_vm14 = vcmp.gt.f32.partialorder %v15091_v9, %v11308_v46  ;;  %vm4910_vm13 = vcmp.gt.f32.partialorder %v4752_v8, %v11308_v46 }
 0x562   : > { %vm13648_vm1 = vmand %vm5038_vm5, %vm15099_vm7  ;;  %7112 = vmatpush1.bf16.msk.msra.mxu0 %vm7111_vm6, %v14399_v27  ;;  %vm15103_vm5 = vcmp.lt.s32.totalorder %v15087_v3, %v8148_v2  ;;  %vm15105_vm7 = vcmp.lt.s32.totalorder %v15104_v56, %v8158_v49 }
 0x563   : > { %v15101_v26 = vsel %vm13648_vm1, 4294967295, %v15100_v26  ;;  %vm5165_vm10 = vmand %vm5037_vm15, %vm15102_vm9  ;;  %vm3785_vm9 = vcmp.eq.f32.partialorder %v3501_v57, %v11631_v15  ;;  %v4776_v30 = vpop.permute.xlu1 %4775 }
 0x564   : > { %vm5167_vm0 = vmand %vm5039_vm11, %vm15103_vm5  ;;  %vm3788_vm5 = vcmp.eq.f32.partialorder %v3505_v6, %v11625_v35 }
 0x565   : > { %vm5293_vm4 = vmor %vm4909_vm8, %vm5165_vm10  ;;  %vm3786_vm8 = vcmp.eq.f32.partialorder %v3501_v57, %v11625_v35  ;;  %vm15108_vm10 = vnez %v15101_v26 }
 0x566   : > { %vm5295_vm6 = vmor %vm4911_vm12, %vm5167_vm0  ;;  %vm15110_vm0 = vcmp.lt.s32.totalorder %v15109_v18, %v8158_v49 }
 0x567   : > { %vm13669_vm1 = vmand %vm3787_vm2, %vm15105_vm7  ;;  %vm3660_vm7 = vcmp.gt.f32.partialorder %v3505_v6, %v11625_v35 }
 0x568   : > { %v15107_v10 = vsel %vm13669_vm1, 4294967295, %v15106_v10  ;;  %vm7370_vm15 = vmpackc.low %vm5295_vm6, %vm5293_vm4  ;;  %vm3658_vm6 = vcmp.gt.f32.partialorder %v3501_v57, %v11625_v35 }
 0x569   : > { %7371 = vmatprep.subr.msk.bf16.mxu1 %vm7370_vm15, %v14399_v27  ;;  %vm5292_vm11 = vmor %vm4908_vm14, %vm13631_vm3  ;;  %vm15111_vm3 = vcmp.lt.s32.totalorder %v15109_v18, %v8148_v2 }
 0x56a   : > { %vm5294_vm12 = vmor %vm4910_vm13, %vm15108_vm10  ;;  %vm15112_vm13 = vcmp.lt.s32.totalorder %v15104_v56, %v8148_v2 }
 0x56b   : > { %vm7372_vm2 = vmpackc.low %vm5294_vm12, %vm5292_vm11  ;;  %vm3657_vm11 = vcmp.gt.f32.partialorder %v3501_v57, %v11631_v15  ;;  %vm3659_vm12 = vcmp.gt.f32.partialorder %v3505_v6, %v11631_v15 }
 0x56c   : > { %vm3913_vm4 = vmand %vm3785_vm9, %vm15110_vm0  ;;  %7373 = vmatpush1.bf16.msk.msra.mxu1 %vm7372_vm2, %v14399_v27  ;;  %vm5040_vm0 = vcmp.eq.f32.partialorder %v4756_v47, %v11308_v46 }
 0x56d   : > { %vm3914_vm14 = vmand %vm3786_vm8, %vm15111_vm3  ;;  %vm15113_vm3 = vnez %v15107_v10 }
 0x56e   : > { %vm3916_vm15 = vmand %vm3788_vm5, %vm15112_vm13  ;;  %vm5042_vm5 = vcmp.eq.f32.partialorder %v4760_v59, %v11308_v46  ;;  %vm5041_vm13 = vcmp.eq.f32.partialorder %v4756_v47, %v11298_v12 }
 0x56f   : > { %vm4042_vm10 = vmor %vm3658_vm6, %vm3914_vm14  ;;  %vm15114_vm14 = vcmp.lt.s32.totalorder %v15109_v18, %v8158_v49 }
 0x570   : > { %vm4044_vm9 = vmor %vm3660_vm7, %vm3916_vm15  ;;  %vm5043_vm15 = vcmp.eq.f32.partialorder %v4760_v59, %v11298_v12 }
 0x571   : > { %vm7113_vm2 = vmpackc.low %vm4044_vm9, %vm4042_vm10  ;;  %vm3789_vm10 = vcmp.eq.f32.partialorder %v3509_v13, %v11631_v15  ;;  %vm15120_vm9 = vcmp.lt.s32.totalorder %v15109_v18, %v8148_v2 }
 0x572   : > { %7114 = vmatprep.subr.msk.bf16.mxu0 %vm7113_vm2, %v14399_v27  ;;  %vm4041_vm1 = vmor %vm3657_vm11, %vm3913_vm4  ;;  %vm15117_vm4 = vcmp.lt.s32.totalorder %v15104_v56, %v8158_v49 }
 0x573   : > { %vm4043_vm8 = vmor %vm3659_vm12, %vm15113_vm3  ;;  %vm4915_vm12 = vcmp.gt.f32.partialorder %v4760_v59, %v11298_v12 }
 0x574   : > { %vm7115_vm6 = vmpackc.low %vm4043_vm8, %vm4041_vm1  ;;  %vm4913_vm1 = vcmp.gt.f32.partialorder %v4756_v47, %v11298_v12  ;;  %vm4912_vm8 = vcmp.gt.f32.partialorder %v4756_v47, %v11308_v46 }
 0x575   : > { %vm13704_vm7 = vmand %vm5040_vm0, %vm15114_vm14  ;;  %7116 = vmatpush1.bf16.msk.msra.mxu0 %vm7115_vm6, %v14399_v27  ;;  %vm15121_vm0 = vcmp.lt.s32.totalorder %v15104_v56, %v8148_v2  ;;  %vm15123_vm6 = vcmp.lt.s32.totalorder %v15122_v31, %v8158_v49 }
 0x576   : > { %v15116_v23 = vsel %vm13704_vm7, 4294967295, %v15115_v23  ;;  %vm13713_vm11 = vmand %vm5042_vm5, %vm15117_vm4  ;;  %vm4914_vm4 = vcmp.gt.f32.partialorder %v4760_v59, %v11308_v46 }
 0x577   : > { %v15119_v52 = vsel %vm13713_vm11, 4294967295, %v15118_v52  ;;  %vm5169_vm2 = vmand %vm5041_vm13, %vm15120_vm9  ;;  %vm3791_vm13 = vcmp.eq.f32.partialorder %v3513_v19, %v11631_v15 }
 0x578   : > { %vm5171_vm3 = vmand %vm5043_vm15, %vm15121_vm0  ;;  %vm15126_vm15 = vnez %v15116_v23  ;;  %vm3792_vm0 = vcmp.eq.f32.partialorder %v3513_v19, %v11625_v35 }
 0x579   : > { %vm5297_vm5 = vmor %vm4913_vm1, %vm5169_vm2  ;;  %vm3790_vm1 = vcmp.eq.f32.partialorder %v3509_v13, %v11625_v35  ;;  %vm15127_vm2 = vnez %v15119_v52 }
 0x57a   : > { %vm13730_vm14 = vmand %vm3789_vm10, %vm15123_vm6 }
 0x57b   : > { %v15125_v36 = vsel %vm13730_vm14, 4294967295, %v15124_v36  ;;  %vm5299_vm11 = vmor %vm4915_vm12, %vm5171_vm3  ;;  %vm15129_vm12 = vcmp.lt.s32.totalorder %v15128_v58, %v8158_v49  ;;  %vm5044_vm3 = vcmp.eq.f32.partialorder %v15132_v5, %v11308_v46 }
 0x57c   : > { %vm7374_vm7 = vmpackc.low %vm5299_vm11, %vm5297_vm5  ;;  %vm3664_vm5 = vcmp.gt.f32.partialorder %v3513_v19, %v11625_v35 }
 0x57d   : > { %7375 = vmatprep.subr.msk.bf16.mxu1 %vm7374_vm7, %v14399_v27  ;;  %vm5296_vm9 = vmor %vm4912_vm8, %vm15126_vm15  ;;  %vm3662_vm7 = vcmp.gt.f32.partialorder %v3509_v13, %v11625_v35  ;;  %vm3795_vm8 = vcmp.eq.f32.partialorder %v3521_v24, %v11631_v15 }
 0x57e   : > { %vm5298_vm10 = vmor %vm4914_vm4, %vm15127_vm2  ;;  %vm15133_vm4 = vcmp.lt.s32.totalorder %v15122_v31, %v8148_v2  ;;  %vm3661_vm2 = vcmp.gt.f32.partialorder %v3509_v13, %v11631_v15 }
 0x57f   : > { %vm7376_vm6 = vmpackc.low %vm5298_vm10, %vm5296_vm9 }
 0x580   : > { %vm13746_vm11 = vmand %vm3791_vm13, %vm15129_vm12  ;;  %7377 = vmatpush1.bf16.msk.msra.mxu1 %vm7376_vm6, %v14399_v27  ;;  %vm15134_vm13 = vcmp.lt.s32.totalorder %v15128_v58, %v8148_v2  ;;  %vm15135_vm6 = vcmp.lt.s32.totalorder %v15122_v31, %v8158_v49 }
 0x581   : > { %v15131_v55 = vsel %vm13746_vm11, 4294967295, %v15130_v55  ;;  %vm3918_vm15 = vmand %vm3790_vm1, %vm15133_vm4  ;;  %vm15139_vm11 = vcmp.lt.s32.totalorder %v15138_v38, %v8158_v49  ;;  %vm3663_vm1 = vcmp.gt.f32.partialorder %v3513_v19, %v11631_v15 }
 0x582   : > { %vm3920_vm9 = vmand %vm3792_vm0, %vm15134_vm13  ;;  %vm5045_vm13 = vcmp.eq.f32.partialorder %v15132_v5, %v11298_v12 }
 0x583   : > { %vm4046_vm10 = vmor %vm3662_vm7, %vm3918_vm15  ;;  %vm5046_vm7 = vcmp.eq.f32.partialorder %v4768_v16, %v11308_v46 }
 0x584   : > { %vm13766_vm12 = vmand %vm5044_vm3, %vm15135_vm6  ;;  %vm15142_vm3 = vnez %v15125_v36 }
 0x585   : > { %v15137_v22 = vsel %vm13766_vm12, 4294967295, %v15136_v22  ;;  %vm13773_vm14 = vmand %vm3795_vm8, %vm15139_vm11  ;;  %vm3796_vm11 = vcmp.eq.f32.partialorder %v3521_v24, %v11625_v35  ;;  %vm15143_vm8 = vnez %v15131_v55  ;;  %vm5047_vm12 = vcmp.eq.f32.partialorder %v4768_v16, %v11298_v12 }
 0x586   : > { %vm4048_vm0 = vmor %vm3664_vm5, %vm3920_vm9  ;;  %vm15144_vm9 = vcmp.lt.s32.totalorder %v15128_v58, %v8158_v49 }
 0x587   : > { %vm7117_vm4 = vmpackc.low %vm4048_vm0, %vm4046_vm10  ;;  %vm4917_vm0 = vcmp.gt.f32.partialorder %v15132_v5, %v11298_v12 }
 0x588   : > { %7118 = vmatprep.subr.msk.bf16.mxu0 %vm7117_vm4, %v14399_v27  ;;  %vm4045_vm15 = vmor %vm3661_vm2, %vm15142_vm3  ;;  %vm3793_vm2 = vcmp.eq.f32.partialorder %v3517_v29, %v11631_v15  ;;  %vm4919_vm3 = vcmp.gt.f32.partialorder %v4768_v16, %v11298_v12 }
 0x589   : > { %vm4047_vm6 = vmor %vm3663_vm1, %vm15143_vm8  ;;  %vm15147_vm1 = vcmp.lt.s32.totalorder %v15138_v38, %v8148_v2  ;;  %vm15151_vm8 = vcmp.lt.s32.totalorder %v15128_v58, %v8148_v2  ;;  %v13923_v58 = vstv %s6066_s16 }
 0x58a   : > { %vm7119_vm5 = vmpackc.low %vm4047_vm6, %vm4045_vm15 }
 0x58b   : > { %vm13791_vm10 = vmand %vm5046_vm7, %vm15144_vm9  ;;  %7120 = vmatpush1.bf16.msk.msra.mxu0 %vm7119_vm5, %v14399_v27  ;;  %vm15150_vm7 = vcmp.lt.s32.totalorder %v15122_v31, %v8148_v2  ;;  %vm4916_vm5 = vcmp.gt.f32.partialorder %v15132_v5, %v11308_v46  ;;  %vm3667_vm9 = vcmp.gt.f32.partialorder %v3521_v24, %v11631_v15 }
 0x58c   : > { %vm13802_vm4 = vmand %vm3796_vm11, %vm15147_vm1  ;;  %vm15153_vm11 = vcmp.lt.s32.totalorder %v15152_v32, %v8158_v49 }
 0x58d   : > { %v15149_v48 = vsel %vm13802_vm4, 4294967295, %v15148_v48  ;;  %vm5173_vm15 = vmand %vm5045_vm13, %vm15150_vm7  ;;  %vm4918_vm13 = vcmp.gt.f32.partialorder %v4768_v16, %v11308_v46 }
 0x58e   : > { %vm5175_vm6 = vmand %vm5047_vm12, %vm15151_vm8 }
 0x58f   : > { %vm13819_vm1 = vmand %vm3793_vm2, %vm15153_vm11  ;;  %vm15158_vm2 = vnez %v15137_v22 }
 0x590   : > { %vm5301_vm4 = vmor %vm4917_vm0, %vm5173_vm15  ;;  %vm5048_vm0 = vcmp.eq.f32.partialorder %v4772_v50, %v11308_v46  ;;  %vm3794_vm15 = vcmp.eq.f32.partialorder %v3517_v29, %v11625_v35 }
 0x591   : > { %vm5303_vm7 = vmor %vm4919_vm3, %vm5175_vm6 }
 0x592   : > { %vm7378_vm12 = vmpackc.low %vm5303_vm7, %vm5301_vm4  ;;  %vm3666_vm4 = vcmp.gt.f32.partialorder %v3517_v29, %v11625_v35 }
 0x593   : > { %vm13828_vm8 = vmor %vm3667_vm9, %vm13773_vm14  ;;  %7379 = vmatprep.subr.msk.bf16.mxu1 %vm7378_vm12, %v14399_v27  ;;  %vm3668_vm14 = vcmp.gt.f32.partialorder %v3521_v24, %v11625_v35  ;;  %vm15159_vm9 = vcmp.lt.s32.totalorder %v15152_v32, %v8158_v49  ;;  %v4380_v35 = vshll.u32 %v3265_v39, 16 }
 0x594   : > { %vm5300_vm11 = vmor %vm4916_vm5, %vm15158_vm2  ;;  %vm15162_vm5 = vcmp.lt.s32.totalorder %v15152_v32, %v8148_v2  ;;  %vm15163_vm2 = vnez %v15149_v48 }
 0x595   : > { %vm5302_vm3 = vmor %vm4918_vm13, %vm13791_vm10  ;;  %vm3665_vm10 = vcmp.gt.f32.partialorder %v3517_v29, %v11631_v15 }
 0x596   : > { %vm7380_vm6 = vmpackc.low %vm5302_vm3, %vm5300_vm11 }
 0x597   : > { %7381 = vmatpush1.bf16.msk.msra.mxu1 %vm7380_vm6, %v14399_v27  ;;  %vm13845_vm7 = vmand %vm5048_vm0, %vm15159_vm9  ;;  %vm5050_vm6 = vcmp.eq.f32.partialorder %v4776_v30, %v11308_v46  ;;  %vm5051_vm9 = vcmp.eq.f32.partialorder %v4776_v30, %v11298_v12 }
 0x598   : > { %vm3922_vm12 = vmand %vm3794_vm15, %vm15162_vm5  ;;  %vm4920_vm15 = vcmp.gt.f32.partialorder %v4772_v50, %v11308_v46  ;;  %vm15164_vm5 = vcmp.lt.s32.totalorder %v15138_v38, %v8158_v49  ;;  %v5635_v49 = vshll.u32 %v4520_v7, 16 }
 0x599   : > { %vm4050_vm13 = vmor %vm3666_vm4, %vm3922_vm12 }
 0x59a   : > { %vm4052_vm11 = vmor %vm3668_vm14, %vm15163_vm2  ;;  %vm4922_vm14 = vcmp.gt.f32.partialorder %v4776_v30, %v11308_v46  ;;  %vm5049_vm2 = vcmp.eq.f32.partialorder %v4772_v50, %v11298_v12 }
 0x59b   : > { %vm7121_vm3 = vmpackc.low %vm4052_vm11, %vm4050_vm13 }
 0x59c   : > { %7122 = vmatprep.subr.msk.bf16.mxu0 %vm7121_vm3, %v14399_v27  ;;  %vm4049_vm0 = vmor %vm3665_vm10, %vm13819_vm1  ;;  %vm15165_vm1 = vnez %v14391_v25  ;;  %vm15166_vm10 = vcmp.lt.s32.totalorder %v15138_v38, %v8148_v2  ;;  %vm15167_vm3 = vcmask 1040384  }
 0x59d   : > { %vm7123_vm4 = vmpackc.low %vm13828_vm8, %vm4049_vm0  ;;  %v4391_v15 = vsel %vm15165_vm1, 1065369472, %v4380_v35  ;;  %vm4921_vm0 = vcmp.gt.f32.partialorder %v4772_v50, %v11298_v12 }
 0x59e   : > { %7124 = vmatpush1.bf16.msk.msra.mxu0 %vm7123_vm4, %v14399_v27  ;;  %vm5178_vm12 = vmand %vm5050_vm6, %vm15164_vm5  ;;  %vm4923_vm6 = vcmp.gt.f32.partialorder %v4776_v30, %v11298_v12  ;;  %vm15168_vm5 = vcmp.lt.s32.totalorder %v15152_v32, %v8148_v2 }
 0x59f   : > { %vm5179_vm13 = vmand %vm5051_vm9, %vm15166_vm10 }
 0x5a0   : > { %vm5304_vm8 = vmor %vm4920_vm15, %vm13845_vm7  ;;  %vm15169_vm15 = vnez %v14391_v25 }
 0x5a1   : > { %vm5306_vm11 = vmor %vm4922_vm14, %vm5178_vm12  ;;  %7126 = vmatmul.mubr.msk.bf16.vlgmr.msra.gmra.mrb[4].mxu0 %vm15167_vm3, %v4391_v15  ;;  %v5646_v46 = vsel %vm15169_vm15, 1065369472, %v5635_v49  ;;  %vm5962_vm12 = vcmp.eq.s32.totalorder %v13079_v34, 2 }
 0x5a2   : > { %vm7384_vm4 = vmpackc.low %vm5306_vm11, %vm5304_vm8  ;;  %v7394_v12 = vsel %vm5962_vm12, 1.0, %v14741_v1 }
 0x5a3   : > { %vm5177_vm1 = vmand %vm5049_vm2, %vm15168_vm5  ;;  %v5971_v2 = vrot.slane %v7394_v12, %v14830_v51  ;;  %v5975_v0 = vrot.slane %v7394_v12, %v14743_v28 }
 0x5a4   : > { %vm5305_vm9 = vmor %vm4921_vm0, %vm5177_vm1  ;;  %vm6062_vm1 = vcmp.eq.s32.totalorder %v13079_v34, 3  ;;  %vm6209_vm0 = vcmask 1042432  }
 0x5a5   : > { %vm5307_vm10 = vmor %vm4923_vm6, %vm5179_vm13  ;;  %v7396_v34 = vsel %vm6062_vm1, 1.0, %v14741_v1 }
 0x5a6   : > { %vm7382_vm7 = vmpackc.low %vm5307_vm10, %vm5305_vm9  ;;  %v6071_v19 = vrot.slane %v7396_v34, %v14830_v51  ;;  %v6075_v16 = vrot.slane %v7396_v34, %v14743_v28 }
 0x5a7   : > { %7383 = vmatprep.subr.msk.bf16.mxu1 %vm7382_vm7, %v14399_v27  ;;  %vm15170_vm14 = vmmov %vm15167_vm3  ;;  %vm6206_vm3 = vcmask 1041408  }
 0x5a8   : > { %7385 = vmatpush1.bf16.msk.msra.mxu1 %vm7384_vm4, %v14399_v27 }
 0x5ab   : > { %7387 = vmatmul.mubr.msk.bf16.vlgmr.msra.gmra.mrb[4].mxu1 %vm15170_vm14, %v5646_v46 }
 0x674   : > { %v13897_v27 = vpop.f32.mrb[4].mxu0 }
 0x675   : > { %v13900_v25 = vadd.f32 %v5971_v2, %v13897_v27  ;;  %v5983_v42 = vadd.f32 1.0, %v13897_v27  ;;  %v6009_v40 = vadd.f32 %v13894_v63, %v13897_v27  ;;  %v13905_v45 = vpop.f32.mrb[5].mxu0  ;;  %v6013_v3 = vrot.slane %v13897_v27, 1 }
 0x676   : > { %v13910_v4 = vadd.f32 %v5975_v0, %v13905_v45  ;;  %v5984_v9 = vadd.f32 1.0, %v13905_v45  ;;  %v4484_v8 = vpop.f32.mrb[6].mxu0  ;;  %v6010_v18 = vadd.f32 %v13894_v63, %v13905_v45  ;;  %v6014_v59 = vrot.slane %v13905_v45, 1 }
 0x677   : > { %v5985_v43 = vadd.f32 %v5983_v42, %v13894_v63  ;;  %v5989_v26 = vrot.slane %v13900_v25, 1  ;;  %v4485_v6 = vpop.f32.mrb[7].mxu0  ;;  %v6017_v57 = vsub.f32 %v6009_v40, %v6013_v3  ;;  %v6007_v12 = vsub.f32 %v13894_v63, %v13897_v27 }
 0x678   : > { %v5986_v56 = vadd.f32 %v5984_v9, %v13894_v63  ;;  %v5990_v10 = vrot.slane %v13910_v4, 1  ;;  %v6018_v52 = vsub.f32 %v6010_v18, %v6014_v59  ;;  %v6008_v8 = vsub.f32 %v13894_v63, %v13905_v45 }
 0x679   : > { %v5993_v47 = vsub.f32 %v5985_v43, %v5989_v26  ;;  %v6021_v23 = vmax.f32 %v6017_v57, 1.0  ;;  %v5981_v26 = vsub.f32 %v13894_v63, %v13900_v25  ;;  %vm6019_vm13 = vcmp.ge.f32.partialorder %v13897_v27, 1.0 }
 0x67a   : > { %v5994_v13 = vsub.f32 %v5986_v56, %v5990_v10  ;;  %v6022_v24 = vmax.f32 %v6018_v52, 1.0  ;;  %vm6020_vm2 = vcmp.ge.f32.partialorder %v13905_v45, 1.0 }
 0x67b   : > { %v5997_v31 = vrot.slane %v5993_v47, 7  ;;  %v6025_v36 = vrot.slane %v6021_v23, 7  ;;  %v5982_v47 = vsub.f32 %v13894_v63, %v13910_v4 }
 0x67c   : > { %v5998_v55 = vrot.slane %v5994_v13, 7  ;;  %v6026_v5 = vrot.slane %v6022_v24, 7 }
 0x67d   : > { %7531 = vrcp.f32 %v6025_v36 }
 0x67e   : > { %v13925_v1 = vpop.f32.mrb[4].mxu1  ;;  %7533 = vrcp.f32 %v5997_v31 }
 0x67f   : > { %v13929_v22 = vadd.f32 %v6071_v19, %v13925_v1  ;;  %v6083_v38 = vadd.f32 1.0, %v13925_v1  ;;  %v13932_v33 = vpop.f32.mrb[5].mxu1  ;;  %v6109_v51 = vadd.f32 %v13923_v58, %v13925_v1  ;;  %v6113_v29 = vrot.slane %v13925_v1, 1 }
 0x680   : > { %v5739_v14 = vpop.f32.mrb[6].mxu1  ;;  %7535 = vrcp.f32 %v6026_v5  ;;  %v13940_v50 = vadd.f32 %v6075_v16, %v13932_v33  ;;  %v6084_v17 = vadd.f32 1.0, %v13932_v33  ;;  %v6110_v39 = vadd.f32 %v13923_v58, %v13932_v33 }
 0x681   : > { %v6085_v48 = vadd.f32 %v6083_v38, %v13923_v58  ;;  %v6089_v28 = vrot.slane %v13929_v22, 1  ;;  %v5740_v32 = vpop.f32.mrb[7].mxu1  ;;  %7537 = vrcp.f32 %v5998_v55  ;;  %v6117_v11 = vsub.f32 %v6109_v51, %v6113_v29 }
 0x682   : > { %v6114_v41 = vrot.slane %v13932_v33, 1  ;;  %v6086_v35 = vadd.f32 %v6084_v17, %v13923_v58  ;;  %v6090_v20 = vrot.slane %v13940_v50, 1  ;;  %v6107_v25 = vsub.f32 %v13923_v58, %v13925_v1 }
 0x683   : > { %v6093_v53 = vsub.f32 %v6085_v48, %v6089_v28  ;;  %v6121_v30 = vmax.f32 %v6117_v11, 1.0  ;;  %v6108_v27 = vsub.f32 %v13923_v58, %v13932_v33  ;;  %v6081_v51 = vsub.f32 %v13923_v58, %v13929_v22 }
 0x684   : > { %v6118_v15 = vsub.f32 %v6110_v39, %v6114_v41  ;;  %v6094_v46 = vsub.f32 %v6086_v35, %v6090_v20  ;;  %v6082_v11 = vsub.f32 %v13923_v58, %v13940_v50  ;;  %vm6119_vm8 = vcmp.ge.f32.partialorder %v13925_v1, 1.0 }
 0x685   : > { %v6097_v7 = vrot.slane %v6093_v53, 7  ;;  %v6125_v49 = vrot.slane %v6121_v30, 7  ;;  %v6057_v39 = vrot.slane %v13528_v60, 6  ;;  %vm6120_vm11 = vcmp.ge.f32.partialorder %v13932_v33, 1.0 }
 0x686   : > { %v6122_v2 = vmax.f32 %v6118_v15, 1.0  ;;  %v6098_v42 = vrot.slane %v6094_v46, 7 }
 0x687   : > { %v7532_v0 = vpop.eup %7531  ;;  %7539 = vrcp.f32 %v6125_v49 }
 0x688   : > { %v6030_v40 = vmul.f32 %v7532_v0, %v6007_v12  ;;  %v6126_v3 = vrot.slane %v6122_v2, 7  ;;  %v7534_v9 = vpop.eup %7533  ;;  %7541 = vrcp.f32 %v6097_v7  ;;  %v15171_v12 = vsub.s32 6, %v8106_v62 }
 0x689   : > { %v6002_v10 = vmul.f32 %v7534_v9, %v5981_v26  ;;  %v6157_v9 = vrot.slane %v13528_v60, 5  ;;  %v15172_v26 = vsub.s32 7, %v8106_v62 }
 0x68a   : > { %v7536_v43 = vpop.eup %7535  ;;  %v6033_v6 = vsub.f32 1.0, %v6030_v40  ;;  %7543 = vrcp.f32 %v6126_v3 }
 0x68b   : > { %v7538_v57 = vpop.eup %7537  ;;  %v6032_v56 = vmul.f32 %v7536_v43, %v6008_v8  ;;  %7545 = vrcp.f32 %v6098_v42  ;;  %v6005_v19 = vsub.f32 1.0, %v6002_v10 }
 0x68c   : > { %v6037_v34 = vrot.slane %v6033_v6, 1  ;;  %v6004_v23 = vmul.f32 %v7538_v57, %v5982_v47 }
 0x68d   : > { %v6034_v18 = vsub.f32 1.0, %v6032_v56 }
 0x68e   : > { %v6041_v59 = vsel %vm6019_vm13, %v6037_v34, 0.0  ;;  %v6006_v55 = vsub.f32 1.0, %v6004_v23 }
 0x68f   : > { %v6045_v13 = vrot.slane %v6041_v59, 7  ;;  %v6038_v52 = vrot.slane %v6034_v18, 1 }
 0x691   : > { %v7540_v31 = vpop.eup %7539  ;;  %v6042_v36 = vsel %vm6020_vm2, %v6038_v52, 0.0  ;;  %v6049_v24 = vsub.f32 %v6005_v19, %v6045_v13 }
 0x692   : > { %v6046_v16 = vrot.slane %v6042_v36, 7  ;;  %v6130_v5 = vmul.f32 %v7540_v31, %v6107_v25  ;;  %v7542_v63 = vpop.eup %7541 }
 0x693   : > { %v6102_v28 = vmul.f32 %v7542_v63, %v6081_v51 }
 0x694   : > { %v7544_v4 = vpop.eup %7543  ;;  %v6050_v38 = vsub.f32 %v6006_v55, %v6046_v16  ;;  %v6133_v29 = vsub.f32 1.0, %v6130_v5 }
 0x695   : > { %v7546_v45 = vpop.eup %7545  ;;  %v6132_v14 = vmul.f32 %v7544_v4, %v6108_v27  ;;  %v6105_v15 = vsub.f32 1.0, %v6102_v28 }
 0x696   : > { %v6053_v48 = vcombine.low %v6049_v24, %v6050_v38  ;;  %v6137_v32 = vrot.slane %v6133_v29, 1  ;;  %v6104_v30 = vmul.f32 %v7546_v45, %v6082_v11 }
 0x697   : > { %v6134_v17 = vsub.f32 1.0, %v6132_v14 }
 0x698   : > { %v6054_v53 = vrot.slane %v6053_v48, 7  ;;  %v6141_v41 = vsel %vm6119_vm8, %v6137_v32, 0.0  ;;  %v6106_v50 = vsub.f32 1.0, %v6104_v30 }
 0x699   : > { %v6145_v35 = vrot.slane %v6141_v41, 7  ;;  %v6138_v22 = vrot.slane %v6134_v17, 1 }
 0x69a   : > { %v6056_v20 = vmul.f32 %v13525_v54, %v6054_v53 }
 0x69b   : > { %v6142_v7 = vsel %vm6120_vm11, %v6138_v22, 0.0  ;;  %v6149_v58 = vsub.f32 %v6105_v15, %v6145_v35 }
 0x69c   : > { %v6059_v49 = vmul.f32 %v6057_v39, %v6056_v20  ;;  %v6146_v1 = vrot.slane %v6142_v7, 7 }
 0x69e   : > { %v6186_v46 = vrot.slane %v6059_v49, %v11176_v21  ;;  %v6190_v2 = vrot.slane %v6059_v49, %v15171_v12  ;;  %v6150_v0 = vsub.f32 %v6106_v50, %v6146_v1 }
 0x6a0   : > { %v6207_v42 = vsel %vm6206_vm3, %v13588_v44, %v6186_v46  ;;  %v6208_v40 = vsel %vm6206_vm3, %v13591_v61, %v6190_v2  ;;  %v6153_v3 = vcombine.low %v6149_v58, %v6150_v0 }
 0x6a2   : > { %v6154_v33 = vrot.slane %v6153_v3, 6 }
 0x6a4   : > { %v6156_v8 = vmul.f32 %v13525_v54, %v6154_v33 }
 0x6a6   : > { %v6159_v43 = vmul.f32 %v6157_v9, %v6156_v8 }
 0x6a8   : > { %v6197_v21 = vrot.slane %v6159_v43, %v15002_v37  ;;  %v6201_v6 = vrot.slane %v6159_v43, %v15172_v26 }
 0x6aa   : > { %v6210_v44 = vsel %vm6209_vm0, %v6207_v42, %v6197_v21  ;;  %v6211_v61 = vsel %vm6209_vm0, %v6208_v40, %v6201_v6 }
 0x6ab   : > { %v6214_v57 = vcombine.low %v6210_v44, %v6211_v61 }
 0x6ad   : > { %6216 = vst [vmem:[%s312_s24] sm:$0xff] %v6214_v57 }
 0x6ae PF: > { %s16_s20 = sadd.s32 1, %s7663_s20   ;;  %s15173_s18 = smov %s7659_s19 }
 0x6af   : > { %p13_p3 = scmp.ge.s32.totalorder %s16_s20, 4   ;;  %s15174_s19 = smov %s15176_s22 }
 0x6b1   :  { %15 = sbr.rel (!%p13_p3) target bundleno = 2 (0x2), region = 95 }
 0x6b8   :  { %6238 = vsyncpa [#allocation4], 1 }
 0x6b9   :  { %6240 = vsyncpa [#allocation4 + $0x1], 1 }

</bundles_post_ra>
